<compile_context>
chip_gen: v7x
topology: tpu7x:2x2x1
jax: 0.10.0
libtpu: 0.0.40
codegen_flags: <defaults>
</compile_context>

<pallas_src>
import functools
import math

import jax
import jax.numpy as jnp
from jax.experimental import pallas as pl
from jax.experimental.pallas import tpu as pltpu


# ----------------------------- activation -----------------------------
_SQRT_2 = math.sqrt(2.0)
_SQRT_2_OVER_PI = math.sqrt(2.0 / math.pi)


def _erf(x):
    # Abramowitz & Stegun 7.1.26 rational approximation, |error| <= 1.5e-7
    # (~float32 eps).  Only mul/add/where + one EUP exp -> lowers everywhere.
    a1, a2, a3, a4, a5 = (0.254829592, -0.284496736, 1.421413741,
                          -1.453152027, 1.061405429)
    p = 0.3275911
    ax = jnp.abs(x)
    t = 1.0 / (1.0 + p * ax)
    poly = t * (a1 + t * (a2 + t * (a3 + t * (a4 + t * a5))))
    y = 1.0 - poly * jnp.exp(-(ax * ax))
    return jnp.where(x < 0.0, -y, y)


def _gelu(x, approximate):
    if approximate:
        # tanh approximation (EUP tanh).  NOTE: slightly different numerics
        # than torch.nn.GELU(approximate='none').
        return 0.5 * x * (1.0 + jnp.tanh(_SQRT_2_OVER_PI * (x + 0.044715 * x * x * x)))
    return 0.5 * x * (1.0 + _erf(x * (1.0 / _SQRT_2)))


# ----------------------------- kernels -----------------------------
def _mlp_fused_kernel(x_ref, w1_ref, b1_ref, w2_ref, b2_ref, out_ref, *,
                      compute_dtype, approx_gelu):
    # x_ref: (tm, C_in) row tile; weights fully VMEM-resident, single-buffered.
    x = x_ref[...].astype(compute_dtype)
    h = jnp.dot(x, w1_ref[...], preferred_element_type=jnp.float32) + b1_ref[...]
    h = _gelu(h, approx_gelu)
    y = jnp.dot(h.astype(compute_dtype), w2_ref[...],
                preferred_element_type=jnp.float32) + b2_ref[...]
    out_ref[...] = y.astype(out_ref.dtype)


def _mlp_hidden_tiled_kernel(x_ref, w1_ref, b1_ref, w2_ref, b2_ref, out_ref,
                             acc_ref, *, compute_dtype, approx_gelu):
    # grid = (row blocks, hidden blocks); hidden axis is a reduction for fc2.
    k = pl.program_id(1)

    @pl.when(k == 0)
    def _():
        acc_ref[...] = jnp.zeros_like(acc_ref)

    x = x_ref[...].astype(compute_dtype)
    h = jnp.dot(x, w1_ref[...], preferred_element_type=jnp.float32) + b1_ref[...]
    h = _gelu(h, approx_gelu)            # elementwise in hidden -> per-tile OK
    acc_ref[...] += jnp.dot(h.astype(compute_dtype), w2_ref[...],
                            preferred_element_type=jnp.float32)

    @pl.when(k == pl.num_programs(1) - 1)
    def _():
        out_ref[...] = (acc_ref[...] + b2_ref[...]).astype(out_ref.dtype)


# ----------------------------- wrapper -----------------------------
def _pick_hidden_tile(hidden):
    for th in (2048, 1024, 512, 256, 128):
        if hidden % th == 0:
            return th
    return hidden  # small / odd hidden: single slab


def mlp_pallas(x, fc1_w, fc1_b, fc2_w, fc2_b, *,
               tm=256,
               compute_dtype=jnp.bfloat16,
               approx_gelu=False,
               donate_input=False,
               force_hidden_tiling=False,
               hidden_tile=None):
    """Mlp forward.  x: (..., C_in); fc1_w: (C_in, hidden); fc2_w: (hidden, C_out)."""
    C_in, hidden = fc1_w.shape
    hidden2, C_out = fc2_w.shape
    assert hidden2 == hidden
    lead = x.shape[:-1]

    x2d = x.reshape(-1, C_in)
    R = x2d.shape[0]

    # Row tile: multiple of 8; keep >= 2 row blocks so the "parallel" grid axis
    # can shard across v7x's two TensorCores.
    tm = int(min(tm, R))
    if tm < R:
        tm = max(8, (tm // 8) * 8)
    elif R >= 16 and R % 16 == 0:
        tm = R // 2
    n_row_blocks = pl.cdiv(R, tm)
    # No host-side jnp.pad: Pallas masks the ragged last row block on writeback.

    # Pre-cast weights once (wrapper-side), keep biases in float32 (they are
    # added to the f32 accumulator, never cast in-kernel).
    w1c = fc1_w.astype(compute_dtype)
    w2c = fc2_w.astype(compute_dtype)
    b1 = fc1_b.reshape(1, hidden).astype(jnp.float32)
    b2 = fc2_b.reshape(1, C_out).astype(jnp.float32)

    out_dtype = x.dtype
    wbytes = jnp.dtype(compute_dtype).itemsize
    xbytes = jnp.dtype(x.dtype).itemsize
    obytes = jnp.dtype(out_dtype).itemsize

    cost = pl.CostEstimate(
        flops=2 * R * hidden * (C_in + C_out),
        transcendentals=R * hidden,  # one exp (or tanh) per hidden element
        bytes_accessed=(R * C_in * xbytes + R * C_out * obytes
                        + (C_in * hidden + hidden * C_out) * wbytes
                        + (hidden + C_out) * 4),
    )

    # VMEM needed by the fully-resident-weight path (weights single-buffered,
    # activation tiles double-buffered, f32 hidden temp + its bf16 cast copy).
    resident_vmem = (
        (C_in * hidden + hidden * C_out) * wbytes
        + (hidden + C_out) * 4
        + 2 * tm * C_in * xbytes + 2 * tm * C_out * obytes
        + tm * hidden * (4 + wbytes)
    )
    RESIDENT_BUDGET = 48 << 20  # conservative vs v7x's 64 MiB physical VMEM
    use_hidden_tiling = force_hidden_tiling or resident_vmem > RESIDENT_BUDGET

    if not use_hidden_tiling:
        vmem_limit = min(max(32 << 20, int(resident_vmem * 1.5) + (4 << 20)), 64 << 20)
        kernel = functools.partial(_mlp_fused_kernel,
                                   compute_dtype=compute_dtype,
                                   approx_gelu=approx_gelu)
        single = pl.Buffered(1)  # grid-invariant operands: no double buffering
        out = pl.pallas_call(
            kernel,
            out_shape=jax.ShapeDtypeStruct((R, C_out), out_dtype),
            grid=(n_row_blocks,),
            in_specs=[
                pl.BlockSpec((tm, C_in), lambda i: (i, 0)),                        # x row tile
                pl.BlockSpec((C_in, hidden), lambda i: (0, 0), pipeline_mode=single),
                pl.BlockSpec((1, hidden), lambda i: (0, 0), pipeline_mode=single),
                pl.BlockSpec((hidden, C_out), lambda i: (0, 0), pipeline_mode=single),
                pl.BlockSpec((1, C_out), lambda i: (0, 0), pipeline_mode=single),
            ],
            out_specs=pl.BlockSpec((tm, C_out), lambda i: (i, 0)),
            compiler_params=pltpu.CompilerParams(
                dimension_semantics=("parallel",),
                vmem_limit_bytes=vmem_limit),
            cost_estimate=cost,
            input_output_aliases=(
                {0: 0} if (donate_input and C_in == C_out) else {}),
        )(x2d, w1c, b1, w2c, b2)
    else:
        th = hidden_tile if hidden_tile is not None else _pick_hidden_tile(hidden)
        assert hidden % th == 0, "hidden tile must divide the hidden dim"
        n_k = hidden // th
        tiled_vmem = (
            2 * (C_in * th + th * C_out) * wbytes
            + (hidden + C_out) * 4
            + 2 * tm * C_in * xbytes + 2 * tm * C_out * obytes
            + tm * C_out * 4                 # f32 accumulator scratch
            + tm * th * (4 + wbytes)         # f32 hidden slab + cast copy
        )
        vmem_limit = min(max(32 << 20, int(tiled_vmem * 1.5) + (4 << 20)), 64 << 20)
        kernel = functools.partial(_mlp_hidden_tiled_kernel,
                                   compute_dtype=compute_dtype,
                                   approx_gelu=approx_gelu)
        out = pl.pallas_call(
            kernel,
            out_shape=jax.ShapeDtypeStruct((R, C_out), out_dtype),
            grid=(n_row_blocks, n_k),
            in_specs=[
                pl.BlockSpec((tm, C_in), lambda i, k: (i, 0)),
                pl.BlockSpec((C_in, th), lambda i, k: (0, k)),
                pl.BlockSpec((1, th), lambda i, k: (0, k)),
                pl.BlockSpec((th, C_out), lambda i, k: (k, 0)),
                pl.BlockSpec((1, C_out), lambda i, k: (0, 0)),
            ],
            out_specs=pl.BlockSpec((tm, C_out), lambda i, k: (i, 0)),
            scratch_shapes=[pltpu.VMEM((tm, C_out), jnp.float32)],
            compiler_params=pltpu.CompilerParams(
                dimension_semantics=("parallel", "arbitrary"),
                vmem_limit_bytes=vmem_limit),
            cost_estimate=cost,
        )(x2d, w1c, b1, w2c, b2)

    return out.reshape(lead + (C_out,))


# ----------------------------- pure-JAX reference -----------------------------
def mlp_reference(x, fc1_w, fc1_b, fc2_w, fc2_b):
    h = jnp.dot(x, fc1_w) + fc1_b
    h = jax.nn.gelu(h, approximate=False)  # torch.nn.GELU() (erf-based)
    return jnp.dot(h, fc2_w) + fc2_b


# ----------------------------- main -----------------------------
if __name__ == "__main__":
    B, L, C, hidden = 2, 256, 128, 512  # Mlp: in=out=128, hidden=4*128

    key = jax.random.PRNGKey(0)
    kx, k1, k2, k3, k4 = jax.random.split(key, 5)
    x = jax.random.normal(kx, (B, L, C), jnp.float32)
    fc1_w = jax.random.normal(k1, (C, hidden), jnp.float32) * 0.02
    fc1_b = jax.random.normal(k2, (hidden,), jnp.float32) * 0.02
    fc2_w = jax.random.normal(k3, (hidden, C), jnp.float32) * 0.02
    fc2_b = jax.random.normal(k4, (C,), jnp.float32) * 0.02

    ref = jax.block_until_ready(mlp_reference(x, fc1_w, fc1_b, fc2_w, fc2_b))

    # 1) default path: fused resident-weight kernel, bf16 MXU operands, f32 accumulation
    out_bf16 = jax.block_until_ready(mlp_pallas(x, fc1_w, fc1_b, fc2_w, fc2_b))
    assert out_bf16.shape == (B, L, C), out_bf16.shape
    assert bool(jnp.all(jnp.isfinite(out_bf16)))
    err_bf16 = float(jnp.max(jnp.abs(out_bf16 - ref)))
    assert bool(jnp.allclose(out_bf16, ref, atol=1e-2, rtol=1e-1)), err_bf16

    # 2) float32 operand path (closest to PyTorch numerics)
    out_f32 = jax.block_until_ready(
        mlp_pallas(x, fc1_w, fc1_b, fc2_w, fc2_b, compute_dtype=jnp.float32))
    err_f32 = float(jnp.max(jnp.abs(out_f32 - ref)))
    assert bool(jnp.allclose(out_f32, ref, atol=5e-3, rtol=5e-2)), err_f32

    # 3) hidden-dim-tiled accumulator path (large-shape / v7x fallback), forced here
    out_tiled = jax.block_until_ready(
        mlp_pallas(x, fc1_w, fc1_b, fc2_w, fc2_b, compute_dtype=jnp.float32,
                   force_hidden_tiling=True, hidden_tile=128))
    err_tiled = float(jnp.max(jnp.abs(out_tiled - ref)))
    assert bool(jnp.allclose(out_tiled, ref, atol=5e-3, rtol=5e-2)), err_tiled

    print("KERNEL_OK")
</pallas_src>

<mosaic_0001>
module attributes {stable_mosaic.version = 11 : i64} {
  func.func @_mlp_fused_kernel(%arg0: i32, %arg1: memref<256x128xf32, #tpu.memory_space<vmem>>, %arg2: memref<128x512xbf16, #tpu.memory_space<vmem>>, %arg3: memref<1x512xf32, #tpu.memory_space<vmem>>, %arg4: memref<512x128xbf16, #tpu.memory_space<vmem>>, %arg5: memref<1x128xf32, #tpu.memory_space<vmem>>, %arg6: memref<256x128xf32, #tpu.memory_space<vmem>>) attributes {dimension_semantics = [#tpu.dimension_semantics<parallel>], iteration_bounds = array<i64: 2>, scalar_prefetch = 0 : i64, scratch_operands = 0 : i64, tpu.core_type = #tpu.core_type<tc>, window_params = [{transform_indices = @transform_0, window_bounds = array<i64: 256, 128>}, {pipeline_mode = #tpu.pipeline_mode<synchronous>, transform_indices = @transform_1, window_bounds = array<i64: 128, 512>}, {pipeline_mode = #tpu.pipeline_mode<synchronous>, transform_indices = @transform_2, window_bounds = array<i64: 1, 512>}, {pipeline_mode = #tpu.pipeline_mode<synchronous>, transform_indices = @transform_3, window_bounds = array<i64: 512, 128>}, {pipeline_mode = #tpu.pipeline_mode<synchronous>, transform_indices = @transform_4, window_bounds = array<i64: 1, 128>}, {transform_indices = @transform_5, window_bounds = array<i64: 256, 128>}]} {
    %c0 = arith.constant 0 : index
    %c0_0 = arith.constant 0 : index
    %0 = vector.load %arg1[%c0, %c0_0] : memref<256x128xf32, #tpu.memory_space<vmem>>, vector<256x128xf32>
    %1 = arith.truncf %0 : vector<256x128xf32> to vector<256x128xbf16>
    %c0_1 = arith.constant 0 : index
    %c0_2 = arith.constant 0 : index
    %2 = vector.load %arg2[%c0_1, %c0_2] : memref<128x512xbf16, #tpu.memory_space<vmem>>, vector<128x512xbf16>
    %cst = arith.constant dense<0.000000e+00> : vector<256x512xf32>
    %3 = tpu.matmul %1, %2, %cst {dimension_numbers = #tpu.dot_dimension_numbers<[1], [0], [0], [1], [0, 0, 1, 1], [], []>} : vector<256x128xbf16>, vector<128x512xbf16>, vector<256x512xf32> -> vector<256x512xf32>
    %c0_3 = arith.constant 0 : index
    %c0_4 = arith.constant 0 : index
    %4 = vector.load %arg3[%c0_3, %c0_4] : memref<1x512xf32, #tpu.memory_space<vmem>>, vector<1x512xf32>
    %5 = vector.broadcast %4 : vector<1x512xf32> to vector<256x512xf32>
    %6 = arith.addf %3, %5 : vector<256x512xf32>
    %cst_5 = arith.constant 5.000000e-01 : f32
    %7 = vector.broadcast %cst_5 : f32 to vector<256x512xf32>
    %8 = arith.mulf %7, %6 : vector<256x512xf32>
    %cst_6 = arith.constant 0.707106769 : f32
    %9 = vector.broadcast %cst_6 : f32 to vector<256x512xf32>
    %10 = arith.mulf %6, %9 : vector<256x512xf32>
    %11 = math.absf %10 : vector<256x512xf32>
    %cst_7 = arith.constant 0.327591091 : f32
    %12 = vector.broadcast %cst_7 : f32 to vector<256x512xf32>
    %13 = arith.mulf %12, %11 : vector<256x512xf32>
    %cst_8 = arith.constant 1.000000e+00 : f32
    %14 = vector.broadcast %cst_8 : f32 to vector<256x512xf32>
    %15 = arith.addf %14, %13 : vector<256x512xf32>
    %cst_9 = arith.constant 1.000000e+00 : f32
    %16 = vector.broadcast %cst_9 : f32 to vector<256x512xf32>
    %17 = arith.divf %16, %15 : vector<256x512xf32>
    %cst_10 = arith.constant 1.06140542 : f32
    %18 = vector.broadcast %cst_10 : f32 to vector<256x512xf32>
    %19 = arith.mulf %17, %18 : vector<256x512xf32>
    %cst_11 = arith.constant -1.45315206 : f32
    %20 = vector.broadcast %cst_11 : f32 to vector<256x512xf32>
    %21 = arith.addf %20, %19 : vector<256x512xf32>
    %22 = arith.mulf %17, %21 : vector<256x512xf32>
    %cst_12 = arith.constant 1.42141378 : f32
    %23 = vector.broadcast %cst_12 : f32 to vector<256x512xf32>
    %24 = arith.addf %23, %22 : vector<256x512xf32>
    %25 = arith.mulf %17, %24 : vector<256x512xf32>
    %cst_13 = arith.constant -0.284496725 : f32
    %26 = vector.broadcast %cst_13 : f32 to vector<256x512xf32>
    %27 = arith.addf %26, %25 : vector<256x512xf32>
    %28 = arith.mulf %17, %27 : vector<256x512xf32>
    %cst_14 = arith.constant 0.254829586 : f32
    %29 = vector.broadcast %cst_14 : f32 to vector<256x512xf32>
    %30 = arith.addf %29, %28 : vector<256x512xf32>
    %31 = arith.mulf %17, %30 : vector<256x512xf32>
    %32 = arith.mulf %11, %11 : vector<256x512xf32>
    %cst_15 = arith.constant 0.000000e+00 : f32
    %33 = vector.broadcast %cst_15 : f32 to vector<256x512xf32>
    %34 = arith.subf %33, %32 : vector<256x512xf32>
    %35 = math.exp %34 : vector<256x512xf32>
    %36 = arith.mulf %31, %35 : vector<256x512xf32>
    %cst_16 = arith.constant 1.000000e+00 : f32
    %37 = vector.broadcast %cst_16 : f32 to vector<256x512xf32>
    %38 = arith.subf %37, %36 : vector<256x512xf32>
    %cst_17 = arith.constant 0.000000e+00 : f32
    %39 = vector.broadcast %cst_17 : f32 to vector<256x512xf32>
    %40 = arith.cmpf olt, %10, %39 : vector<256x512xf32>
    %cst_18 = arith.constant 0.000000e+00 : f32
    %41 = vector.broadcast %cst_18 : f32 to vector<256x512xf32>
    %42 = arith.subf %41, %38 : vector<256x512xf32>
    %43 = arith.select %40, %42, %38 : vector<256x512xi1>, vector<256x512xf32>
    %cst_19 = arith.constant 1.000000e+00 : f32
    %44 = vector.broadcast %cst_19 : f32 to vector<256x512xf32>
    %45 = arith.addf %44, %43 : vector<256x512xf32>
    %46 = arith.mulf %8, %45 : vector<256x512xf32>
    %47 = arith.truncf %46 : vector<256x512xf32> to vector<256x512xbf16>
    %c0_20 = arith.constant 0 : index
    %c0_21 = arith.constant 0 : index
    %48 = vector.load %arg4[%c0_20, %c0_21] : memref<512x128xbf16, #tpu.memory_space<vmem>>, vector<512x128xbf16>
    %cst_22 = arith.constant dense<0.000000e+00> : vector<256x128xf32>
    %49 = tpu.matmul %47, %48, %cst_22 {dimension_numbers = #tpu.dot_dimension_numbers<[1], [0], [0], [1], [0, 0, 1, 1], [], []>} : vector<256x512xbf16>, vector<512x128xbf16>, vector<256x128xf32> -> vector<256x128xf32>
    %c0_23 = arith.constant 0 : index
    %c0_24 = arith.constant 0 : index
    %50 = vector.load %arg5[%c0_23, %c0_24] : memref<1x128xf32, #tpu.memory_space<vmem>>, vector<1x128xf32>
    %51 = vector.broadcast %50 : vector<1x128xf32> to vector<256x128xf32>
    %52 = arith.addf %49, %51 : vector<256x128xf32>
    %c0_25 = arith.constant 0 : index
    %c0_26 = arith.constant 0 : index
    %53 = vector.load %arg6[%c0_25, %c0_26] : memref<256x128xf32, #tpu.memory_space<vmem>>, vector<256x128xf32>
    tpu.vector_store %arg6[%c0_25, %c0_26], %52 {strides = array<i32>} : memref<256x128xf32, #tpu.memory_space<vmem>>, vector<256x128xf32>,
    return
  }
  func.func @transform_0(%arg0: i32) -> (i32, i32) {
    %c0_i32 = arith.constant 0 : i32
    %c0_i32_0 = arith.constant 0 : i32
    return %arg0, %c0_i32 : i32, i32
  }
  func.func @transform_1(%arg0: i32) -> (i32, i32) {
    %c0_i32 = arith.constant 0 : i32
    %c0_i32_0 = arith.constant 0 : i32
    %c0_i32_1 = arith.constant 0 : i32
    return %c0_i32, %c0_i32_0 : i32, i32
  }
  func.func @transform_2(%arg0: i32) -> (i32, i32) {
    %c0_i32 = arith.constant 0 : i32
    %c0_i32_0 = arith.constant 0 : i32
    %c0_i32_1 = arith.constant 0 : i32
    return %c0_i32, %c0_i32_0 : i32, i32
  }
  func.func @transform_3(%arg0: i32) -> (i32, i32) {
    %c0_i32 = arith.constant 0 : i32
    %c0_i32_0 = arith.constant 0 : i32
    %c0_i32_1 = arith.constant 0 : i32
    return %c0_i32, %c0_i32_0 : i32, i32
  }
  func.func @transform_4(%arg0: i32) -> (i32, i32) {
    %c0_i32 = arith.constant 0 : i32
    %c0_i32_0 = arith.constant 0 : i32
    %c0_i32_1 = arith.constant 0 : i32
    return %c0_i32, %c0_i32_0 : i32, i32
  }
  func.func @transform_5(%arg0: i32) -> (i32, i32) {
    %c0_i32 = arith.constant 0 : i32
    %c0_i32_0 = arith.constant 0 : i32
    return %arg0, %c0_i32 : i32, i32
  }
}

</mosaic_0001>

<bundles_post_ra>
// kernel: tpu_custom_call.1
= control target key start
LH: loop header
LB: loop body
LE: loop exit
PB: predicated region body
PF: predicated region fallthrough
CT: control target
= control target key end

     0   :  { %10 = vsyncpa [#allocation3], 0  ;;  %s10892_s0 = inlined_call_operand.hbm [shape: f32[512,128], index: 0, kind: input, shape index: {}]   ;;  %s10893_s1 = inlined_call_operand.hbm [shape: bf16[128,512], index: 1, kind: input, shape index: {}]   ;;  %s10894_s2 = inlined_call_operand.vmem [shape: f32[1,512], index: 2, kind: input, shape index: {}]   ;;  %s10895_s3 = inlined_call_operand.hbm [shape: bf16[512,128], index: 3, kind: input, shape index: {}]   ;;  %s10896_s4 = inlined_call_operand.vmem [shape: f32[1,128], index: 4, kind: input, shape index: {}]   ;;  %s10897_s5 = inlined_call_operand.hbm [shape: f32[512,128], index: 5, kind: output, shape index: {}]  }
   0x1   :  { %12 = vsyncpa [#allocation3 + $0x1], 0 }
   0x2   :  { %13 = vsyncpa [#allocation6], 0 }
   0x3   :  { %14 = vsyncpa [#allocation4], 0 }
   0x4   :  { %16 = vsyncpa [#allocation4 + $0x1], 0  ;;  %s6344_s18 = smov 0   ;;  %s6346_s19 = smov 0  }
   0x5   :  { %s6348_s20 = smov 0   ;;  %s6350_s21 = smov 0  }
   0x6 LB: > { %s6365_s22 = sadd.s32 4294967295, %s6299_s21   ;;  %s5166_s23 = sadd.s32 4294967294, %s6299_s21   ;;  %s6299_s21 = sphi %s6350_s21, %s11599_s21   ;;  %s6295_s20 = sphi %s6348_s20, %s11598_s20   ;;  %s6291_s19 = sphi %s6346_s19, %s11597_s19   ;;  %s6287_s18 = sphi %s6344_s18, %s11596_s18  }
   0x7   : > { %p42_p0 = scmp.ne.s32.totalorder %s6291_s19, %s6287_s18  ;;  %p10898_p1 = scmp.eq.s32.totalorder %s6365_s22, 0 }
   0x8   : > { %p156_p3 = scmp.eq.s32.totalorder %s5166_s23, 1  ;;  %p5167_p5 = scmp.ge.s32.totalorder %s6299_s21, 1 }
   0x9   : > { %p6374_p4 = por %p10898_p1, %p42_p0  ;;  %p163_p7 = scmp.lt.s32.totalorder %s6299_s21, 3 }
   0xa   : > { %p6379_p6 = por %p156_p3, %p42_p0  ;;  %s6301_s27 = smov [#allocation5]  }
   0xb   : > { %s10987_s24 = scalar_select %p6374_p4, 1, 0 }
   0xc   : > { %s10988_s25 = scalar_select %p6379_p6, 1, 0 }
   0xd   : > { %p6384_p8 = pnand %p5167_p5, %p163_p7  ;;  %s175_s28 = sshll.u32 %s6301_s27, 4  ;;  %s6388_s28 = int_to_ptr.vmem [resolvable:$true] %s175_s28 }
   0xe   : > { %s6302_s30 = smov [#allocation7]   ;;  %s6143_s9 = scalar_lea.hbm %s10893_s1, 4096 }
   0xf   : > { %p5487_p9 = pneg %p6384_p8  ;;  %s191_s6 = sshll.u32 %s6302_s30, 4  ;;  %s6399_s6 = int_to_ptr.vmem [resolvable:$true] %s191_s6 }
  0x10   : > { %p6144_p12 = scmp.ne.s32.totalorder %s10893_s1, %s6143_s9  ;;  %p6150_p5 = scmp.lt.u32.totalorder %s6143_s9, %s10893_s1 }
  0x11   : > { %p6395_p11 = pnand %p5487_p9, %p10898_p1 }
  0x13   : > { %p6145_p13 = pneg %p6395_p11 }
  0x15   : > { %p6146_p0 = pnand %p6145_p13, %p6144_p12 }
  0x17   : > { %p6147_p3 = pneg %p6146_p0 }
  0x19   : > { %p6152_p7 = pnand %p6150_p5, %p6147_p3 }
  0x1b   : > { %6155 = shalt.err (!%p6152_p7)
}
  0x1c   : > { %s6156_s14 = scalar_lea.vmem %s6388_s28, 4096  ;;  %p6164_p2 = scmp.lt.s32.totalorder %s6388_s28, %s6388_s28 }
  0x1d   : > { %p6157_p9 = scmp.ne.s32.totalorder %s6388_s28, %s6156_s14  ;;  %p6165_p12 = scmp.lt.s32.totalorder %s6156_s14, %s6156_s14 }
  0x1f   : > { %p6159_p10 = pnand %p6157_p9, %p6145_p13  ;;  %p6166_p0 = por %p6165_p12, %p6164_p2 }
  0x21   : > { %p6160_p1 = pneg %p6159_p10 }
  0x23   : > { %p6167_p6 = pnand %p6166_p0, %p6160_p1 }
  0x25   : > { %6170 = shalt.err (!%p6167_p6)
}
  0x26   : > { %s6303_s15 = smov 256   ;;  %s6304_s16 = smov 16  }
  0x27   : > { %5490 = dma.hbm_to_vmem [thread:$0]  (!%p6395_p11), %s10893_s1, 4096, %s6388_s28, [#allocation6], %s6303_s15, %s6303_s15, %s6304_s16  }
  0x28   : > { %s6171_s7 = scalar_lea.hbm %s10895_s3, 4096 }
  0x29   : > { %p6172_p2 = scmp.ne.s32.totalorder %s10895_s3, %s6171_s7  ;;  %p6178_p10 = scmp.lt.u32.totalorder %s6171_s7, %s10895_s3 }
  0x2b   : > { %p6174_p1 = pnand %p6172_p2, %p6145_p13 }
  0x2d   : > { %p6175_p6 = pneg %p6174_p1 }
  0x2f   : > { %p6180_p3 = pnand %p6178_p10, %p6175_p6 }
  0x31   : > { %6183 = shalt.err (!%p6180_p3)
}
  0x32   : > { %s6184_s28 = scalar_lea.vmem %s6399_s6, 4096  ;;  %p6192_p12 = scmp.lt.s32.totalorder %s6399_s6, %s6399_s6 }
  0x33   : > { %p6185_p5 = scmp.ne.s32.totalorder %s6399_s6, %s6184_s28  ;;  %p6193_p0 = scmp.lt.s32.totalorder %s6184_s28, %s6184_s28 }
  0x35   : > { %p6187_p7 = pnand %p6185_p5, %p6145_p13  ;;  %p6194_p2 = por %p6193_p0, %p6192_p12 }
  0x37   : > { %p6188_p9 = pneg %p6187_p7 }
  0x39   : > { %p6195_p1 = pnand %p6194_p2, %p6188_p9 }
  0x3b   : > { %6198 = shalt.err (!%p6195_p1)
}
  0x3c   : > { %s6305_s12 = smov 64   ;;  %s6306_s13 = smov 4  }
  0x3d   : > { %5493 = dma.hbm_to_vmem [thread:$0]  (!%p6395_p11), %s10895_s3, 4096, %s6399_s6, [#allocation6], %s6305_s12, %s6305_s12, %s6306_s13  }
  0x3e   : > { %s6454_s16 = sadd.s32 1, %s6299_s21   ;;  %s29_s23 = sadd.s32 1, %s6295_s20 }
  0x3f   : > { %s26_s17 = ssub.s32 %s6299_s21, %s6454_s16  ;;  %p36_p6 = scmp.ne.s32.totalorder %s6295_s20, %s6291_s19 }
  0x40   : > { %p27_p13 = scmp.eq.s32.totalorder %s26_s17, 0  ;;  %p37_p10 = scmp.eq.s32.totalorder %s6299_s21, 0 }
  0x41   : > { %p10991_p5 = scmp.eq.s32.totalorder %s6365_s22, 1  ;;  %p5504_p9 = scmp.lt.s32.totalorder %s6299_s21, 2 }
  0x42   : > { %s6463_s27 = scalar_select %p27_p13, %s6295_s20, %s29_s23  }
  0x43   : > { %p38_p3 = por %p37_p10, %p36_p6  ;;  %p6467_p7 = por %p10991_p5, %p36_p6 }
  0x44   : > { %s208_s29 = sand.u32 1, %s6295_s20   ;;  %s5249_s6 = sshll.u32 %s6299_s21, 12 }
  0x45   : > { %s10992_s30 = scalar_select %p6467_p7, 1, 0 }
  0x46   : > { %s5171_s7 = sshll.u32 %s208_s29, 8  ;;  %s6477_s10 = scalar_lea.hbm %s10892_s0, %s5249_s6 }
  0x47   : > { %s212_s11 = scalar_lea.vmem [#allocation2], %s5171_s7  ;;  %p6481_p11 = pnand %p5504_p9, %p38_p3 }
  0x48   : > { %s219_s28 = sshll.u32 %s212_s11, 4  ;;  %s6485_s13 = scalar_lea.sflag [#allocation3], %s208_s29  ;;  %s6479_s28 = int_to_ptr.vmem [resolvable:$true] %s219_s28 }
  0x49   : > { %s6199_s14 = scalar_lea.hbm %s6477_s10, 4096  ;;  %p6201_p0 = pneg %p6481_p11 }
  0x4a   : > { %p6200_p12 = scmp.ne.s32.totalorder %s6477_s10, %s6199_s14  ;;  %s6204_s23 = scalar_lea.hbm %s10892_s0, 8192 }
  0x4b   : > { %p6205_p13 = scmp.lt.u32.totalorder %s6477_s10, %s10892_s0  ;;  %p6206_p6 = scmp.lt.u32.totalorder %s6204_s23, %s6199_s14 }
  0x4c   : > { %p6202_p2 = pnand %p6201_p0, %p6200_p12  ;;  %p6208_p3 = scmp.lt.u32.totalorder %s6199_s14, %s6477_s10 }
  0x4d   : > { %p6207_p10 = por %p6206_p6, %p6205_p13 }
  0x4e   : > { %p6203_p1 = pneg %p6202_p2 }
  0x4f   : > { %p6209_p5 = por %p6208_p3, %p6207_p10 }
  0x51   : > { %p6210_p9 = pnand %p6209_p5, %p6203_p1 }
  0x53   : > { %6213 = shalt.err (!%p6210_p9)
}
  0x54   : > { %s6214_s29 = scalar_lea.vmem %s6479_s28, 4096  ;;  %s6307_s8 = smov [#allocation2]  }
  0x55   : > { %p6215_p12 = scmp.ne.s32.totalorder %s6479_s28, %s6214_s29  ;;  %s6219_s9 = sshll.u32 %s6307_s8, 4  ;;  %s6220_s9 = int_to_ptr.vmem [resolvable:$false] %s6219_s9 }
  0x56   : > { %s6221_s11 = scalar_lea.vmem %s6220_s9, 8192  ;;  %p6222_p4 = scmp.lt.s32.totalorder %s6479_s28, %s6220_s9 }
  0x57   : > { %p6217_p2 = pnand %p6215_p12, %p6201_p0  ;;  %p6223_p13 = scmp.lt.s32.totalorder %s6221_s11, %s6214_s29 }
  0x59   : > { %p6218_p7 = pneg %p6217_p2  ;;  %p6224_p6 = por %p6223_p13, %p6222_p4 }
  0x5b   : > { %p6225_p10 = pnand %p6224_p6, %p6218_p7 }
  0x5d   : > { %6228 = shalt.err (!%p6225_p10)
}
  0x5e   : > { %s6308_s14 = smov 128   ;;  %s6309_s15 = smov 8  }
  0x5f   : > { %5497 = dma.hbm_to_vmem [thread:$0]  (!%p6481_p11), %s6477_s10, 4096, %s6479_s28, %s6485_s13, %s6308_s14, %s6308_s14, %s6309_s15  }
  0x60   : > { %231 = sbr.rel (%p6384_p8) target bundleno = 1514 (0x5ea), region = 40 }
  0x67   : > { %s6516_s17 = sand.u32 1, %s6291_s19   ;;  %p10994_p4 = scmp.ne.s32.totalorder %s10987_s24, 0 }
  0x68   : > { %s5175_s23 = sshll.u32 %s6516_s17, 8  ;;  %s234_s7 = scalar_lea.sflag [#allocation3], %s6516_s17 }
  0x69   : > { %s6522_s6 = scalar_lea.vmem [#allocation2], %s5175_s23 }
  0x6a   : > { %6274 = dma.done.wait (%p10994_p4), %s234_s7, 4096  }
  0x6b   : > { %6276 = vsyncadd (%p10994_p4), %s234_s7, 4294963200  ;;  %p10995_p7 = scmp.eq.s32.totalorder %s6365_s22, 0 }
  0x6d   : > { %6278 = dma.done.wait (%p10995_p7), [#allocation6], 8192   ;;  %p10996_p8 = pmov %p10995_p7 }
  0x6e   : > { %v6310_v0 = vmov 0   ;;  %v5551_v1 = vld [vmem:[#allocation5 + $0x4] ss:$16 sps:$4 sm:$0xff]   ;;  %v5553_v2 = vld [vmem:[#allocation5 + $0xc] ss:$16 sps:$4 sm:$0xff]   ;;  %s10684_s12 = scalar_lea.vmem [#allocation8], %s5175_s23 }
  0x6f   : > { %6280 = vsyncadd (%p10996_p8), [#allocation6], 4294959104  ;;  %569 = vmatprep.mubr.bf16.mxu0 %v6310_v0  ;;  %762 = vmatprep.mubr.bf16.mxu1 %v6310_v0  ;;  %v5555_v3 = vld [vmem:[#allocation5] ss:$16 sps:$4 sm:$0xff]   ;;  %v5556_v4 = vld [vmem:[#allocation5 + $0x8] ss:$16 sps:$4 sm:$0xff]  }
  0x70   : > { %537 = vmatprep.subr.bf16.mxu0 %v5551_v1  ;;  %730 = vmatprep.subr.bf16.mxu1 %v5553_v2  ;;  %v5557_v5 = vld [vmem:[#allocation5 + $0x24] ss:$16 sps:$4 sm:$0xff]   ;;  %v5559_v6 = vld [vmem:[#allocation5 + $0x2c] ss:$16 sps:$4 sm:$0xff]   ;;  %v5561_v7 = vld [vmem:[#allocation5 + $0x20] ss:$16 sps:$4 sm:$0xff]  }
  0x71   : > { %538 = vmatpush1.bf16.msra.mxu0 %v5555_v3  ;;  %731 = vmatpush1.bf16.msra.mxu1 %v5556_v4  ;;  %v5562_v8 = vld [vmem:[#allocation5 + $0x28] ss:$16 sps:$4 sm:$0xff]   ;;  %v5563_v9 = vld [vmem:[#allocation5 + $0x44] ss:$16 sps:$4 sm:$0xff]   ;;  %v5565_v10 = vld [vmem:[#allocation5 + $0x4c] ss:$16 sps:$4 sm:$0xff]  }
  0x72   : > { %539 = vmatprep.subr.bf16.mxu0 %v5557_v5  ;;  %732 = vmatprep.subr.bf16.mxu1 %v5559_v6  ;;  %v5567_v11 = vld [vmem:[#allocation5 + $0x40] ss:$16 sps:$4 sm:$0xff]   ;;  %v5568_v12 = vld [vmem:[#allocation5 + $0x48] ss:$16 sps:$4 sm:$0xff]   ;;  %v5569_v13 = vld [vmem:[#allocation5 + $0x64] ss:$16 sps:$4 sm:$0xff]  }
  0x73   : > { %v5571_v14 = vld [vmem:[#allocation5 + $0x6c] ss:$16 sps:$4 sm:$0xff]   ;;  %v5573_v15 = vld [vmem:[#allocation5 + $0x60] ss:$16 sps:$4 sm:$0xff]   ;;  %v5574_v16 = vld [vmem:[#allocation5 + $0x68] ss:$16 sps:$4 sm:$0xff]  }
  0x74   : > { %v5575_v17 = vld [vmem:[#allocation5 + $0x84] ss:$16 sps:$4 sm:$0xff]   ;;  %v5577_v18 = vld [vmem:[#allocation5 + $0x8c] ss:$16 sps:$4 sm:$0xff]   ;;  %v5579_v19 = vld [vmem:[#allocation5 + $0x80] ss:$16 sps:$4 sm:$0xff]  }
  0x75   : > { %540 = vmatpush1.bf16.msra.mxu0 %v5561_v7  ;;  %733 = vmatpush1.bf16.msra.mxu1 %v5562_v8  ;;  %v5580_v20 = vld [vmem:[#allocation5 + $0x88] ss:$16 sps:$4 sm:$0xff]   ;;  %v5581_v21 = vld [vmem:[#allocation5 + $0xa4] ss:$16 sps:$4 sm:$0xff]   ;;  %v5583_v22 = vld [vmem:[#allocation5 + $0xac] ss:$16 sps:$4 sm:$0xff]  }
  0x76   : > { %541 = vmatprep.subr.bf16.mxu0 %v5563_v9  ;;  %734 = vmatprep.subr.bf16.mxu1 %v5565_v10  ;;  %v5585_v23 = vld [vmem:[#allocation5 + $0xa0] ss:$16 sps:$4 sm:$0xff]   ;;  %v5586_v24 = vld [vmem:[#allocation5 + $0xa8] ss:$16 sps:$4 sm:$0xff]   ;;  %v5587_v25 = vld [vmem:[#allocation5 + $0xc4] ss:$16 sps:$4 sm:$0xff]  }
  0x77   : > { %v5589_v26 = vld [vmem:[#allocation5 + $0xcc] ss:$16 sps:$4 sm:$0xff]   ;;  %v5591_v27 = vld [vmem:[#allocation5 + $0xc0] ss:$16 sps:$4 sm:$0xff]   ;;  %v5592_v28 = vld [vmem:[#allocation5 + $0xc8] ss:$16 sps:$4 sm:$0xff]  }
  0x78   : > { %v5593_v29 = vld [vmem:[#allocation5 + $0xe4] ss:$16 sps:$4 sm:$0xff]   ;;  %v5595_v30 = vld [vmem:[#allocation5 + $0xec] ss:$16 sps:$4 sm:$0xff]   ;;  %v5597_v31 = vld [vmem:[#allocation5 + $0xe0] ss:$16 sps:$4 sm:$0xff]  }
  0x79   : > { %542 = vmatpush1.bf16.msra.mxu0 %v5567_v11  ;;  %735 = vmatpush1.bf16.msra.mxu1 %v5568_v12  ;;  %v5598_v32 = vld [vmem:[#allocation5 + $0xe8] ss:$16 sps:$4 sm:$0xff]   ;;  %v275_v33 = vld [vmem:[%s6522_s6] sm:$0xff]  ;;  %v277_v38 = vld [vmem:[%s6522_s6 + $0x10] sm:$0xff]  ;;  %s5250_s13 = sshll.u32 %s6365_s22, 12  ;;  %s5074_s29 = sshll.u32 %s10684_s12, 4  ;;  %s10846_s29 = int_to_ptr.vmem [resolvable:$true] %s5074_s29 }
  0x7a   : > { %543 = vmatprep.subr.bf16.mxu0 %v5569_v13  ;;  %736 = vmatprep.subr.bf16.mxu1 %v5571_v14  ;;  %v276_v34 = vld [vmem:[%s6522_s6 + $0x8] sm:$0xff]  ;;  %v5599_v36 = vld [vmem:[#allocation7 + $0x40] sm:$0xff]   ;;  %v278_v39 = vld [vmem:[%s6522_s6 + $0x18] sm:$0xff]  ;;  %s10844_s11 = scalar_lea.hbm %s10897_s5, %s5250_s13  ;;  %s5061_s14 = scalar_lea.sflag [#allocation4], %s6516_s17 }
  0x7b   : > { %v307_v35 = vpack.c.bf16 %v276_v34, %v275_v33  ;;  %v5600_v37 = vld [vmem:[#allocation7] sm:$0xff]   ;;  %v5603_v42 = vld [vmem:[#allocation7 + $0x48] sm:$0xff]   ;;  %v308_v45 = vpack.c.bf16 %v278_v39, %v277_v38  ;;  %v5607_v47 = vld [vmem:[#allocation7 + $0x50] sm:$0xff]   ;;  %s6229_s22 = scalar_lea.vmem %s10846_s29, 4096  ;;  %p11593_p0 = scmp.ne.s32.totalorder %s10992_s30, 0 }
  0x7c   : > { %v5601_v40 = vld [vmem:[#allocation7 + $0xc0] sm:$0xff]   ;;  %v5604_v43 = vld [vmem:[#allocation7 + $0x8] sm:$0xff]   ;;  %v5608_v48 = vld [vmem:[#allocation7 + $0x10] sm:$0xff]   ;;  %p6230_p11 = scmp.ne.s32.totalorder %s10846_s29, %s6229_s22  ;;  %s6311_s15 = smov [#allocation8]  }
  0x7d   : > { %544 = vmatpush1.bf16.msra.mxu0 %v5573_v15  ;;  %737 = vmatpush1.bf16.msra.mxu1 %v5574_v16  ;;  %v5602_v41 = vld [vmem:[#allocation7 + $0x80] sm:$0xff]   ;;  %v5605_v44 = vld [vmem:[#allocation7 + $0xc8] sm:$0xff]   ;;  %v5609_v51 = vld [vmem:[#allocation7 + $0xd0] sm:$0xff]   ;;  %s6233_s23 = sshll.u32 %s6311_s15, 4  ;;  %s6234_s23 = int_to_ptr.vmem [resolvable:$false] %s6233_s23 }
  0x7e   : > { %545 = vmatprep.subr.bf16.mxu0 %v5575_v17  ;;  %738 = vmatprep.subr.bf16.mxu1 %v5577_v18  ;;  %v5606_v46 = vld [vmem:[#allocation7 + $0x88] sm:$0xff]   ;;  %v279_v49 = vld [vmem:[%s6522_s6 + $0x20] sm:$0xff]  ;;  %v5610_v52 = vld [vmem:[#allocation7 + $0x90] sm:$0xff]   ;;  %p6231_p1 = pnand %p6230_p11, %p11593_p0  ;;  %s6235_s7 = scalar_lea.vmem %s6234_s23, 8192 }
  0x7f   : > { %v280_v50 = vld [vmem:[%s6522_s6 + $0x28] sm:$0xff]  ;;  %v5611_v53 = vld [vmem:[#allocation7 + $0x58] sm:$0xff]   ;;  %v5615_v58 = vld [vmem:[#allocation7 + $0x60] sm:$0xff]   ;;  %p6236_p5 = scmp.lt.s32.totalorder %s10846_s29, %s6234_s23  ;;  %p6237_p9 = scmp.lt.s32.totalorder %s6235_s7, %s6229_s22 }
  0x80   : > { %v5612_v54 = vld [vmem:[#allocation7 + $0x18] sm:$0xff]   ;;  %v309_v56 = vpack.c.bf16 %v280_v50, %v279_v49  ;;  %v5616_v59 = vld [vmem:[#allocation7 + $0x20] sm:$0xff]   ;;  %v281_v60 = vld [vmem:[%s6522_s6 + $0x30] sm:$0xff]  ;;  %p6232_p3 = pneg %p6231_p1 }
  0x81   : > { %546 = vmatpush1.bf16.msra.mxu0 %v5579_v19  ;;  %739 = vmatpush1.bf16.msra.mxu1 %v5580_v20  ;;  %v5613_v55 = vld [vmem:[#allocation7 + $0xd8] sm:$0xff]   ;;  %v5617_v61 = vld [vmem:[#allocation7 + $0xe0] sm:$0xff]   ;;  %v284_v3 = vld [vmem:[%s6522_s6 + $0x48] sm:$0xff]  ;;  %p6238_p12 = por %p6237_p9, %p6236_p5 }
  0x82   : > { %547 = vmatprep.subr.bf16.mxu0 %v5581_v21  ;;  %740 = vmatprep.subr.bf16.mxu1 %v5583_v22  ;;  %v5614_v57 = vld [vmem:[#allocation7 + $0x98] sm:$0xff]   ;;  %v5618_v62 = vld [vmem:[#allocation7 + $0xa0] sm:$0xff]   ;;  %v285_v5 = vld [vmem:[%s6522_s6 + $0x50] sm:$0xff] }
  0x83   : > { %v282_v63 = vld [vmem:[%s6522_s6 + $0x38] sm:$0xff]  ;;  %v283_v2 = vld [vmem:[%s6522_s6 + $0x40] sm:$0xff]  ;;  %v288_v9 = vld [vmem:[%s6522_s6 + $0x68] sm:$0xff]  ;;  %p6239_p2 = pnand %p6238_p12, %p6232_p3 }
  0x84   : > { %v310_v1 = vpack.c.bf16 %v282_v63, %v281_v60  ;;  %v311_v4 = vpack.c.bf16 %v284_v3, %v283_v2  ;;  %v286_v6 = vld [vmem:[%s6522_s6 + $0x58] sm:$0xff]  ;;  %v287_v8 = vld [vmem:[%s6522_s6 + $0x60] sm:$0xff]  ;;  %v289_v11 = vld [vmem:[%s6522_s6 + $0x70] sm:$0xff] }
  0x85   : > { %548 = vmatpush1.bf16.msra.mxu0 %v5585_v23  ;;  %741 = vmatpush1.bf16.msra.mxu1 %v5586_v24  ;;  %v312_v7 = vpack.c.bf16 %v286_v6, %v285_v5  ;;  %v313_v10 = vpack.c.bf16 %v288_v9, %v287_v8  ;;  %v290_v12 = vld [vmem:[%s6522_s6 + $0x78] sm:$0xff]  ;;  %v291_v14 = vld [vmem:[%s6522_s6 + $0x80] sm:$0xff]  ;;  %v292_v15 = vld [vmem:[%s6522_s6 + $0x88] sm:$0xff] }
  0x86   : > { %549 = vmatprep.subr.bf16.mxu0 %v5587_v25  ;;  %742 = vmatprep.subr.bf16.mxu1 %v5589_v26  ;;  %v314_v13 = vpack.c.bf16 %v290_v12, %v289_v11  ;;  %v315_v16 = vpack.c.bf16 %v292_v15, %v291_v14  ;;  %v293_v17 = vld [vmem:[%s6522_s6 + $0x90] sm:$0xff]  ;;  %v294_v18 = vld [vmem:[%s6522_s6 + $0x98] sm:$0xff]  ;;  %v295_v20 = vld [vmem:[%s6522_s6 + $0xa0] sm:$0xff] }
  0x87   : > { %v316_v19 = vpack.c.bf16 %v294_v18, %v293_v17  ;;  %v296_v21 = vld [vmem:[%s6522_s6 + $0xa8] sm:$0xff]  ;;  %v297_v23 = vld [vmem:[%s6522_s6 + $0xb0] sm:$0xff]  ;;  %v298_v24 = vld [vmem:[%s6522_s6 + $0xb8] sm:$0xff] }
  0x88   : > { %v317_v22 = vpack.c.bf16 %v296_v21, %v295_v20  ;;  %v318_v25 = vpack.c.bf16 %v298_v24, %v297_v23  ;;  %v299_v26 = vld [vmem:[%s6522_s6 + $0xc0] sm:$0xff]  ;;  %v304_v33 = vld [vmem:[%s6522_s6 + $0xe8] sm:$0xff] }
  0x89   : > { %550 = vmatpush1.bf16.msra.mxu0 %v5591_v27  ;;  %743 = vmatpush1.bf16.msra.mxu1 %v5592_v28  ;;  %v300_v27 = vld [vmem:[%s6522_s6 + $0xc8] sm:$0xff] }
  0x8a   : > { %551 = vmatprep.subr.bf16.mxu0 %v5593_v29  ;;  %744 = vmatprep.subr.bf16.mxu1 %v5595_v30  ;;  %v319_v28 = vpack.c.bf16 %v300_v27, %v299_v26  ;;  %v301_v29 = vld [vmem:[%s6522_s6 + $0xd0] sm:$0xff]  ;;  %v302_v30 = vld [vmem:[%s6522_s6 + $0xd8] sm:$0xff]  ;;  %v5619_v38 = vld [vmem:[#allocation7 + $0x68] sm:$0xff]  }
  0x8b   : > { %v5620_v39 = vld [vmem:[#allocation7 + $0x28] sm:$0xff]  }
  0x8d   : > { %552 = vmatpush1.bf16.msra.mxu0 %v5597_v31  ;;  %745 = vmatpush1.bf16.msra.mxu1 %v5598_v32  ;;  %v320_v31 = vpack.c.bf16 %v302_v30, %v301_v29  ;;  %v303_v32 = vld [vmem:[%s6522_s6 + $0xe0] sm:$0xff] }
  0x8e   : > { %5251 = vmatprep.subr.bf16.mxu0 %v5599_v36  ;;  %5363 = vmatprep.subr.bf16.mxu1 %v5601_v40  ;;  %v321_v34 = vpack.c.bf16 %v304_v33, %v303_v32  ;;  %v306_v36 = vld [vmem:[%s6522_s6 + $0xf8] sm:$0xff]  ;;  %v5621_v40 = vld [vmem:[#allocation7 + $0xe8] sm:$0xff]  }
  0x90   : > { %570 = vmatmul.mubr.bf16.vlgmr.msra.gmra.mrb[0].mxu0 %v307_v35  ;;  %763 = vmatmul.mubr.bf16.vlgmr.msra.gmra.mrb[0].mxu1 %v307_v35  ;;  %v305_v35 = vld [vmem:[%s6522_s6 + $0xf0] sm:$0xff] }
  0x91   : > { %579 = vmatprep.mubr.bf16.mxu0 %v6310_v0  ;;  %772 = vmatprep.mubr.bf16.mxu1 %v6310_v0 }
  0x92   : > { %5252 = vmatpush3.bf16.msra.mxu0 %v5600_v37  ;;  %5364 = vmatpush3.bf16.msra.mxu1 %v5602_v41  ;;  %v322_v37 = vpack.c.bf16 %v306_v36, %v305_v35  ;;  %v5622_v41 = vld [vmem:[#allocation7 + $0xa8] sm:$0xff]  }
  0x93   : > { %5253 = vmatprep.subr.bf16.mxu0 %v5603_v42  ;;  %5365 = vmatprep.subr.bf16.mxu1 %v5605_v44  ;;  %v357_v42 = vlaneseq }
  0x96   : > { %5254 = vmatpush3.bf16.msra.mxu0 %v5604_v43  ;;  %5366 = vmatpush3.bf16.msra.mxu1 %v5606_v46  ;;  %v358_v43 = vshrl.u32 %v357_v42, 7 }
  0x97   : > { %5255 = vmatprep.subr.bf16.mxu0 %v5607_v47  ;;  %5367 = vmatprep.subr.bf16.mxu1 %v5609_v51 }
  0x98   : > { %580 = vmatmul.mubr.bf16.gmra.mrb[4].mxu0 %v308_v45  ;;  %773 = vmatmul.mubr.bf16.gmra.mrb[4].mxu1 %v308_v45  ;;  %v359_v44 = vsub.s32 0, %v358_v43  ;;  %v367_v45 = vsub.s32 2, %v358_v43  ;;  %v363_v60 = vsub.s32 1, %v358_v43  ;;  %v371_v11 = vsub.s32 3, %v358_v43 }
  0x99   : > { %589 = vmatprep.mubr.bf16.mxu0 %v6310_v0  ;;  %782 = vmatprep.mubr.bf16.mxu1 %v6310_v0 }
  0x9a   : > { %5256 = vmatpush3.bf16.msra.mxu0 %v5608_v48  ;;  %5368 = vmatpush3.bf16.msra.mxu1 %v5610_v52 }
  0x9b   : > { %5257 = vmatprep.subr.bf16.mxu0 %v5611_v53  ;;  %5369 = vmatprep.subr.bf16.mxu1 %v5613_v55 }
  0x9e   : > { %5258 = vmatpush3.bf16.msra.mxu0 %v5612_v54  ;;  %5370 = vmatpush3.bf16.msra.mxu1 %v5614_v57 }
  0x9f   : > { %5259 = vmatprep.subr.bf16.mxu0 %v5615_v58  ;;  %5371 = vmatprep.subr.bf16.mxu1 %v5617_v61 }
  0xa0   : > { %590 = vmatmul.mubr.bf16.gmra.mrb[8].mxu0 %v309_v56  ;;  %783 = vmatmul.mubr.bf16.gmra.mrb[8].mxu1 %v309_v56 }
  0xa1   : > { %599 = vmatprep.mubr.bf16.mxu0 %v6310_v0  ;;  %792 = vmatprep.mubr.bf16.mxu1 %v6310_v0 }
  0xa2   : > { %5260 = vmatpush3.bf16.msra.mxu0 %v5616_v59  ;;  %5372 = vmatpush3.bf16.msra.mxu1 %v5618_v62 }
  0xa3   : > { %5261 = vmatprep.subr.bf16.mxu0 %v5619_v38  ;;  %5373 = vmatprep.subr.bf16.mxu1 %v5621_v40 }
  0xa6   : > { %5262 = vmatpush3.bf16.msra.mxu0 %v5620_v39  ;;  %5374 = vmatpush3.bf16.msra.mxu1 %v5622_v41 }
  0xa8   : > { %600 = vmatmul.mubr.bf16.gmra.mrb[12].mxu0 %v310_v1  ;;  %793 = vmatmul.mubr.bf16.gmra.mrb[12].mxu1 %v310_v1 }
  0xa9   : > { %609 = vmatprep.mubr.bf16.mxu0 %v6310_v0  ;;  %802 = vmatprep.mubr.bf16.mxu1 %v6310_v0 }
  0xb0   : > { %610 = vmatmul.mubr.bf16.gmra.mrb[16].mxu0 %v311_v4  ;;  %803 = vmatmul.mubr.bf16.gmra.mrb[16].mxu1 %v311_v4 }
  0xb1   : > { %619 = vmatprep.mubr.bf16.mxu0 %v6310_v0  ;;  %812 = vmatprep.mubr.bf16.mxu1 %v6310_v0 }
  0xb8   : > { %620 = vmatmul.mubr.bf16.gmra.mrb[20].mxu0 %v312_v7  ;;  %813 = vmatmul.mubr.bf16.gmra.mrb[20].mxu1 %v312_v7 }
  0xb9   : > { %629 = vmatprep.mubr.bf16.mxu0 %v6310_v0  ;;  %822 = vmatprep.mubr.bf16.mxu1 %v6310_v0 }
  0xc0   : > { %630 = vmatmul.mubr.bf16.gmra.mrb[24].mxu0 %v313_v10  ;;  %823 = vmatmul.mubr.bf16.gmra.mrb[24].mxu1 %v313_v10 }
  0xc1   : > { %639 = vmatprep.mubr.bf16.mxu0 %v6310_v0  ;;  %832 = vmatprep.mubr.bf16.mxu1 %v6310_v0 }
  0xc8   : > { %640 = vmatmul.mubr.bf16.gmra.mrb[28].mxu0 %v314_v13  ;;  %833 = vmatmul.mubr.bf16.gmra.mrb[28].mxu1 %v314_v13 }
  0xc9   : > { %649 = vmatprep.mubr.bf16.mxu0 %v6310_v0  ;;  %842 = vmatprep.mubr.bf16.mxu1 %v6310_v0 }
  0xd0   : > { %650 = vmatmul.mubr.bf16.gmra.mrb[32].mxu0 %v315_v16  ;;  %843 = vmatmul.mubr.bf16.gmra.mrb[32].mxu1 %v315_v16 }
  0xd1   : > { %659 = vmatprep.mubr.bf16.mxu0 %v6310_v0  ;;  %852 = vmatprep.mubr.bf16.mxu1 %v6310_v0 }
  0xd8   : > { %660 = vmatmul.mubr.bf16.gmra.mrb[36].mxu0 %v316_v19  ;;  %853 = vmatmul.mubr.bf16.gmra.mrb[36].mxu1 %v316_v19 }
  0xd9   : > { %669 = vmatprep.mubr.bf16.mxu0 %v6310_v0  ;;  %862 = vmatprep.mubr.bf16.mxu1 %v6310_v0 }
  0xe0   : > { %670 = vmatmul.mubr.bf16.gmra.mrb[40].mxu0 %v317_v22  ;;  %863 = vmatmul.mubr.bf16.gmra.mrb[40].mxu1 %v317_v22 }
  0xe1   : > { %679 = vmatprep.mubr.bf16.mxu0 %v6310_v0  ;;  %872 = vmatprep.mubr.bf16.mxu1 %v6310_v0 }
  0xe8   : > { %680 = vmatmul.mubr.bf16.gmra.mrb[44].mxu0 %v318_v25  ;;  %873 = vmatmul.mubr.bf16.gmra.mrb[44].mxu1 %v318_v25 }
  0xe9   : > { %689 = vmatprep.mubr.bf16.mxu0 %v6310_v0  ;;  %882 = vmatprep.mubr.bf16.mxu1 %v6310_v0 }
  0xf0   : > { %690 = vmatmul.mubr.bf16.gmra.mrb[48].mxu0 %v319_v28  ;;  %883 = vmatmul.mubr.bf16.gmra.mrb[48].mxu1 %v319_v28 }
  0xf1   : > { %699 = vmatprep.mubr.bf16.mxu0 %v6310_v0  ;;  %892 = vmatprep.mubr.bf16.mxu1 %v6310_v0 }
  0xf8   : > { %700 = vmatmul.mubr.bf16.gmra.mrb[52].mxu0 %v320_v31  ;;  %893 = vmatmul.mubr.bf16.gmra.mrb[52].mxu1 %v320_v31 }
  0xf9   : > { %709 = vmatprep.mubr.bf16.mxu0 %v6310_v0  ;;  %902 = vmatprep.mubr.bf16.mxu1 %v6310_v0 }
 0x100   : > { %710 = vmatmul.mubr.bf16.gmra.mrb[56].mxu0 %v321_v34  ;;  %903 = vmatmul.mubr.bf16.gmra.mrb[56].mxu1 %v321_v34 }
 0x101   : > { %719 = vmatprep.mubr.bf16.mxu0 %v6310_v0  ;;  %912 = vmatprep.mubr.bf16.mxu1 %v6310_v0  ;;  %v355_v0 = vld [vmem:[%s10894_s2] sm:$0xf] }
 0x102   : > { %v6599_v46 = vrot.slane %v355_v0, %v359_v44  ;;  %v6601_v47 = vrot.slane %v355_v0, %v367_v45  ;;  %v6629_v10 = vrot.slane %v355_v0, %v363_v60  ;;  %v6650_v19 = vrot.slane %v355_v0, %v371_v11 }
 0x108   : > { %720 = vmatmul.mubr.bf16.gmra.mrb[60].mxu0 %v322_v37  ;;  %913 = vmatmul.mubr.bf16.gmra.mrb[60].mxu1 %v322_v37 }
 0x163   : > { %v571_v48 = vpop.f32.mrb[0].mxu0  ;;  %v764_v49 = vpop.f32.mrb[0].mxu1 }
 0x164   : > { %v6604_v50 = vadd.f32 %v571_v48, %v6599_v46  ;;  %v6607_v51 = vadd.f32 %v764_v49, %v6601_v47  ;;  %v573_v52 = vpop.f32.mrb[1].mxu0  ;;  %v766_v53 = vpop.f32.mrb[1].mxu1 }
 0x165   : > { %v575_v54 = vpop.f32.mrb[2].mxu0  ;;  %v768_v55 = vpop.f32.mrb[2].mxu1  ;;  %v6648_v18 = vadd.f32 %v573_v52, %v6629_v10  ;;  %v6668_v32 = vadd.f32 %v766_v53, %v6650_v19 }
 0x166   : > { %v6610_v56 = vmul.f32 0.70710677, %v6604_v50  ;;  %v6613_v57 = vmul.f32 0.70710677, %v6607_v51  ;;  %v577_v63 = vpop.f32.mrb[3].mxu0  ;;  %v770_v1 = vpop.f32.mrb[3].mxu1  ;;  %v6632_v12 = vadd.f32 %v575_v54, %v6599_v46  ;;  %v6639_v15 = vadd.f32 %v768_v55, %v6601_v47 }
 0x167   : > { %v6665_v31 = vmul.f32 0.70710677, %v6648_v18  ;;  %v6677_v40 = vadd.f32 %v577_v63, %v6629_v10  ;;  %v6683_v0 = vmul.f32 0.70710677, %v6668_v32 }
 0x168   : > { %v1179_v58 = vand.u32 2147483647, %v6610_v56  ;;  %v1181_v59 = vand.u32 2147483647, %v6613_v57  ;;  %v6642_v16 = vmul.f32 0.70710677, %v6632_v12 }
 0x169   : > { %v6645_v17 = vmul.f32 0.70710677, %v6639_v15  ;;  %v6680_v45 = vand.u32 2147483647, %v6665_v31  ;;  %v6690_v55 = vmul.f32 0.70710677, %v6677_v40 }
 0x16a   : > { %v1307_v61 = vmul.f32 0.3275911, %v1179_v58  ;;  %v1309_v62 = vmul.f32 0.3275911, %v1181_v59  ;;  %v1183_v20 = vand.u32 2147483647, %v6642_v16  ;;  %v2971_v21 = vmul.f32 %v1179_v58, %v1179_v58 }
 0x16b   : > { %v6617_v2 = vpop.f32.mrb[4].mxu0  ;;  %v6619_v3 = vpop.f32.mrb[4].mxu1  ;;  %v1185_v22 = vand.u32 2147483647, %v6645_v17  ;;  %v2973_v27 = vmul.f32 %v1181_v59, %v1181_v59  ;;  %v6698_v63 = vand.u32 2147483647, %v6683_v0 }
 0x16c   : > { %v1435_v4 = vadd.f32 1.0, %v1307_v61  ;;  %v1437_v5 = vadd.f32 1.0, %v1309_v62  ;;  %v6621_v6 = vpop.f32.mrb[5].mxu0  ;;  %v6623_v7 = vpop.f32.mrb[5].mxu1  ;;  %v1311_v24 = vmul.f32 0.3275911, %v1183_v20  ;;  %v6695_v61 = vadd.f32 %v770_v1, %v6650_v19 }
 0x16d   : > { %v6625_v8 = vpop.f32.mrb[6].mxu0  ;;  %v6627_v9 = vpop.f32.mrb[6].mxu1  ;;  %v1313_v28 = vmul.f32 0.3275911, %v1185_v22  ;;  %v3099_v35 = vsub.f32 0.0, %v2971_v21  ;;  %v3101_v43 = vsub.f32 0.0, %v2973_v27  ;;  %v2977_v21 = vmul.f32 %v1185_v22, %v1185_v22 }
 0x16e   : > { %5631 = vrcp.f32 %v1435_v4  ;;  %v6634_v13 = vpop.f32.mrb[7].mxu0  ;;  %v6636_v14 = vpop.f32.mrb[7].mxu1  ;;  %v1439_v33 = vadd.f32 1.0, %v1311_v24  ;;  %v2975_v4 = vmul.f32 %v1183_v20, %v1183_v20  ;;  %v1308_v11 = vmul.f32 0.3275911, %v6680_v45 }
 0x16f   : > { %5633 = vrcp.f32 %v1437_v5  ;;  %v1441_v36 = vadd.f32 1.0, %v1313_v28  ;;  %v3227_v49 = vmul.f32 1.442695, %v3099_v35  ;;  %v3231_v60 = vmul.f32 1.442695, %v3101_v43 }
 0x170   : > { %5635 = vrcp.f32 %v1439_v33  ;;  %v6702_v27 = vand.u32 2147483647, %v6690_v55  ;;  %v6705_v33 = vmul.f32 0.70710677, %v6695_v61  ;;  %v3105_v22 = vsub.f32 0.0, %v2977_v21 }
 0x171   : > { %5637 = vrcp.f32 %v1441_v36  ;;  %v1310_v36 = vmul.f32 0.3275911, %v6698_v63  ;;  %vm3739_vm0 = vcmp.lt.f32.partialorder %v6610_v56, 0.0  ;;  %vm3741_vm1 = vcmp.lt.f32.partialorder %v6613_v57, 0.0 }
 0x172   : > { %5639 = vpow2.f32 %v3227_v49  ;;  %vm3743_vm2 = vcmp.lt.f32.partialorder %v6642_v16, 0.0  ;;  %vm3745_vm3 = vcmp.lt.f32.partialorder %v6645_v17, 0.0  ;;  %v929_v16 = vmul.f32 0.5, %v6639_v15 }
 0x173   : > { %v6654_v23 = vpop.f32.mrb[8].mxu0  ;;  %v6656_v25 = vpop.f32.mrb[8].mxu1  ;;  %5641 = vpow2.f32 %v3231_v60  ;;  %v6710_v60 = vand.u32 2147483647, %v6705_v33  ;;  %vm3740_vm4 = vcmp.lt.f32.partialorder %v6665_v31, 0.0  ;;  %vm3742_vm5 = vcmp.lt.f32.partialorder %v6683_v0, 0.0 }
 0x174   : > { %v6658_v26 = vpop.f32.mrb[9].mxu0  ;;  %v6660_v29 = vpop.f32.mrb[9].mxu1  ;;  %vm3744_vm6 = vcmp.lt.f32.partialorder %v6690_v55, 0.0  ;;  %vm3746_vm7 = vcmp.lt.f32.partialorder %v6705_v33, 0.0 }
 0x175   : > { %v6662_v30 = vpop.f32.mrb[10].mxu0  ;;  %v6670_v34 = vpop.f32.mrb[10].mxu1 }
 0x176   : > { %10997 = vst [vmem:[#allocation12_spill] sm:$0xff] %v6662_v30  ;;  %10998 = vst [vmem:[#allocation13_spill] sm:$0xff] %v6670_v34  ;;  %v6672_v37 = vpop.f32.mrb[11].mxu0  ;;  %v6674_v38 = vpop.f32.mrb[11].mxu1  ;;  %v1314_v30 = vmul.f32 0.3275911, %v6710_v60 }
 0x177   : > { %10999 = vst [vmem:[#allocation14_spill] sm:$0xff] %v6672_v37  ;;  %11000 = vst [vmem:[#allocation15_spill] sm:$0xff] %v6674_v38 }
 0x178   : > { %v5632_v39 = vpop.eup %5631 }
 0x179   : > { %v5634_v41 = vpop.eup %5633  ;;  %v1819_v42 = vmul.f32 1.0614054, %v5632_v39 }
 0x17a   : > { %v1821_v44 = vmul.f32 1.0614054, %v5634_v41  ;;  %v5636_v1 = vpop.eup %5635 }
 0x17b   : > { %v1947_v48 = vadd.f32 -1.4531521, %v1819_v42  ;;  %v6685_v52 = vpop.f32.mrb[12].mxu0  ;;  %v6687_v53 = vpop.f32.mrb[12].mxu1  ;;  %v3103_v42 = vsub.f32 0.0, %v2975_v4 }
 0x17c   : > { %11001 = vst [vmem:[#allocation16_spill] sm:$0xff] %v6685_v52  ;;  %11002 = vst [vmem:[#allocation17_spill] sm:$0xff] %v6687_v53  ;;  %v1949_v54 = vadd.f32 -1.4531521, %v1821_v44  ;;  %v6692_v58 = vpop.f32.mrb[13].mxu0  ;;  %v5638_v20 = vpop.eup %5637  ;;  %v1436_v44 = vadd.f32 1.0, %v1308_v11  ;;  %v6716_v11 = vadd.f32 %v6617_v2, %v6599_v46 }
 0x17d   : > { %11003 = vst [vmem:[#allocation18_spill] sm:$0xff] %v6692_v58  ;;  %v2075_v59 = vmul.f32 %v5632_v39, %v1947_v48  ;;  %v1823_v48 = vmul.f32 1.0614054, %v5636_v1  ;;  %v6712_v58 = vpop.f32.mrb[13].mxu1  ;;  %v3235_v53 = vmul.f32 1.442695, %v3103_v42 }
 0x17e   : > { %v2077_v62 = vmul.f32 %v5634_v41, %v1949_v54  ;;  %v1825_v54 = vmul.f32 1.0614054, %v5638_v20  ;;  %11004 = vst [vmem:[#allocation19_spill] sm:$0xff] %v6712_v58  ;;  %5643 = vrcp.f32 %v1436_v44  ;;  %v5640_v58 = vpop.eup %5639  ;;  %v6720_v2 = vmul.f32 0.70710677, %v6716_v11 }
 0x17f   : > { %v2203_v5 = vadd.f32 1.4214138, %v2075_v59  ;;  %v1312_v59 = vmul.f32 0.3275911, %v6702_v27  ;;  %5645 = vpow2.f32 %v3235_v53  ;;  %v6935_v55 = vmul.f32 0.5, %v6716_v11 }
 0x180   : > { %v2205_v24 = vadd.f32 1.4214138, %v2077_v62  ;;  %v1953_v52 = vadd.f32 -1.4531521, %v1825_v54  ;;  %v5642_v54 = vpop.eup %5641  ;;  %vm3747_vm8 = vcmp.lt.f32.partialorder %v6720_v2, 0.0 }
 0x181   : > { %v2331_v28 = vmul.f32 %v5632_v39, %v2203_v5  ;;  %v1951_v5 = vadd.f32 -1.4531521, %v1823_v48  ;;  %v1440_v34 = vadd.f32 1.0, %v1312_v59  ;;  %v6722_v59 = vpop.f32.mrb[14].mxu0 }
 0x182   : > { %v2333_v35 = vmul.f32 %v5634_v41, %v2205_v24  ;;  %11005 = vst [vmem:[#allocation20_spill] sm:$0xff] %v6722_v59 }
 0x183   : > { %v2459_v43 = vadd.f32 -0.28449672, %v2331_v28  ;;  %v2079_v38 = vmul.f32 %v5636_v1, %v1951_v5  ;;  %v3239_v28 = vmul.f32 1.442695, %v3105_v22 }
 0x184   : > { %v2461_v49 = vadd.f32 -0.28449672, %v2333_v35  ;;  %v1438_v35 = vadd.f32 1.0, %v1310_v36 }
 0x185   : > { %v2587_v62 = vmul.f32 %v5632_v39, %v2459_v43  ;;  %v2081_v43 = vmul.f32 %v5638_v20, %v1953_v52  ;;  %v2207_v37 = vadd.f32 1.4214138, %v2079_v38  ;;  %5647 = vpow2.f32 %v3239_v28  ;;  %v5623_v52 = vld [vmem:[#allocation7 + $0x70] sm:$0xff]  }
 0x186   : > { %v2589_v24 = vmul.f32 %v5634_v41, %v2461_v49  ;;  %5649 = vrcp.f32 %v1438_v35  ;;  %v1442_v38 = vadd.f32 1.0, %v1314_v30  ;;  %5263 = vmatprep.subr.bf16.mxu0 %v5623_v52 }
 0x187   : > { %v2715_v4 = vadd.f32 0.2548296, %v2587_v62  ;;  %v2209_v42 = vadd.f32 1.4214138, %v2081_v43  ;;  %v2335_v22 = vmul.f32 %v5636_v1, %v2207_v37  ;;  %5651 = vrcp.f32 %v1440_v34 }
 0x188   : > { %v2717_v21 = vadd.f32 0.2548296, %v2589_v24  ;;  %5653 = vrcp.f32 %v1442_v38  ;;  %v6727_v28 = vpop.eup %5643 }
 0x189   : > { %v2843_v48 = vmul.f32 %v5632_v39, %v2715_v4  ;;  %v2337_v36 = vmul.f32 %v5638_v20, %v2209_v42  ;;  %v2463_v39 = vadd.f32 -0.28449672, %v2335_v22  ;;  %v5646_v34 = vpop.eup %5645  ;;  %v6730_v42 = vpop.f32.mrb[14].mxu1 }
 0x18a   : > { %v2845_v49 = vmul.f32 %v5634_v41, %v2717_v21  ;;  %11006 = vst [vmem:[#allocation21_spill] sm:$0xff] %v6730_v42 }
 0x18b   : > { %v3483_v62 = vmul.f32 %v5640_v58, %v2843_v48  ;;  %v2465_v44 = vadd.f32 -0.28449672, %v2337_v36  ;;  %v2591_v53 = vmul.f32 %v5636_v1, %v2463_v39  ;;  %v6725_v58 = vand.u32 2147483647, %v6720_v2 }
 0x18c   : > { %v3485_v5 = vmul.f32 %v5642_v54, %v2845_v49 }
 0x18d   : > { %v3611_v41 = vsub.f32 1.0, %v3483_v62  ;;  %v2593_v24 = vmul.f32 %v5638_v20, %v2465_v44  ;;  %v2719_v4 = vadd.f32 0.2548296, %v2591_v53  ;;  %v1315_v30 = vmul.f32 0.3275911, %v6725_v58 }
 0x18e   : > { %v3613_v37 = vsub.f32 1.0, %v3485_v5  ;;  %v1820_v62 = vmul.f32 1.0614054, %v6727_v28 }
 0x18f   : > { %v2721_v21 = vadd.f32 0.2548296, %v2593_v24  ;;  %v3867_v35 = vsub.f32 0.0, %v3611_v41  ;;  %v2847_v43 = vmul.f32 %v5636_v1, %v2719_v4  ;;  %v5648_v54 = vpop.eup %5647  ;;  %v1443_v38 = vadd.f32 1.0, %v1315_v30 }
 0x190   : > { %v3869_v48 = vsub.f32 0.0, %v3613_v37  ;;  %v6733_v5 = vpop.eup %5649  ;;  %v1948_v24 = vadd.f32 -1.4531521, %v1820_v62 }
 0x191   : > { %v2849_v49 = vmul.f32 %v5638_v20, %v2721_v21  ;;  %v3487_v22 = vmul.f32 %v5646_v34, %v2847_v43  ;;  %v6736_v52 = vpop.eup %5651  ;;  %v3995_v39 = vsel %vm3739_vm0, %v3867_v35, %v3611_v41  ;;  %v923_v20 = vmul.f32 0.5, %v6604_v50  ;;  %v6741_v43 = vpop.f32.mrb[15].mxu0 }
 0x192   : > { %v3997_v44 = vsel %vm3741_vm1, %v3869_v48, %v3613_v37  ;;  %v1822_v4 = vmul.f32 1.0614054, %v6733_v5  ;;  %11007 = vst [vmem:[#allocation22_spill] sm:$0xff] %v6741_v43  ;;  %v4123_v34 = vadd.f32 1.0, %v3995_v39  ;;  %v1824_v41 = vmul.f32 1.0614054, %v6736_v52  ;;  %v6745_v35 = vpop.eup %5653 }
 0x193   : > { %v3489_v36 = vmul.f32 %v5648_v54, %v2849_v49  ;;  %v3615_v1 = vsub.f32 1.0, %v3487_v22  ;;  %v4125_v57 = vadd.f32 1.0, %v3997_v44  ;;  %5655 = vrcp.f32 %v1443_v38  ;;  %v6757_v38 = vpop.f32.mrb[15].mxu1 }
 0x194   : > { %v925_v50 = vmul.f32 0.5, %v6607_v51  ;;  %v927_v37 = vmul.f32 0.5, %v6632_v12  ;;  %v2076_v54 = vmul.f32 %v6727_v28, %v1948_v24  ;;  %v1950_v62 = vadd.f32 -1.4531521, %v1822_v4  ;;  %11010 = vst [vmem:[#allocation25_spill] sm:$0xff] %v6757_v38 }
 0x195   : > { %v3617_v53 = vsub.f32 1.0, %v3489_v36  ;;  %v3871_v21 = vsub.f32 0.0, %v3615_v1  ;;  %v6752_v36 = vmul.f32 %v4123_v34, %v923_v20  ;;  %v1826_v17 = vmul.f32 1.0614054, %v6745_v35  ;;  %v5625_v20 = vld [vmem:[#allocation7 + $0xf0] sm:$0xff]  }
 0x196   : > { %v6759_v51 = vmul.f32 %v4125_v57, %v925_v50  ;;  %v2078_v15 = vmul.f32 %v6733_v5, %v1950_v62  ;;  %v2972_v34 = vmul.f32 %v6680_v45, %v6680_v45  ;;  %v5624_v57 = vld [vmem:[#allocation7 + $0x30] sm:$0xff]   ;;  %5375 = vmatprep.subr.bf16.mxu1 %v5625_v20 }
 0x197   : > { %v3873_v56 = vsub.f32 0.0, %v3617_v53  ;;  %v3999_v30 = vsel %vm3743_vm2, %v3871_v21, %v3615_v1  ;;  %11008 = vst [vmem:[#allocation23_spill] sm:$0xff] %v6752_v36  ;;  %v1952_v1 = vadd.f32 -1.4531521, %v1824_v41  ;;  %v1954_v4 = vadd.f32 -1.4531521, %v1826_v17  ;;  %5264 = vmatpush3.bf16.msra.mxu0 %v5624_v57 }
 0x198   : > { %v4127_v48 = vadd.f32 1.0, %v3999_v30  ;;  %11011 = vst [vmem:[#allocation26_spill] sm:$0xff] %v6759_v51  ;;  %v6771_v21 = vadd.f32 %v6619_v3, %v6601_v47  ;;  %v2976_v41 = vmul.f32 %v6702_v27, %v6702_v27  ;;  %v3100_v45 = vsub.f32 0.0, %v2972_v34 }
 0x199   : > { %v4001_v49 = vsel %vm3745_vm3, %v3873_v56, %v3617_v53  ;;  %v2204_v53 = vadd.f32 1.4214138, %v2076_v54  ;;  %v2080_v24 = vmul.f32 %v6736_v52, %v1952_v1  ;;  %v2974_v56 = vmul.f32 %v6698_v63, %v6698_v63  ;;  %v6786_v54 = vpop.f32.mrb[16].mxu0 }
 0x19a   : > { %v4129_v22 = vadd.f32 1.0, %v4001_v49  ;;  %v6754_v39 = vmul.f32 %v4127_v48, %v927_v37  ;;  %v2206_v37 = vadd.f32 1.4214138, %v2078_v15  ;;  %v2082_v49 = vmul.f32 %v6745_v35, %v1954_v4  ;;  %11013 = vst [vmem:[#allocation28_spill] sm:$0xff] %v6786_v54 }
 0x19b   : > { %v2332_v50 = vmul.f32 %v6727_v28, %v2204_v53  ;;  %v2208_v48 = vadd.f32 1.4214138, %v2080_v24  ;;  %v6784_v3 = vmul.f32 0.70710677, %v6771_v21  ;;  %v3102_v63 = vsub.f32 0.0, %v2974_v56 }
 0x19c   : > { %11009 = vst [vmem:[#allocation24_spill] sm:$0xff] %v6754_v39  ;;  %v6761_v12 = vmul.f32 %v4129_v22, %v929_v16  ;;  %v3104_v62 = vsub.f32 0.0, %v2976_v41  ;;  %v6789_v16 = vpop.f32.mrb[16].mxu1  ;;  %v2334_v1 = vmul.f32 %v6733_v5, %v2206_v37  ;;  %v6794_v17 = vadd.f32 %v6621_v6, %v6629_v10 }
 0x19d   : > { %v6779_v30 = vpop.eup %5655  ;;  %11014 = vst [vmem:[#allocation29_spill] sm:$0xff] %v6789_v16  ;;  %v2460_v22 = vadd.f32 -0.28449672, %v2332_v50  ;;  %v2336_v53 = vmul.f32 %v6736_v52, %v2208_v48  ;;  %v2210_v15 = vadd.f32 1.4214138, %v2082_v49  ;;  %v6802_v4 = vadd.f32 %v6623_v7, %v6650_v19 }
 0x19e   : > { %11012 = vst [vmem:[#allocation27_spill] sm:$0xff] %v6761_v12  ;;  %v1827_v27 = vmul.f32 1.0614054, %v6779_v30  ;;  %v6798_v24 = vand.u32 2147483647, %v6784_v3  ;;  %v2978_v56 = vmul.f32 %v6710_v60, %v6710_v60  ;;  %v6808_v41 = vadd.f32 %v6625_v8, %v6599_v46 }
 0x19f   : > { %v3229_v34 = vmul.f32 1.442695, %v3100_v45  ;;  %v3233_v6 = vmul.f32 1.442695, %v3102_v63  ;;  %v3237_v57 = vmul.f32 1.442695, %v3104_v62  ;;  %v2588_v37 = vmul.f32 %v6727_v28, %v2460_v22 }
 0x1a0   : > { %v1955_v50 = vadd.f32 -1.4531521, %v1827_v27  ;;  %v2462_v48 = vadd.f32 -0.28449672, %v2334_v1  ;;  %v6812_v49 = vmul.f32 0.70710677, %v6794_v17  ;;  %v2338_v45 = vmul.f32 %v6745_v35, %v2210_v15 }
 0x1a1   : > { %v2464_v7 = vadd.f32 -0.28449672, %v2336_v53  ;;  %v1317_v44 = vmul.f32 0.3275911, %v6798_v24  ;;  %v6817_v60 = vmul.f32 0.70710677, %v6802_v4  ;;  %5657 = vpow2.f32 %v3229_v34 }
 0x1a2   : > { %v3106_v8 = vsub.f32 0.0, %v2978_v56  ;;  %v6820_v63 = vmul.f32 0.70710677, %v6808_v41  ;;  %v6824_v62 = vadd.f32 %v6627_v9, %v6601_v47  ;;  %5659 = vpow2.f32 %v3233_v6  ;;  %v6827_v22 = vpop.f32.mrb[17].mxu0 }
 0x1a3   : > { %v2083_v27 = vmul.f32 %v6779_v30, %v1955_v50  ;;  %11015 = vst [vmem:[#allocation30_spill] sm:$0xff] %v6827_v22  ;;  %v2716_v1 = vadd.f32 0.2548296, %v2588_v37  ;;  %v2590_v53 = vmul.f32 %v6733_v5, %v2462_v48  ;;  %5661 = vpow2.f32 %v3237_v57 }
 0x1a4   : > { %v6831_v15 = vand.u32 2147483647, %v6812_v49  ;;  %v2592_v34 = vmul.f32 %v6736_v52, %v2464_v7  ;;  %v2466_v56 = vadd.f32 -0.28449672, %v2338_v45  ;;  %v1445_v51 = vadd.f32 1.0, %v1317_v44 }
 0x1a5   : > { %v6835_v9 = vand.u32 2147483647, %v6817_v60  ;;  %v3241_v20 = vmul.f32 1.442695, %v3106_v8  ;;  %v6838_v6 = vand.u32 2147483647, %v6820_v63  ;;  %v6845_v57 = vadd.f32 %v6634_v13, %v6629_v10 }
 0x1a6   : > { %v6841_v50 = vmul.f32 0.70710677, %v6824_v62  ;;  %v2211_v37 = vadd.f32 1.4214138, %v2083_v27  ;;  %v6849_v48 = vadd.f32 %v6636_v14, %v6650_v19  ;;  %v2844_v44 = vmul.f32 %v6727_v28, %v2716_v1 }
 0x1a7   : > { %v2718_v7 = vadd.f32 0.2548296, %v2590_v53  ;;  %v2979_v45 = vmul.f32 %v6725_v58, %v6725_v58  ;;  %v1316_v8 = vmul.f32 0.3275911, %v6831_v15  ;;  %v2720_v12 = vadd.f32 0.2548296, %v2592_v34 }
 0x1a8   : > { %11016 = vst [vmem:[#allocation31_spill] sm:$0xff] %v6841_v50  ;;  %v2594_v36 = vmul.f32 %v6745_v35, %v2466_v56  ;;  %5663 = vrcp.f32 %v1445_v51  ;;  %v1318_v13 = vmul.f32 0.3275911, %v6835_v9  ;;  %v1319_v27 = vmul.f32 0.3275911, %v6838_v6  ;;  %v5626_v53 = vld [vmem:[#allocation7 + $0xb0] sm:$0xff]  }
 0x1a9   : > { %5665 = vpow2.f32 %v3241_v20  ;;  %v6859_v14 = vand.u32 2147483647, %v6841_v50  ;;  %v6862_v28 = vmul.f32 0.70710677, %v6845_v57  ;;  %v2339_v1 = vmul.f32 %v6779_v30, %v2211_v37  ;;  %5376 = vmatpush3.bf16.msra.mxu1 %v5626_v53 }
 0x1aa   : > { %v6866_v58 = vmul.f32 0.70710677, %v6849_v48  ;;  %v2846_v51 = vmul.f32 %v6733_v5, %v2718_v7  ;;  %v3107_v56 = vsub.f32 0.0, %v2979_v45  ;;  %v1444_v39 = vadd.f32 1.0, %v1316_v8 }
 0x1ab   : > { %v5658_v34 = vpop.eup %5657  ;;  %v2848_v16 = vmul.f32 %v6736_v52, %v2720_v12  ;;  %v2722_v54 = vadd.f32 0.2548296, %v2594_v36  ;;  %v1446_v38 = vadd.f32 1.0, %v1318_v13  ;;  %v1447_v42 = vadd.f32 1.0, %v1319_v27 }
 0x1ac   : > { %v5660_v20 = vpop.eup %5659  ;;  %v3484_v22 = vmul.f32 %v5658_v34, %v2844_v44  ;;  %v1321_v37 = vmul.f32 0.3275911, %v6859_v14  ;;  %v6872_v59 = vand.u32 2147483647, %v6862_v28  ;;  %v6876_v50 = vadd.f32 %v6654_v23, %v6599_v46  ;;  %v6881_v44 = vpop.f32.mrb[17].mxu1 }
 0x1ad   : > { %v5662_v43 = vpop.eup %5661  ;;  %v2467_v5 = vadd.f32 -0.28449672, %v2339_v1  ;;  %v6879_v7 = vand.u32 2147483647, %v6866_v58  ;;  %11017 = vst [vmem:[#allocation32_spill] sm:$0xff] %v6881_v44  ;;  %v3486_v52 = vmul.f32 %v5660_v20, %v2846_v51  ;;  %5667 = vrcp.f32 %v1444_v39 }
 0x1ae   : > { %v3243_v36 = vmul.f32 1.442695, %v3107_v56  ;;  %v3612_v12 = vsub.f32 1.0, %v3484_v22  ;;  %v3488_v45 = vmul.f32 %v5662_v43, %v2848_v16  ;;  %v2850_v8 = vmul.f32 %v6745_v35, %v2722_v54  ;;  %v6892_v43 = vpop.f32.mrb[18].mxu0 }
 0x1af   : > { %5669 = vrcp.f32 %v1446_v38  ;;  %v1449_v13 = vadd.f32 1.0, %v1321_v37  ;;  %v1320_v27 = vmul.f32 0.3275911, %v6872_v59  ;;  %v6886_v23 = vmul.f32 0.70710677, %v6876_v50  ;;  %11019 = vst [vmem:[#allocation34_spill] sm:$0xff] %v6892_v43 }
 0x1b0   : > { %5671 = vrcp.f32 %v1447_v42  ;;  %v2595_v53 = vmul.f32 %v6779_v30, %v2467_v5  ;;  %v1322_v34 = vmul.f32 0.3275911, %v6879_v7  ;;  %v3614_v39 = vsub.f32 1.0, %v3486_v52 }
 0x1b1   : > { %11018 = vst [vmem:[#allocation33_spill] sm:$0xff] %v6886_v23  ;;  %5673 = vpow2.f32 %v3243_v36  ;;  %v3868_v35 = vsub.f32 0.0, %v3612_v12  ;;  %v3616_v38 = vsub.f32 1.0, %v3488_v45  ;;  %v1448_v16 = vadd.f32 1.0, %v1320_v27 }
 0x1b2   : > { %v6888_v1 = vpop.eup %5663  ;;  %5675 = vrcp.f32 %v1449_v13  ;;  %v6896_v22 = vand.u32 2147483647, %v6886_v23  ;;  %v924_v56 = vmul.f32 0.5, %v6648_v18  ;;  %v2723_v20 = vadd.f32 0.2548296, %v2595_v53 }
 0x1b3   : > { %v5666_v51 = vpop.eup %5665  ;;  %v1829_v54 = vmul.f32 1.0614054, %v6888_v1  ;;  %v1450_v37 = vadd.f32 1.0, %v1322_v34  ;;  %v926_v5 = vmul.f32 0.5, %v6668_v32  ;;  %v3870_v52 = vsub.f32 0.0, %v3614_v39  ;;  %v6911_v32 = vpop.f32.mrb[18].mxu1 }
 0x1b4   : > { %v3490_v42 = vmul.f32 %v5666_v51, %v2850_v8  ;;  %v2981_v36 = vmul.f32 %v6798_v24, %v6798_v24  ;;  %v3996_v45 = vsel %vm3740_vm4, %v3868_v35, %v3612_v12  ;;  %v3872_v8 = vsub.f32 0.0, %v3616_v38  ;;  %11020 = vst [vmem:[#allocation35_spill] sm:$0xff] %v6911_v32 }
 0x1b5   : > { %v6906_v13 = vadd.f32 %v6656_v25, %v6601_v47  ;;  %v1957_v53 = vadd.f32 -1.4531521, %v1829_v54  ;;  %5677 = vrcp.f32 %v1448_v16  ;;  %v1323_v31 = vmul.f32 0.3275911, %v6896_v22 }
 0x1b6   : > { %v3618_v18 = vsub.f32 1.0, %v3490_v42  ;;  %v928_v24 = vmul.f32 0.5, %v6677_v40  ;;  %v6917_v12 = vmul.f32 0.5, %v6695_v61  ;;  %v2851_v51 = vmul.f32 %v6779_v30, %v2723_v20 }
 0x1b7   : > { %v6908_v27 = vpop.eup %5667  ;;  %5679 = vrcp.f32 %v1450_v37  ;;  %v4124_v35 = vadd.f32 1.0, %v3996_v45  ;;  %v3998_v42 = vsel %vm3742_vm5, %v3870_v52, %v3614_v39  ;;  %v3109_v54 = vsub.f32 0.0, %v2981_v36 }
 0x1b8   : > { %v4000_v16 = vsel %vm3744_vm6, %v3872_v8, %v3616_v38  ;;  %v1828_v32 = vmul.f32 1.0614054, %v6908_v27  ;;  %v2980_v40 = vmul.f32 %v6831_v15, %v6831_v15  ;;  %v6929_v61 = vmul.f32 0.70710677, %v6906_v13 }
 0x1b9   : > { %v6913_v34 = vpop.eup %5669  ;;  %v3874_v20 = vsub.f32 0.0, %v3618_v18  ;;  %v2085_v37 = vmul.f32 %v6888_v1, %v1957_v53  ;;  %v1451_v0 = vadd.f32 1.0, %v1323_v31  ;;  %v4126_v15 = vadd.f32 1.0, %v3998_v42 }
 0x1ba   : > { %v6920_v25 = vpop.eup %5671  ;;  %v1830_v45 = vmul.f32 1.0614054, %v6913_v34  ;;  %v4128_v36 = vadd.f32 1.0, %v4000_v16  ;;  %v6941_v8 = vmul.f32 0.5, %v6771_v21  ;;  %v3247_v43 = vmul.f32 1.442695, %v3109_v54 }
 0x1bb   : > { %v5674_v30 = vpop.eup %5673  ;;  %v1831_v38 = vmul.f32 1.0614054, %v6920_v25  ;;  %v6943_v53 = vmul.f32 %v4124_v35, %v924_v56  ;;  %v1956_v44 = vadd.f32 -1.4531521, %v1828_v32  ;;  %v3108_v31 = vsub.f32 0.0, %v2980_v40  ;;  %v6952_v56 = vpop.f32.mrb[19].mxu0 }
 0x1bc   : > { %v3491_v39 = vmul.f32 %v5674_v30, %v2851_v51  ;;  %v6938_v52 = vpop.eup %5675  ;;  %v6946_v33 = vand.u32 2147483647, %v6929_v61  ;;  %v4002_v11 = vsel %vm3746_vm7, %v3874_v20, %v3618_v18  ;;  %v2213_v51 = vadd.f32 1.4214138, %v2085_v37  ;;  %11022 = vst [vmem:[#allocation37_spill] sm:$0xff] %v6952_v56 }
 0x1bd   : > { %11021 = vst [vmem:[#allocation36_spill] sm:$0xff] %v6943_v53  ;;  %v1958_v30 = vadd.f32 -1.4531521, %v1830_v45  ;;  %5681 = vrcp.f32 %v1451_v0  ;;  %v2982_v42 = vmul.f32 %v6835_v9, %v6835_v9  ;;  %v1959_v21 = vadd.f32 -1.4531521, %v1831_v38 }
 0x1be   : > { %v3619_v23 = vsub.f32 1.0, %v3491_v39  ;;  %v1833_v54 = vmul.f32 1.0614054, %v6938_v52  ;;  %v6956_v35 = vmul.f32 %v4126_v15, %v926_v5  ;;  %v6958_v16 = vmul.f32 %v4128_v36, %v928_v24  ;;  %v6974_v36 = vpop.f32.mrb[19].mxu1 }
 0x1bf   : > { %v6954_v32 = vpop.eup %5677  ;;  %5683 = vpow2.f32 %v3247_v43  ;;  %v6961_v18 = vmul.f32 0.5, %v6794_v17  ;;  %v4130_v20 = vadd.f32 1.0, %v4002_v11  ;;  %v2084_v9 = vmul.f32 %v6908_v27, %v1956_v44  ;;  %11025 = vst [vmem:[#allocation40_spill] sm:$0xff] %v6974_v36 }
 0x1c0   : > { %11023 = vst [vmem:[#allocation38_spill] sm:$0xff] %v6956_v35  ;;  %11024 = vst [vmem:[#allocation39_spill] sm:$0xff] %v6958_v16  ;;  %v2983_v37 = vmul.f32 %v6838_v6, %v6838_v6  ;;  %v1325_v45 = vmul.f32 0.3275911, %v6946_v33  ;;  %v2341_v0 = vmul.f32 %v6888_v1, %v2213_v51  ;;  %v3245_v5 = vmul.f32 1.442695, %v3108_v31 }
 0x1c1   : > { %v6963_v40 = vpop.eup %5679  ;;  %v2086_v24 = vmul.f32 %v6913_v34, %v1958_v30  ;;  %v2985_v43 = vmul.f32 %v6859_v14, %v6859_v14  ;;  %v3875_v17 = vsub.f32 0.0, %v3619_v23  ;;  %v3110_v39 = vsub.f32 0.0, %v2982_v42 }
 0x1c2   : > { %v2087_v38 = vmul.f32 %v6920_v25, %v1959_v21  ;;  %v1961_v15 = vadd.f32 -1.4531521, %v1833_v54  ;;  %v6977_v44 = vmul.f32 0.5, %v6802_v4  ;;  %v1832_v6 = vmul.f32 1.0614054, %v6954_v32 }
 0x1c3   : > { %v1834_v11 = vmul.f32 1.0614054, %v6963_v40  ;;  %v6983_v31 = vadd.f32 %v6658_v26, %v6629_v10  ;;  %v2212_v51 = vadd.f32 1.4214138, %v2084_v9  ;;  %v6986_v14 = vmul.f32 0.5, %v6808_v41 }
 0x1c4   : > { %v3111_v30 = vsub.f32 0.0, %v2983_v37  ;;  %v1453_v42 = vadd.f32 1.0, %v1325_v45  ;;  %v6989_v21 = vmul.f32 %v4130_v20, %v6917_v12  ;;  %v2469_v54 = vadd.f32 -0.28449672, %v2341_v0 }
 0x1c5   : > { %v2214_v4 = vadd.f32 1.4214138, %v2086_v24  ;;  %v3113_v35 = vsub.f32 0.0, %v2985_v43  ;;  %v4003_v16 = vsel %vm3747_vm8, %v3875_v17, %v3619_v23  ;;  %v3249_v53 = vmul.f32 1.442695, %v3110_v39 }
 0x1c6   : > { %11026 = vst [vmem:[#allocation41_spill] sm:$0xff] %v6989_v21  ;;  %v2215_v36 = vadd.f32 1.4214138, %v2087_v38  ;;  %v2089_v26 = vmul.f32 %v6938_v52, %v1961_v15  ;;  %5685 = vpow2.f32 %v3245_v5  ;;  %v1960_v41 = vadd.f32 -1.4531521, %v1832_v6  ;;  %v11038_v21 = vld [vmem:[#allocation14_spill] sm:$0xff] }
 0x1c7   : > { %v6994_v56 = vpop.eup %5681  ;;  %v1962_v9 = vadd.f32 -1.4531521, %v1834_v11  ;;  %v6997_v37 = vmul.f32 0.70710677, %v6983_v31  ;;  %v2340_v12 = vmul.f32 %v6908_v27, %v2212_v51  ;;  %v3251_v20 = vmul.f32 1.442695, %v3111_v30 }
 0x1c8   : > { %v2984_v45 = vmul.f32 %v6872_v59, %v6872_v59  ;;  %5687 = vrcp.f32 %v1453_v42  ;;  %v4131_v23 = vadd.f32 1.0, %v4003_v16  ;;  %v2597_v0 = vmul.f32 %v6888_v1, %v2469_v54 }
 0x1c9   : > { %11027 = vst [vmem:[#allocation42_spill] sm:$0xff] %v6997_v37  ;;  %v5684_v2 = vpop.eup %5683  ;;  %v2342_v24 = vmul.f32 %v6913_v34, %v2214_v4  ;;  %v3255_v43 = vmul.f32 1.442695, %v3113_v35  ;;  %v2343_v5 = vmul.f32 %v6920_v25, %v2215_v36  ;;  %v7006_v17 = vmul.f32 0.5, %v6824_v62 }
 0x1ca   : > { %v2217_v39 = vadd.f32 1.4214138, %v2089_v26  ;;  %v1835_v38 = vmul.f32 1.0614054, %v6994_v56  ;;  %5689 = vpow2.f32 %v3249_v53  ;;  %v2088_v15 = vmul.f32 %v6954_v32, %v1960_v41  ;;  %v7020_v53 = vpop.f32.mrb[20].mxu0  ;;  %v7025_v26 = vpop.f32.mrb[20].mxu1 }
 0x1cb   : > { %v2090_v59 = vmul.f32 %v6963_v40, %v1962_v9  ;;  %v7012_v16 = vand.u32 2147483647, %v6997_v37  ;;  %v2468_v6 = vadd.f32 -0.28449672, %v2340_v12  ;;  %5691 = vpow2.f32 %v3251_v20  ;;  %11029 = vst [vmem:[#allocation44_spill] sm:$0xff] %v7020_v53  ;;  %11030 = vst [vmem:[#allocation45_spill] sm:$0xff] %v7025_v26 }
 0x1cc   : > { %v7015_v35 = vmul.f32 0.5, %v6845_v57  ;;  %v3112_v36 = vsub.f32 0.0, %v2984_v45  ;;  %v7018_v62 = vmul.f32 %v4131_v23, %v6935_v55  ;;  %v2725_v11 = vadd.f32 0.2548296, %v2597_v0  ;;  %v11031_v23 = vld [vmem:[#allocation12_spill] sm:$0xff] }
 0x1cd   : > { %v2470_v51 = vadd.f32 -0.28449672, %v2342_v24  ;;  %5693 = vpow2.f32 %v3255_v43  ;;  %v2471_v30 = vadd.f32 -0.28449672, %v2343_v5  ;;  %v2345_v42 = vmul.f32 %v6938_v52, %v2217_v39 }
 0x1ce   : > { %11028 = vst [vmem:[#allocation43_spill] sm:$0xff] %v7018_v62  ;;  %v2986_v54 = vmul.f32 %v6879_v7, %v6879_v7  ;;  %v1963_v4 = vadd.f32 -1.4531521, %v1835_v38  ;;  %v2216_v57 = vadd.f32 1.4214138, %v2088_v15  ;;  %v7030_v55 = vadd.f32 %v6660_v29, %v6650_v19 }
 0x1cf   : > { %v2218_v41 = vadd.f32 1.4214138, %v2090_v59  ;;  %v1324_v9 = vmul.f32 0.3275911, %v7012_v16  ;;  %v2596_v12 = vmul.f32 %v6908_v27, %v2468_v6  ;;  %v3253_v20 = vmul.f32 1.442695, %v3112_v36 }
 0x1d0   : > { %v7034_v45 = vmul.f32 0.5, %v6849_v48  ;;  %v7038_v7 = vadd.f32 %v11031_v23, %v6599_v46  ;;  %v5686_v0 = vpop.eup %5685  ;;  %v2853_v24 = vmul.f32 %v6888_v1, %v2725_v11  ;;  %v2598_v43 = vmul.f32 %v6913_v34, %v2470_v51  ;;  %v11035_v51 = vld [vmem:[#allocation13_spill] sm:$0xff] }
 0x1d1   : > { %v7043_v5 = vmul.f32 0.5, %v6876_v50  ;;  %v2987_v29 = vmul.f32 %v6896_v22, %v6896_v22  ;;  %v2599_v48 = vmul.f32 %v6920_v25, %v2471_v30  ;;  %v2473_v38 = vadd.f32 -0.28449672, %v2345_v42  ;;  %v7063_v42 = vpop.f32.mrb[21].mxu0 }
 0x1d2   : > { %v7047_v39 = vpop.eup %5687  ;;  %v3114_v15 = vsub.f32 0.0, %v2986_v54  ;;  %v2091_v59 = vmul.f32 %v6994_v56, %v1963_v4  ;;  %v2344_v6 = vmul.f32 %v6954_v32, %v2216_v57  ;;  %v2346_v1 = vmul.f32 %v6963_v40, %v2218_v41  ;;  %11037 = vst [vmem:[#allocation48_spill] sm:$0xff] %v7063_v42 }
 0x1d3   : > { %11032 = vst [vmem:[#allocation12_spill] sm:$0xff] %v7043_v5  ;;  %v1452_v36 = vadd.f32 1.0, %v1324_v9  ;;  %v7054_v11 = vmul.f32 0.70710677, %v7030_v55  ;;  %v2724_v50 = vadd.f32 0.2548296, %v2596_v12  ;;  %5695 = vpow2.f32 %v3253_v20 }
 0x1d4   : > { %v7057_v22 = vmul.f32 0.70710677, %v7038_v7  ;;  %v7061_v30 = vadd.f32 %v11035_v51, %v6601_v47  ;;  %v5690_v54 = vpop.eup %5689  ;;  %v3493_v4 = vmul.f32 %v5684_v2, %v2853_v24  ;;  %v2726_v57 = vadd.f32 0.2548296, %v2598_v43 }
 0x1d5   : > { %11033 = vst [vmem:[#allocation46_spill] sm:$0xff] %v7054_v11  ;;  %v3115_v23 = vsub.f32 0.0, %v2987_v29  ;;  %v1837_v41 = vmul.f32 1.0614054, %v7047_v39  ;;  %v5692_v9 = vpop.eup %5691  ;;  %v2727_v62 = vadd.f32 0.2548296, %v2599_v48  ;;  %v2601_v12 = vmul.f32 %v6938_v52, %v2473_v38 }
 0x1d6   : > { %11034 = vst [vmem:[#allocation47_spill] sm:$0xff] %v7057_v22  ;;  %11036 = vst [vmem:[#allocation13_spill] sm:$0xff] %v7061_v30  ;;  %v2219_v20 = vadd.f32 1.4214138, %v2091_v59  ;;  %v7069_v26 = vadd.f32 %v11038_v21, %v6629_v10  ;;  %v2472_v51 = vadd.f32 -0.28449672, %v2344_v6  ;;  %5697 = vrcp.f32 %v1452_v36 }
 0x1d7   : > { %v5694_v53 = vpop.eup %5693  ;;  %v2474_v37 = vadd.f32 -0.28449672, %v2346_v1  ;;  %v7072_v42 = vand.u32 2147483647, %v7054_v11  ;;  %vm3749_vm9 = vcmp.lt.f32.partialorder %v6784_v3, 0.0  ;;  %v2852_v2 = vmul.f32 %v6908_v27, %v2724_v50  ;;  %v11042_v59 = vld [vmem:[#allocation15_spill] sm:$0xff] }
 0x1d8   : > { %11039 = vst [vmem:[#allocation14_spill] sm:$0xff] %v7069_v26  ;;  %v3257_v24 = vmul.f32 1.442695, %v3114_v15  ;;  %v7077_v43 = vand.u32 2147483647, %v7057_v22  ;;  %v3621_v21 = vsub.f32 1.0, %v3493_v4  ;;  %v7087_v6 = vadd.f32 %v11042_v59, %v6650_v19 }
 0x1d9   : > { %v7080_v29 = vmul.f32 0.70710677, %v7061_v30  ;;  %v1965_v48 = vadd.f32 -1.4531521, %v1837_v41  ;;  %v7083_v38 = vmul.f32 0.70710677, %v7069_v26  ;;  %v2854_v27 = vmul.f32 %v6913_v34, %v2726_v57 }
 0x1da   : > { %11043 = vst [vmem:[#allocation15_spill] sm:$0xff] %v7087_v6  ;;  %v7089_v1 = vpop.f32.mrb[21].mxu1  ;;  %v2855_v15 = vmul.f32 %v6920_v25, %v2727_v62  ;;  %v2347_v36 = vmul.f32 %v6994_v56, %v2219_v20  ;;  %v3259_v50 = vmul.f32 1.442695, %v3115_v23  ;;  %v2729_v22 = vadd.f32 0.2548296, %v2601_v12 }
 0x1db   : > { %11040 = vst [vmem:[#allocation49_spill] sm:$0xff] %v7080_v29  ;;  %11041 = vst [vmem:[#allocation50_spill] sm:$0xff] %v7083_v38  ;;  %v2600_v4 = vmul.f32 %v6954_v32, %v2472_v51  ;;  %v2602_v41 = vmul.f32 %v6963_v40, %v2474_v37  ;;  %v1326_v11 = vmul.f32 0.3275911, %v7072_v42  ;;  %v7097_v26 = vmul.f32 %v5686_v0, %v2852_v2 }
 0x1dc   : > { %11044 = vst [vmem:[#allocation51_spill] sm:$0xff] %v7089_v1  ;;  %5699 = vpow2.f32 %v3257_v24  ;;  %v1327_v59 = vmul.f32 0.3275911, %v7077_v43  ;;  %v7101_v1 = vand.u32 2147483647, %v7080_v29  ;;  %v3877_v34 = vsub.f32 0.0, %v3621_v21 }
 0x1dd   : > { %v2093_v25 = vmul.f32 %v7047_v39, %v1965_v48  ;;  %v7105_v62 = vand.u32 2147483647, %v7083_v38  ;;  %v7108_v57 = vmul.f32 0.70710677, %v7087_v6  ;;  %v5696_v37 = vpop.eup %5695  ;;  %v7110_v23 = vmul.f32 %v5690_v54, %v2854_v27  ;;  %v5627_v29 = vld [vmem:[#allocation7 + $0x78] sm:$0xff]   ;;  %v11046_v6 = vld [vmem:[#allocation16_spill] sm:$0xff] }
 0x1de   : > { %v7112_v0 = vmul.f32 %v5692_v9, %v2855_v15  ;;  %v2475_v12 = vadd.f32 -0.28449672, %v2347_v36  ;;  %5701 = vpow2.f32 %v3259_v50  ;;  %v2857_v20 = vmul.f32 %v6938_v52, %v2729_v22  ;;  %5265 = vmatprep.subr.bf16.mxu0 %v5627_v29 }
 0x1df   : > { %11045 = vst [vmem:[#allocation52_spill] sm:$0xff] %v7108_v57  ;;  %v2728_v51 = vadd.f32 0.2548296, %v2600_v4  ;;  %v2730_v2 = vadd.f32 0.2548296, %v2602_v41  ;;  %v1454_v24 = vadd.f32 1.0, %v1326_v11  ;;  %v7119_v30 = vadd.f32 %v11046_v6, %v6599_v46 }
 0x1e0   : > { %v3620_v48 = vsub.f32 1.0, %v7097_v26  ;;  %v1455_v38 = vadd.f32 1.0, %v1327_v59  ;;  %v1329_v5 = vmul.f32 0.3275911, %v7101_v1  ;;  %v7121_v54 = vpop.eup %5697  ;;  %v4005_v9 = vsel %vm3749_vm9, %v3877_v34, %v3621_v21  ;;  %v7136_v21 = vpop.f32.mrb[22].mxu0 }
 0x1e1   : > { %vm3748_vm10 = vcmp.lt.f32.partialorder %v6812_v49, 0.0  ;;  %v2221_v52 = vadd.f32 1.4214138, %v2093_v25  ;;  %v1328_v11 = vmul.f32 0.3275911, %v7105_v62  ;;  %v3622_v26 = vsub.f32 1.0, %v7110_v23 }
 0x1e2   : > { %v7128_v22 = vand.u32 2147483647, %v7108_v57  ;;  %vm3750_vm11 = vcmp.lt.f32.partialorder %v6817_v60, 0.0  ;;  %v3623_v6 = vsub.f32 1.0, %v7112_v0  ;;  %v2603_v27 = vmul.f32 %v6994_v56, %v2475_v12  ;;  %11047 = vst [vmem:[#allocation16_spill] sm:$0xff] %v7136_v21 }
 0x1e3   : > { %v2989_v3 = vmul.f32 %v6946_v33, %v6946_v33  ;;  %vm3751_vm12 = vcmp.lt.f32.partialorder %v6820_v63, 0.0  ;;  %v3497_v15 = vmul.f32 %v5694_v53, %v2857_v20  ;;  %v2856_v36 = vmul.f32 %v6954_v32, %v2728_v51 }
 0x1e4   : > { %v2858_v29 = vmul.f32 %v6963_v40, %v2730_v2  ;;  %5703 = vrcp.f32 %v1454_v24  ;;  %v1836_v50 = vmul.f32 1.0614054, %v7121_v54  ;;  %v1457_v4 = vadd.f32 1.0, %v1329_v5  ;;  %v11048_v40 = vld [vmem:[#allocation31_spill] sm:$0xff] }
 0x1e5   : > { %5705 = vrcp.f32 %v1455_v38  ;;  %v7143_v41 = vmul.f32 0.70710677, %v7119_v30  ;;  %v7146_v59 = vmul.f32 0.5, %v6906_v13  ;;  %v2349_v33 = vmul.f32 %v7047_v39, %v2221_v52 }
 0x1e6   : > { %v1456_v34 = vadd.f32 1.0, %v1328_v11  ;;  %v1330_v53 = vmul.f32 0.3275911, %v7128_v22  ;;  %v5700_v25 = vpop.eup %5699  ;;  %v4133_v32 = vadd.f32 1.0, %v4005_v9  ;;  %v3876_v23 = vsub.f32 0.0, %v3620_v48  ;;  %v11049_v9 = vld [vmem:[#allocation17_spill] sm:$0xff] }
 0x1e7   : > { %vm3753_vm13 = vcmp.lt.f32.partialorder %v11048_v40, 0.0  ;;  %v2731_v0 = vadd.f32 0.2548296, %v2603_v27  ;;  %v3117_v12 = vsub.f32 0.0, %v2989_v3  ;;  %v3878_v38 = vsub.f32 0.0, %v3622_v26 }
 0x1e8   : > { %v3879_v5 = vsub.f32 0.0, %v3623_v6  ;;  %v3625_v20 = vsub.f32 1.0, %v3497_v15  ;;  %v3496_v51 = vmul.f32 %v5696_v37, %v2856_v36  ;;  %v5702_v2 = vpop.eup %5701  ;;  %v3498_v24 = vmul.f32 %v5700_v25, %v2858_v29 }
 0x1e9   : > { %v1964_v13 = vadd.f32 -1.4531521, %v1836_v50  ;;  %5707 = vrcp.f32 %v1457_v4  ;;  %v7152_v52 = vand.u32 2147483647, %v7143_v41  ;;  %v2477_v11 = vadd.f32 -0.28449672, %v2349_v33 }
 0x1ea   : > { %5709 = vrcp.f32 %v1456_v34  ;;  %v1458_v21 = vadd.f32 1.0, %v1330_v53  ;;  %v7156_v57 = vadd.f32 %v11049_v9, %v6601_v47  ;;  %v7159_v27 = vmul.f32 %v4133_v32, %v6941_v8  ;;  %v5628_v8 = vld [vmem:[#allocation7 + $0x38] sm:$0xff]   ;;  %v7170_v33 = vpop.f32.mrb[22].mxu1 }
 0x1eb   : > { %v4004_v37 = vsel %vm3748_vm10, %v3876_v23, %v3620_v48  ;;  %vm3752_vm14 = vcmp.lt.f32.partialorder %v6862_v28, 0.0  ;;  %v2859_v3 = vmul.f32 %v6994_v56, %v2731_v0  ;;  %v3263_v15 = vmul.f32 1.442695, %v3117_v12  ;;  %11051 = vst [vmem:[#allocation17_spill] sm:$0xff] %v7170_v33  ;;  %5266 = vmatpush3.bf16.msra.mxu0 %v5628_v8 }
 0x1ec   : > { %11050 = vst [vmem:[#allocation31_spill] sm:$0xff] %v7159_v27  ;;  %v4006_v36 = vsel %vm3750_vm11, %v3878_v38, %v3622_v26  ;;  %v3881_v29 = vsub.f32 0.0, %v3625_v20  ;;  %v3624_v50 = vsub.f32 1.0, %v3496_v51  ;;  %vm3754_vm15 = vcmp.lt.f32.partialorder %v6866_v58, 0.0 }
 0x1ed   : > { %v2988_v4 = vmul.f32 %v7012_v16, %v7012_v16  ;;  %v4007_v49 = vsel %vm3751_vm12, %v3879_v5, %v3623_v6  ;;  %v3626_v48 = vsub.f32 1.0, %v3498_v24  ;;  %v2092_v56 = vmul.f32 %v7121_v54, %v1964_v13  ;;  %v11052_v6 = vld [vmem:[#allocation18_spill] sm:$0xff] }
 0x1ee   : > { %v1331_v34 = vmul.f32 0.3275911, %v7152_v52  ;;  %v7176_v60 = vpop.eup %5703  ;;  %v4132_v26 = vadd.f32 1.0, %v4004_v37  ;;  %v2605_v53 = vmul.f32 %v7047_v39, %v2477_v11  ;;  %5711 = vrcp.f32 %v1458_v21 }
 0x1ef   : > { %v7180_v25 = vmul.f32 0.70710677, %v7156_v57  ;;  %v7182_v16 = vpop.eup %5705  ;;  %v4134_v32 = vadd.f32 1.0, %v4006_v36  ;;  %v3499_v63 = vmul.f32 %v5702_v2, %v2859_v3  ;;  %5713 = vpow2.f32 %v3263_v15  ;;  %v11054_v2 = vld [vmem:[#allocation33_spill] sm:$0xff] }
 0x1f0   : > { %v7186_v23 = vadd.f32 %v11052_v6, %v6629_v10  ;;  %v4135_v0 = vadd.f32 1.0, %v4007_v49  ;;  %v4009_v12 = vsel %vm3753_vm13, %v3881_v29, %v3625_v20  ;;  %v3880_v38 = vsub.f32 0.0, %v3624_v50 }
 0x1f1   : > { %v3116_v5 = vsub.f32 0.0, %v2988_v4  ;;  %v3882_v21 = vsub.f32 0.0, %v3626_v48  ;;  %v2220_v51 = vadd.f32 1.4214138, %v2092_v56  ;;  %v1838_v24 = vmul.f32 1.0614054, %v7176_v60 }
 0x1f2   : > { %v1459_v13 = vadd.f32 1.0, %v1331_v34  ;;  %v7192_v11 = vmul.f32 %v4132_v26, %v6961_v18  ;;  %vm3755_vm0 = vcmp.lt.f32.partialorder %v11054_v2, 0.0  ;;  %v2733_v9 = vadd.f32 0.2548296, %v2605_v53 }
 0x1f3   : > { %v1839_v37 = vmul.f32 1.0614054, %v7182_v16  ;;  %v7197_v3 = vand.u32 2147483647, %v7180_v25  ;;  %v7199_v40 = vpop.eup %5707  ;;  %v4137_v20 = vadd.f32 1.0, %v4009_v12  ;;  %v3627_v15 = vsub.f32 1.0, %v3499_v63 }
 0x1f4   : > { %11053 = vst [vmem:[#allocation18_spill] sm:$0xff] %v7192_v11  ;;  %v7202_v36 = vmul.f32 0.5, %v6983_v31  ;;  %v7205_v29 = vmul.f32 0.70710677, %v7186_v23  ;;  %v7207_v18 = vpop.eup %5709  ;;  %v7210_v4 = vmul.f32 %v4134_v32, %v6977_v44  ;;  %v7213_v8 = vmul.f32 %v4135_v0, %v6986_v14 }
 0x1f5   : > { %v4008_v49 = vsel %vm3752_vm14, %v3880_v38, %v3624_v50  ;;  %v3261_v56 = vmul.f32 1.442695, %v3116_v5  ;;  %v4010_v34 = vsel %vm3754_vm15, %v3882_v21, %v3626_v48  ;;  %v2348_v31 = vmul.f32 %v7121_v54, %v2220_v51  ;;  %v7230_v48 = vpop.f32.mrb[23].mxu0 }
 0x1f6   : > { %11055 = vst [vmem:[#allocation33_spill] sm:$0xff] %v7210_v4  ;;  %11056 = vst [vmem:[#allocation53_spill] sm:$0xff] %v7213_v8  ;;  %v1966_v26 = vadd.f32 -1.4531521, %v1838_v24  ;;  %5715 = vrcp.f32 %v1459_v13  ;;  %v2861_v53 = vmul.f32 %v7047_v39, %v2733_v9  ;;  %v1967_v63 = vadd.f32 -1.4531521, %v1839_v37 }
 0x1f7   : > { %v1841_v44 = vmul.f32 1.0614054, %v7199_v40  ;;  %v1333_v32 = vmul.f32 0.3275911, %v7197_v3  ;;  %v7224_v14 = vmul.f32 %v4137_v20, %v7006_v17  ;;  %v3883_v28 = vsub.f32 0.0, %v3627_v15  ;;  %11058 = vst [vmem:[#allocation55_spill] sm:$0xff] %v7230_v48 }
 0x1f8   : > { %v1840_v50 = vmul.f32 1.0614054, %v7207_v18  ;;  %v7228_v58 = vand.u32 2147483647, %v7205_v29  ;;  %v7232_v6 = vpop.eup %5711  ;;  %v4136_v0 = vadd.f32 1.0, %v4008_v49  ;;  %5717 = vpow2.f32 %v3261_v56 }
 0x1f9   : > { %11057 = vst [vmem:[#allocation54_spill] sm:$0xff] %v7224_v14  ;;  %v7235_v39 = vmul.f32 0.5, %v7030_v55  ;;  %v2990_v12 = vmul.f32 %v7072_v42, %v7072_v42  ;;  %v5714_v17 = vpop.eup %5713  ;;  %v4138_v38 = vadd.f32 1.0, %v4010_v34  ;;  %v2476_v5 = vadd.f32 -0.28449672, %v2348_v31 }
 0x1fa   : > { %v2094_v21 = vmul.f32 %v7176_v60, %v1966_v26  ;;  %v2991_v51 = vmul.f32 %v7077_v43, %v7077_v43  ;;  %v3501_v24 = vmul.f32 %v5714_v17, %v2861_v53  ;;  %v2095_v13 = vmul.f32 %v7182_v16, %v1967_v63  ;;  %v11060_v43 = vld [vmem:[#allocation19_spill] sm:$0xff]  ;;  %v7257_v53 = vpop.f32.mrb[23].mxu1 }
 0x1fb   : > { %v1969_v9 = vadd.f32 -1.4531521, %v1841_v44  ;;  %v1461_v37 = vadd.f32 1.0, %v1333_v32  ;;  %v4011_v55 = vsel %vm3755_vm0, %v3883_v28, %v3627_v15  ;;  %v1968_v20 = vadd.f32 -1.4531521, %v1840_v50  ;;  %11061 = vst [vmem:[#allocation19_spill] sm:$0xff] %v7257_v53 }
 0x1fc   : > { %v1842_v49 = vmul.f32 1.0614054, %v7232_v6  ;;  %v1332_v42 = vmul.f32 0.3275911, %v7228_v58  ;;  %v7248_v56 = vmul.f32 %v4136_v0, %v7015_v35  ;;  %v3118_v34 = vsub.f32 0.0, %v2990_v12 }
 0x1fd   : > { %v7251_v31 = vmul.f32 0.5, %v7038_v7  ;;  %v7255_v26 = vadd.f32 %v11060_v43, %v6650_v19  ;;  %v7260_v2 = vmul.f32 %v4138_v38, %v7034_v45  ;;  %v2604_v15 = vmul.f32 %v7121_v54, %v2476_v5  ;;  %v5629_v45 = vld [vmem:[#allocation7 + $0xf8] sm:$0xff]   ;;  %v11063_v43 = vld [vmem:[#allocation13_spill] sm:$0xff] }
 0x1fe   : > { %11059 = vst [vmem:[#allocation56_spill] sm:$0xff] %v7248_v56  ;;  %v2222_v63 = vadd.f32 1.4214138, %v2094_v21  ;;  %v3119_v44 = vsub.f32 0.0, %v2991_v51  ;;  %v4139_v32 = vadd.f32 1.0, %v4011_v55  ;;  %v3629_v35 = vsub.f32 1.0, %v3501_v24  ;;  %5377 = vmatprep.subr.bf16.mxu1 %v5629_v45 }
 0x1ff   : > { %11062 = vst [vmem:[#allocation57_spill] sm:$0xff] %v7260_v2  ;;  %vm3757_vm1 = vcmp.lt.f32.partialorder %v6929_v61, 0.0  ;;  %v2223_v28 = vadd.f32 1.4214138, %v2095_v13  ;;  %v2097_v7 = vmul.f32 %v7199_v40, %v1969_v9  ;;  %v2096_v0 = vmul.f32 %v7207_v18, %v1968_v20 }
 0x200   : > { %v7265_v50 = vpop.eup %5715  ;;  %v1970_v12 = vadd.f32 -1.4531521, %v1842_v49  ;;  %5719 = vrcp.f32 %v1461_v37  ;;  %v1460_v17 = vadd.f32 1.0, %v1332_v42  ;;  %v3265_v38 = vmul.f32 1.442695, %v3118_v34 }
 0x201   : > { %v7269_v5 = vmul.f32 0.5, %v11063_v43  ;;  %v2993_v21 = vmul.f32 %v7101_v1, %v7101_v1  ;;  %v7274_v51 = vmul.f32 0.70710677, %v7255_v26  ;;  %v2732_v24 = vadd.f32 0.2548296, %v2604_v15 }
 0x202   : > { %v2350_v13 = vmul.f32 %v7176_v60, %v2222_v63  ;;  %v3267_v9 = vmul.f32 1.442695, %v3119_v44  ;;  %v2992_v55 = vmul.f32 %v7105_v62, %v7105_v62  ;;  %v5718_v37 = vpop.eup %5717  ;;  %v3885_v20 = vsub.f32 0.0, %v3629_v35  ;;  %v11064_v63 = vld [vmem:[#allocation12_spill] sm:$0xff] }
 0x203   : > { %v2351_v49 = vmul.f32 %v7182_v16, %v2223_v28  ;;  %v2994_v42 = vmul.f32 %v7128_v22, %v7128_v22  ;;  %v1843_v1 = vmul.f32 1.0614054, %v7265_v50  ;;  %v2225_v34 = vadd.f32 1.4214138, %v2097_v7  ;;  %v11066_v22 = vld [vmem:[#allocation20_spill] sm:$0xff]  ;;  %v7295_v7 = vpop.f32.mrb[24].mxu0 }
 0x204   : > { %v2224_v43 = vadd.f32 1.4214138, %v2096_v0  ;;  %v2098_v15 = vmul.f32 %v7232_v6, %v1970_v12  ;;  %5721 = vrcp.f32 %v1460_v17  ;;  %v7285_v44 = vmul.f32 %v4139_v32, %v11064_v63  ;;  %11067 = vst [vmem:[#allocation12_spill] sm:$0xff] %v7295_v7  ;;  %v7297_v0 = vpop.f32.mrb[24].mxu1 }
 0x205   : > { %5723 = vpow2.f32 %v3265_v38  ;;  %v3121_v62 = vsub.f32 0.0, %v2993_v21  ;;  %v7288_v45 = vand.u32 2147483647, %v7274_v51  ;;  %v2860_v28 = vmul.f32 %v7121_v54, %v2732_v24  ;;  %11068 = vst [vmem:[#allocation20_spill] sm:$0xff] %v7297_v0  ;;  %v7339_v4 = vpop.f32.mrb[25].mxu1 }
 0x206   : > { %11065 = vst [vmem:[#allocation13_spill] sm:$0xff] %v7285_v44  ;;  %v2478_v14 = vadd.f32 -0.28449672, %v2350_v13  ;;  %v3120_v27 = vsub.f32 0.0, %v2992_v55  ;;  %v7293_v8 = vadd.f32 %v11066_v22, %v6599_v46  ;;  %v2479_v12 = vadd.f32 -0.28449672, %v2351_v49 }
 0x207   : > { %5725 = vpow2.f32 %v3267_v9  ;;  %v3122_v32 = vsub.f32 0.0, %v2994_v42  ;;  %v1971_v17 = vadd.f32 -1.4531521, %v1843_v1  ;;  %v4013_v38 = vsel %vm3757_vm1, %v3885_v20, %v3629_v35  ;;  %v11069_v55 = vld [vmem:[#allocation14_spill] sm:$0xff]  ;;  %v11070_v22 = vld [vmem:[#allocation15_spill] sm:$0xff] }
 0x208   : > { %v2353_v21 = vmul.f32 %v7199_v40, %v2225_v34  ;;  %v2352_v54 = vmul.f32 %v7207_v18, %v2224_v43  ;;  %v2226_v24 = vadd.f32 1.4214138, %v2098_v15  ;;  %v3271_v13 = vmul.f32 1.442695, %v3121_v62  ;;  %v5630_v1 = vld [vmem:[#allocation7 + $0xb8] sm:$0xff]  }
 0x209   : > { %v7304_v63 = vmul.f32 0.5, %v11069_v55  ;;  %v7307_v44 = vmul.f32 0.5, %v11070_v22  ;;  %v1334_v49 = vmul.f32 0.3275911, %v7288_v45  ;;  %v3500_v42 = vmul.f32 %v5718_v37, %v2860_v28  ;;  %5378 = vmatpush3.bf16.msra.mxu1 %v5630_v1 }
 0x20a   : > { %v7310_v9 = vpop.eup %5719  ;;  %v2606_v61 = vmul.f32 %v7176_v60, %v2478_v14  ;;  %v3269_v35 = vmul.f32 1.442695, %v3120_v27  ;;  %v7314_v20 = vmul.f32 0.70710677, %v7293_v8  ;;  %v7316_v34 = vadd.f32 1.0, %v4013_v38  ;;  %v11072_v27 = vld [vmem:[#allocation42_spill] sm:$0xff] }
 0x20b   : > { %v2607_v43 = vmul.f32 %v7182_v16, %v2479_v12  ;;  %v3273_v15 = vmul.f32 1.442695, %v3122_v32  ;;  %v2099_v62 = vmul.f32 %v7265_v50, %v1971_v17  ;;  %v2481_v55 = vadd.f32 -0.28449672, %v2353_v21  ;;  %v11073_v38 = vld [vmem:[#allocation21_spill] sm:$0xff]  ;;  %v7329_v32 = vpop.f32.mrb[25].mxu0 }
 0x20c   : > { %11071 = vst [vmem:[#allocation14_spill] sm:$0xff] %v7314_v20  ;;  %v2480_v22 = vadd.f32 -0.28449672, %v2352_v54  ;;  %v2354_v2 = vmul.f32 %v7232_v6, %v2226_v24  ;;  %v2995_v37 = vmul.f32 %v7152_v52, %v7152_v52  ;;  %vm3756_vm2 = vcmp.lt.f32.partialorder %v11072_v27, 0.0  ;;  %11074 = vst [vmem:[#allocation15_spill] sm:$0xff] %v7329_v32 }
 0x20d   : > { %5727 = vpow2.f32 %v3271_v13  ;;  %v1845_v14 = vmul.f32 1.0614054, %v7310_v9  ;;  %v1462_v28 = vadd.f32 1.0, %v1334_v49  ;;  %v7327_v12 = vadd.f32 %v11073_v38, %v6601_v47  ;;  %11075 = vst [vmem:[#allocation42_spill] sm:$0xff] %v7339_v4 }
 0x20e   : > { %v7331_v17 = vpop.eup %5721  ;;  %v3628_v21 = vsub.f32 1.0, %v3500_v42  ;;  %v2734_v54 = vadd.f32 0.2548296, %v2606_v61  ;;  %5729 = vpow2.f32 %v3269_v35  ;;  %v7334_v52 = vand.u32 2147483647, %v7314_v20 }
 0x20f   : > { %v5724_v24 = vpop.eup %5723  ;;  %v2735_v1 = vadd.f32 0.2548296, %v2607_v43  ;;  %5731 = vpow2.f32 %v3273_v15  ;;  %v7337_v13 = vmul.f32 0.5, %v7119_v30  ;;  %v2227_v49 = vadd.f32 1.4214138, %v2099_v62 }
 0x210   : > { %v2609_v38 = vmul.f32 %v7199_v40, %v2481_v55  ;;  %v2608_v56 = vmul.f32 %v7207_v18, %v2480_v22  ;;  %v2482_v11 = vadd.f32 -0.28449672, %v2354_v2  ;;  %v3123_v42 = vsub.f32 0.0, %v2995_v37  ;;  %v11077_v55 = vld [vmem:[#allocation22_spill] sm:$0xff] }
 0x211   : > { %v5726_v61 = vpop.eup %5725  ;;  %v1973_v35 = vadd.f32 -1.4531521, %v1845_v14  ;;  %v1844_v32 = vmul.f32 1.0614054, %v7331_v17  ;;  %5733 = vrcp.f32 %v1462_v28  ;;  %v7345_v43 = vmul.f32 0.70710677, %v7327_v12 }
 0x212   : > { %v3884_v15 = vsub.f32 0.0, %v3628_v21  ;;  %v2997_v30 = vmul.f32 %v7197_v3, %v7197_v3  ;;  %v1335_v62 = vmul.f32 0.3275911, %v7334_v52  ;;  %v7352_v4 = vadd.f32 %v11077_v55, %v6629_v10  ;;  %v11078_v14 = vld [vmem:[#allocation25_spill] sm:$0xff] }
 0x213   : > { %11076 = vst [vmem:[#allocation21_spill] sm:$0xff] %v7345_v43  ;;  %v2862_v2 = vmul.f32 %v7176_v60, %v2734_v54  ;;  %v2863_v22 = vmul.f32 %v7182_v16, %v2735_v1  ;;  %v2355_v37 = vmul.f32 %v7265_v50, %v2227_v49  ;;  %v7359_v28 = vadd.f32 %v11078_v14, %v6650_v19 }
 0x214   : > { %v2737_v0 = vadd.f32 0.2548296, %v2609_v38  ;;  %v2736_v7 = vadd.f32 0.2548296, %v2608_v56  ;;  %v2610_v3 = vmul.f32 %v7232_v6, %v2482_v11  ;;  %v3275_v53 = vmul.f32 1.442695, %v3123_v42 }
 0x215   : > { %v7363_v48 = vmul.f32 0.5, %v7156_v57  ;;  %v2101_v55 = vmul.f32 %v7310_v9, %v1973_v35  ;;  %v1972_v33 = vadd.f32 -1.4531521, %v1844_v32  ;;  %v7367_v60 = vand.u32 2147483647, %v7345_v43 }
 0x216   : > { %v4012_v16 = vsel %vm3756_vm2, %v3884_v15, %v3628_v21  ;;  %v3125_v54 = vsub.f32 0.0, %v2997_v30  ;;  %v1463_v1 = vadd.f32 1.0, %v1335_v62  ;;  %v7372_v49 = vmul.f32 0.70710677, %v7352_v4 }
 0x217   : > { %v5728_v56 = vpop.eup %5727  ;;  %v7374_v11 = vmul.f32 %v5724_v24, %v2862_v2  ;;  %v7376_v38 = vmul.f32 %v5726_v61, %v2863_v22  ;;  %v2483_v57 = vadd.f32 -0.28449672, %v2355_v37  ;;  %v7379_v42 = vmul.f32 0.70710677, %v7359_v28  ;;  %v7385_v61 = vpop.f32.mrb[26].mxu0  ;;  %v11084_v37 = vld [vmem:[#allocation47_spill] sm:$0xff] }
 0x218   : > { %11079 = vst [vmem:[#allocation22_spill] sm:$0xff] %v7372_v49  ;;  %v5730_v32 = vpop.eup %5729  ;;  %v2865_v35 = vmul.f32 %v7199_v40, %v2737_v0  ;;  %v2864_v27 = vmul.f32 %v7207_v18, %v2736_v7  ;;  %v2738_v21 = vadd.f32 0.2548296, %v2610_v3  ;;  %5735 = vpow2.f32 %v3275_v53  ;;  %11081 = vst [vmem:[#allocation58_spill] sm:$0xff] %v7385_v61  ;;  %v11082_v40 = vld [vmem:[#allocation28_spill] sm:$0xff]  ;;  %v11083_v7 = vld [vmem:[#allocation46_spill] sm:$0xff] }
 0x219   : > { %11080 = vst [vmem:[#allocation25_spill] sm:$0xff] %v7379_v42  ;;  %v5732_v15 = vpop.eup %5731  ;;  %v4140_v30 = vadd.f32 1.0, %v4012_v16  ;;  %v2229_v62 = vadd.f32 1.4214138, %v2101_v55  ;;  %v2100_v14 = vmul.f32 %v7331_v17, %v1972_v33  ;;  %v1337_v24 = vmul.f32 0.3275911, %v7367_v60 }
 0x21a   : > { %v3279_v2 = vmul.f32 1.442695, %v3125_v54  ;;  %5737 = vrcp.f32 %v1463_v1  ;;  %v7388_v22 = vand.u32 2147483647, %v7372_v49  ;;  %v7392_v0 = vadd.f32 %v11082_v40, %v6599_v46 }
 0x21b   : > { %v7394_v18 = vpop.eup %5733  ;;  %v3630_v53 = vsub.f32 1.0, %v7374_v11  ;;  %vm3758_vm3 = vcmp.lt.f32.partialorder %v11083_v7, 0.0  ;;  %v3631_v33 = vsub.f32 1.0, %v7376_v38  ;;  %vm3759_vm4 = vcmp.lt.f32.partialorder %v11084_v37, 0.0  ;;  %v11085_v38 = vld [vmem:[#allocation29_spill] sm:$0xff] }
 0x21c   : > { %v2611_v3 = vmul.f32 %v7265_v50, %v2483_v57  ;;  %v7402_v55 = vand.u32 2147483647, %v7379_v42  ;;  %v3505_v16 = vmul.f32 %v5728_v56, %v2865_v35  ;;  %v7404_v54 = vmul.f32 %v5730_v32, %v2864_v27 }
 0x21d   : > { %v2866_v1 = vmul.f32 %v7232_v6, %v2738_v21  ;;  %v2996_v40 = vmul.f32 %v7228_v58, %v7228_v58  ;;  %v2357_v11 = vmul.f32 %v7310_v9, %v2229_v62  ;;  %v2228_v61 = vadd.f32 1.4214138, %v2100_v14 }
 0x21e   : > { %v1465_v49 = vadd.f32 1.0, %v1337_v24  ;;  %v7412_v43 = vadd.f32 %v11085_v38, %v6601_v47  ;;  %v7416_v57 = vmul.f32 %v7316_v34, %v7146_v59  ;;  %v1846_v56 = vmul.f32 1.0614054, %v7394_v18  ;;  %v11089_v24 = vld [vmem:[#allocation49_spill] sm:$0xff] }
 0x21f   : > { %v1336_v32 = vmul.f32 0.3275911, %v7388_v22  ;;  %v7421_v6 = vmul.f32 0.70710677, %v7392_v0  ;;  %v7424_v58 = vmul.f32 %v4140_v30, %v7202_v36  ;;  %v3886_v35 = vsub.f32 0.0, %v3630_v53  ;;  %v7436_v30 = vpop.f32.mrb[26].mxu1 }
 0x220   : > { %11086 = vst [vmem:[#allocation28_spill] sm:$0xff] %v7416_v57  ;;  %v2739_v27 = vadd.f32 0.2548296, %v2611_v3  ;;  %v1338_v21 = vmul.f32 0.3275911, %v7402_v55  ;;  %v3887_v62 = vsub.f32 0.0, %v3631_v33  ;;  %v7428_v59 = vmul.f32 %v5732_v15, %v2866_v1 }
 0x221   : > { %11087 = vst [vmem:[#allocation46_spill] sm:$0xff] %v7421_v6  ;;  %11088 = vst [vmem:[#allocation47_spill] sm:$0xff] %v7424_v58  ;;  %v3633_v14 = vsub.f32 1.0, %v3505_v16  ;;  %vm3761_vm5 = vcmp.lt.f32.partialorder %v11089_v24, 0.0  ;;  %v3124_v34 = vsub.f32 0.0, %v2996_v40  ;;  %v3632_v38 = vsub.f32 1.0, %v7404_v54 }
 0x222   : > { %v11090_v57 = vld [vmem:[#allocation50_spill] sm:$0xff]  ;;  %v2485_v42 = vadd.f32 -0.28449672, %v2357_v11  ;;  %v2356_v20 = vmul.f32 %v7331_v17, %v2228_v61  ;;  %v7434_v36 = vmul.f32 0.70710677, %v7412_v43  ;;  %11092 = vst [vmem:[#allocation49_spill] sm:$0xff] %v7436_v30  ;;  %v5736_v3 = vpop.eup %5735  ;;  %5739 = vrcp.f32 %v1465_v49 }
 0x223   : > { %vm3760_vm6 = vcmp.lt.f32.partialorder %v11090_v57, 0.0  ;;  %v1974_v58 = vadd.f32 -1.4531521, %v1846_v56  ;;  %v1464_v16 = vadd.f32 1.0, %v1336_v32  ;;  %v7439_v15 = vand.u32 2147483647, %v7421_v6 }
 0x224   : > { %11091 = vst [vmem:[#allocation29_spill] sm:$0xff] %v7434_v36  ;;  %v2867_v1 = vmul.f32 %v7265_v50, %v2739_v27  ;;  %5741 = vpow2.f32 %v3279_v2  ;;  %v1466_v54 = vadd.f32 1.0, %v1338_v21  ;;  %v7443_v40 = vand.u32 2147483647, %v7434_v36  ;;  %v7445_v61 = vpop.eup %5737  ;;  %v11093_v32 = vld [vmem:[#allocation30_spill] sm:$0xff]  ;;  %v11095_v2 = vld [vmem:[#allocation52_spill] sm:$0xff] }
 0x225   : > { %v4014_v11 = vsel %vm3758_vm3, %v3886_v35, %v3630_v53  ;;  %v4015_v56 = vsel %vm3759_vm4, %v3887_v62, %v3631_v33  ;;  %v3889_v49 = vsub.f32 0.0, %v3633_v14  ;;  %v7453_v30 = vadd.f32 %v11093_v32, %v6629_v10  ;;  %v7476_v24 = vpop.f32.mrb[27].mxu0 }
 0x226   : > { %v3888_v6 = vsub.f32 0.0, %v3632_v38  ;;  %v3634_v50 = vsub.f32 1.0, %v7428_v59  ;;  %vm3762_vm7 = vcmp.lt.f32.partialorder %v11095_v2, 0.0  ;;  %v2613_v27 = vmul.f32 %v7310_v9, %v2485_v42  ;;  %11096 = vst [vmem:[#allocation30_spill] sm:$0xff] %v7476_v24  ;;  %v11099_v2 = vld [vmem:[#allocation32_spill] sm:$0xff] }
 0x227   : > { %11094 = vst [vmem:[#allocation50_spill] sm:$0xff] %v7453_v30  ;;  %v3277_v21 = vmul.f32 1.442695, %v3124_v34  ;;  %v2484_v36 = vadd.f32 -0.28449672, %v2356_v20  ;;  %v2102_v7 = vmul.f32 %v7394_v18, %v1974_v58  ;;  %5743 = vrcp.f32 %v1464_v16 }
 0x228   : > { %v1339_v53 = vmul.f32 0.3275911, %v7439_v15  ;;  %v3507_v33 = vmul.f32 %v5736_v3, %v2867_v1  ;;  %v1847_v37 = vmul.f32 1.0614054, %v7445_v61  ;;  %5745 = vrcp.f32 %v1466_v54 }
 0x229   : > { %v1341_v35 = vmul.f32 0.3275911, %v7443_v40  ;;  %v4142_v62 = vadd.f32 1.0, %v4014_v11  ;;  %v4143_v32 = vadd.f32 1.0, %v4015_v56  ;;  %v7463_v59 = vmul.f32 0.5, %v7186_v23 }
 0x22a   : > { %v7466_v42 = vmul.f32 0.70710677, %v7453_v30  ;;  %v4017_v20 = vsel %vm3761_vm5, %v3889_v49, %v3633_v14  ;;  %v3890_v58 = vsub.f32 0.0, %v3634_v50  ;;  %v2741_v34 = vadd.f32 0.2548296, %v2613_v27 }
 0x22b   : > { %v2998_v3 = vmul.f32 %v7288_v45, %v7288_v45  ;;  %v4016_v16 = vsel %vm3760_vm6, %v3888_v6, %v3632_v38  ;;  %vm3763_vm8 = vcmp.lt.f32.partialorder %v7143_v41, 0.0  ;;  %v2612_v1 = vmul.f32 %v7331_v17, %v2484_v36 }
 0x22c   : > { %v2230_v23 = vadd.f32 1.4214138, %v2102_v7  ;;  %v1467_v54 = vadd.f32 1.0, %v1339_v53  ;;  %v3635_v11 = vsub.f32 1.0, %v3507_v33  ;;  %5747 = vpow2.f32 %v3277_v21  ;;  %v7478_v14 = vpop.eup %5739 }
 0x22d   : > { %v1975_v56 = vadd.f32 -1.4531521, %v1847_v37  ;;  %v1469_v30 = vadd.f32 1.0, %v1341_v35  ;;  %v7481_v49 = vmul.f32 %v4142_v62, %v7235_v39  ;;  %v7484_v45 = vmul.f32 %v4143_v32, %v7251_v31 }
 0x22e   : > { %v4145_v57 = vadd.f32 1.0, %v4017_v20  ;;  %v7487_v6 = vand.u32 2147483647, %v7466_v42  ;;  %v5742_v38 = vpop.eup %5741  ;;  %v4144_v36 = vadd.f32 1.0, %v4016_v16  ;;  %v2869_v27 = vmul.f32 %v7310_v9, %v2741_v34  ;;  %v7510_v20 = vpop.f32.mrb[27].mxu1 }
 0x22f   : > { %11097 = vst [vmem:[#allocation52_spill] sm:$0xff] %v7481_v49  ;;  %11098 = vst [vmem:[#allocation59_spill] sm:$0xff] %v7484_v45  ;;  %v3126_v21 = vsub.f32 0.0, %v2998_v3  ;;  %v2999_v7 = vmul.f32 %v7334_v52, %v7334_v52  ;;  %v4018_v53 = vsel %vm3762_vm7, %v3890_v58, %v3634_v50  ;;  %v2740_v39 = vadd.f32 0.2548296, %v2612_v1 }
 0x230   : > { %v2358_v33 = vmul.f32 %v7394_v18, %v2230_v23  ;;  %5749 = vrcp.f32 %v1467_v54  ;;  %v3891_v31 = vsub.f32 0.0, %v3635_v11  ;;  %v2103_v37 = vmul.f32 %v7445_v61, %v1975_v56  ;;  %11100 = vst [vmem:[#allocation32_spill] sm:$0xff] %v7510_v20 }
 0x231   : > { %v1849_v35 = vmul.f32 1.0614054, %v7478_v14  ;;  %5751 = vrcp.f32 %v1469_v30  ;;  %v7497_v62 = vpop.eup %5743  ;;  %v7500_v9 = vmul.f32 0.5, %v7255_v26  ;;  %v7503_v52 = vmul.f32 0.5, %v7293_v8 }
 0x232   : > { %v1340_v50 = vmul.f32 0.3275911, %v7487_v6  ;;  %v7508_v32 = vadd.f32 %v11099_v2, %v6650_v19  ;;  %v7512_v58 = vpop.eup %5745  ;;  %v4146_v34 = vadd.f32 1.0, %v4018_v53  ;;  %v3509_v30 = vmul.f32 %v5742_v38, %v2869_v27 }
 0x233   : > { %v3281_v3 = vmul.f32 1.442695, %v3126_v21  ;;  %v3127_v16 = vsub.f32 0.0, %v2999_v7  ;;  %v7515_v26 = vmul.f32 %v4145_v57, %v7269_v5  ;;  %v7518_v8 = vmul.f32 %v4144_v36, %v7304_v63 }
 0x234   : > { %v2868_v1 = vmul.f32 %v7331_v17, %v2740_v39  ;;  %v2486_v23 = vadd.f32 -0.28449672, %v2358_v33  ;;  %v4019_v54 = vsel %vm3763_vm8, %v3891_v31, %v3635_v11  ;;  %v2231_v56 = vadd.f32 1.4214138, %v2103_v37 }
 0x235   : > { %11101 = vst [vmem:[#allocation60_spill] sm:$0xff] %v7515_v26  ;;  %11102 = vst [vmem:[#allocation61_spill] sm:$0xff] %v7518_v8  ;;  %v1977_v2 = vadd.f32 -1.4531521, %v1849_v35  ;;  %v1848_v45 = vmul.f32 1.0614054, %v7497_v62  ;;  %v3001_v38 = vmul.f32 %v7367_v60, %v7367_v60  ;;  %v7532_v36 = vmul.f32 %v4146_v34, %v7307_v44 }
 0x236   : > { %vm3765_vm9 = vcmp.lt.f32.partialorder %v7180_v25, 0.0  ;;  %v1850_v5 = vmul.f32 1.0614054, %v7512_v58  ;;  %v1468_v57 = vadd.f32 1.0, %v1340_v50  ;;  %v7529_v63 = vmul.f32 0.70710677, %v7508_v32  ;;  %v5748_v17 = vpop.eup %5747 }
 0x237   : > { %11103 = vst [vmem:[#allocation62_spill] sm:$0xff] %v7532_v36  ;;  %v3637_v41 = vsub.f32 1.0, %v3509_v30  ;;  %5753 = vpow2.f32 %v3281_v3  ;;  %v3283_v11 = vmul.f32 1.442695, %v3127_v16  ;;  %v4147_v27 = vadd.f32 1.0, %v4019_v54 }
 0x238   : > { %v3508_v21 = vmul.f32 %v5748_v17, %v2868_v1  ;;  %v2614_v7 = vmul.f32 %v7394_v18, %v2486_v23  ;;  %v7536_v53 = vmul.f32 0.5, %v7327_v12  ;;  %v2359_v60 = vmul.f32 %v7445_v61, %v2231_v56 }
 0x239   : > { %v2105_v39 = vmul.f32 %v7478_v14, %v1977_v2  ;;  %v7541_v33 = vmul.f32 0.5, %v7352_v4  ;;  %v1976_v31 = vadd.f32 -1.4531521, %v1848_v45  ;;  %v3129_v37 = vsub.f32 0.0, %v3001_v38  ;;  %v11104_v4 = vld [vmem:[#allocation34_spill] sm:$0xff] }
 0x23a   : > { %v7543_v44 = vpop.eup %5749  ;;  %v1978_v35 = vadd.f32 -1.4531521, %v1850_v5  ;;  %5755 = vrcp.f32 %v1468_v57  ;;  %v7546_v50 = vand.u32 2147483647, %v7529_v63  ;;  %v3893_v12 = vsub.f32 0.0, %v3637_v41 }
 0x23b   : > { %v7548_v34 = vpop.eup %5751  ;;  %vm3764_vm10 = vcmp.lt.f32.partialorder %v7205_v29, 0.0  ;;  %5757 = vpow2.f32 %v3283_v11  ;;  %v3000_v30 = vmul.f32 %v7388_v22, %v7388_v22  ;;  %v7555_v45 = vadd.f32 %v11104_v4, %v6599_v46 }
 0x23c   : > { %v7558_v3 = vmul.f32 %v4147_v27, %v7337_v13  ;;  %v3636_v16 = vsub.f32 1.0, %v3508_v21  ;;  %v2742_v1 = vadd.f32 0.2548296, %v2614_v7  ;;  %v3002_v23 = vmul.f32 %v7402_v55, %v7402_v55  ;;  %v7575_v21 = vpop.f32.mrb[28].mxu0  ;;  %v7577_v7 = vpop.f32.mrb[28].mxu1 }
 0x23d   : > { %v2487_v54 = vadd.f32 -0.28449672, %v2359_v60  ;;  %v2233_v56 = vadd.f32 1.4214138, %v2105_v39  ;;  %v2104_v2 = vmul.f32 %v7497_v62, %v1976_v31  ;;  %v1851_v38 = vmul.f32 1.0614054, %v7543_v44 }
 0x23e   : > { %11105 = vst [vmem:[#allocation34_spill] sm:$0xff] %v7558_v3  ;;  %v3287_v5 = vmul.f32 1.442695, %v3129_v37  ;;  %v2106_v22 = vmul.f32 %v7512_v58, %v1978_v35  ;;  %v1853_v57 = vmul.f32 1.0614054, %v7548_v34  ;;  %v4021_v13 = vsel %vm3765_vm9, %v3893_v12, %v3637_v41  ;;  %11106 = vst [vmem:[#allocation63_spill] sm:$0xff] %v7575_v21 }
 0x23f   : > { %v1342_v17 = vmul.f32 0.3275911, %v7546_v50  ;;  %v3128_v11 = vsub.f32 0.0, %v3000_v30  ;;  %v7570_v27 = vmul.f32 0.5, %v7359_v28  ;;  %v7573_v55 = vmul.f32 0.70710677, %v7555_v45 }
 0x240   : > { %11107 = vst [vmem:[#allocation64_spill] sm:$0xff] %v7577_v7  ;;  %v3892_v60 = vsub.f32 0.0, %v3636_v16  ;;  %v2870_v39 = vmul.f32 %v7394_v18, %v2742_v1  ;;  %v3130_v31 = vsub.f32 0.0, %v3002_v23  ;;  %v11108_v37 = vld [vmem:[#allocation35_spill] sm:$0xff]  ;;  %v2615_v41 = vmul.f32 %v7445_v61, %v2487_v54  ;;  %v7641_v8 = vpop.f32.mrb[29].mxu0 }
 0x241   : > { %v7582_v35 = vadd.f32 %v11108_v37, %v6601_v47  ;;  %v5754_v25 = vpop.eup %5753  ;;  %v2361_v28 = vmul.f32 %v7478_v14, %v2233_v56  ;;  %v2232_v12 = vadd.f32 1.4214138, %v2104_v2  ;;  %v1979_v30 = vadd.f32 -1.4531521, %v1851_v38  ;;  %v11111_v37 = vld [vmem:[#allocation37_spill] sm:$0xff]  ;;  %11115 = vst [vmem:[#allocation66_spill] sm:$0xff] %v7641_v8 }
 0x242   : > { %v4149_v4 = vadd.f32 1.0, %v4021_v13  ;;  %v2234_v3 = vadd.f32 1.4214138, %v2106_v22  ;;  %v1981_v26 = vadd.f32 -1.4531521, %v1853_v57  ;;  %v1470_v36 = vadd.f32 1.0, %v1342_v17 }
 0x243   : > { %5759 = vpow2.f32 %v3287_v5  ;;  %v3285_v49 = vmul.f32 1.442695, %v3128_v11  ;;  %v7587_v18 = vmul.f32 0.5, %v7392_v0  ;;  %v7590_v1 = vand.u32 2147483647, %v7573_v55  ;;  %v7664_v8 = vpop.f32.mrb[30].mxu0 }
 0x244   : > { %v7592_v23 = vpop.eup %5755  ;;  %v4020_v54 = vsel %vm3764_vm10, %v3892_v60, %v3636_v16  ;;  %v3289_v56 = vmul.f32 1.442695, %v3130_v31  ;;  %v3003_v2 = vmul.f32 %v7439_v15, %v7439_v15  ;;  %v7599_v38 = vmul.f32 0.70710677, %v7582_v35 }
 0x245   : > { %v5758_v5 = vpop.eup %5757  ;;  %v3510_v22 = vmul.f32 %v5754_v25, %v2870_v39  ;;  %v2743_v57 = vadd.f32 0.2548296, %v2615_v41  ;;  %v2489_v0 = vadd.f32 -0.28449672, %v2361_v28  ;;  %v2360_v17 = vmul.f32 %v7497_v62, %v2232_v12 }
 0x246   : > { %11109 = vst [vmem:[#allocation35_spill] sm:$0xff] %v7599_v38  ;;  %v2362_v13 = vmul.f32 %v7512_v58, %v2234_v3  ;;  %v2107_v11 = vmul.f32 %v7543_v44, %v1979_v30  ;;  %v2109_v29 = vmul.f32 %v7548_v34, %v1981_v26  ;;  %5761 = vrcp.f32 %v1470_v36 }
 0x247   : > { %v7606_v16 = vmul.f32 %v4149_v4, %v7363_v48  ;;  %v1852_v15 = vmul.f32 1.0614054, %v7592_v23  ;;  %v1343_v60 = vmul.f32 0.3275911, %v7590_v1  ;;  %v7611_v39 = vand.u32 2147483647, %v7599_v38 }
 0x248   : > { %v4148_v31 = vadd.f32 1.0, %v4020_v54  ;;  %vm3766_vm11 = vcmp.lt.f32.partialorder %v7274_v51, 0.0  ;;  %5763 = vpow2.f32 %v3285_v49  ;;  %v3131_v3 = vsub.f32 0.0, %v3003_v2 }
 0x249   : > { %11110 = vst [vmem:[#allocation65_spill] sm:$0xff] %v7606_v16  ;;  %v7616_v25 = vadd.f32 %v11111_v37, %v6629_v10  ;;  %v3638_v26 = vsub.f32 1.0, %v3510_v22  ;;  %v2871_v48 = vmul.f32 %v7445_v61, %v2743_v57  ;;  %v2488_v36 = vadd.f32 -0.28449672, %v2360_v17  ;;  %v11113_v22 = vld [vmem:[#allocation40_spill] sm:$0xff] }
 0x24a   : > { %v3005_v41 = vmul.f32 %v7443_v40, %v7443_v40  ;;  %v2617_v28 = vmul.f32 %v7478_v14, %v2489_v0  ;;  %v2490_v12 = vadd.f32 -0.28449672, %v2362_v13  ;;  %v2235_v30 = vadd.f32 1.4214138, %v2107_v11 }
 0x24b   : > { %v2237_v4 = vadd.f32 1.4214138, %v2109_v29  ;;  %5765 = vpow2.f32 %v3289_v56  ;;  %v1980_v54 = vadd.f32 -1.4531521, %v1852_v15  ;;  %v1471_v49 = vadd.f32 1.0, %v1343_v60 }
 0x24c   : > { %v1345_v2 = vmul.f32 0.3275911, %v7611_v39  ;;  %v3291_v16 = vmul.f32 1.442695, %v3131_v3  ;;  %v7624_v37 = vmul.f32 0.5, %v7412_v43  ;;  %v7631_v40 = vadd.f32 %v11113_v22, %v6650_v19 }
 0x24d   : > { %v7627_v61 = vmul.f32 0.70710677, %v7616_v25  ;;  %v5760_v57 = vpop.eup %5759  ;;  %v3894_v0 = vsub.f32 0.0, %v3638_v26  ;;  %v3511_v17 = vmul.f32 %v5758_v5, %v2871_v48  ;;  %v2616_v56 = vmul.f32 %v7497_v62, %v2488_v36  ;;  %v7643_v5 = vpop.f32.mrb[29].mxu1  ;;  %v11117_v36 = vld [vmem:[#allocation14_spill] sm:$0xff] }
 0x24e   : > { %v3133_v13 = vsub.f32 0.0, %v3005_v41  ;;  %v7635_v11 = vmul.f32 %v4148_v31, %v7463_v59  ;;  %v2745_v29 = vadd.f32 0.2548296, %v2617_v28  ;;  %v2618_v43 = vmul.f32 %v7512_v58, %v2490_v12  ;;  %11116 = vst [vmem:[#allocation67_spill] sm:$0xff] %v7643_v5  ;;  %v11118_v59 = vld [vmem:[#allocation50_spill] sm:$0xff] }
 0x24f   : > { %11112 = vst [vmem:[#allocation37_spill] sm:$0xff] %v7627_v61  ;;  %v2363_v15 = vmul.f32 %v7543_v44, %v2235_v30  ;;  %v2365_v60 = vmul.f32 %v7548_v34, %v2237_v4  ;;  %v2108_v3 = vmul.f32 %v7592_v23, %v1980_v54  ;;  %5767 = vrcp.f32 %v1471_v49  ;;  %11121 = vst [vmem:[#allocation50_spill] sm:$0xff] %v7664_v8 }
 0x250   : > { %11114 = vst [vmem:[#allocation40_spill] sm:$0xff] %v7635_v11  ;;  %v1473_v22 = vadd.f32 1.0, %v1345_v2  ;;  %v7645_v48 = vpop.eup %5761  ;;  %vm3767_vm12 = vcmp.lt.f32.partialorder %v11117_v36, 0.0  ;;  %5769 = vpow2.f32 %v3291_v16  ;;  %v7649_v31 = vmul.f32 0.5, %v11118_v59  ;;  %v11120_v59 = vld [vmem:[#allocation44_spill] sm:$0xff] }
 0x251   : > { %v7652_v41 = vand.u32 2147483647, %v7627_v61  ;;  %v7655_v28 = vmul.f32 0.70710677, %v7631_v40  ;;  %v4022_v12 = vsel %vm3766_vm11, %v3894_v0, %v3638_v26  ;;  %v3639_v30 = vsub.f32 1.0, %v3511_v17 }
 0x252   : > { %v2744_v4 = vadd.f32 0.2548296, %v2616_v56  ;;  %v3295_v54 = vmul.f32 1.442695, %v3133_v13  ;;  %v5764_v49 = vpop.eup %5763  ;;  %v2873_v2 = vmul.f32 %v7478_v14, %v2745_v29  ;;  %v2746_v11 = vadd.f32 0.2548296, %v2618_v43 }
 0x253   : > { %11119 = vst [vmem:[#allocation14_spill] sm:$0xff] %v7655_v28  ;;  %v2491_v16 = vadd.f32 -0.28449672, %v2363_v15  ;;  %v7662_v5 = vadd.f32 %v11120_v59, %v6599_v46  ;;  %v2493_v7 = vadd.f32 -0.28449672, %v2365_v60  ;;  %5771 = vrcp.f32 %v1473_v22  ;;  %v11123_v43 = vld [vmem:[#allocation45_spill] sm:$0xff] }
 0x254   : > { %v2236_v21 = vadd.f32 1.4214138, %v2108_v3  ;;  %v1854_v20 = vmul.f32 1.0614054, %v7645_v48  ;;  %v4150_v51 = vadd.f32 1.0, %v4022_v12  ;;  %v7668_v26 = vmul.f32 0.5, %v7508_v32 }
 0x255   : > { %v1344_v0 = vmul.f32 0.3275911, %v7652_v41  ;;  %v7672_v14 = vand.u32 2147483647, %v7655_v28  ;;  %v5766_v17 = vpop.eup %5765  ;;  %v3895_v56 = vsub.f32 0.0, %v3639_v30  ;;  %v2872_v13 = vmul.f32 %v7497_v62, %v2744_v4  ;;  %v11126_v4 = vld [vmem:[#allocation48_spill] sm:$0xff] }
 0x256   : > { %11122 = vst [vmem:[#allocation44_spill] sm:$0xff] %v7668_v26  ;;  %v3004_v29 = vmul.f32 %v7487_v6, %v7487_v6  ;;  %v7679_v15 = vadd.f32 %v11123_v43, %v6601_v47  ;;  %v3513_v60 = vmul.f32 %v5760_v57, %v2873_v2  ;;  %v2874_v32 = vmul.f32 %v7512_v58, %v2746_v11 }
 0x257   : > { %v2619_v3 = vmul.f32 %v7543_v44, %v2491_v16  ;;  %v7684_v22 = vmul.f32 0.70710677, %v7662_v5  ;;  %v2621_v12 = vmul.f32 %v7548_v34, %v2493_v7  ;;  %v2364_v59 = vmul.f32 %v7592_v23, %v2236_v21  ;;  %v11129_v7 = vld [vmem:[#allocation21_spill] sm:$0xff] }
 0x258   : > { %11124 = vst [vmem:[#allocation45_spill] sm:$0xff] %v7679_v15  ;;  %v1982_v62 = vadd.f32 -1.4531521, %v1854_v20  ;;  %v7690_v6 = vadd.f32 %v11126_v4, %v6629_v10  ;;  %v7693_v43 = vmul.f32 %v4150_v51, %v7500_v9  ;;  %5773 = vpow2.f32 %v3295_v54 }
 0x259   : > { %11125 = vst [vmem:[#allocation68_spill] sm:$0xff] %v7684_v22  ;;  %v1472_v57 = vadd.f32 1.0, %v1344_v0  ;;  %v1346_v58 = vmul.f32 0.3275911, %v7672_v14  ;;  %v7696_v11 = vpop.eup %5767  ;;  %v4023_v2 = vsel %vm3767_vm12, %v3895_v56, %v3639_v30  ;;  %vm3769_vm13 = vcmp.lt.f32.partialorder %v11129_v7, 0.0  ;;  %v7707_v0 = vpop.f32.mrb[30].mxu1 }
 0x25a   : > { %11127 = vst [vmem:[#allocation48_spill] sm:$0xff] %v7690_v6  ;;  %11128 = vst [vmem:[#allocation69_spill] sm:$0xff] %v7693_v43  ;;  %v3512_v21 = vmul.f32 %v5764_v49, %v2872_v13  ;;  %v3132_v20 = vsub.f32 0.0, %v3004_v29  ;;  %v7702_v16 = vmul.f32 0.70710677, %v7679_v15  ;;  %v5770_v4 = vpop.eup %5769  ;;  %v3641_v8 = vsub.f32 1.0, %v3513_v60 }
 0x25b   : > { %v3514_v9 = vmul.f32 %v5766_v17, %v2874_v32  ;;  %v2747_v51 = vadd.f32 0.2548296, %v2619_v3  ;;  %v7705_v54 = vand.u32 2147483647, %v7684_v22  ;;  %11131 = vst [vmem:[#allocation70_spill] sm:$0xff] %v7707_v0  ;;  %v2110_v36 = vmul.f32 %v7645_v48, %v1982_v62  ;;  %v11133_v49 = vld [vmem:[#allocation22_spill] sm:$0xff] }
 0x25c   : > { %11130 = vst [vmem:[#allocation21_spill] sm:$0xff] %v7702_v16  ;;  %v2749_v43 = vadd.f32 0.2548296, %v2621_v12  ;;  %v2492_v24 = vadd.f32 -0.28449672, %v2364_v59  ;;  %vm3768_vm14 = vcmp.lt.f32.partialorder %v11133_v49, 0.0  ;;  %5775 = vrcp.f32 %v1472_v57 }
 0x25d   : > { %v7711_v30 = vmul.f32 0.70710677, %v7690_v6  ;;  %v1855_v56 = vmul.f32 1.0614054, %v7696_v11  ;;  %v1474_v13 = vadd.f32 1.0, %v1346_v58  ;;  %v7718_v29 = vpop.eup %5771  ;;  %v4151_v60 = vadd.f32 1.0, %v4023_v2 }
 0x25e   : > { %v7716_v17 = vand.u32 2147483647, %v7702_v16  ;;  %v3640_v32 = vsub.f32 1.0, %v3512_v21  ;;  %v3293_v3 = vmul.f32 1.442695, %v3132_v20  ;;  %v3006_v12 = vmul.f32 %v7546_v50, %v7546_v50  ;;  %v11134_v0 = vld [vmem:[#allocation25_spill] sm:$0xff] }
 0x25f   : > { %11132 = vst [vmem:[#allocation71_spill] sm:$0xff] %v7711_v30  ;;  %v3897_v59 = vsub.f32 0.0, %v3641_v8  ;;  %v3642_v62 = vsub.f32 1.0, %v3514_v9  ;;  %vm3770_vm15 = vcmp.lt.f32.partialorder %v11134_v0, 0.0  ;;  %v2875_v22 = vmul.f32 %v7543_v44, %v2747_v51  ;;  %v11137_v15 = vld [vmem:[#allocation51_spill] sm:$0xff] }
 0x260   : > { %v1347_v57 = vmul.f32 0.3275911, %v7705_v54  ;;  %v2877_v58 = vmul.f32 %v7548_v34, %v2749_v43  ;;  %v2620_v16 = vmul.f32 %v7592_v23, %v2492_v24  ;;  %v2238_v28 = vadd.f32 1.4214138, %v2110_v36 }
 0x261   : > { %v7728_v2 = vand.u32 2147483647, %v7711_v30  ;;  %v1983_v21 = vadd.f32 -1.4531521, %v1855_v56  ;;  %v1857_v20 = vmul.f32 1.0614054, %v7718_v29  ;;  %5777 = vrcp.f32 %v1474_v13 }
 0x262   : > { %v1349_v50 = vmul.f32 0.3275911, %v7716_v17  ;;  %v3896_v9 = vsub.f32 0.0, %v3640_v32  ;;  %5779 = vpow2.f32 %v3293_v3  ;;  %v3134_v26 = vsub.f32 0.0, %v3006_v12  ;;  %v5774_v51 = vpop.eup %5773  ;;  %v7738_v56 = vpop.f32.mrb[31].mxu0 }
 0x263   : > { %v1348_v44 = vmul.f32 0.3275911, %v7728_v2  ;;  %v7734_v34 = vmul.f32 %v4151_v60, %v7503_v52  ;;  %v4025_v24 = vsel %vm3769_vm13, %v3897_v59, %v3641_v8  ;;  %v3515_v43 = vmul.f32 %v5770_v4, %v2875_v22  ;;  %11136 = vst [vmem:[#allocation25_spill] sm:$0xff] %v7738_v56  ;;  %v11138_v22 = vld [vmem:[#allocation46_spill] sm:$0xff] }
 0x264   : > { %v1475_v36 = vadd.f32 1.0, %v1347_v57  ;;  %v3898_v30 = vsub.f32 0.0, %v3642_v62  ;;  %v3517_v13 = vmul.f32 %v5774_v51, %v2877_v58  ;;  %v2748_v61 = vadd.f32 0.2548296, %v2620_v16 }
 0x265   : > { %11135 = vst [vmem:[#allocation22_spill] sm:$0xff] %v7734_v34  ;;  %v2366_v6 = vmul.f32 %v7645_v48, %v2238_v28  ;;  %v2111_v3 = vmul.f32 %v7696_v11, %v1983_v21  ;;  %v1985_v12 = vadd.f32 -1.4531521, %v1857_v20  ;;  %v1477_v38 = vadd.f32 1.0, %v1349_v50  ;;  %v11139_v28 = vld [vmem:[#allocation29_spill] sm:$0xff] }
 0x266   : > { %v7744_v52 = vadd.f32 %v11137_v15, %v6650_v19  ;;  %v4153_v60 = vadd.f32 1.0, %v4025_v24  ;;  %v4024_v8 = vsel %vm3768_vm14, %v3896_v9, %v3640_v32  ;;  %vm3771_vm0 = vcmp.lt.f32.partialorder %v11138_v22, 0.0  ;;  %v7749_v59 = vpop.eup %5775  ;;  %v7764_v9 = vpop.f32.mrb[31].mxu1 }
 0x267   : > { %v3297_v7 = vmul.f32 1.442695, %v3134_v26  ;;  %v1476_v4 = vadd.f32 1.0, %v1348_v44  ;;  %v3643_v16 = vsub.f32 1.0, %v3515_v43  ;;  %vm3773_vm1 = vcmp.lt.f32.partialorder %v11139_v28, 0.0  ;;  %11140 = vst [vmem:[#allocation51_spill] sm:$0xff] %v7764_v9 }
 0x268   : > { %v3007_v57 = vmul.f32 %v7590_v1, %v7590_v1  ;;  %5781 = vrcp.f32 %v1475_v36  ;;  %v7755_v15 = vmul.f32 0.70710677, %v7744_v52  ;;  %v4026_v49 = vsel %vm3770_vm15, %v3898_v30, %v3642_v62 }
 0x269   : > { %v3645_v32 = vsub.f32 1.0, %v3517_v13  ;;  %v2876_v58 = vmul.f32 %v7592_v23, %v2748_v61  ;;  %v2494_v26 = vadd.f32 -0.28449672, %v2366_v6  ;;  %v2239_v21 = vadd.f32 1.4214138, %v2111_v3 }
 0x26a   : > { %v2113_v20 = vmul.f32 %v7718_v29, %v1985_v12  ;;  %5783 = vrcp.f32 %v1477_v38  ;;  %v7762_v50 = vand.u32 2147483647, %v7755_v15  ;;  %v4152_v1 = vadd.f32 1.0, %v4024_v8 }
 0x26b   : > { %v7767_v44 = vmul.f32 0.5, %v7555_v45  ;;  %v1856_v0 = vmul.f32 1.0614054, %v7749_v59  ;;  %5785 = vrcp.f32 %v1476_v4  ;;  %v7770_v30 = vpop.eup %5777  ;;  %v7773_v23 = vmul.f32 %v4153_v60, %v7536_v53 }
 0x26c   : > { %v3899_v61 = vsub.f32 0.0, %v3643_v16  ;;  %v3009_v38 = vmul.f32 %v7611_v39, %v7611_v39  ;;  %v1350_v6 = vmul.f32 0.3275911, %v7762_v50  ;;  %v5780_v62 = vpop.eup %5779  ;;  %v4154_v51 = vadd.f32 1.0, %v4026_v49 }
 0x26d   : > { %11141 = vst [vmem:[#allocation46_spill] sm:$0xff] %v7773_v23  ;;  %v3901_v24 = vsub.f32 0.0, %v3645_v32  ;;  %5787 = vpow2.f32 %v3297_v7  ;;  %v3135_v45 = vsub.f32 0.0, %v3007_v57  ;;  %v3516_v43 = vmul.f32 %v5780_v62, %v2876_v58  ;;  %v11143_v57 = vld [vmem:[#allocation16_spill] sm:$0xff] }
 0x26e   : > { %v2622_v36 = vmul.f32 %v7645_v48, %v2494_v26  ;;  %v2367_v13 = vmul.f32 %v7696_v11, %v2239_v21  ;;  %v2241_v3 = vadd.f32 1.4214138, %v2113_v20  ;;  %v7781_v53 = vmul.f32 %v4152_v1, %v7541_v33 }
 0x26f   : > { %v1984_v12 = vadd.f32 -1.4531521, %v1856_v0  ;;  %v1858_v60 = vmul.f32 1.0614054, %v7770_v30  ;;  %v1478_v39 = vadd.f32 1.0, %v1350_v6  ;;  %v4027_v8 = vsel %vm3771_vm0, %v3899_v61, %v3643_v16 }
 0x270   : > { %11142 = vst [vmem:[#allocation29_spill] sm:$0xff] %v7781_v53  ;;  %v3137_v4 = vsub.f32 0.0, %v3009_v38  ;;  %v3008_v7 = vmul.f32 %v7652_v41, %v7652_v41  ;;  %v7790_v49 = vadd.f32 %v11143_v57, %v6599_v46  ;;  %v7793_v58 = vmul.f32 %v4154_v51, %v7570_v27 }
 0x271   : > { %v4029_v33 = vsel %vm3773_vm1, %v3901_v24, %v3645_v32  ;;  %vm3772_vm2 = vcmp.lt.f32.partialorder %v7466_v42, 0.0  ;;  %v3299_v26 = vmul.f32 1.442695, %v3135_v45  ;;  %v7799_v22 = vmul.f32 0.5, %v7582_v35 }
 0x272   : > { %11144 = vst [vmem:[#allocation16_spill] sm:$0xff] %v7793_v58  ;;  %v7801_v16 = vpop.eup %5781  ;;  %v3644_v21 = vsub.f32 1.0, %v3516_v43  ;;  %v2750_v41 = vadd.f32 0.2548296, %v2622_v36  ;;  %v2495_v20 = vadd.f32 -0.28449672, %v2367_v13  ;;  %v2369_v1 = vmul.f32 %v7718_v29, %v2241_v3 }
 0x273   : > { %v4155_v0 = vadd.f32 1.0, %v4027_v8  ;;  %v2112_v27 = vmul.f32 %v7749_v59, %v1984_v12  ;;  %v1986_v61 = vadd.f32 -1.4531521, %v1858_v60  ;;  %5789 = vrcp.f32 %v1478_v39  ;;  %v11145_v43 = vld [vmem:[#allocation17_spill] sm:$0xff] }
 0x274   : > { %v7805_v28 = vpop.eup %5783  ;;  %v3303_v32 = vmul.f32 1.442695, %v3137_v4  ;;  %v7808_v38 = vmul.f32 0.5, %v7616_v25  ;;  %v3136_v35 = vsub.f32 0.0, %v3008_v7  ;;  %v7811_v6 = vmul.f32 0.70710677, %v7790_v49 }
 0x275   : > { %v7813_v62 = vpop.eup %5785  ;;  %v4157_v51 = vadd.f32 1.0, %v4029_v33  ;;  %v3010_v24 = vmul.f32 %v7672_v14, %v7672_v14  ;;  %v1859_v45 = vmul.f32 1.0614054, %v7801_v16  ;;  %v7820_v36 = vadd.f32 %v11145_v43, %v6601_v47  ;;  %v7826_v14 = vpop.f32.mrb[32].mxu0 }
 0x276   : > { %v3900_v13 = vsub.f32 0.0, %v3644_v21  ;;  %v2878_v25 = vmul.f32 %v7645_v48, %v2750_v41  ;;  %v2623_v3 = vmul.f32 %v7696_v11, %v2495_v20  ;;  %v2497_v12 = vadd.f32 -0.28449672, %v2369_v1  ;;  %11146 = vst [vmem:[#allocation17_spill] sm:$0xff] %v7826_v14  ;;  %v7828_v7 = vpop.f32.mrb[32].mxu1 }
 0x277   : > { %v5788_v60 = vpop.eup %5787  ;;  %5791 = vpow2.f32 %v3299_v26  ;;  %v2240_v39 = vadd.f32 1.4214138, %v2112_v27  ;;  %v2114_v8 = vmul.f32 %v7770_v30, %v1986_v61  ;;  %v1861_v4 = vmul.f32 1.0614054, %v7805_v28  ;;  %11147 = vst [vmem:[#allocation72_spill] sm:$0xff] %v7828_v7 }
 0x278   : > { %v7831_v57 = vmul.f32 %v4155_v0, %v7587_v18  ;;  %v3301_v33 = vmul.f32 1.442695, %v3136_v35  ;;  %v1860_v48 = vmul.f32 1.0614054, %v7813_v62  ;;  %v7835_v41 = vand.u32 2147483647, %v7811_v6 }
 0x279   : > { %v7838_v26 = vmul.f32 0.5, %v7631_v40  ;;  %v3138_v20 = vsub.f32 0.0, %v3010_v24  ;;  %v1987_v1 = vadd.f32 -1.4531521, %v1859_v45  ;;  %v7841_v27 = vmul.f32 0.70710677, %v7820_v36 }
 0x27a   : > { %11148 = vst [vmem:[#allocation73_spill] sm:$0xff] %v7831_v57  ;;  %v4028_v61 = vsel %vm3772_vm2, %v3900_v13, %v3644_v21  ;;  %v7845_v43 = vmul.f32 %v5788_v60, %v2878_v25  ;;  %v2751_v18 = vadd.f32 0.2548296, %v2623_v3  ;;  %5793 = vpow2.f32 %v3303_v32 }
 0x27b   : > { %v2625_v0 = vmul.f32 %v7718_v29, %v2497_v12  ;;  %v2368_v35 = vmul.f32 %v7749_v59, %v2240_v39  ;;  %v2242_v57 = vadd.f32 1.4214138, %v2114_v8  ;;  %v1989_v23 = vadd.f32 -1.4531521, %v1861_v4 }
 0x27c   : > { %v7850_v40 = vmul.f32 %v4157_v51, %v7624_v37  ;;  %5795 = vpow2.f32 %v3301_v33  ;;  %v1988_v24 = vadd.f32 -1.4531521, %v1860_v48  ;;  %v1351_v45 = vmul.f32 0.3275911, %v7835_v41 }
 0x27d   : > { %v7853_v34 = vpop.eup %5789  ;;  %v4156_v42 = vadd.f32 1.0, %v4028_v61  ;;  %v3305_v21 = vmul.f32 1.442695, %v3138_v20  ;;  %v2115_v13 = vmul.f32 %v7801_v16, %v1987_v1  ;;  %v7857_v32 = vand.u32 2147483647, %v7841_v27 }
 0x27e   : > { %11149 = vst [vmem:[#allocation74_spill] sm:$0xff] %v7850_v40  ;;  %v3646_v25 = vsub.f32 1.0, %v7845_v43  ;;  %v2879_v3 = vmul.f32 %v7696_v11, %v2751_v18  ;;  %v7862_v37 = vmul.f32 0.5, %v7662_v5  ;;  %v3011_v51 = vmul.f32 %v7705_v54, %v7705_v54  ;;  %v11150_v11 = vld [vmem:[#allocation55_spill] sm:$0xff]  ;;  %v7904_v40 = vpop.f32.mrb[33].mxu1 }
 0x27f   : > { %vm3774_vm3 = vcmp.lt.f32.partialorder %v7529_v63, 0.0  ;;  %v2753_v12 = vadd.f32 0.2548296, %v2625_v0  ;;  %v2496_v60 = vadd.f32 -0.28449672, %v2368_v35  ;;  %v2370_v39 = vmul.f32 %v7770_v30, %v2242_v57  ;;  %v7966_v14 = vpop.f32.mrb[34].mxu1 }
 0x280   : > { %v2117_v8 = vmul.f32 %v7805_v28, %v1989_v23  ;;  %v2116_v4 = vmul.f32 %v7813_v62, %v1988_v24  ;;  %v1862_v33 = vmul.f32 1.0614054, %v7853_v34  ;;  %v1479_v48 = vadd.f32 1.0, %v1351_v45 }
 0x281   : > { %v7873_v5 = vadd.f32 %v11150_v11, %v6629_v10  ;;  %v5792_v20 = vpop.eup %5791  ;;  %v7876_v54 = vmul.f32 %v4156_v42, %v7649_v31  ;;  %5797 = vpow2.f32 %v3305_v21  ;;  %v2243_v1 = vadd.f32 1.4214138, %v2115_v13 }
 0x282   : > { %v1353_v61 = vmul.f32 0.3275911, %v7857_v32  ;;  %v3902_v57 = vsub.f32 0.0, %v3646_v25  ;;  %v3519_v43 = vmul.f32 %v5792_v20, %v2879_v3  ;;  %v3139_v23 = vsub.f32 0.0, %v3011_v51 }
 0x283   : > { %11151 = vst [vmem:[#allocation55_spill] sm:$0xff] %v7876_v54  ;;  %v3013_v18 = vmul.f32 %v7716_v17, %v7716_v17  ;;  %v2881_v0 = vmul.f32 %v7718_v29, %v2753_v12  ;;  %v2498_v35 = vadd.f32 -0.28449672, %v2370_v39  ;;  %v2245_v24 = vadd.f32 1.4214138, %v2117_v8  ;;  %v11152_v29 = vld [vmem:[#allocation19_spill] sm:$0xff] }
 0x284   : > { %v7883_v45 = vmul.f32 0.70710677, %v7873_v5  ;;  %v5794_v11 = vpop.eup %5793  ;;  %v2624_v31 = vmul.f32 %v7749_v59, %v2496_v60  ;;  %v2244_v42 = vadd.f32 1.4214138, %v2116_v4  ;;  %v1990_v21 = vadd.f32 -1.4531521, %v1862_v33 }
 0x285   : > { %5799 = vrcp.f32 %v1479_v48  ;;  %vm3775_vm4 = vcmp.lt.f32.partialorder %v7573_v55, 0.0  ;;  %v2371_v13 = vmul.f32 %v7801_v16, %v2243_v1  ;;  %v3012_v17 = vmul.f32 %v7728_v2, %v7728_v2  ;;  %v11153_v8 = vld [vmem:[#allocation45_spill] sm:$0xff] }
 0x286   : > { %v1481_v3 = vadd.f32 1.0, %v1353_v61  ;;  %v7892_v51 = vadd.f32 %v11152_v29, %v6650_v19  ;;  %v5796_v12 = vpop.eup %5795  ;;  %v3647_v39 = vsub.f32 1.0, %v3519_v43  ;;  %v7895_v20 = vmul.f32 0.5, %v11153_v8  ;;  %v7902_v61 = vpop.f32.mrb[33].mxu0  ;;  %11155 = vst [vmem:[#allocation45_spill] sm:$0xff] %v7904_v40 }
 0x287   : > { %v3141_v60 = vsub.f32 0.0, %v3013_v18  ;;  %v7898_v4 = vand.u32 2147483647, %v7883_v45  ;;  %v3521_v33 = vmul.f32 %v5794_v11, %v2881_v0  ;;  %v2626_v48 = vmul.f32 %v7770_v30, %v2498_v35  ;;  %11154 = vst [vmem:[#allocation19_spill] sm:$0xff] %v7902_v61  ;;  %v11157_v11 = vld [vmem:[#allocation12_spill] sm:$0xff] }
 0x288   : > { %v3307_v1 = vmul.f32 1.442695, %v3139_v23  ;;  %v2373_v2 = vmul.f32 %v7805_v28, %v2245_v24  ;;  %v4030_v43 = vsel %vm3774_vm3, %v3902_v57, %v3646_v25  ;;  %v2752_v29 = vadd.f32 0.2548296, %v2624_v31  ;;  %v11158_v57 = vld [vmem:[#allocation35_spill] sm:$0xff] }
 0x289   : > { %v2372_v8 = vmul.f32 %v7813_v62, %v2244_v42  ;;  %v2118_v18 = vmul.f32 %v7853_v34, %v1990_v21  ;;  %v2499_v54 = vadd.f32 -0.28449672, %v2371_v13  ;;  %v3140_v58 = vsub.f32 0.0, %v3012_v17  ;;  %v11159_v21 = vld [vmem:[#allocation48_spill] sm:$0xff] }
 0x28a   : > { %5801 = vrcp.f32 %v1481_v3  ;;  %v7911_v0 = vmul.f32 0.70710677, %v7892_v51  ;;  %v3903_v23 = vsub.f32 0.0, %v3647_v39  ;;  %v3311_v35 = vmul.f32 1.442695, %v3141_v60 }
 0x28b   : > { %v1352_v24 = vmul.f32 0.3275911, %v7898_v4  ;;  %v7916_v53 = vadd.f32 %v11157_v11, %v6599_v46  ;;  %v5798_v63 = vpop.eup %5797  ;;  %v3649_v25 = vsub.f32 1.0, %v3521_v33  ;;  %vm3777_vm5 = vcmp.lt.f32.partialorder %v11158_v57, 0.0 }
 0x28c   : > { %11156 = vst [vmem:[#allocation75_spill] sm:$0xff] %v7911_v0  ;;  %v2754_v31 = vadd.f32 0.2548296, %v2626_v48  ;;  %v2501_v42 = vadd.f32 -0.28449672, %v2373_v2  ;;  %v7920_v13 = vmul.f32 0.5, %v11159_v21  ;;  %v2880_v17 = vmul.f32 %v7749_v59, %v2752_v29 }
 0x28d   : > { %5803 = vpow2.f32 %v3307_v1  ;;  %v2500_v3 = vadd.f32 -0.28449672, %v2372_v8  ;;  %v2246_v60 = vadd.f32 1.4214138, %v2118_v18  ;;  %v4158_v40 = vadd.f32 1.0, %v4030_v43 }
 0x28e   : > { %v2627_v61 = vmul.f32 %v7801_v16, %v2499_v54  ;;  %v3309_v7 = vmul.f32 1.442695, %v3140_v58  ;;  %v7925_v11 = vand.u32 2147483647, %v7911_v0  ;;  %v4031_v48 = vsel %vm3775_vm4, %v3903_v23, %v3647_v39  ;;  %v11161_v39 = vld [vmem:[#allocation20_spill] sm:$0xff] }
 0x28f   : > { %v7927_v33 = vpop.eup %5799  ;;  %5805 = vpow2.f32 %v3311_v35  ;;  %v1480_v2 = vadd.f32 1.0, %v1352_v24  ;;  %v7932_v21 = vmul.f32 0.70710677, %v7916_v53  ;;  %v3905_v59 = vsub.f32 0.0, %v3649_v25  ;;  %11166 = vst [vmem:[#allocation20_spill] sm:$0xff] %v7966_v14 }
 0x290   : > { %v2882_v1 = vmul.f32 %v7770_v30, %v2754_v31  ;;  %v2629_v43 = vmul.f32 %v7805_v28, %v2501_v42  ;;  %v3014_v58 = vmul.f32 %v7762_v50, %v7762_v50  ;;  %v7938_v54 = vmul.f32 %v5796_v12, %v2880_v17  ;;  %v11162_v12 = vld [vmem:[#allocation15_spill] sm:$0xff] }
 0x291   : > { %11160 = vst [vmem:[#allocation12_spill] sm:$0xff] %v7932_v21  ;;  %v2628_v29 = vmul.f32 %v7813_v62, %v2500_v3  ;;  %v2374_v55 = vmul.f32 %v7853_v34, %v2246_v60  ;;  %v7944_v8 = vadd.f32 %v11161_v39, %v6601_v47  ;;  %v2755_v18 = vadd.f32 0.2548296, %v2627_v61  ;;  %v7960_v61 = vpop.f32.mrb[34].mxu0 }
 0x292   : > { %5807 = vpow2.f32 %v3309_v7  ;;  %v1863_v23 = vmul.f32 1.0614054, %v7927_v33  ;;  %v1354_v30 = vmul.f32 0.3275911, %v7925_v11  ;;  %v4159_v35 = vadd.f32 1.0, %v4031_v48  ;;  %11164 = vst [vmem:[#allocation48_spill] sm:$0xff] %v7960_v61 }
 0x293   : > { %5809 = vrcp.f32 %v1480_v2  ;;  %v7949_v50 = vand.u32 2147483647, %v7932_v21  ;;  %v7953_v24 = vadd.f32 %v11162_v12, %v6629_v10  ;;  %v3522_v42 = vmul.f32 %v5798_v63, %v2882_v1  ;;  %v11165_v2 = vld [vmem:[#allocation37_spill] sm:$0xff]  ;;  %v11167_v61 = vld [vmem:[#allocation44_spill] sm:$0xff]  ;;  %v7994_v21 = vpop.f32.mrb[35].mxu0 }
 0x294   : > { %v7955_v31 = vpop.eup %5801  ;;  %v2757_v17 = vadd.f32 0.2548296, %v2629_v43  ;;  %v3142_v3 = vsub.f32 0.0, %v3014_v58  ;;  %v7958_v7 = vmul.f32 0.70710677, %v7944_v8  ;;  %v4033_v60 = vsel %vm3777_vm5, %v3905_v59, %v3649_v25  ;;  %v11169_v25 = vld [vmem:[#allocation14_spill] sm:$0xff] }
 0x295   : > { %v3648_v48 = vsub.f32 1.0, %v7938_v54  ;;  %vm3776_vm6 = vcmp.lt.f32.partialorder %v11165_v2, 0.0  ;;  %v2756_v39 = vadd.f32 0.2548296, %v2628_v29  ;;  %v2502_v12 = vadd.f32 -0.28449672, %v2374_v55 }
 0x296   : > { %11163 = vst [vmem:[#allocation35_spill] sm:$0xff] %v7958_v7  ;;  %v2883_v63 = vmul.f32 %v7801_v16, %v2755_v18  ;;  %v1991_v1 = vadd.f32 -1.4531521, %v1863_v23  ;;  %v1482_v43 = vadd.f32 1.0, %v1354_v30  ;;  %v7970_v58 = vand.u32 2147483647, %v7958_v7 }
 0x297   : > { %v5804_v9 = vpop.eup %5803  ;;  %v7973_v56 = vmul.f32 %v4158_v40, %v11167_v61  ;;  %vm3778_vm7 = vcmp.lt.f32.partialorder %v11169_v25, 0.0  ;;  %v1865_v57 = vmul.f32 1.0614054, %v7955_v31  ;;  %v1355_v59 = vmul.f32 0.3275911, %v7949_v50  ;;  %11172 = vst [vmem:[#allocation14_spill] sm:$0xff] %v7994_v21 }
 0x298   : > { %v7979_v54 = vmul.f32 0.70710677, %v7953_v24  ;;  %v3650_v29 = vsub.f32 1.0, %v3522_v42  ;;  %v7982_v16 = vmul.f32 0.5, %v7744_v52  ;;  %v3313_v55 = vmul.f32 1.442695, %v3142_v3 }
 0x299   : > { %11168 = vst [vmem:[#allocation15_spill] sm:$0xff] %v7973_v56  ;;  %v1357_v18 = vmul.f32 0.3275911, %v7970_v58  ;;  %v5806_v23 = vpop.eup %5805  ;;  %v7986_v40 = vmul.f32 %v4159_v35, %v7767_v44  ;;  %v4161_v30 = vadd.f32 1.0, %v4033_v60  ;;  %v3904_v61 = vsub.f32 0.0, %v3648_v48  ;;  %v11176_v2 = vld [vmem:[#allocation21_spill] sm:$0xff] }
 0x29a   : > { %11170 = vst [vmem:[#allocation37_spill] sm:$0xff] %v7979_v54  ;;  %v7989_v56 = vand.u32 2147483647, %v7979_v54  ;;  %v3523_v14 = vmul.f32 %v5804_v9, %v2883_v63  ;;  %v2885_v7 = vmul.f32 %v7805_v28, %v2757_v17  ;;  %v2884_v42 = vmul.f32 %v7813_v62, %v2756_v39  ;;  %v11173_v54 = vld [vmem:[#allocation42_spill] sm:$0xff]  ;;  %v11175_v17 = vld [vmem:[#allocation68_spill] sm:$0xff] }
 0x29b   : > { %11171 = vst [vmem:[#allocation44_spill] sm:$0xff] %v7986_v40  ;;  %v2630_v52 = vmul.f32 %v7853_v34, %v2502_v12  ;;  %v2119_v3 = vmul.f32 %v7927_v33, %v1991_v1  ;;  %v1993_v0 = vadd.f32 -1.4531521, %v1865_v57  ;;  %5811 = vrcp.f32 %v1482_v43  ;;  %v11197_v21 = vld [vmem:[#allocation36_spill] sm:$0xff] }
 0x29c   : > { %v1483_v44 = vadd.f32 1.0, %v1355_v59  ;;  %v5808_v35 = vpop.eup %5807  ;;  %v3906_v60 = vsub.f32 0.0, %v3650_v29  ;;  %5813 = vpow2.f32 %v3313_v55  ;;  %v1485_v40 = vadd.f32 1.0, %v1357_v18 }
 0x29d   : > { %v7999_v9 = vadd.f32 %v11173_v54, %v6650_v19  ;;  %v8001_v28 = vpop.eup %5809  ;;  %v8004_v62 = vmul.f32 %v4161_v30, %v7799_v22  ;;  %vm3779_vm8 = vcmp.lt.f32.partialorder %v11175_v17, 0.0  ;;  %v8008_v39 = vmul.f32 0.5, %v7790_v49 }
 0x29e   : > { %v3015_v12 = vmul.f32 %v7835_v41, %v7835_v41  ;;  %v1356_v63 = vmul.f32 0.3275911, %v7989_v56  ;;  %v4032_v1 = vsel %vm3776_vm6, %v3904_v61, %v3648_v48  ;;  %v3651_v43 = vsub.f32 1.0, %v3523_v14  ;;  %v11177_v14 = vld [vmem:[#allocation71_spill] sm:$0xff] }
 0x29f   : > { %11174 = vst [vmem:[#allocation42_spill] sm:$0xff] %v8004_v62  ;;  %v3525_v57 = vmul.f32 %v5806_v23, %v2885_v7  ;;  %v3524_v59 = vmul.f32 %v5808_v35, %v2884_v42  ;;  %v2758_v54 = vadd.f32 0.2548296, %v2630_v52  ;;  %v2247_v55 = vadd.f32 1.4214138, %v2119_v3 }
 0x2a0   : > { %v2121_v22 = vmul.f32 %v7955_v31, %v1993_v0  ;;  %5815 = vrcp.f32 %v1483_v44  ;;  %v4034_v49 = vsel %vm3778_vm7, %v3906_v60, %v3650_v29  ;;  %v1864_v18 = vmul.f32 1.0614054, %v8001_v28  ;;  %v8031_v44 = vpop.f32.mrb[35].mxu1 }
 0x2a1   : > { %5817 = vrcp.f32 %v1485_v40  ;;  %v8020_v41 = vmul.f32 0.70710677, %v7999_v9  ;;  %v4160_v30 = vadd.f32 1.0, %v4032_v1  ;;  %vm3781_vm9 = vcmp.lt.f32.partialorder %v11176_v2, 0.0  ;;  %11178 = vst [vmem:[#allocation68_spill] sm:$0xff] %v8031_v44 }
 0x2a2   : > { %vm3780_vm10 = vcmp.lt.f32.partialorder %v11177_v14, 0.0  ;;  %v3143_v7 = vsub.f32 0.0, %v3015_v12  ;;  %v3017_v48 = vmul.f32 %v7857_v32, %v7857_v32  ;;  %v1484_v0 = vadd.f32 1.0, %v1356_v63  ;;  %v11179_v12 = vld [vmem:[#allocation58_spill] sm:$0xff] }
 0x2a3   : > { %v3907_v23 = vsub.f32 0.0, %v3651_v43  ;;  %v3653_v61 = vsub.f32 1.0, %v3525_v57  ;;  %v3652_v25 = vsub.f32 1.0, %v3524_v59  ;;  %v8027_v29 = vand.u32 2147483647, %v8020_v41 }
 0x2a4   : > { %v4162_v40 = vadd.f32 1.0, %v4034_v49  ;;  %v2886_v42 = vmul.f32 %v7853_v34, %v2758_v54  ;;  %v2375_v52 = vmul.f32 %v7927_v33, %v2247_v55  ;;  %v2249_v3 = vadd.f32 1.4214138, %v2121_v22 }
 0x2a5   : > { %v8034_v35 = vmul.f32 0.5, %v7820_v36  ;;  %v1992_v60 = vadd.f32 -1.4531521, %v1864_v18  ;;  %v1358_v32 = vmul.f32 0.3275911, %v8027_v29  ;;  %v8039_v63 = vadd.f32 %v11179_v12, %v6599_v46  ;;  %v8041_v1 = vpop.eup %5811 }
 0x2a6   : > { %v8044_v57 = vmul.f32 %v4160_v30, %v7808_v38  ;;  %v3315_v34 = vmul.f32 1.442695, %v3143_v7  ;;  %v3145_v59 = vsub.f32 0.0, %v3017_v48  ;;  %5819 = vrcp.f32 %v1484_v0  ;;  %v5814_v54 = vpop.eup %5813 }
 0x2a7   : > { %v4035_v36 = vsel %vm3779_vm8, %v3907_v23, %v3651_v43  ;;  %v3909_v55 = vsub.f32 0.0, %v3653_v61  ;;  %v3908_v22 = vsub.f32 0.0, %v3652_v25  ;;  %v3016_v49 = vmul.f32 %v7898_v4, %v7898_v4 }
 0x2a8   : > { %11180 = vst [vmem:[#allocation21_spill] sm:$0xff] %v8044_v57  ;;  %v8051_v18 = vmul.f32 %v4162_v40, %v7838_v26  ;;  %v3526_v12 = vmul.f32 %v5814_v54, %v2886_v42  ;;  %v2503_v62 = vadd.f32 -0.28449672, %v2375_v52  ;;  %v2377_v38 = vmul.f32 %v7955_v31, %v2249_v3 }
 0x2a9   : > { %v2120_v30 = vmul.f32 %v8001_v28, %v1992_v60  ;;  %v1866_v7 = vmul.f32 1.0614054, %v8041_v1  ;;  %v1486_v48 = vadd.f32 1.0, %v1358_v32  ;;  %v8057_v17 = vmul.f32 0.70710677, %v8039_v63 }
 0x2aa   : > { %11181 = vst [vmem:[#allocation71_spill] sm:$0xff] %v8051_v18  ;;  %v8059_v43 = vpop.eup %5815  ;;  %v4163_v0 = vadd.f32 1.0, %v4035_v36  ;;  %5821 = vpow2.f32 %v3315_v34  ;;  %v3319_v4 = vmul.f32 1.442695, %v3145_v59  ;;  %v8062_v26 = vmul.f32 0.5, %v7873_v5  ;;  %v11182_v5 = vld [vmem:[#allocation49_spill] sm:$0xff] }
 0x2ab   : > { %v8064_v23 = vpop.eup %5817  ;;  %v4037_v40 = vsel %vm3781_vm9, %v3909_v55, %v3653_v61  ;;  %v4036_v42 = vsel %vm3780_vm10, %v3908_v22, %v3652_v25  ;;  %v3144_v52 = vsub.f32 0.0, %v3016_v49  ;;  %v8071_v3 = vand.u32 2147483647, %v8057_v17  ;;  %v8085_v55 = vpop.f32.mrb[36].mxu0 }
 0x2ac   : > { %v3654_v60 = vsub.f32 1.0, %v3526_v12  ;;  %vm3782_vm11 = vcmp.lt.f32.partialorder %v7755_v15, 0.0  ;;  %v2631_v32 = vmul.f32 %v7927_v33, %v2503_v62  ;;  %v2505_v34 = vadd.f32 -0.28449672, %v2377_v38  ;;  %11184 = vst [vmem:[#allocation49_spill] sm:$0xff] %v8085_v55  ;;  %v8087_v62 = vpop.f32.mrb[36].mxu1 }
 0x2ad   : > { %v8077_v59 = vadd.f32 %v11182_v5, %v6601_v47  ;;  %v2248_v54 = vadd.f32 1.4214138, %v2120_v30  ;;  %v1994_v2 = vadd.f32 -1.4531521, %v1866_v7  ;;  %v1867_v61 = vmul.f32 1.0614054, %v8059_v43 }
 0x2ae   : > { %5823 = vrcp.f32 %v1486_v48  ;;  %v8081_v14 = vmul.f32 %v4163_v0, %v7862_v37  ;;  %v1869_v25 = vmul.f32 1.0614054, %v8064_v23  ;;  %v1359_v36 = vmul.f32 0.3275911, %v8071_v3  ;;  %11185 = vst [vmem:[#allocation76_spill] sm:$0xff] %v8087_v62 }
 0x2af   : > { %5825 = vpow2.f32 %v3319_v4  ;;  %v4165_v22 = vadd.f32 1.0, %v4037_v40  ;;  %v4164_v49 = vadd.f32 1.0, %v4036_v42  ;;  %v8090_v12 = vmul.f32 0.5, %v7892_v51 }
 0x2b0   : > { %11183 = vst [vmem:[#allocation58_spill] sm:$0xff] %v8081_v14  ;;  %v3018_v38 = vmul.f32 %v7925_v11, %v7925_v11  ;;  %v8094_v30 = vpop.eup %5819  ;;  %v2759_v37 = vadd.f32 0.2548296, %v2631_v32  ;;  %v2633_v7 = vmul.f32 %v7955_v31, %v2505_v34  ;;  %v3019_v48 = vmul.f32 %v7949_v50, %v7949_v50 }
 0x2b1   : > { %v8100_v0 = vmul.f32 0.70710677, %v8077_v59  ;;  %v3910_v4 = vsub.f32 0.0, %v3654_v60  ;;  %v2376_v40 = vmul.f32 %v8001_v28, %v2248_v54  ;;  %v3317_v42 = vmul.f32 1.442695, %v3144_v52 }
 0x2b2   : > { %v2122_v51 = vmul.f32 %v8041_v1, %v1994_v2  ;;  %v8105_v5 = vmul.f32 0.5, %v7916_v53  ;;  %v1995_v11 = vadd.f32 -1.4531521, %v1867_v61  ;;  %v1997_v14 = vadd.f32 -1.4531521, %v1869_v25 }
 0x2b3   : > { %v1487_v32 = vadd.f32 1.0, %v1359_v36  ;;  %v8108_v34 = vmul.f32 %v4165_v22, %v7895_v20  ;;  %v3146_v18 = vsub.f32 0.0, %v3018_v38  ;;  %v1868_v50 = vmul.f32 1.0614054, %v8094_v30 }
 0x2b4   : > { %v8112_v57 = vand.u32 2147483647, %v8100_v0  ;;  %v5822_v62 = vpop.eup %5821  ;;  %v8115_v52 = vmul.f32 %v4164_v49, %v7920_v13  ;;  %v2887_v54 = vmul.f32 %v7927_v33, %v2759_v37  ;;  %v2761_v53 = vadd.f32 0.2548296, %v2633_v7 }
 0x2b5   : > { %11186 = vst [vmem:[#allocation77_spill] sm:$0xff] %v8108_v34  ;;  %v3147_v2 = vsub.f32 0.0, %v3019_v48  ;;  %v4038_v61 = vsel %vm3782_vm11, %v3910_v4, %v3654_v60  ;;  %v2504_v25 = vadd.f32 -0.28449672, %v2376_v40  ;;  %v2250_v20 = vadd.f32 1.4214138, %v2122_v51 }
 0x2b6   : > { %11187 = vst [vmem:[#allocation78_spill] sm:$0xff] %v8115_v52  ;;  %v1361_v36 = vmul.f32 0.3275911, %v8112_v57  ;;  %v2123_v22 = vmul.f32 %v8059_v43, %v1995_v11  ;;  %v2125_v38 = vmul.f32 %v8064_v23, %v1997_v14  ;;  %5827 = vrcp.f32 %v1487_v32  ;;  %v11188_v34 = vld [vmem:[#allocation30_spill] sm:$0xff] }
 0x2b7   : > { %v8125_v13 = vadd.f32 %v11188_v34, %v6629_v10  ;;  %v3321_v33 = vmul.f32 1.442695, %v3146_v18  ;;  %v8130_v37 = vmul.f32 0.5, %v7944_v8  ;;  %v1996_v15 = vadd.f32 -1.4531521, %v1868_v50 }
 0x2b8   : > { %v8127_v49 = vpop.eup %5823  ;;  %v1489_v60 = vadd.f32 1.0, %v1361_v36  ;;  %v4166_v48 = vadd.f32 1.0, %v4038_v61  ;;  %v3527_v4 = vmul.f32 %v5822_v62, %v2887_v54  ;;  %v2889_v40 = vmul.f32 %v7955_v31, %v2761_v53  ;;  %v11189_v62 = vld [vmem:[#allocation32_spill] sm:$0xff] }
 0x2b9   : > { %v5826_v7 = vpop.eup %5825  ;;  %v3021_v14 = vmul.f32 %v7970_v58, %v7970_v58  ;;  %v2632_v51 = vmul.f32 %v8001_v28, %v2504_v25  ;;  %v2378_v11 = vmul.f32 %v8041_v1, %v2250_v20  ;;  %v3323_v32 = vmul.f32 1.442695, %v3147_v2 }
 0x2ba   : > { %v8138_v18 = vmul.f32 0.70710677, %v8125_v13  ;;  %5829 = vpow2.f32 %v3317_v42  ;;  %v2251_v8 = vadd.f32 1.4214138, %v2123_v22  ;;  %v2253_v34 = vadd.f32 1.4214138, %v2125_v38 }
 0x2bb   : > { %v1870_v50 = vmul.f32 1.0614054, %v8127_v49  ;;  %vm3783_vm12 = vcmp.lt.f32.partialorder %v7811_v6, 0.0  ;;  %v2124_v31 = vmul.f32 %v8094_v30, %v1996_v15  ;;  %5831 = vrcp.f32 %v1489_v60 }
 0x2bc   : > { %v8144_v58 = vand.u32 2147483647, %v8138_v18  ;;  %v8148_v54 = vadd.f32 %v11189_v62, %v6650_v19  ;;  %v3655_v53 = vsub.f32 1.0, %v3527_v4  ;;  %v3529_v2 = vmul.f32 %v5826_v7, %v2889_v40 }
 0x2bd   : > { %v3149_v61 = vsub.f32 0.0, %v3021_v14  ;;  %v3020_v42 = vmul.f32 %v7989_v56, %v7989_v56  ;;  %v2760_v25 = vadd.f32 0.2548296, %v2632_v51  ;;  %v2506_v20 = vadd.f32 -0.28449672, %v2378_v11  ;;  %v8161_v56 = vpop.f32.mrb[37].mxu0 }
 0x2be   : > { %5833 = vpow2.f32 %v3321_v33  ;;  %v1360_v36 = vmul.f32 0.3275911, %v8144_v58  ;;  %v2379_v22 = vmul.f32 %v8059_v43, %v2251_v8  ;;  %v2381_v38 = vmul.f32 %v8064_v23, %v2253_v34  ;;  %11191 = vst [vmem:[#allocation32_spill] sm:$0xff] %v8161_v56 }
 0x2bf   : > { %v8156_v15 = vmul.f32 0.5, %v7953_v24  ;;  %v1998_v60 = vadd.f32 -1.4531521, %v1870_v50  ;;  %5835 = vpow2.f32 %v3323_v32  ;;  %v2252_v4 = vadd.f32 1.4214138, %v2124_v31  ;;  %v11192_v50 = vld [vmem:[#allocation63_spill] sm:$0xff] }
 0x2c0   : > { %v1488_v7 = vadd.f32 1.0, %v1360_v36  ;;  %v8159_v40 = vmul.f32 0.70710677, %v8148_v54  ;;  %v8163_v14 = vpop.eup %5827  ;;  %v3911_v33 = vsub.f32 0.0, %v3655_v53  ;;  %v3657_v51 = vsub.f32 1.0, %v3529_v2 }
 0x2c1   : > { %vm3785_vm13 = vcmp.lt.f32.partialorder %v7841_v27, 0.0  ;;  %v3148_v11 = vsub.f32 0.0, %v3020_v42  ;;  %v3022_v24 = vmul.f32 %v8027_v29, %v8027_v29  ;;  %v2888_v8 = vmul.f32 %v8001_v28, %v2760_v25 }
 0x2c2   : > { %11190 = vst [vmem:[#allocation30_spill] sm:$0xff] %v8159_v40  ;;  %v2634_v32 = vmul.f32 %v8041_v1, %v2506_v20  ;;  %v3327_v34 = vmul.f32 1.442695, %v3149_v61  ;;  %v8172_v31 = vadd.f32 %v11192_v50, %v6599_v46  ;;  %v2507_v62 = vadd.f32 -0.28449672, %v2379_v22  ;;  %v8183_v61 = vpop.f32.mrb[37].mxu1 }
 0x2c3   : > { %v2509_v36 = vadd.f32 -0.28449672, %v2381_v38  ;;  %v2126_v52 = vmul.f32 %v8127_v49, %v1998_v60  ;;  %v8176_v2 = vand.u32 2147483647, %v8159_v40  ;;  %v8179_v42 = vmul.f32 %v4166_v48, %v7982_v16  ;;  %11194 = vst [vmem:[#allocation79_spill] sm:$0xff] %v8183_v61 }
 0x2c4   : > { %v2380_v29 = vmul.f32 %v8094_v30, %v2252_v4  ;;  %v1871_v28 = vmul.f32 1.0614054, %v8163_v14  ;;  %5837 = vrcp.f32 %v1488_v7  ;;  %v5830_v25 = vpop.eup %5829  ;;  %v4039_v20 = vsel %vm3783_vm12, %v3911_v33, %v3655_v53 }
 0x2c5   : > { %11193 = vst [vmem:[#allocation63_spill] sm:$0xff] %v8179_v42  ;;  %v3913_v22 = vsub.f32 0.0, %v3657_v51  ;;  %v3325_v38 = vmul.f32 1.442695, %v3148_v11  ;;  %v3150_v60 = vsub.f32 0.0, %v3022_v24  ;;  %v8187_v50 = vpop.eup %5831  ;;  %v3528_v56 = vmul.f32 %v5830_v25, %v2888_v8  ;;  %v11196_v24 = vld [vmem:[#allocation64_spill] sm:$0xff] }
 0x2c6   : > { %v2762_v55 = vadd.f32 0.2548296, %v2634_v32  ;;  %v1362_v16 = vmul.f32 0.3275911, %v8176_v2  ;;  %v8191_v48 = vmul.f32 0.70710677, %v8172_v31  ;;  %v2635_v4 = vmul.f32 %v8059_v43, %v2507_v62 }
 0x2c7   : > { %v2637_v7 = vmul.f32 %v8064_v23, %v2509_v36  ;;  %5839 = vpow2.f32 %v3327_v34  ;;  %v2254_v42 = vadd.f32 1.4214138, %v2126_v52  ;;  %v2508_v53 = vadd.f32 -0.28449672, %v2380_v29 }
 0x2c8   : > { %11195 = vst [vmem:[#allocation80_spill] sm:$0xff] %v8191_v48  ;;  %v5834_v6 = vpop.eup %5833  ;;  %v1999_v33 = vadd.f32 -1.4531521, %v1871_v28  ;;  %v8196_v11 = vand.u32 2147483647, %v8191_v48  ;;  %v8200_v8 = vadd.f32 %v11196_v24, %v6601_v47  ;;  %v4167_v32 = vadd.f32 1.0, %v4039_v20 }
 0x2c9   : > { %vm3784_vm14 = vcmp.lt.f32.partialorder %v7883_v45, 0.0  ;;  %5841 = vpow2.f32 %v3325_v38  ;;  %v1873_v62 = vmul.f32 1.0614054, %v8187_v50  ;;  %v1490_v25 = vadd.f32 1.0, %v1362_v16  ;;  %v5836_v36 = vpop.eup %5835  ;;  %v11198_v20 = vld [vmem:[#allocation39_spill] sm:$0xff] }
 0x2ca   : > { %v4041_v52 = vsel %vm3785_vm13, %v3913_v22, %v3657_v51  ;;  %v3656_v34 = vsub.f32 1.0, %v3528_v56  ;;  %v2890_v29 = vmul.f32 %v8041_v1, %v2762_v55  ;;  %v3329_v28 = vmul.f32 1.442695, %v3150_v60 }
 0x2cb   : > { %v2763_v61 = vadd.f32 0.2548296, %v2635_v4  ;;  %v2765_v44 = vadd.f32 0.2548296, %v2637_v7  ;;  %v2382_v24 = vmul.f32 %v8127_v49, %v2254_v42  ;;  %v4380_v48 = vpack.c.bf16 %v11198_v20, %v11197_v21  ;;  %v11201_v4 = vld [vmem:[#allocation24_spill] sm:$0xff] }
 0x2cc   : > { %v2636_v38 = vmul.f32 %v8094_v30, %v2508_v53  ;;  %v2127_v40 = vmul.f32 %v8163_v14, %v1999_v33  ;;  %v1363_v16 = vmul.f32 0.3275911, %v8196_v11  ;;  %v8214_v27 = vmul.f32 0.70710677, %v8200_v8 }
 0x2cd   : > { %v8217_v56 = vmul.f32 %v4167_v32, %v8008_v39  ;;  %v8220_v1 = vmul.f32 0.5, %v7999_v9  ;;  %v2001_v55 = vadd.f32 -1.4531521, %v1873_v62  ;;  %5843 = vrcp.f32 %v1490_v25  ;;  %4738 = vmatprep.mubr.bf16.mxu0 %v4380_v48  ;;  %v11202_v39 = vld [vmem:[#allocation23_spill] sm:$0xff] }
 0x2ce   : > { %11199 = vst [vmem:[#allocation64_spill] sm:$0xff] %v8214_v27  ;;  %v8222_v51 = vpop.eup %5837  ;;  %v3912_v21 = vsub.f32 0.0, %v3656_v34  ;;  %v8224_v42 = vmul.f32 %v5834_v6, %v2890_v29  ;;  %v8227_v22 = vmul.f32 0.5, %v8039_v63  ;;  %v8230_v60 = vand.u32 2147483647, %v8214_v27 }
 0x2cf   : > { %11200 = vst [vmem:[#allocation36_spill] sm:$0xff] %v8217_v56  ;;  %v11203_v7 = vpack.c.bf16 %v11201_v4, %v11202_v39  ;;  %v4169_v9 = vadd.f32 1.0, %v4041_v52  ;;  %v2891_v53 = vmul.f32 %v8059_v43, %v2763_v61  ;;  %v2893_v48 = vmul.f32 %v8064_v23, %v2765_v44  ;;  %v11204_v56 = vld [vmem:[#allocation38_spill] sm:$0xff]  ;;  %v11205_v4 = vld [vmem:[#allocation41_spill] sm:$0xff]  ;;  %v8242_v52 = vpop.f32.mrb[38].mxu0  ;;  %v8244_v43 = vpop.f32.mrb[38].mxu1 }
 0x2d0   : > { %v2510_v33 = vadd.f32 -0.28449672, %v2382_v24  ;;  %v2764_v32 = vadd.f32 0.2548296, %v2636_v38  ;;  %5845 = vpow2.f32 %v3329_v28  ;;  %v2255_v6 = vadd.f32 1.4214138, %v2127_v40 }
 0x2d1   : > { %4739 = vmatmul.mubr.bf16.vlgmr.msra.gmra.mrb[64].mxu0 %v11203_v7  ;;  %v1491_v62 = vadd.f32 1.0, %v1363_v16  ;;  %v5840_v25 = vpop.eup %5839  ;;  %v2129_v63 = vmul.f32 %v8187_v50, %v2001_v55  ;;  %v1872_v29 = vmul.f32 1.0614054, %v8222_v51  ;;  %v1365_v20 = vmul.f32 0.3275911, %v8230_v60  ;;  %11206 = vst [vmem:[#allocation39_spill] sm:$0xff] %v8242_v52 }
 0x2d2   : > { %v4382_v39 = vpack.c.bf16 %v11205_v4, %v11204_v56  ;;  %11207 = vst [vmem:[#allocation24_spill] sm:$0xff] %v8244_v43  ;;  %v4040_v44 = vsel %vm3784_vm14, %v3912_v21, %v3656_v34  ;;  %v3658_v23 = vsub.f32 1.0, %v8224_v42  ;;  %v11208_v40 = vld [vmem:[#allocation75_spill] sm:$0xff]  ;;  %v3023_v61 = vmul.f32 %v8071_v3, %v8071_v3  ;;  %v11209_v28 = vld [vmem:[#allocation66_spill] sm:$0xff]  ;;  %v8273_v4 = vpop.f32.mrb[39].mxu0 }
 0x2d3   : > { %vm3786_vm15 = vcmp.lt.f32.partialorder %v11208_v40, 0.0  ;;  %v8254_v24 = vadd.f32 %v11209_v28, %v6629_v10  ;;  %v5842_v38 = vpop.eup %5841  ;;  %v3531_v16 = vmul.f32 %v5836_v36, %v2891_v53  ;;  %v8256_v56 = vmul.f32 %v5840_v25, %v2893_v48  ;;  %v11211_v42 = vld [vmem:[#allocation67_spill] sm:$0xff]  ;;  %v11213_v53 = vld [vmem:[#allocation26_spill] sm:$0xff]  ;;  %11215 = vst [vmem:[#allocation38_spill] sm:$0xff] %v8273_v4 }
 0x2d4   : > { %v2638_v55 = vmul.f32 %v8127_v49, %v2510_v33  ;;  %v3025_v45 = vmul.f32 %v8112_v57, %v8112_v57  ;;  %4899 = vmatprep.mubr.bf16.mxu1 %v4382_v39  ;;  %v2892_v34 = vmul.f32 %v8094_v30, %v2764_v32  ;;  %v2383_v21 = vmul.f32 %v8163_v14, %v2255_v6  ;;  %v11212_v36 = vld [vmem:[#allocation27_spill] sm:$0xff]  ;;  %v11216_v32 = vld [vmem:[#allocation12_spill] sm:$0xff] }
 0x2d5   : > { %v8264_v3 = vmul.f32 0.70710677, %v8254_v24  ;;  %v8268_v7 = vadd.f32 %v11211_v42, %v6650_v19  ;;  %v11214_v48 = vpack.c.bf16 %v11212_v36, %v11213_v53  ;;  %v2257_v33 = vadd.f32 1.4214138, %v2129_v63 }
 0x2d6   : > { %v2000_v25 = vadd.f32 -1.4531521, %v1872_v29  ;;  %5847 = vrcp.f32 %v1491_v62  ;;  %v1493_v57 = vadd.f32 1.0, %v1365_v20  ;;  %v4168_v30 = vadd.f32 1.0, %v4040_v44  ;;  %v11217_v20 = vld [vmem:[#allocation35_spill] sm:$0xff] }
 0x2d7   : > { %11210 = vst [vmem:[#allocation23_spill] sm:$0xff] %v8264_v3  ;;  %4900 = vmatmul.mubr.bf16.vlgmr.msra.gmra.mrb[64].mxu1 %v11214_v48  ;;  %vm3787_vm0 = vcmp.lt.f32.partialorder %v11216_v32, 0.0  ;;  %v3151_v6 = vsub.f32 0.0, %v3023_v61  ;;  %v8277_v39 = vmul.f32 0.5, %v8077_v59  ;;  %v8280_v28 = vand.u32 2147483647, %v8264_v3  ;;  %v8282_v42 = vpop.eup %5843 }
 0x2d8   : > { %v3914_v36 = vsub.f32 0.0, %v3658_v23  ;;  %v3659_v53 = vsub.f32 1.0, %v3531_v16  ;;  %v2766_v63 = vadd.f32 0.2548296, %v2638_v55  ;;  %v3153_v29 = vsub.f32 0.0, %v3025_v45 }
 0x2d9   : > { %v3661_v62 = vsub.f32 1.0, %v8256_v56  ;;  %vm3789_vm1 = vcmp.lt.f32.partialorder %v11217_v20, 0.0  ;;  %v3532_v44 = vmul.f32 %v5842_v38, %v2892_v34  ;;  %v1364_v48 = vmul.f32 0.3275911, %v8280_v28 }
 0x2da   : > { %v8288_v61 = vmul.f32 0.70710677, %v8268_v7  ;;  %v2511_v59 = vadd.f32 -0.28449672, %v2383_v21  ;;  %v2385_v4 = vmul.f32 %v8187_v50, %v2257_v33  ;;  %v2128_v43 = vmul.f32 %v8222_v51, %v2000_v25  ;;  %v5846_v52 = vpop.eup %5845  ;;  %v11220_v21 = vld [vmem:[#allocation37_spill] sm:$0xff] }
 0x2db   : > { %5849 = vrcp.f32 %v1493_v57  ;;  %v8293_v16 = vmul.f32 %v4169_v9, %v8034_v35  ;;  %v3331_v55 = vmul.f32 1.442695, %v3151_v6  ;;  %v1874_v56 = vmul.f32 1.0614054, %v8282_v42  ;;  %v11221_v9 = vld [vmem:[#allocation50_spill] sm:$0xff] }
 0x2dc   : > { %11218 = vst [vmem:[#allocation41_spill] sm:$0xff] %v8288_v61  ;;  %v8297_v38 = vand.u32 2147483647, %v8288_v61  ;;  %v4042_v45 = vsel %vm3786_vm15, %v3914_v36, %v3658_v23  ;;  %v3915_v34 = vsub.f32 0.0, %v3659_v53  ;;  %vm3788_vm2 = vcmp.lt.f32.partialorder %v11220_v21, 0.0  ;;  %v8310_v36 = vpop.f32.mrb[39].mxu1 }
 0x2dd   : > { %11219 = vst [vmem:[#allocation75_spill] sm:$0xff] %v8293_v16  ;;  %v2894_v33 = vmul.f32 %v8127_v49, %v2766_v63  ;;  %v1492_v25 = vadd.f32 1.0, %v1364_v48  ;;  %v3660_v57 = vsub.f32 1.0, %v3532_v44  ;;  %v3335_v3 = vmul.f32 1.442695, %v3153_v29  ;;  %11222 = vst [vmem:[#allocation66_spill] sm:$0xff] %v8310_v36 }
 0x2de   : > { %v3024_v35 = vmul.f32 %v8144_v58, %v8144_v58  ;;  %v8307_v6 = vadd.f32 %v11221_v9, %v6599_v46  ;;  %v3917_v16 = vsub.f32 0.0, %v3661_v62  ;;  %v2639_v61 = vmul.f32 %v8163_v14, %v2511_v59  ;;  %v11256_v36 = vld [vmem:[#allocation54_spill] sm:$0xff] }
 0x2df   : > { %v2513_v40 = vadd.f32 -0.28449672, %v2385_v4  ;;  %v2256_v23 = vadd.f32 1.4214138, %v2128_v43  ;;  %v8313_v27 = vmul.f32 %v4168_v30, %v8062_v26  ;;  %5851 = vpow2.f32 %v3331_v55 }
 0x2e0   : > { %v2002_v49 = vadd.f32 -1.4531521, %v1874_v56  ;;  %v1366_v63 = vmul.f32 0.3275911, %v8297_v38  ;;  %v8316_v29 = vpop.eup %5847  ;;  %v4170_v58 = vadd.f32 1.0, %v4042_v45  ;;  %v4043_v44 = vsel %vm3787_vm0, %v3915_v34, %v3659_v53 }
 0x2e1   : > { %11223 = vst [vmem:[#allocation67_spill] sm:$0xff] %v8313_v27  ;;  %v3534_v48 = vmul.f32 %v5846_v52, %v2894_v33  ;;  %5853 = vrcp.f32 %v1492_v25  ;;  %v3916_v59 = vsub.f32 0.0, %v3660_v57  ;;  %v3152_v43 = vsub.f32 0.0, %v3024_v35 }
 0x2e2   : > { %5855 = vpow2.f32 %v3335_v3  ;;  %v8321_v4 = vmul.f32 0.70710677, %v8307_v6  ;;  %v4045_v26 = vsel %vm3789_vm1, %v3917_v16, %v3661_v62  ;;  %v2767_v30 = vadd.f32 0.2548296, %v2639_v61  ;;  %v11224_v3 = vld [vmem:[#allocation70_spill] sm:$0xff] }
 0x2e3   : > { %v2641_v55 = vmul.f32 %v8187_v50, %v2513_v40  ;;  %v2384_v56 = vmul.f32 %v8222_v51, %v2256_v23  ;;  %vm3790_vm3 = vcmp.lt.f32.partialorder %v8020_v41, 0.0  ;;  %v2130_v32 = vmul.f32 %v8282_v42, %v2002_v49 }
 0x2e4   : > { %v1875_v52 = vmul.f32 1.0614054, %v8316_v29  ;;  %v1494_v53 = vadd.f32 1.0, %v1366_v63  ;;  %v8332_v45 = vadd.f32 %v11224_v3, %v6601_v47  ;;  %v4171_v20 = vadd.f32 1.0, %v4043_v44 }
 0x2e5   : > { %v8334_v34 = vpop.eup %5849  ;;  %v3662_v62 = vsub.f32 1.0, %v3534_v48  ;;  %v8337_v61 = vmul.f32 0.5, %v8125_v13  ;;  %v8340_v16 = vand.u32 2147483647, %v8321_v4  ;;  %v4173_v33 = vadd.f32 1.0, %v4045_v26 }
 0x2e6   : > { %v4044_v25 = vsel %vm3788_vm2, %v3916_v59, %v3660_v57  ;;  %v3333_v35 = vmul.f32 1.442695, %v3152_v43  ;;  %v3026_v9 = vmul.f32 %v8176_v2, %v8176_v2  ;;  %v2895_v40 = vmul.f32 %v8163_v14, %v2767_v30  ;;  %v8358_v14 = vpop.f32.mrb[40].mxu0 }
 0x2e7   : > { %v2769_v23 = vadd.f32 0.2548296, %v2641_v55  ;;  %v2512_v49 = vadd.f32 -0.28449672, %v2384_v56  ;;  %v8348_v63 = vmul.f32 0.70710677, %v8332_v45  ;;  %5857 = vrcp.f32 %v1494_v53 }
 0x2e8   : > { %v2258_v13 = vadd.f32 1.4214138, %v2130_v32  ;;  %v2003_v44 = vadd.f32 -1.4531521, %v1875_v52  ;;  %v1877_v48 = vmul.f32 1.0614054, %v8334_v34  ;;  %v8352_v26 = vmul.f32 %v4170_v58, %v8090_v12 }
 0x2e9   : > { %v3918_v21 = vsub.f32 0.0, %v3662_v62  ;;  %v1367_v57 = vmul.f32 0.3275911, %v8340_v16  ;;  %v8356_v2 = vand.u32 2147483647, %v8348_v63  ;;  %11226 = vst [vmem:[#allocation26_spill] sm:$0xff] %v8358_v14  ;;  %v5852_v59 = vpop.eup %5851  ;;  %v8361_v43 = vmul.f32 %v4171_v20, %v8105_v5 }
 0x2ea   : > { %11225 = vst [vmem:[#allocation27_spill] sm:$0xff] %v8352_v26  ;;  %v8364_v30 = vmul.f32 %v4173_v33, %v8130_v37  ;;  %5859 = vpow2.f32 %v3333_v35  ;;  %v8367_v55 = vmul.f32 0.5, %v8148_v54  ;;  %v4172_v58 = vadd.f32 1.0, %v4044_v25 }
 0x2eb   : > { %11227 = vst [vmem:[#allocation12_spill] sm:$0xff] %v8361_v43  ;;  %v8369_v12 = vpop.eup %5853  ;;  %v3535_v56 = vmul.f32 %v5852_v59, %v2895_v40  ;;  %v2897_v32 = vmul.f32 %v8187_v50, %v2769_v23  ;;  %v3154_v52 = vsub.f32 0.0, %v3026_v9  ;;  %v2640_v3 = vmul.f32 %v8222_v51, %v2512_v49  ;;  %v11229_v23 = vld [vmem:[#allocation25_spill] sm:$0xff]  ;;  %v8388_v49 = vpop.f32.mrb[40].mxu1 }
 0x2ec   : > { %11228 = vst [vmem:[#allocation35_spill] sm:$0xff] %v8364_v30  ;;  %v5856_v53 = vpop.eup %5855  ;;  %v2386_v5 = vmul.f32 %v8282_v42, %v2258_v13  ;;  %v3027_v37 = vmul.f32 %v8196_v11, %v8196_v11  ;;  %v1369_v20 = vmul.f32 0.3275911, %v8356_v2  ;;  %v4046_v54 = vsel %vm3790_vm3, %v3918_v21, %v3662_v62  ;;  %11230 = vst [vmem:[#allocation37_spill] sm:$0xff] %v8388_v49 }
 0x2ed   : > { %v2131_v33 = vmul.f32 %v8316_v29, %v2003_v44  ;;  %v2005_v25 = vadd.f32 -1.4531521, %v1877_v48  ;;  %v1495_v35 = vadd.f32 1.0, %v1367_v57  ;;  %vm3791_vm4 = vcmp.lt.f32.partialorder %v8057_v17, 0.0 }
 0x2ee   : > { %v3029_v50 = vmul.f32 %v8230_v60, %v8230_v60  ;;  %v1876_v9 = vmul.f32 1.0614054, %v8369_v12  ;;  %v1497_v40 = vadd.f32 1.0, %v1369_v20  ;;  %v8386_v11 = vadd.f32 %v11229_v23, %v6629_v10 }
 0x2ef   : > { %v3663_v41 = vsub.f32 1.0, %v3535_v56  ;;  %v3537_v62 = vmul.f32 %v5856_v53, %v2897_v32  ;;  %v3337_v13 = vmul.f32 1.442695, %v3154_v52  ;;  %v8391_v44 = vmul.f32 0.5, %v8172_v31 }
 0x2f0   : > { %v8394_v48 = vmul.f32 %v4172_v58, %v8156_v15  ;;  %v2768_v21 = vadd.f32 0.2548296, %v2640_v3  ;;  %v2514_v60 = vadd.f32 -0.28449672, %v2386_v5  ;;  %v3155_v57 = vsub.f32 0.0, %v3027_v37  ;;  %v11232_v37 = vld [vmem:[#allocation51_spill] sm:$0xff] }
 0x2f1   : > { %v4174_v59 = vadd.f32 1.0, %v4046_v54  ;;  %v2259_v20 = vadd.f32 1.4214138, %v2131_v33  ;;  %v2133_v30 = vmul.f32 %v8334_v34, %v2005_v25  ;;  %5861 = vrcp.f32 %v1495_v35  ;;  %v8397_v23 = vpop.eup %5857 }
 0x2f2   : > { %11231 = vst [vmem:[#allocation50_spill] sm:$0xff] %v8394_v48  ;;  %v3157_v43 = vsub.f32 0.0, %v3029_v50  ;;  %v2004_v56 = vadd.f32 -1.4531521, %v1876_v9  ;;  %5863 = vrcp.f32 %v1497_v40  ;;  %v8400_v32 = vmul.f32 0.70710677, %v8386_v11 }
 0x2f3   : > { %v3919_v31 = vsub.f32 0.0, %v3663_v41  ;;  %v3665_v52 = vsub.f32 1.0, %v3537_v62  ;;  %vm3793_vm5 = vcmp.lt.f32.partialorder %v8100_v0, 0.0  ;;  %5865 = vpow2.f32 %v3337_v13 }
 0x2f4   : > { %v8404_v15 = vmul.f32 0.5, %v8200_v8  ;;  %v5860_v58 = vpop.eup %5859  ;;  %v2896_v53 = vmul.f32 %v8222_v51, %v2768_v21  ;;  %v2642_v3 = vmul.f32 %v8282_v42, %v2514_v60  ;;  %v8409_v5 = vand.u32 2147483647, %v8400_v32 }
 0x2f5   : > { %v8413_v54 = vadd.f32 %v11232_v37, %v6650_v19  ;;  %v2387_v33 = vmul.f32 %v8316_v29, %v2259_v20  ;;  %v3339_v25 = vmul.f32 1.442695, %v3155_v57  ;;  %v2261_v35 = vadd.f32 1.4214138, %v2133_v30 }
 0x2f6   : > { %v1878_v50 = vmul.f32 1.0614054, %v8397_v23  ;;  %v8418_v8 = vmul.f32 %v4174_v59, %v8220_v1  ;;  %v3343_v9 = vmul.f32 1.442695, %v3157_v43  ;;  %v2132_v51 = vmul.f32 %v8369_v12, %v2004_v56 }
 0x2f7   : > { %v1368_v40 = vmul.f32 0.3275911, %v8409_v5  ;;  %v4047_v62 = vsel %vm3791_vm4, %v3919_v31, %v3663_v41  ;;  %v3921_v13 = vsub.f32 0.0, %v3665_v52  ;;  %v3028_v21 = vmul.f32 %v8280_v28, %v8280_v28  ;;  %v8434_v41 = vpop.f32.mrb[41].mxu0 }
 0x2f8   : > { %11233 = vst [vmem:[#allocation70_spill] sm:$0xff] %v8418_v8  ;;  %v3030_v30 = vmul.f32 %v8297_v38, %v8297_v38  ;;  %v8428_v60 = vmul.f32 %v5860_v58, %v2896_v53  ;;  %v2770_v57 = vadd.f32 0.2548296, %v2642_v3  ;;  %v8431_v43 = vmul.f32 0.70710677, %v8413_v54  ;;  %11234 = vst [vmem:[#allocation25_spill] sm:$0xff] %v8434_v41 }
 0x2f9   : > { %v1496_v1 = vadd.f32 1.0, %v1368_v40  ;;  %v2515_v59 = vadd.f32 -0.28449672, %v2387_v33  ;;  %5867 = vpow2.f32 %v3339_v25  ;;  %v2389_v20 = vmul.f32 %v8334_v34, %v2261_v35  ;;  %v11235_v38 = vld [vmem:[#allocation17_spill] sm:$0xff]  ;;  %v8443_v58 = vpop.f32.mrb[41].mxu1 }
 0x2fa   : > { %v2006_v17 = vadd.f32 -1.4531521, %v1878_v50  ;;  %v8437_v56 = vmul.f32 0.5, %v8254_v24  ;;  %v2260_v28 = vadd.f32 1.4214138, %v2132_v51  ;;  %v8441_v31 = vadd.f32 %v11235_v38, %v6599_v46  ;;  %11236 = vst [vmem:[#allocation51_spill] sm:$0xff] %v8443_v58 }
 0x2fb   : > { %5869 = vrcp.f32 %v1496_v1  ;;  %v8445_v53 = vpop.eup %5861  ;;  %v4175_v3 = vadd.f32 1.0, %v4047_v62  ;;  %v3156_v37 = vsub.f32 0.0, %v3028_v21  ;;  %v8448_v33 = vand.u32 2147483647, %v8431_v43 }
 0x2fc   : > { %5871 = vpow2.f32 %v3343_v9  ;;  %v8450_v25 = vpop.eup %5863  ;;  %v4049_v24 = vsel %vm3793_vm5, %v3921_v13, %v3665_v52  ;;  %v3664_v35 = vsub.f32 1.0, %v8428_v60  ;;  %v2898_v50 = vmul.f32 %v8282_v42, %v2770_v57 }
 0x2fd   : > { %v3158_v51 = vsub.f32 0.0, %v3030_v30  ;;  %v5866_v40 = vpop.eup %5865  ;;  %vm3792_vm6 = vcmp.lt.f32.partialorder %v8138_v18, 0.0  ;;  %v2643_v62 = vmul.f32 %v8316_v29, %v2515_v59  ;;  %v2517_v9 = vadd.f32 -0.28449672, %v2389_v20 }
 0x2fe   : > { %v2134_v21 = vmul.f32 %v8397_v23, %v2006_v17  ;;  %v1370_v1 = vmul.f32 0.3275911, %v8448_v33  ;;  %v2388_v38 = vmul.f32 %v8369_v12, %v2260_v28  ;;  %v8462_v0 = vmul.f32 0.5, %v8268_v7 }
 0x2ff   : > { %v1879_v52 = vmul.f32 1.0614054, %v8445_v53  ;;  %v8466_v42 = vmul.f32 0.70710677, %v8441_v31  ;;  %v4177_v13 = vadd.f32 1.0, %v4049_v24  ;;  %v8469_v59 = vmul.f32 %v5866_v40, %v2898_v50 }
 0x300   : > { %v3341_v30 = vmul.f32 1.442695, %v3156_v37  ;;  %v1881_v60 = vmul.f32 1.0614054, %v8450_v25  ;;  %v1498_v57 = vadd.f32 1.0, %v1370_v1  ;;  %v3031_v17 = vmul.f32 %v8340_v16, %v8340_v16  ;;  %v11237_v37 = vld [vmem:[#allocation72_spill] sm:$0xff] }
 0x301   : > { %v3345_v20 = vmul.f32 1.442695, %v3158_v51  ;;  %v8474_v28 = vand.u32 2147483647, %v8466_v42  ;;  %v3920_v7 = vsub.f32 0.0, %v3664_v35  ;;  %v2645_v48 = vmul.f32 %v8334_v34, %v2517_v9 }
 0x302   : > { %v2771_v8 = vadd.f32 0.2548296, %v2643_v62  ;;  %v2262_v26 = vadd.f32 1.4214138, %v2134_v21  ;;  %v2516_v27 = vadd.f32 -0.28449672, %v2388_v38  ;;  %5873 = vrcp.f32 %v1498_v57 }
 0x303   : > { %v2007_v24 = vadd.f32 -1.4531521, %v1879_v52  ;;  %v8479_v1 = vadd.f32 %v11237_v37, %v6601_v47  ;;  %v5868_v50 = vpop.eup %5867  ;;  %v8482_v51 = vmul.f32 %v4175_v3, %v8227_v22  ;;  %v8485_v16 = vmul.f32 0.5, %v8307_v6  ;;  %v11240_v57 = vld [vmem:[#allocation30_spill] sm:$0xff] }
 0x304   : > { %v2009_v40 = vadd.f32 -1.4531521, %v1881_v60  ;;  %v1371_v62 = vmul.f32 0.3275911, %v8474_v28  ;;  %v8491_v9 = vmul.f32 %v4177_v13, %v8277_v39  ;;  %v3666_v21 = vsub.f32 1.0, %v8469_v59 }
 0x305   : > { %11238 = vst [vmem:[#allocation17_spill] sm:$0xff] %v8482_v51  ;;  %v8488_v58 = vpop.eup %5869  ;;  %5875 = vpow2.f32 %v3341_v30  ;;  %v3159_v38 = vsub.f32 0.0, %v3031_v17  ;;  %vm3794_vm7 = vcmp.lt.f32.partialorder %v11240_v57, 0.0  ;;  %v2899_v22 = vmul.f32 %v8316_v29, %v2771_v8  ;;  %v11241_v29 = vld [vmem:[#allocation18_spill] sm:$0xff] }
 0x306   : > { %11239 = vst [vmem:[#allocation72_spill] sm:$0xff] %v8491_v9  ;;  %v5872_v52 = vpop.eup %5871  ;;  %v2773_v3 = vadd.f32 0.2548296, %v2645_v48  ;;  %v2390_v6 = vmul.f32 %v8397_v23, %v2262_v26  ;;  %5877 = vpow2.f32 %v3345_v20  ;;  %v4048_v60 = vsel %vm3792_vm6, %v3920_v7, %v3664_v35  ;;  %v11242_v48 = vld [vmem:[#allocation56_spill] sm:$0xff]  ;;  %v11244_v9 = vld [vmem:[#allocation57_spill] sm:$0xff] }
 0x307   : > { %v2644_v37 = vmul.f32 %v8369_v12, %v2516_v27  ;;  %v2135_v39 = vmul.f32 %v8445_v53, %v2007_v24  ;;  %v8502_v13 = vmul.f32 0.70710677, %v8479_v1  ;;  %v2137_v30 = vmul.f32 %v8450_v25, %v2009_v40  ;;  %v11243_v40 = vld [vmem:[#allocation33_spill] sm:$0xff] }
 0x308   : > { %v1880_v59 = vmul.f32 1.0614054, %v8488_v58  ;;  %v1499_v17 = vadd.f32 1.0, %v1371_v62  ;;  %v4384_v8 = vpack.c.bf16 %v11242_v48, %v11241_v29  ;;  %v3922_v26 = vsub.f32 0.0, %v3666_v21 }
 0x309   : > { %v3347_v20 = vmul.f32 1.442695, %v3159_v38  ;;  %v3033_v18 = vmul.f32 %v8356_v2, %v8356_v2  ;;  %v8511_v27 = vand.u32 2147483647, %v8502_v13  ;;  %v3539_v35 = vmul.f32 %v5868_v50, %v2899_v22  ;;  %v11245_v38 = vld [vmem:[#allocation19_spill] sm:$0xff]  ;;  %v11247_v22 = vld [vmem:[#allocation53_spill] sm:$0xff] }
 0x30a   : > { %v2901_v7 = vmul.f32 %v8334_v34, %v2773_v3  ;;  %v2518_v24 = vadd.f32 -0.28449672, %v2390_v6  ;;  %4746 = vmatprep.mubr.bf16.mxu0 %v4384_v8  ;;  %v4386_v51 = vpack.c.bf16 %v11244_v9, %v11243_v40  ;;  %v2772_v62 = vadd.f32 0.2548296, %v2644_v37  ;;  %v11246_v50 = vld [vmem:[#allocation43_spill] sm:$0xff]  ;;  %v11248_v8 = vld [vmem:[#allocation80_spill] sm:$0xff] }
 0x30b   : > { %v2263_v41 = vadd.f32 1.4214138, %v2135_v39  ;;  %v1373_v29 = vmul.f32 0.3275911, %v8511_v27  ;;  %v8519_v48 = vadd.f32 %v11245_v38, %v6629_v10  ;;  %v2265_v2 = vadd.f32 1.4214138, %v2137_v30 }
 0x30c   : > { %v2008_v49 = vadd.f32 -1.4531521, %v1880_v59  ;;  %5879 = vrcp.f32 %v1499_v17  ;;  %4907 = vmatprep.mubr.bf16.mxu1 %v4386_v51  ;;  %v4383_v34 = vpack.c.bf16 %v11247_v22, %v11246_v50  ;;  %v8523_v3 = vpop.eup %5873  ;;  %v4176_v6 = vadd.f32 1.0, %v4048_v60  ;;  %v8530_v51 = vpop.f32.mrb[42].mxu0 }
 0x30d   : > { %vm3795_vm8 = vcmp.lt.f32.partialorder %v11248_v8, 0.0  ;;  %5881 = vpow2.f32 %v3347_v20  ;;  %v3161_v9 = vsub.f32 0.0, %v3033_v18  ;;  %v1501_v37 = vadd.f32 1.0, %v1373_v29  ;;  %11249 = vst [vmem:[#allocation30_spill] sm:$0xff] %v8530_v51  ;;  %v8532_v59 = vpop.f32.mrb[42].mxu1 }
 0x30e   : > { %v3667_v39 = vsub.f32 1.0, %v3539_v35  ;;  %v3541_v40 = vmul.f32 %v5872_v52, %v2901_v7  ;;  %v2646_v38 = vmul.f32 %v8397_v23, %v2518_v24  ;;  %v8528_v30 = vmul.f32 0.70710677, %v8519_v48  ;;  %4747 = vmatmul.mubr.bf16.gmra.mrb[68].mxu0 %v4383_v34  ;;  %11250 = vst [vmem:[#allocation18_spill] sm:$0xff] %v8532_v59  ;;  %v11251_v52 = vld [vmem:[#allocation45_spill] sm:$0xff] }
 0x30f   : > { %v5876_v17 = vpop.eup %5875  ;;  %v4050_v60 = vsel %vm3794_vm7, %v3922_v26, %v3666_v21  ;;  %v2900_v20 = vmul.f32 %v8369_v12, %v2772_v62  ;;  %v2391_v18 = vmul.f32 %v8445_v53, %v2263_v41  ;;  %v8540_v35 = vadd.f32 %v11251_v52, %v6650_v19  ;;  %v11253_v12 = vld [vmem:[#allocation64_spill] sm:$0xff]  ;;  %v8555_v26 = vpop.f32.mrb[43].mxu0 }
 0x310   : > { %v5878_v7 = vpop.eup %5877  ;;  %v2393_v24 = vmul.f32 %v8450_v25, %v2265_v2  ;;  %v2136_v29 = vmul.f32 %v8488_v58, %v2008_v49  ;;  %v1882_v50 = vmul.f32 1.0614054, %v8523_v3  ;;  %v8546_v22 = vand.u32 2147483647, %v8528_v30  ;;  %11254 = vst [vmem:[#allocation33_spill] sm:$0xff] %v8555_v26 }
 0x311   : > { %v8549_v21 = vmul.f32 %v4176_v6, %v8337_v61  ;;  %vm3797_vm9 = vcmp.lt.f32.partialorder %v11253_v12, 0.0  ;;  %v8553_v41 = vmul.f32 0.5, %v8332_v45  ;;  %v3351_v57 = vmul.f32 1.442695, %v3161_v9  ;;  %v11255_v45 = vld [vmem:[#allocation31_spill] sm:$0xff]  ;;  %v11261_v12 = vld [vmem:[#allocation20_spill] sm:$0xff] }
 0x312   : > { %5883 = vrcp.f32 %v1501_v37  ;;  %v4178_v62 = vadd.f32 1.0, %v4050_v60  ;;  %v3923_v2 = vsub.f32 0.0, %v3667_v39  ;;  %v3669_v49 = vsub.f32 1.0, %v3541_v40 }
 0x313   : > { %11252 = vst [vmem:[#allocation56_spill] sm:$0xff] %v8549_v21  ;;  %v2774_v34 = vadd.f32 0.2548296, %v2646_v38  ;;  %v3540_v52 = vmul.f32 %v5876_v17, %v2900_v20  ;;  %v2519_v59 = vadd.f32 -0.28449672, %v2391_v18  ;;  %v4385_v9 = vpack.c.bf16 %v11256_v36, %v11255_v45  ;;  %v11257_v18 = vld [vmem:[#allocation23_spill] sm:$0xff] }
 0x314   : > { %v1372_v51 = vmul.f32 0.3275911, %v8546_v22  ;;  %v8559_v61 = vmul.f32 0.70710677, %v8540_v35  ;;  %v2521_v6 = vadd.f32 -0.28449672, %v2393_v24  ;;  %5885 = vpow2.f32 %v3351_v57 }
 0x315   : > { %v2264_v21 = vadd.f32 1.4214138, %v2136_v29  ;;  %v2010_v14 = vadd.f32 -1.4531521, %v1882_v50  ;;  %v8564_v37 = vmul.f32 0.5, %v8386_v11  ;;  %v3032_v40 = vmul.f32 %v8409_v5, %v8409_v5  ;;  %4908 = vmatmul.mubr.bf16.gmra.mrb[68].mxu1 %v4385_v9  ;;  %v8577_v11 = vpop.f32.mrb[43].mxu1 }
 0x316   : > { %v1500_v38 = vadd.f32 1.0, %v1372_v51  ;;  %v8568_v17 = vpop.eup %5879  ;;  %v4051_v60 = vsel %vm3795_vm8, %v3923_v2, %v3667_v39  ;;  %v3925_v20 = vsub.f32 0.0, %v3669_v49  ;;  %vm3796_vm10 = vcmp.lt.f32.partialorder %v11257_v18, 0.0  ;;  %11258 = vst [vmem:[#allocation57_spill] sm:$0xff] %v8577_v11  ;;  %v11260_v9 = vld [vmem:[#allocation48_spill] sm:$0xff] }
 0x317   : > { %v2902_v24 = vmul.f32 %v8397_v23, %v2774_v34  ;;  %v8575_v36 = vand.u32 2147483647, %v8559_v61  ;;  %v5882_v29 = vpop.eup %5881  ;;  %v8580_v5 = vmul.f32 %v4178_v62, %v8367_v55  ;;  %v3668_v51 = vsub.f32 1.0, %v3540_v52 }
 0x318   : > { %v2647_v50 = vmul.f32 %v8445_v53, %v2519_v59  ;;  %5887 = vrcp.f32 %v1500_v38  ;;  %v2649_v8 = vmul.f32 %v8450_v25, %v2521_v6  ;;  %v2392_v39 = vmul.f32 %v8488_v58, %v2264_v21 }
 0x319   : > { %11259 = vst [vmem:[#allocation19_spill] sm:$0xff] %v8580_v5  ;;  %v2138_v23 = vmul.f32 %v8523_v3, %v2010_v14  ;;  %v1374_v57 = vmul.f32 0.3275911, %v8575_v36  ;;  %v4179_v2 = vadd.f32 1.0, %v4051_v60  ;;  %v3160_v34 = vsub.f32 0.0, %v3032_v40 }
 0x31a   : > { %v1883_v45 = vmul.f32 1.0614054, %v8568_v17  ;;  %v8590_v55 = vadd.f32 %v11260_v9, %v6599_v46  ;;  %v4053_v59 = vsel %vm3797_vm9, %v3925_v20, %v3669_v49  ;;  %v3542_v62 = vmul.f32 %v5878_v7, %v2902_v24  ;;  %v11263_v49 = vld [vmem:[#allocation41_spill] sm:$0xff] }
 0x31b   : > { %v8595_v52 = vmul.f32 0.5, %v8413_v54  ;;  %v1502_v21 = vadd.f32 1.0, %v1374_v57  ;;  %v3924_v14 = vsub.f32 0.0, %v3668_v51  ;;  %v2775_v38 = vadd.f32 0.2548296, %v2647_v50 }
 0x31c   : > { %v8597_v6 = vpop.eup %5883  ;;  %v3034_v40 = vmul.f32 %v8448_v33, %v8448_v33  ;;  %v8602_v60 = vmul.f32 0.70710677, %v8590_v55  ;;  %v2777_v9 = vadd.f32 0.2548296, %v2649_v8  ;;  %v2520_v5 = vadd.f32 -0.28449672, %v2392_v39 }
 0x31d   : > { %v2266_v11 = vadd.f32 1.4214138, %v2138_v23  ;;  %v8606_v7 = vadd.f32 %v11261_v12, %v6601_v47  ;;  %v8609_v54 = vmul.f32 %v4179_v2, %v8391_v44  ;;  %vm3798_vm11 = vcmp.lt.f32.partialorder %v11263_v49, 0.0  ;;  %v8616_v39 = vpop.f32.mrb[44].mxu0 }
 0x31e   : > { %v3349_v20 = vmul.f32 1.442695, %v3160_v34  ;;  %v2011_v24 = vadd.f32 -1.4531521, %v1883_v45  ;;  %v8613_v50 = vand.u32 2147483647, %v8602_v60  ;;  %5889 = vrcp.f32 %v1502_v21  ;;  %v5886_v23 = vpop.eup %5885 }
 0x31f   : > { %11262 = vst [vmem:[#allocation43_spill] sm:$0xff] %v8609_v54  ;;  %v4181_v33 = vadd.f32 1.0, %v4053_v59  ;;  %v3670_v57 = vsub.f32 1.0, %v3542_v62  ;;  %v1885_v8 = vmul.f32 1.0614054, %v8597_v6  ;;  %11264 = vst [vmem:[#allocation53_spill] sm:$0xff] %v8616_v39  ;;  %v4052_v12 = vsel %vm3796_vm10, %v3924_v14, %v3668_v51 }
 0x320   : > { %v2903_v44 = vmul.f32 %v8445_v53, %v2775_v38  ;;  %v3162_v2 = vsub.f32 0.0, %v3034_v40  ;;  %v1375_v34 = vmul.f32 0.3275911, %v8613_v50  ;;  %v8622_v45 = vpop.f32.mrb[44].mxu1  ;;  %v2905_v54 = vmul.f32 %v8450_v25, %v2777_v9 }
 0x321   : > { %11265 = vst [vmem:[#allocation80_spill] sm:$0xff] %v8622_v45  ;;  %v2648_v59 = vmul.f32 %v8488_v58, %v2520_v5  ;;  %v2394_v62 = vmul.f32 %v8523_v3, %v2266_v11  ;;  %v8628_v21 = vmul.f32 0.70710677, %v8606_v7  ;;  %5891 = vpow2.f32 %v3349_v20 }
 0x322   : > { %v8630_v39 = vpop.eup %5887  ;;  %v8633_v18 = vmul.f32 0.5, %v8441_v31  ;;  %v2139_v53 = vmul.f32 %v8568_v17, %v2011_v24  ;;  %v1503_v51 = vadd.f32 1.0, %v1375_v34  ;;  %v8637_v14 = vmul.f32 %v4181_v33, %v8404_v15  ;;  %v11267_v33 = vld [vmem:[#allocation14_spill] sm:$0xff] }
 0x323   : > { %v3926_v25 = vsub.f32 0.0, %v3670_v57  ;;  %v2013_v38 = vadd.f32 -1.4531521, %v1885_v8  ;;  %v1884_v5 = vmul.f32 1.0614054, %v8630_v39  ;;  %v4180_v11 = vadd.f32 1.0, %v4052_v12 }
 0x324   : > { %11266 = vst [vmem:[#allocation45_spill] sm:$0xff] %v8637_v14  ;;  %v3543_v40 = vmul.f32 %v5882_v29, %v2903_v44  ;;  %v3353_v9 = vmul.f32 1.442695, %v3162_v2  ;;  %v8641_v45 = vand.u32 2147483647, %v8628_v21  ;;  %v3545_v20 = vmul.f32 %v5886_v23, %v2905_v54 }
 0x325   : > { %v2776_v26 = vadd.f32 0.2548296, %v2648_v59  ;;  %v2522_v31 = vadd.f32 -0.28449672, %v2394_v62  ;;  %v3035_v24 = vmul.f32 %v8474_v28, %v8474_v28  ;;  %v2267_v34 = vadd.f32 1.4214138, %v2139_v53 }
 0x326   : > { %5893 = vrcp.f32 %v1503_v51  ;;  %v1377_v15 = vmul.f32 0.3275911, %v8641_v45  ;;  %v8648_v8 = vadd.f32 %v11267_v33, %v6629_v10  ;;  %v4054_v29 = vsel %vm3798_vm11, %v3926_v25, %v3670_v57 }
 0x327   : > { %vm3799_vm12 = vcmp.lt.f32.partialorder %v8321_v4, 0.0  ;;  %v8654_v54 = vmul.f32 0.5, %v8479_v1  ;;  %v2141_v23 = vmul.f32 %v8597_v6, %v2013_v38  ;;  %v2012_v12 = vadd.f32 -1.4531521, %v1884_v5  ;;  %v11271_v4 = vld [vmem:[#allocation49_spill] sm:$0xff] }
 0x328   : > { %v3671_v28 = vsub.f32 1.0, %v3543_v40  ;;  %vm3801_vm13 = vcmp.lt.f32.partialorder %v8348_v63, 0.0  ;;  %5895 = vpow2.f32 %v3353_v9  ;;  %v3037_v44 = vmul.f32 %v8511_v27, %v8511_v27  ;;  %v8660_v59 = vpop.eup %5889  ;;  %v11269_v40 = vld [vmem:[#allocation68_spill] sm:$0xff] }
 0x329   : > { %v1505_v2 = vadd.f32 1.0, %v1377_v15  ;;  %v3673_v49 = vsub.f32 1.0, %v3545_v20  ;;  %v2904_v57 = vmul.f32 %v8488_v58, %v2776_v26  ;;  %v2650_v62 = vmul.f32 %v8523_v3, %v2522_v31 }
 0x32a   : > { %v3163_v1 = vsub.f32 0.0, %v3035_v24  ;;  %v4182_v53 = vadd.f32 1.0, %v4054_v29  ;;  %v2395_v51 = vmul.f32 %v8568_v17, %v2267_v34  ;;  %v8666_v25 = vmul.f32 0.70710677, %v8648_v8 }
 0x32b   : > { %5897 = vrcp.f32 %v1505_v2  ;;  %v8669_v38 = vmul.f32 %v4180_v11, %v8437_v56  ;;  %v2269_v27 = vadd.f32 1.4214138, %v2141_v23  ;;  %v2140_v5 = vmul.f32 %v8630_v39, %v2012_v12  ;;  %v5892_v58 = vpop.eup %5891 }
 0x32c   : > { %v8674_v9 = vadd.f32 %v11269_v40, %v6650_v19  ;;  %v3927_v26 = vsub.f32 0.0, %v3671_v28  ;;  %v3165_v20 = vsub.f32 0.0, %v3037_v44  ;;  %v1886_v31 = vmul.f32 1.0614054, %v8660_v59 }
 0x32d   : > { %11268 = vst [vmem:[#allocation64_spill] sm:$0xff] %v8669_v38  ;;  %v8678_v24 = vand.u32 2147483647, %v8666_v25  ;;  %v3929_v34 = vsub.f32 0.0, %v3673_v49  ;;  %v3544_v15 = vmul.f32 %v5892_v58, %v2904_v57  ;;  %v2778_v33 = vadd.f32 0.2548296, %v2650_v62 }
 0x32e   : > { %v3036_v56 = vmul.f32 %v8546_v22, %v8546_v22  ;;  %v8683_v11 = vmul.f32 %v4182_v53, %v8462_v0  ;;  %v2523_v29 = vadd.f32 -0.28449672, %v2395_v51  ;;  %v3355_v23 = vmul.f32 1.442695, %v3163_v1 }
 0x32f   : > { %v1376_v12 = vmul.f32 0.3275911, %v8678_v24  ;;  %v2397_v44 = vmul.f32 %v8597_v6, %v2269_v27  ;;  %v8688_v2 = vmul.f32 0.5, %v8519_v48  ;;  %v2268_v40 = vadd.f32 1.4214138, %v2140_v5 }
 0x330   : > { %11270 = vst [vmem:[#allocation31_spill] sm:$0xff] %v8683_v11  ;;  %v8691_v14 = vmul.f32 0.70710677, %v8674_v9  ;;  %v8693_v57 = vpop.eup %5893  ;;  %v4055_v22 = vsel %vm3799_vm12, %v3927_v26, %v3671_v28  ;;  %v3359_v0 = vmul.f32 1.442695, %v3165_v20  ;;  %v4057_v1 = vsel %vm3801_vm13, %v3929_v34, %v3673_v49  ;;  %v8711_v20 = vpop.f32.mrb[45].mxu0 }
 0x331   : > { %v2014_v62 = vadd.f32 -1.4531521, %v1886_v31  ;;  %v1504_v53 = vadd.f32 1.0, %v1376_v12  ;;  %v3672_v51 = vsub.f32 1.0, %v3544_v15  ;;  %vm3800_vm14 = vcmp.lt.f32.partialorder %v8400_v32, 0.0  ;;  %11272 = vst [vmem:[#allocation54_spill] sm:$0xff] %v8711_v20 }
 0x332   : > { %v2906_v48 = vmul.f32 %v8523_v3, %v2778_v33  ;;  %v3164_v27 = vsub.f32 0.0, %v3036_v56  ;;  %v5896_v5 = vpop.eup %5895  ;;  %v2651_v58 = vmul.f32 %v8568_v17, %v2523_v29  ;;  %v8703_v11 = vand.u32 2147483647, %v8691_v14  ;;  %v8713_v3 = vpop.f32.mrb[45].mxu1  ;;  %v11281_v20 = vld [vmem:[#allocation62_spill] sm:$0xff] }
 0x333   : > { %5899 = vrcp.f32 %v1504_v53  ;;  %v8707_v28 = vadd.f32 %v11271_v4, %v6599_v46  ;;  %v2525_v63 = vadd.f32 -0.28449672, %v2397_v44  ;;  %v2396_v49 = vmul.f32 %v8630_v39, %v2268_v40  ;;  %11273 = vst [vmem:[#allocation23_spill] sm:$0xff] %v8713_v3 }
 0x334   : > { %5901 = vpow2.f32 %v3355_v23  ;;  %v1887_v26 = vmul.f32 1.0614054, %v8693_v57  ;;  %v4183_v34 = vadd.f32 1.0, %v4055_v22  ;;  %v8718_v15 = vmul.f32 0.5, %v8540_v35 }
 0x335   : > { %v8715_v31 = vpop.eup %5897  ;;  %v2142_v33 = vmul.f32 %v8660_v59, %v2014_v62  ;;  %v1378_v56 = vmul.f32 0.3275911, %v8703_v11  ;;  %v4185_v29 = vadd.f32 1.0, %v4057_v1  ;;  %v3546_v23 = vmul.f32 %v5896_v5, %v2906_v48 }
 0x336   : > { %v3038_v12 = vmul.f32 %v8575_v36, %v8575_v36  ;;  %v1889_v44 = vmul.f32 1.0614054, %v8715_v31  ;;  %v3928_v40 = vsub.f32 0.0, %v3672_v51  ;;  %v2779_v53 = vadd.f32 0.2548296, %v2651_v58 }
 0x337   : > { %v1506_v4 = vadd.f32 1.0, %v1378_v56  ;;  %v8726_v38 = vmul.f32 0.70710677, %v8707_v28  ;;  %v2653_v35 = vmul.f32 %v8597_v6, %v2525_v63  ;;  %v2524_v22 = vadd.f32 -0.28449672, %v2396_v49 }
 0x338   : > { %v3357_v3 = vmul.f32 1.442695, %v3164_v27  ;;  %v2015_v62 = vadd.f32 -1.4531521, %v1887_v26  ;;  %vm3802_vm15 = vcmp.lt.f32.partialorder %v8431_v43, 0.0  ;;  %5903 = vpow2.f32 %v3359_v0  ;;  %v11282_v43 = vld [vmem:[#allocation32_spill] sm:$0xff] }
 0x339   : > { %11274 = vst [vmem:[#allocation48_spill] sm:$0xff] %v8726_v38  ;;  %v2270_v1 = vadd.f32 1.4214138, %v2142_v33  ;;  %v2017_v48 = vadd.f32 -1.4531521, %v1889_v44  ;;  %v8734_v5 = vmul.f32 %v4183_v34, %v8485_v16  ;;  %v8737_v58 = vmul.f32 %v4185_v29, %v8553_v41  ;;  %v11277_v16 = vld [vmem:[#allocation76_spill] sm:$0xff] }
 0x33a   : > { %v8731_v36 = vand.u32 2147483647, %v8726_v38  ;;  %v3674_v56 = vsub.f32 1.0, %v3546_v23  ;;  %5905 = vrcp.f32 %v1506_v4  ;;  %v4056_v27 = vsel %vm3800_vm14, %v3928_v40, %v3672_v51 }
 0x33b   : > { %11275 = vst [vmem:[#allocation20_spill] sm:$0xff] %v8734_v5  ;;  %11276 = vst [vmem:[#allocation41_spill] sm:$0xff] %v8737_v58  ;;  %v2907_v63 = vmul.f32 %v8568_v17, %v2779_v53  ;;  %v3166_v49 = vsub.f32 0.0, %v3038_v12  ;;  %v2781_v26 = vadd.f32 0.2548296, %v2653_v35  ;;  %v2652_v33 = vmul.f32 %v8630_v39, %v2524_v22  ;;  %v11279_v58 = vld [vmem:[#allocation61_spill] sm:$0xff] }
 0x33c   : > { %v1379_v0 = vmul.f32 0.3275911, %v8731_v36  ;;  %v2143_v44 = vmul.f32 %v8693_v57, %v2015_v62  ;;  %v8747_v34 = vadd.f32 %v11277_v16, %v6601_v47  ;;  %5907 = vpow2.f32 %v3357_v3  ;;  %v11278_v16 = vld [vmem:[#allocation47_spill] sm:$0xff] }
 0x33d   : > { %v8749_v41 = vpop.eup %5899  ;;  %v2398_v32 = vmul.f32 %v8660_v59, %v2270_v1  ;;  %v2145_v51 = vmul.f32 %v8715_v31, %v2017_v48  ;;  %v3930_v23 = vsub.f32 0.0, %v3674_v56  ;;  %v8754_v12 = vmul.f32 0.5, %v8590_v55 }
 0x33e   : > { %v1507_v17 = vadd.f32 1.0, %v1379_v0  ;;  %v5902_v29 = vpop.eup %5901  ;;  %v3039_v40 = vmul.f32 %v8613_v50, %v8613_v50  ;;  %v1888_v53 = vmul.f32 1.0614054, %v8749_v41  ;;  %v4184_v4 = vadd.f32 1.0, %v4056_v27  ;;  %v11280_v50 = vld [vmem:[#allocation52_spill] sm:$0xff] }
 0x33f   : > { %v8759_v35 = vmul.f32 %v5902_v29, %v2907_v63  ;;  %v3361_v22 = vmul.f32 1.442695, %v3166_v49  ;;  %v2909_v3 = vmul.f32 %v8597_v6, %v2781_v26  ;;  %v2780_v62 = vadd.f32 0.2548296, %v2652_v33 }
 0x340   : > { %5909 = vrcp.f32 %v1507_v17  ;;  %v2271_v1 = vadd.f32 1.4214138, %v2143_v44  ;;  %v8763_v48 = vmul.f32 0.70710677, %v8747_v34  ;;  %v2526_v0 = vadd.f32 -0.28449672, %v2398_v32 }
 0x341   : > { %v2273_v55 = vadd.f32 1.4214138, %v2145_v51  ;;  %v4388_v5 = vpack.c.bf16 %v11279_v58, %v11278_v16  ;;  %v4390_v38 = vpack.c.bf16 %v11281_v20, %v11280_v50  ;;  %v4058_v27 = vsel %vm3802_vm15, %v3930_v23, %v3674_v56 }
 0x342   : > { %v3167_v63 = vsub.f32 0.0, %v3039_v40  ;;  %v8772_v49 = vmul.f32 0.5, %v8606_v7  ;;  %v2016_v6 = vadd.f32 -1.4531521, %v1888_v53  ;;  %v5904_v26 = vpop.eup %5903  ;;  %v3675_v33 = vsub.f32 1.0, %v8759_v35 }
 0x343   : > { %vm3803_vm0 = vcmp.lt.f32.partialorder %v8466_v42, 0.0  ;;  %v3041_v44 = vmul.f32 %v8641_v45, %v8641_v45  ;;  %v8779_v58 = vand.u32 2147483647, %v8763_v48  ;;  %4754 = vmatprep.mubr.bf16.mxu0 %v4388_v5  ;;  %4915 = vmatprep.mubr.bf16.mxu1 %v4390_v38  ;;  %v8783_v20 = vadd.f32 %v11282_v43, %v6629_v10 }
 0x344   : > { %v8785_v7 = vpop.eup %5905  ;;  %v8788_v56 = vmul.f32 %v4184_v4, %v8564_v37  ;;  %v3549_v32 = vmul.f32 %v5904_v26, %v2909_v3  ;;  %5911 = vpow2.f32 %v3361_v22  ;;  %v2399_v51 = vmul.f32 %v8693_v57, %v2271_v1  ;;  %v8814_v26 = vpop.f32.mrb[46].mxu1 }
 0x345   : > { %v2908_v45 = vmul.f32 %v8630_v39, %v2780_v62  ;;  %v2654_v17 = vmul.f32 %v8660_v59, %v2526_v0  ;;  %v2401_v5 = vmul.f32 %v8715_v31, %v2273_v55  ;;  %v1381_v38 = vmul.f32 0.3275911, %v8779_v58  ;;  %11285 = vst [vmem:[#allocation68_spill] sm:$0xff] %v8814_v26 }
 0x346   : > { %11283 = vst [vmem:[#allocation14_spill] sm:$0xff] %v8788_v56  ;;  %v4186_v29 = vadd.f32 1.0, %v4058_v27  ;;  %v3363_v23 = vmul.f32 1.442695, %v3167_v63  ;;  %v2144_v40 = vmul.f32 %v8749_v41, %v2016_v6  ;;  %v8797_v53 = vmul.f32 0.70710677, %v8783_v20  ;;  %v5908_v37 = vpop.eup %5907 }
 0x347   : > { %v3931_v4 = vsub.f32 0.0, %v3675_v33  ;;  %v3169_v35 = vsub.f32 0.0, %v3041_v44  ;;  %v3040_v22 = vmul.f32 %v8678_v24, %v8678_v24  ;;  %v1890_v39 = vmul.f32 1.0614054, %v8785_v7  ;;  %v11284_v63 = vld [vmem:[#allocation79_spill] sm:$0xff]  ;;  %v8812_v24 = vpop.f32.mrb[46].mxu0 }
 0x348   : > { %v3677_v3 = vsub.f32 1.0, %v3549_v32  ;;  %vm3805_vm1 = vcmp.lt.f32.partialorder %v8502_v13, 0.0  ;;  %v2527_v62 = vadd.f32 -0.28449672, %v2399_v51  ;;  %v1509_v1 = vadd.f32 1.0, %v1381_v38  ;;  %v8820_v51 = vpop.f32.mrb[47].mxu0 }
 0x349   : > { %v8804_v0 = vand.u32 2147483647, %v8797_v53  ;;  %v3548_v16 = vmul.f32 %v5908_v37, %v2908_v45  ;;  %v2782_v50 = vadd.f32 0.2548296, %v2654_v17  ;;  %v2529_v27 = vadd.f32 -0.28449672, %v2401_v5 }
 0x34a   : > { %v8806_v55 = vpop.eup %5909  ;;  %v8810_v6 = vadd.f32 %v11284_v63, %v6650_v19  ;;  %5913 = vpow2.f32 %v3363_v23  ;;  %v8817_v44 = vmul.f32 0.5, %v8648_v8  ;;  %v2272_v43 = vadd.f32 1.4214138, %v2144_v40  ;;  %11286 = vst [vmem:[#allocation49_spill] sm:$0xff] %v8820_v51  ;;  %v11293_v13 = vld [vmem:[#allocation39_spill] sm:$0xff] }
 0x34b   : > { %v1380_v32 = vmul.f32 0.3275911, %v8804_v0  ;;  %v8823_v45 = vmul.f32 %v4186_v29, %v8595_v52  ;;  %v3367_v17 = vmul.f32 1.442695, %v3169_v35  ;;  %v2018_v5 = vadd.f32 -1.4531521, %v1890_v39 }
 0x34c   : > { %v1891_v38 = vmul.f32 1.0614054, %v8806_v55  ;;  %v4059_v37 = vsel %vm3803_vm0, %v3931_v4, %v3675_v33  ;;  %vm3804_vm2 = vcmp.lt.f32.partialorder %v8528_v30, 0.0  ;;  %v2655_v8 = vmul.f32 %v8693_v57, %v2527_v62 }
 0x34d   : > { %11287 = vst [vmem:[#allocation76_spill] sm:$0xff] %v8823_v45  ;;  %5915 = vrcp.f32 %v1509_v1  ;;  %v1508_v23 = vadd.f32 1.0, %v1380_v32  ;;  %v3933_v40 = vsub.f32 0.0, %v3677_v3  ;;  %v3676_v63 = vsub.f32 1.0, %v3548_v16  ;;  %v11288_v16 = vld [vmem:[#allocation13_spill] sm:$0xff]  ;;  %v11289_v32 = vld [vmem:[#allocation59_spill] sm:$0xff] }
 0x34e   : > { %v3168_v56 = vsub.f32 0.0, %v3040_v22  ;;  %v8831_v51 = vmul.f32 0.70710677, %v8810_v6  ;;  %v5912_v52 = vpop.eup %5911  ;;  %v2910_v29 = vmul.f32 %v8660_v59, %v2782_v50  ;;  %v2657_v35 = vmul.f32 %v8715_v31, %v2529_v27  ;;  %v8844_v50 = vpop.f32.mrb[47].mxu1 }
 0x34f   : > { %v2400_v42 = vmul.f32 %v8749_v41, %v2272_v43  ;;  %5917 = vrcp.f32 %v1508_v23  ;;  %v4187_v33 = vadd.f32 1.0, %v4059_v37  ;;  %v2146_v4 = vmul.f32 %v8785_v7, %v2018_v5  ;;  %11290 = vst [vmem:[#allocation47_spill] sm:$0xff] %v8844_v50  ;;  %v11291_v37 = vld [vmem:[#allocation28_spill] sm:$0xff]  ;;  %v11300_v50 = vld [vmem:[#allocation66_spill] sm:$0xff] }
 0x350   : > { %5919 = vpow2.f32 %v3367_v17  ;;  %v2019_v39 = vadd.f32 -1.4531521, %v1891_v38  ;;  %v2783_v62 = vadd.f32 0.2548296, %v2655_v8  ;;  %v3042_v22 = vmul.f32 %v8703_v11, %v8703_v11  ;;  %v11292_v5 = vld [vmem:[#allocation60_spill] sm:$0xff] }
 0x351   : > { %v8840_v1 = vand.u32 2147483647, %v8831_v51  ;;  %v4387_v59 = vpack.c.bf16 %v11289_v32, %v11288_v16  ;;  %v4061_v27 = vsel %vm3805_vm1, %v3933_v40, %v3677_v3  ;;  %v3932_v43 = vsub.f32 0.0, %v3676_v63 }
 0x352   : > { %v3365_v17 = vmul.f32 1.442695, %v3168_v56  ;;  %v4389_v38 = vpack.c.bf16 %v11292_v5, %v11291_v37  ;;  %v8850_v8 = vmul.f32 %v5912_v52, %v2910_v29  ;;  %v2785_v23 = vadd.f32 0.2548296, %v2657_v35 }
 0x353   : > { %v2528_v11 = vadd.f32 -0.28449672, %v2400_v42  ;;  %v1382_v45 = vmul.f32 0.3275911, %v8840_v1  ;;  %4755 = vmatmul.mubr.bf16.gmra.mrb[72].mxu0 %v4387_v59  ;;  %v8854_v26 = vmul.f32 0.5, %v8674_v9  ;;  %v2147_v32 = vmul.f32 %v8806_v55, %v2019_v39 }
 0x354   : > { %v2274_v16 = vadd.f32 1.4214138, %v2146_v4  ;;  %4916 = vmatmul.mubr.bf16.gmra.mrb[72].mxu1 %v4389_v38  ;;  %v8859_v56 = vadd.f32 %v11293_v13, %v6599_v46  ;;  %v5914_v3 = vpop.eup %5913  ;;  %v4189_v40 = vadd.f32 1.0, %v4061_v27  ;;  %v2911_v52 = vmul.f32 %v8693_v57, %v2783_v62 }
 0x355   : > { %v3170_v29 = vsub.f32 0.0, %v3042_v22  ;;  %v1510_v35 = vadd.f32 1.0, %v1382_v45  ;;  %v4060_v42 = vsel %vm3804_vm2, %v3932_v43, %v3676_v63  ;;  %5921 = vpow2.f32 %v3365_v17 }
 0x356   : > { %v3043_v9 = vmul.f32 %v8731_v36, %v8731_v36  ;;  %v8867_v4 = vmul.f32 0.70710677, %v8859_v56  ;;  %v3678_v59 = vsub.f32 1.0, %v8850_v8  ;;  %vm3806_vm3 = vcmp.lt.f32.partialorder %v8559_v61, 0.0  ;;  %v11294_v36 = vld [vmem:[#allocation24_spill] sm:$0xff] }
 0x357   : > { %v8869_v39 = vpop.eup %5915  ;;  %v2913_v57 = vmul.f32 %v8715_v31, %v2785_v23  ;;  %v2656_v45 = vmul.f32 %v8749_v41, %v2528_v11  ;;  %5923 = vrcp.f32 %v1510_v35  ;;  %v2402_v30 = vmul.f32 %v8785_v7, %v2274_v16  ;;  %v8898_v16 = vpop.f32.mrb[48].mxu0 }
 0x358   : > { %v2275_v63 = vadd.f32 1.4214138, %v2147_v32  ;;  %v8877_v62 = vand.u32 2147483647, %v8867_v4  ;;  %v8881_v22 = vadd.f32 %v11294_v36, %v6601_v47  ;;  %v8886_v43 = vmul.f32 %v4187_v33, %v8633_v18  ;;  %11297 = vst [vmem:[#allocation62_spill] sm:$0xff] %v8898_v16 }
 0x359   : > { %v8883_v27 = vpop.eup %5917  ;;  %v3551_v17 = vmul.f32 %v5914_v3, %v2911_v52  ;;  %v3369_v31 = vmul.f32 1.442695, %v3170_v29  ;;  %v8889_v37 = vmul.f32 0.5, %v8707_v28  ;;  %v8892_v38 = vmul.f32 %v4189_v40, %v8654_v54  ;;  %v8901_v3 = vpop.f32.mrb[48].mxu1 }
 0x35a   : > { %11295 = vst [vmem:[#allocation61_spill] sm:$0xff] %v8886_v43  ;;  %v5920_v5 = vpop.eup %5919  ;;  %v8894_v8 = vadd.f32 1.0, %v4060_v42  ;;  %v1893_v23 = vmul.f32 1.0614054, %v8869_v39  ;;  %v1892_v11 = vmul.f32 1.0614054, %v8883_v27  ;;  %v2403_v54 = vmul.f32 %v8806_v55, %v2275_v63 }
 0x35b   : > { %11296 = vst [vmem:[#allocation52_spill] sm:$0xff] %v8892_v38  ;;  %v3553_v32 = vmul.f32 %v5920_v5, %v2913_v57  ;;  %v2784_v18 = vadd.f32 0.2548296, %v2656_v45  ;;  %v3171_v33 = vsub.f32 0.0, %v3043_v9  ;;  %v1383_v13 = vmul.f32 0.3275911, %v8877_v62 }
 0x35c   : > { %11298 = vst [vmem:[#allocation32_spill] sm:$0xff] %v8901_v3  ;;  %v3934_v28 = vsub.f32 0.0, %v3678_v59  ;;  %v2530_v52 = vadd.f32 -0.28449672, %v2402_v30  ;;  %v8905_v40 = vmul.f32 0.70710677, %v8881_v22  ;;  %5925 = vpow2.f32 %v3369_v31 }
 0x35d   : > { %v3679_v29 = vsub.f32 1.0, %v3551_v17  ;;  %vm3807_vm4 = vcmp.lt.f32.partialorder %v8602_v60, 0.0  ;;  %v8909_v35 = vmul.f32 0.5, %v8747_v34  ;;  %v1511_v42 = vadd.f32 1.0, %v1383_v13  ;;  %v11299_v9 = vld [vmem:[#allocation38_spill] sm:$0xff] }
 0x35e   : > { %v8913_v57 = vadd.f32 %v11299_v9, %v6629_v10  ;;  %vm3809_vm5 = vcmp.lt.f32.partialorder %v8628_v21, 0.0  ;;  %v2021_v45 = vadd.f32 -1.4531521, %v1893_v23  ;;  %v2020_v30 = vadd.f32 -1.4531521, %v1892_v11 }
 0x35f   : > { %v8917_v63 = vand.u32 2147483647, %v8905_v40  ;;  %v3681_v36 = vsub.f32 1.0, %v3553_v32  ;;  %v2912_v17 = vmul.f32 %v8749_v41, %v2784_v18  ;;  %v3371_v5 = vmul.f32 1.442695, %v3171_v33  ;;  %v5922_v34 = vpop.eup %5921 }
 0x360   : > { %5927 = vrcp.f32 %v1511_v42  ;;  %v4062_v13 = vsel %vm3806_vm3, %v3934_v28, %v3678_v59  ;;  %v2658_v9 = vmul.f32 %v8785_v7, %v2530_v52  ;;  %v2531_v38 = vadd.f32 -0.28449672, %v2403_v54 }
 0x361   : > { %v1385_v43 = vmul.f32 0.3275911, %v8917_v63  ;;  %v8924_v31 = vpop.eup %5923  ;;  %v3935_v23 = vsub.f32 0.0, %v3679_v29  ;;  %v3045_v11 = vmul.f32 %v8779_v58, %v8779_v58  ;;  %v3044_v41 = vmul.f32 %v8804_v0, %v8804_v0 }
 0x362   : > { %v8931_v32 = vmul.f32 0.70710677, %v8913_v57  ;;  %v2149_v61 = vmul.f32 %v8869_v39, %v2021_v45  ;;  %v2148_v59 = vmul.f32 %v8883_v27, %v2020_v30  ;;  %v1894_v18 = vmul.f32 1.0614054, %v8924_v31 }
 0x363   : > { %v1513_v33 = vadd.f32 1.0, %v1385_v43  ;;  %v3937_v28 = vsub.f32 0.0, %v3681_v36  ;;  %v8936_v52 = vmul.f32 %v5922_v34, %v2912_v17  ;;  %5929 = vpow2.f32 %v3371_v5 }
 0x364   : > { %v8939_v54 = vand.u32 2147483647, %v8931_v32  ;;  %v4190_v58 = vadd.f32 1.0, %v4062_v13  ;;  %v2786_v42 = vadd.f32 0.2548296, %v2658_v9  ;;  %v2659_v0 = vmul.f32 %v8806_v55, %v2531_v38 }
 0x365   : > { %5931 = vrcp.f32 %v1513_v33  ;;  %v3173_v3 = vsub.f32 0.0, %v3045_v11  ;;  %v8943_v45 = vmul.f32 0.5, %v8783_v20  ;;  %v2022_v30 = vadd.f32 -1.4531521, %v1894_v18 }
 0x366   : > { %v1384_v16 = vmul.f32 0.3275911, %v8939_v54  ;;  %v4063_v43 = vsel %vm3807_vm4, %v3935_v23, %v3679_v29  ;;  %v2277_v17 = vadd.f32 1.4214138, %v2149_v61  ;;  %v2276_v5 = vadd.f32 1.4214138, %v2148_v59  ;;  %v5926_v20 = vpop.eup %5925 }
 0x367   : > { %v3172_v34 = vsub.f32 0.0, %v3044_v41  ;;  %v4065_v13 = vsel %vm3809_vm5, %v3937_v28, %v3681_v36  ;;  %v3680_v9 = vsub.f32 1.0, %v8936_v52  ;;  %v3046_v38 = vmul.f32 %v8840_v1, %v8840_v1  ;;  %v11301_v29 = vld [vmem:[#allocation26_spill] sm:$0xff] }
 0x368   : > { %v1512_v11 = vadd.f32 1.0, %v1384_v16  ;;  %v2914_v18 = vmul.f32 %v8785_v7, %v2786_v42  ;;  %v2787_v33 = vadd.f32 0.2548296, %v2659_v0  ;;  %v8956_v60 = vadd.f32 %v11300_v50, %v6650_v19 }
 0x369   : > { %v8960_v23 = vadd.f32 %v11301_v29, %v6599_v46  ;;  %v4191_v36 = vadd.f32 1.0, %v4063_v43  ;;  %vm3808_vm6 = vcmp.lt.f32.partialorder %v8666_v25, 0.0  ;;  %v8966_v1 = vmul.f32 0.5, %v8810_v6 }
 0x36a   : > { %v8962_v21 = vpop.eup %5927  ;;  %v2150_v16 = vmul.f32 %v8924_v31, %v2022_v30  ;;  %5933 = vrcp.f32 %v1512_v11  ;;  %v2405_v7 = vmul.f32 %v8869_v39, %v2277_v17  ;;  %v3375_v41 = vmul.f32 1.442695, %v3173_v3 }
 0x36b   : > { %v2404_v50 = vmul.f32 %v8883_v27, %v2276_v5  ;;  %v1895_v61 = vmul.f32 1.0614054, %v8962_v21  ;;  %v4193_v59 = vadd.f32 1.0, %v4065_v13  ;;  %v3936_v28 = vsub.f32 0.0, %v3680_v9  ;;  %v8989_v13 = vpop.f32.mrb[49].mxu0 }
 0x36c   : > { %v3373_v52 = vmul.f32 1.442695, %v3172_v34  ;;  %v8973_v42 = vmul.f32 0.70710677, %v8956_v60  ;;  %v3554_v0 = vmul.f32 %v5926_v20, %v2914_v18  ;;  %v2915_v6 = vmul.f32 %v8806_v55, %v2787_v33  ;;  %11304 = vst [vmem:[#allocation59_spill] sm:$0xff] %v8989_v13  ;;  %v8991_v20 = vpop.f32.mrb[49].mxu1 }
 0x36d   : > { %v3174_v43 = vsub.f32 0.0, %v3046_v38  ;;  %v8977_v30 = vmul.f32 0.70710677, %v8960_v23  ;;  %v5930_v11 = vpop.eup %5929  ;;  %v8981_v3 = vmul.f32 %v8894_v8, %v8688_v2  ;;  %v8984_v17 = vmul.f32 %v4190_v58, %v8718_v15  ;;  %11305 = vst [vmem:[#allocation28_spill] sm:$0xff] %v8991_v20 }
 0x36e   : > { %v2278_v5 = vadd.f32 1.4214138, %v2150_v16  ;;  %v8987_v34 = vand.u32 2147483647, %v8973_v42  ;;  %v8996_v38 = vmul.f32 %v4191_v36, %v8754_v12  ;;  %v2533_v18 = vadd.f32 -0.28449672, %v2405_v7 }
 0x36f   : > { %11302 = vst [vmem:[#allocation79_spill] sm:$0xff] %v8981_v3  ;;  %11303 = vst [vmem:[#allocation13_spill] sm:$0xff] %v8984_v17  ;;  %v8993_v55 = vpop.eup %5931  ;;  %v2532_v33 = vadd.f32 -0.28449672, %v2404_v50  ;;  %v2023_v2 = vadd.f32 -1.4531521, %v1895_v61  ;;  %5935 = vpow2.f32 %v3375_v41  ;;  %v9004_v29 = vmul.f32 %v4193_v59, %v8772_v49 }
 0x370   : > { %11306 = vst [vmem:[#allocation60_spill] sm:$0xff] %v8996_v38  ;;  %v1897_v15 = vmul.f32 1.0614054, %v8993_v55  ;;  %v1386_v8 = vmul.f32 0.3275911, %v8987_v34  ;;  %v3682_v16 = vsub.f32 1.0, %v3554_v0  ;;  %v9007_v17 = vmul.f32 %v5930_v11, %v2915_v6 }
 0x371   : > { %v9001_v58 = vand.u32 2147483647, %v8977_v30  ;;  %11307 = vst [vmem:[#allocation39_spill] sm:$0xff] %v9004_v29  ;;  %vm3810_vm7 = vcmp.lt.f32.partialorder %v8691_v14, 0.0  ;;  %5937 = vpow2.f32 %v3373_v52  ;;  %v2406_v12 = vmul.f32 %v8924_v31, %v2278_v5  ;;  %v11308_v11 = vld [vmem:[#allocation37_spill] sm:$0xff] }
 0x372   : > { %v2025_v36 = vadd.f32 -1.4531521, %v1897_v15  ;;  %v1514_v7 = vadd.f32 1.0, %v1386_v8  ;;  %v4064_v50 = vsel %vm3808_vm6, %v3936_v28, %v3680_v9  ;;  %v2661_v61 = vmul.f32 %v8869_v39, %v2533_v18  ;;  %v11309_v8 = vld [vmem:[#allocation48_spill] sm:$0xff]  ;;  %v11311_v3 = vld [vmem:[#allocation29_spill] sm:$0xff] }
 0x373   : > { %v1387_v41 = vmul.f32 0.3275911, %v9001_v58  ;;  %v9015_v49 = vmul.f32 0.5, %v8859_v56  ;;  %v2151_v59 = vmul.f32 %v8962_v21, %v2023_v2  ;;  %v2660_v52 = vmul.f32 %v8883_v27, %v2532_v33 }
 0x374   : > { %v9018_v0 = vpop.eup %5933  ;;  %v3377_v6 = vmul.f32 1.442695, %v3174_v43  ;;  %5939 = vrcp.f32 %v1514_v7  ;;  %v9023_v5 = vadd.f32 %v11308_v11, %v6601_v47  ;;  %v3047_v25 = vmul.f32 %v8877_v62, %v8877_v62 }
 0x375   : > { %v2153_v9 = vmul.f32 %v8993_v55, %v2025_v36  ;;  %v1896_v56 = vmul.f32 1.0614054, %v9018_v0  ;;  %v1515_v28 = vadd.f32 1.0, %v1387_v41  ;;  %v4192_v18 = vadd.f32 1.0, %v4064_v50 }
 0x376   : > { %v3938_v2 = vsub.f32 0.0, %v3682_v16  ;;  %v3683_v15 = vsub.f32 1.0, %v9007_v17  ;;  %vm3811_vm8 = vcmp.lt.f32.partialorder %v11309_v8, 0.0  ;;  %v2534_v43 = vadd.f32 -0.28449672, %v2406_v12  ;;  %v11310_v17 = vld [vmem:[#allocation40_spill] sm:$0xff] }
 0x377   : > { %v2789_v33 = vadd.f32 0.2548296, %v2661_v61  ;;  %v2279_v7 = vadd.f32 1.4214138, %v2151_v59  ;;  %v2024_v29 = vadd.f32 -1.4531521, %v1896_v56  ;;  %5941 = vrcp.f32 %v1515_v28 }
 0x378   : > { %v2788_v11 = vadd.f32 0.2548296, %v2660_v52  ;;  %5943 = vpow2.f32 %v3377_v6  ;;  %v9032_v62 = vmul.f32 0.5, %v8881_v22  ;;  %v9035_v36 = vmul.f32 0.70710677, %v9023_v5  ;;  %v11313_v56 = vld [vmem:[#allocation16_spill] sm:$0xff] }
 0x379   : > { %v3175_v41 = vsub.f32 0.0, %v3047_v25  ;;  %v2281_v50 = vadd.f32 1.4214138, %v2153_v9  ;;  %v2152_v38 = vmul.f32 %v9018_v0, %v2024_v29  ;;  %v4392_v20 = vpack.c.bf16 %v11311_v3, %v11310_v17  ;;  %v5936_v12 = vpop.eup %5935  ;;  %v11312_v3 = vld [vmem:[#allocation69_spill] sm:$0xff] }
 0x37a   : > { %v4066_v61 = vsel %vm3810_vm7, %v3938_v2, %v3682_v16  ;;  %v2662_v59 = vmul.f32 %v8924_v31, %v2534_v43  ;;  %v3049_v22 = vmul.f32 %v8917_v63, %v8917_v63  ;;  %v9046_v52 = vand.u32 2147483647, %v9035_v36 }
 0x37b   : > { %v5938_v6 = vpop.eup %5937  ;;  %v3939_v25 = vsub.f32 0.0, %v3683_v15  ;;  %v2917_v9 = vmul.f32 %v8869_v39, %v2789_v33  ;;  %v2407_v29 = vmul.f32 %v8962_v21, %v2279_v7  ;;  %4762 = vmatprep.mubr.bf16.mxu0 %v4392_v20  ;;  %v4394_v28 = vpack.c.bf16 %v11313_v56, %v11312_v3  ;;  %v11315_v20 = vld [vmem:[#allocation25_spill] sm:$0xff] }
 0x37c   : > { %v9053_v14 = vmul.f32 %v4192_v18, %v8817_v44  ;;  %v2916_v16 = vmul.f32 %v8883_v27, %v2788_v11  ;;  %v3048_v63 = vmul.f32 %v8939_v54, %v8939_v54  ;;  %v1389_v2 = vmul.f32 0.3275911, %v9046_v52 }
 0x37d   : > { %v2409_v43 = vmul.f32 %v8993_v55, %v2281_v50  ;;  %v9061_v39 = vmul.f32 0.5, %v8913_v57  ;;  %v2280_v33 = vadd.f32 1.4214138, %v2152_v38  ;;  %4923 = vmatprep.mubr.bf16.mxu1 %v4394_v28  ;;  %v9065_v7 = vadd.f32 %v11315_v20, %v6629_v10 }
 0x37e   : > { %11314 = vst [vmem:[#allocation24_spill] sm:$0xff] %v9053_v14  ;;  %v9067_v44 = vpop.eup %5939  ;;  %v4194_v18 = vadd.f32 1.0, %v4066_v61  ;;  %v2790_v27 = vadd.f32 0.2548296, %v2662_v59  ;;  %v3379_v11 = vmul.f32 1.442695, %v3175_v41  ;;  %v4067_v54 = vsel %vm3811_vm8, %v3939_v25, %v3683_v15 }
 0x37f   : > { %v3177_v17 = vsub.f32 0.0, %v3049_v22  ;;  %v9071_v3 = vmul.f32 %v5936_v12, %v2917_v9  ;;  %v2535_v50 = vadd.f32 -0.28449672, %v2407_v29  ;;  %v1898_v57 = vmul.f32 1.0614054, %v9067_v44  ;;  %v9079_v14 = vpop.f32.mrb[50].mxu0 }
 0x380   : > { %v9074_v38 = vmul.f32 %v5938_v6, %v2916_v16  ;;  %v3176_v56 = vsub.f32 0.0, %v3048_v63  ;;  %v1517_v28 = vadd.f32 1.0, %v1389_v2  ;;  %v9077_v20 = vmul.f32 0.70710677, %v9065_v7  ;;  %11316 = vst [vmem:[#allocation38_spill] sm:$0xff] %v9079_v14  ;;  %v9081_v61 = vpop.f32.mrb[50].mxu1 }
 0x381   : > { %11317 = vst [vmem:[#allocation66_spill] sm:$0xff] %v9081_v61  ;;  %v9083_v41 = vpop.eup %5941  ;;  %v2537_v8 = vadd.f32 -0.28449672, %v2409_v43  ;;  %v2408_v15 = vmul.f32 %v9018_v0, %v2280_v33  ;;  %v2026_v12 = vadd.f32 -1.4531521, %v1898_v57  ;;  %v11318_v59 = vld [vmem:[#allocation51_spill] sm:$0xff]  ;;  %v2918_v25 = vmul.f32 %v8924_v31, %v2790_v27 }
 0x382   : > { %v9088_v22 = vadd.f32 %v11318_v59, %v6650_v19  ;;  %v5944_v6 = vpop.eup %5943  ;;  %5945 = vpow2.f32 %v3379_v11  ;;  %v3383_v9 = vmul.f32 1.442695, %v3177_v17  ;;  %v9092_v29 = vand.u32 2147483647, %v9077_v20 }
 0x383   : > { %v4195_v16 = vadd.f32 1.0, %v4067_v54  ;;  %v3685_v63 = vsub.f32 1.0, %v9071_v3  ;;  %vm3813_vm9 = vcmp.lt.f32.partialorder %v8763_v48, 0.0  ;;  %v2663_v2 = vmul.f32 %v8962_v21, %v2535_v50 }
 0x384   : > { %v1899_v43 = vmul.f32 1.0614054, %v9083_v41  ;;  %vm3812_vm10 = vcmp.lt.f32.partialorder %v8797_v53, 0.0  ;;  %v3381_v33 = vmul.f32 1.442695, %v3176_v56  ;;  %v2154_v57 = vmul.f32 %v9067_v44, %v2026_v12  ;;  %v9109_v56 = vpop.f32.mrb[51].mxu0 }
 0x385   : > { %5947 = vrcp.f32 %v1517_v28  ;;  %v1388_v31 = vmul.f32 0.3275911, %v9092_v29  ;;  %v3684_v27 = vsub.f32 1.0, %v9074_v38  ;;  %v2665_v11 = vmul.f32 %v8993_v55, %v2537_v8  ;;  %11320 = vst [vmem:[#allocation37_spill] sm:$0xff] %v9109_v56  ;;  %v11327_v53 = vld [vmem:[#allocation30_spill] sm:$0xff] }
 0x386   : > { %v2536_v17 = vadd.f32 -0.28449672, %v2408_v15  ;;  %v9104_v54 = vmul.f32 0.70710677, %v9088_v22  ;;  %v9107_v3 = vmul.f32 %v4194_v18, %v8854_v26  ;;  %v3558_v50 = vmul.f32 %v5944_v6, %v2918_v25 }
 0x387   : > { %5949 = vpow2.f32 %v3383_v9  ;;  %v1516_v59 = vadd.f32 1.0, %v1388_v31  ;;  %v9112_v28 = vmul.f32 %v4195_v16, %v8889_v37  ;;  %v2791_v12 = vadd.f32 0.2548296, %v2663_v2  ;;  %v11322_v16 = vld [vmem:[#allocation34_spill] sm:$0xff] }
 0x388   : > { %11319 = vst [vmem:[#allocation26_spill] sm:$0xff] %v9107_v3  ;;  %v2027_v61 = vadd.f32 -1.4531521, %v1899_v43  ;;  %v9115_v38 = vand.u32 2147483647, %v9104_v54  ;;  %v3941_v8 = vsub.f32 0.0, %v3685_v63  ;;  %v3050_v14 = vmul.f32 %v8987_v34, %v8987_v34 }
 0x389   : > { %11321 = vst [vmem:[#allocation48_spill] sm:$0xff] %v9112_v28  ;;  %v2282_v15 = vadd.f32 1.4214138, %v2154_v57  ;;  %5951 = vrcp.f32 %v1516_v59  ;;  %v3940_v26 = vsub.f32 0.0, %v3684_v27  ;;  %vm3814_vm11 = vcmp.lt.f32.partialorder %v8831_v51, 0.0  ;;  %v11323_v2 = vld [vmem:[#allocation22_spill] sm:$0xff] }
 0x38a   : > { %v2793_v18 = vadd.f32 0.2548296, %v2665_v11  ;;  %v2664_v6 = vmul.f32 %v9018_v0, %v2536_v17  ;;  %5953 = vpow2.f32 %v3381_v33  ;;  %v3686_v37 = vsub.f32 1.0, %v3558_v50  ;;  %v9126_v57 = vpop.f32.mrb[51].mxu1 }
 0x38b   : > { %v3051_v25 = vmul.f32 %v9001_v58, %v9001_v58  ;;  %v1390_v9 = vmul.f32 0.3275911, %v9115_v38  ;;  %v4391_v43 = vpack.c.bf16 %v11323_v2, %v11322_v16  ;;  %11324 = vst [vmem:[#allocation40_spill] sm:$0xff] %v9126_v57  ;;  %v2919_v34 = vmul.f32 %v8962_v21, %v2791_v12  ;;  %v11325_v2 = vld [vmem:[#allocation65_spill] sm:$0xff] }
 0x38c   : > { %v9130_v31 = vmul.f32 0.5, %v8956_v60  ;;  %v9133_v11 = vmul.f32 0.5, %v8960_v23  ;;  %v2155_v33 = vmul.f32 %v9083_v41, %v2027_v61  ;;  %v5946_v17 = vpop.eup %5945  ;;  %v4069_v58 = vsel %vm3813_vm9, %v3941_v8, %v3685_v63  ;;  %v11326_v23 = vld [vmem:[#allocation46_spill] sm:$0xff] }
 0x38d   : > { %v2410_v50 = vmul.f32 %v9067_v44, %v2282_v15  ;;  %v3178_v59 = vsub.f32 0.0, %v3050_v14  ;;  %v1518_v16 = vadd.f32 1.0, %v1390_v9  ;;  %4763 = vmatmul.mubr.bf16.gmra.mrb[76].mxu0 %v4391_v43  ;;  %v4068_v21 = vsel %vm3812_vm10, %v3940_v26, %v3684_v27 }
 0x38e   : > { %v2921_v60 = vmul.f32 %v8993_v55, %v2793_v18  ;;  %v2792_v12 = vadd.f32 0.2548296, %v2664_v6  ;;  %v4393_v28 = vpack.c.bf16 %v11326_v23, %v11325_v2  ;;  %v3942_v61 = vsub.f32 0.0, %v3686_v37  ;;  %v11328_v55 = vld [vmem:[#allocation18_spill] sm:$0xff] }
 0x38f   : > { %v9144_v3 = vpop.eup %5947  ;;  %v3179_v57 = vsub.f32 0.0, %v3051_v25  ;;  %v9147_v48 = vmul.f32 0.5, %v9023_v5  ;;  %5955 = vrcp.f32 %v1518_v16  ;;  %v9149_v14 = vmul.f32 %v5946_v17, %v2919_v34 }
 0x390   : > { %v2283_v63 = vadd.f32 1.4214138, %v2155_v33  ;;  %4924 = vmatmul.mubr.bf16.gmra.mrb[76].mxu1 %v4393_v28  ;;  %v9153_v27 = vadd.f32 %v11327_v53, %v6599_v46  ;;  %v9157_v8 = vadd.f32 %v11328_v55, %v6601_v47  ;;  %v4197_v26 = vadd.f32 1.0, %v4069_v58 }
 0x391   : > { %v5950_v15 = vpop.eup %5949  ;;  %v4196_v18 = vadd.f32 1.0, %v4068_v21  ;;  %v2538_v6 = vadd.f32 -0.28449672, %v2410_v50  ;;  %v3385_v25 = vmul.f32 1.442695, %v3178_v59  ;;  %v2920_v9 = vmul.f32 %v9018_v0, %v2792_v12  ;;  %v9173_v59 = vpop.f32.mrb[52].mxu0 }
 0x392   : > { %v3561_v5 = vmul.f32 %v5950_v15, %v2921_v60  ;;  %v1901_v43 = vmul.f32 1.0614054, %v9144_v3  ;;  %v9162_v28 = vmul.f32 0.70710677, %v9153_v27  ;;  %v4070_v33 = vsel %vm3814_vm11, %v3942_v61, %v3686_v37  ;;  %11329 = vst [vmem:[#allocation29_spill] sm:$0xff] %v9173_v59  ;;  %v9175_v0 = vpop.f32.mrb[52].mxu1 }
 0x393   : > { %v9164_v34 = vpop.eup %5951  ;;  %v3387_v17 = vmul.f32 1.442695, %v3179_v57  ;;  %v3053_v58 = vmul.f32 %v9046_v52, %v9046_v52  ;;  %v9171_v50 = vmul.f32 0.70710677, %v9157_v8  ;;  %11330 = vst [vmem:[#allocation69_spill] sm:$0xff] %v9175_v0  ;;  %v3687_v21 = vsub.f32 1.0, %v9149_v14 }
 0x394   : > { %v5954_v16 = vpop.eup %5953  ;;  %vm3815_vm12 = vcmp.lt.f32.partialorder %v8867_v4, 0.0  ;;  %v2411_v60 = vmul.f32 %v9083_v41, %v2283_v63  ;;  %v1900_v51 = vmul.f32 1.0614054, %v9164_v34  ;;  %v9182_v37 = vand.u32 2147483647, %v9162_v28 }
 0x395   : > { %v9185_v52 = vmul.f32 %v4197_v26, %v8909_v35  ;;  %vm3817_vm13 = vcmp.lt.f32.partialorder %v8905_v40, 0.0  ;;  %v2666_v57 = vmul.f32 %v9067_v44, %v2538_v6  ;;  %5957 = vpow2.f32 %v3385_v25 }
 0x396   : > { %v9190_v12 = vand.u32 2147483647, %v9171_v50  ;;  %v4198_v2 = vadd.f32 1.0, %v4070_v33  ;;  %v3689_v23 = vsub.f32 1.0, %v3561_v5  ;;  %v3560_v61 = vmul.f32 %v5954_v16, %v2920_v9 }
 0x397   : > { %11331 = vst [vmem:[#allocation16_spill] sm:$0xff] %v9185_v52  ;;  %v2029_v14 = vadd.f32 -1.4531521, %v1901_v43  ;;  %v9193_v63 = vmul.f32 %v4196_v18, %v8943_v45  ;;  %v2028_v53 = vadd.f32 -1.4531521, %v1900_v51  ;;  %v3943_v15 = vsub.f32 0.0, %v3687_v21 }
 0x398   : > { %v1391_v55 = vmul.f32 0.3275911, %v9182_v37  ;;  %v1393_v35 = vmul.f32 0.3275911, %v9190_v12  ;;  %v2539_v26 = vadd.f32 -0.28449672, %v2411_v60  ;;  %5959 = vpow2.f32 %v3387_v17 }
 0x399   : > { %11332 = vst [vmem:[#allocation25_spill] sm:$0xff] %v9193_v63  ;;  %v3181_v6 = vsub.f32 0.0, %v3053_v58  ;;  %v9197_v25 = vpop.eup %5955  ;;  %vm3816_vm14 = vcmp.lt.f32.partialorder %v8931_v32, 0.0  ;;  %v2794_v33 = vadd.f32 0.2548296, %v2666_v57  ;;  %v3052_v5 = vmul.f32 %v9092_v29, %v9092_v29  ;;  %v11333_v45 = vld [vmem:[#allocation33_spill] sm:$0xff] }
 0x39a   : > { %v1519_v9 = vadd.f32 1.0, %v1391_v55  ;;  %v9204_v18 = vadd.f32 %v11333_v45, %v6629_v10  ;;  %v3945_v43 = vsub.f32 0.0, %v3689_v23  ;;  %v3688_v16 = vsub.f32 1.0, %v3560_v61  ;;  %v11335_v52 = vld [vmem:[#allocation57_spill] sm:$0xff] }
 0x39b   : > { %v2157_v51 = vmul.f32 %v9144_v3, %v2029_v14  ;;  %v1902_v17 = vmul.f32 1.0614054, %v9197_v25  ;;  %v9209_v58 = vmul.f32 %v4198_v2, %v8966_v1  ;;  %v2156_v60 = vmul.f32 %v9164_v34, %v2028_v53 }
 0x39c   : > { %5961 = vrcp.f32 %v1519_v9  ;;  %v1521_v57 = vadd.f32 1.0, %v1393_v35  ;;  %v2667_v29 = vmul.f32 %v9083_v41, %v2539_v26  ;;  %v9214_v55 = vmul.f32 0.5, %v9065_v7 }
 0x39d   : > { %11334 = vst [vmem:[#allocation51_spill] sm:$0xff] %v9209_v58  ;;  %v2030_v45 = vadd.f32 -1.4531521, %v1902_v17  ;;  %v9218_v61 = vadd.f32 %v11335_v52, %v6650_v19  ;;  %v4071_v14 = vsel %vm3815_vm12, %v3943_v15, %v3687_v21  ;;  %v2922_v1 = vmul.f32 %v9067_v44, %v2794_v33 }
 0x39e   : > { %v3391_v2 = vmul.f32 1.442695, %v3181_v6  ;;  %v9224_v53 = vmul.f32 0.70710677, %v9204_v18  ;;  %v4073_v35 = vsel %vm3817_vm13, %v3945_v43, %v3689_v23  ;;  %v3944_v26 = vsub.f32 0.0, %v3688_v16 }
 0x39f   : > { %v2285_v7 = vadd.f32 1.4214138, %v2157_v51  ;;  %v3180_v9 = vsub.f32 0.0, %v3052_v5  ;;  %v5958_v17 = vpop.eup %5957  ;;  %v2284_v58 = vadd.f32 1.4214138, %v2156_v60  ;;  %v3054_v52 = vmul.f32 %v9115_v38, %v9115_v38 }
 0x3a0   : > { %5963 = vrcp.f32 %v1521_v57  ;;  %v9231_v4 = vand.u32 2147483647, %v9224_v53  ;;  %v2795_v44 = vadd.f32 0.2548296, %v2667_v29  ;;  %v9234_v21 = vmul.f32 0.5, %v9088_v22  ;;  %v9247_v57 = vpop.f32.mrb[53].mxu0 }
 0x3a1   : > { %v2158_v15 = vmul.f32 %v9197_v25, %v2030_v45  ;;  %v9238_v40 = vmul.f32 0.70710677, %v9218_v61  ;;  %v4199_v23 = vadd.f32 1.0, %v4071_v14  ;;  %v4201_v6 = vadd.f32 1.0, %v4073_v35  ;;  %11336 = vst [vmem:[#allocation34_spill] sm:$0xff] %v9247_v57 }
 0x3a2   : > { %v3562_v33 = vmul.f32 %v5958_v17, %v2922_v1  ;;  %v1392_v5 = vmul.f32 0.3275911, %v9231_v4  ;;  %v5960_v43 = vpop.eup %5959  ;;  %v4072_v38 = vsel %vm3816_vm14, %v3944_v26, %v3688_v16  ;;  %v2413_v51 = vmul.f32 %v9144_v3, %v2285_v7  ;;  %v11337_v1 = vld [vmem:[#allocation53_spill] sm:$0xff]  ;;  %v9254_v17 = vpop.f32.mrb[53].mxu1 }
 0x3a3   : > { %v3389_v60 = vmul.f32 1.442695, %v3180_v9  ;;  %v9245_v22 = vand.u32 2147483647, %v9238_v40  ;;  %v2412_v29 = vmul.f32 %v9164_v34, %v2284_v58  ;;  %v3182_v45 = vsub.f32 0.0, %v3054_v52  ;;  %11338 = vst [vmem:[#allocation22_spill] sm:$0xff] %v9254_v17 }
 0x3a4   : > { %v1520_v14 = vadd.f32 1.0, %v1392_v5  ;;  %v9252_v35 = vadd.f32 %v11337_v1, %v6599_v46  ;;  %vm3818_vm15 = vcmp.lt.f32.partialorder %v8973_v42, 0.0  ;;  %v2923_v32 = vmul.f32 %v9083_v41, %v2795_v44 }
 0x3a5   : > { %5965 = vpow2.f32 %v3391_v2  ;;  %v2286_v16 = vadd.f32 1.4214138, %v2158_v15  ;;  %v1394_v26 = vmul.f32 0.3275911, %v9245_v22  ;;  %v9262_v58 = vmul.f32 %v4199_v23, %v9015_v49 }
 0x3a6   : > { %v9259_v7 = vpop.eup %5961  ;;  %v4200_v9 = vadd.f32 1.0, %v4072_v38  ;;  %v3690_v52 = vsub.f32 1.0, %v3562_v33  ;;  %5967 = vrcp.f32 %v1520_v14  ;;  %v9265_v5 = vmul.f32 %v4201_v6, %v9032_v62 }
 0x3a7   : > { %11339 = vst [vmem:[#allocation65_spill] sm:$0xff] %v9262_v58  ;;  %v2541_v1 = vadd.f32 -0.28449672, %v2413_v51  ;;  %v1903_v63 = vmul.f32 1.0614054, %v9259_v7  ;;  %v1522_v17 = vadd.f32 1.0, %v1394_v26  ;;  %5969 = vpow2.f32 %v3389_v60 }
 0x3a8   : > { %11340 = vst [vmem:[#allocation46_spill] sm:$0xff] %v9265_v5  ;;  %v2540_v41 = vadd.f32 -0.28449672, %v2412_v29  ;;  %v3393_v2 = vmul.f32 1.442695, %v3182_v45  ;;  %v9271_v15 = vmul.f32 %v5960_v43, %v2923_v32  ;;  %v2414_v49 = vmul.f32 %v9197_v25, %v2286_v16  ;;  %v11342_v51 = vld [vmem:[#allocation80_spill] sm:$0xff] }
 0x3a9   : > { %v9269_v44 = vmul.f32 0.70710677, %v9252_v35  ;;  %v2031_v23 = vadd.f32 -1.4531521, %v1903_v63  ;;  %5971 = vrcp.f32 %v1522_v17  ;;  %v9277_v62 = vmul.f32 %v4200_v9, %v9061_v39  ;;  %v11343_v58 = vld [vmem:[#allocation55_spill] sm:$0xff]  ;;  %v11344_v32 = vld [vmem:[#allocation21_spill] sm:$0xff] }
 0x3aa   : > { %v9274_v33 = vpop.eup %5963  ;;  %v3946_v6 = vsub.f32 0.0, %v3690_v52  ;;  %v9284_v60 = vadd.f32 %v11342_v51, %v6601_v47  ;;  %v2669_v43 = vmul.f32 %v9144_v3, %v2541_v1  ;;  %v3055_v63 = vmul.f32 %v9182_v37, %v9182_v37 }
 0x3ab   : > { %11341 = vst [vmem:[#allocation30_spill] sm:$0xff] %v9277_v62  ;;  %v9280_v38 = vand.u32 2147483647, %v9269_v44  ;;  %v2159_v29 = vmul.f32 %v9259_v7, %v2031_v23  ;;  %v1905_v45 = vmul.f32 1.0614054, %v9274_v33  ;;  %v2668_v39 = vmul.f32 %v9164_v34, %v2540_v41 }
 0x3ac   : > { %5973 = vpow2.f32 %v3393_v2  ;;  %v9293_v14 = vmul.f32 0.5, %v9153_v27  ;;  %v2542_v16 = vadd.f32 -0.28449672, %v2414_v49  ;;  %v3057_v9 = vmul.f32 %v9190_v12, %v9190_v12 }
 0x3ad   : > { %v1395_v17 = vmul.f32 0.3275911, %v9280_v38  ;;  %v2033_v26 = vadd.f32 -1.4531521, %v1905_v45  ;;  %v4074_v37 = vsel %vm3818_vm15, %v3946_v6, %v3690_v52  ;;  %v2287_v1 = vadd.f32 1.4214138, %v2159_v29 }
 0x3ae   : > { %v9302_v41 = vmul.f32 0.70710677, %v9284_v60  ;;  %v2797_v27 = vadd.f32 0.2548296, %v2669_v43  ;;  %v3183_v51 = vsub.f32 0.0, %v3055_v63  ;;  %v4396_v49 = vpack.c.bf16 %v11344_v32, %v11343_v58  ;;  %v9315_v52 = vpop.f32.mrb[54].mxu0 }
 0x3af   : > { %v1523_v23 = vadd.f32 1.0, %v1395_v17  ;;  %v5966_v2 = vpop.eup %5965  ;;  %v2161_v5 = vmul.f32 %v9274_v33, %v2033_v26  ;;  %v2796_v62 = vadd.f32 0.2548296, %v2668_v39  ;;  %v9310_v12 = vmul.f32 0.5, %v9157_v8  ;;  %11345 = vst [vmem:[#allocation18_spill] sm:$0xff] %v9315_v52  ;;  %v11349_v52 = vld [vmem:[#allocation71_spill] sm:$0xff] }
 0x3b0   : > { %v9307_v45 = vpop.eup %5967  ;;  %v9313_v42 = vand.u32 2147483647, %v9302_v41  ;;  %v4202_v6 = vadd.f32 1.0, %v4074_v37  ;;  %v2670_v43 = vmul.f32 %v9197_v25, %v2542_v16  ;;  %v9319_v63 = vmul.f32 0.5, %v9204_v18  ;;  %4770 = vmatprep.mubr.bf16.mxu0 %v4396_v49  ;;  %v9327_v37 = vpop.f32.mrb[54].mxu1  ;;  %v11348_v49 = vld [vmem:[#allocation15_spill] sm:$0xff] }
 0x3b1   : > { %5975 = vrcp.f32 %v1523_v23  ;;  %v2289_v29 = vadd.f32 1.4214138, %v2161_v5  ;;  %v5970_v58 = vpop.eup %5969  ;;  %vm3819_vm0 = vcmp.lt.f32.partialorder %v8977_v30, 0.0  ;;  %v11346_v8 = vsub.f32 1.0, %v9271_v15  ;;  %11347 = vst [vmem:[#allocation33_spill] sm:$0xff] %v9327_v37 }
 0x3b2   : > { %v2415_v17 = vmul.f32 %v9259_v7, %v2287_v1  ;;  %v1904_v32 = vmul.f32 1.0614054, %v9307_v45  ;;  %v1397_v26 = vmul.f32 0.3275911, %v9313_v42  ;;  %v2925_v18 = vmul.f32 %v9144_v3, %v2797_v27  ;;  %v11351_v3 = vld [vmem:[#allocation54_spill] sm:$0xff] }
 0x3b3   : > { %v3947_v39 = vsub.f32 0.0, %v11346_v8  ;;  %v9329_v16 = vpop.eup %5971  ;;  %v3395_v5 = vmul.f32 1.442695, %v3183_v51  ;;  %v3185_v23 = vsub.f32 0.0, %v3057_v9  ;;  %v4398_v57 = vpack.c.bf16 %v11349_v52, %v11348_v49  ;;  %v11352_v49 = vld [vmem:[#allocation23_spill] sm:$0xff] }
 0x3b4   : > { %v2924_v0 = vmul.f32 %v9164_v34, %v2796_v62  ;;  %v2032_v8 = vadd.f32 -1.4531521, %v1904_v32  ;;  %v1906_v1 = vmul.f32 1.0614054, %v9329_v16  ;;  %v1525_v59 = vadd.f32 1.0, %v1397_v26 }
 0x3b5   : > { %v9337_v56 = vmul.f32 %v4202_v6, %v9130_v31  ;;  %v2798_v13 = vadd.f32 0.2548296, %v2670_v43  ;;  %v2417_v37 = vmul.f32 %v9274_v33, %v2289_v29  ;;  %4931 = vmatprep.mubr.bf16.mxu1 %v4398_v57  ;;  %v9342_v27 = vadd.f32 %v11351_v3, %v6629_v10 }
 0x3b6   : > { %v5974_v9 = vpop.eup %5973  ;;  %v2543_v51 = vadd.f32 -0.28449672, %v2415_v17  ;;  %v2160_v52 = vmul.f32 %v9307_v45, %v2032_v8  ;;  %v2034_v34 = vadd.f32 -1.4531521, %v1906_v1  ;;  %5977 = vrcp.f32 %v1525_v59 }
 0x3b7   : > { %11350 = vst [vmem:[#allocation57_spill] sm:$0xff] %v9337_v56  ;;  %v9345_v62 = vmul.f32 %v5966_v2, %v2925_v18  ;;  %5979 = vpow2.f32 %v3395_v5  ;;  %v3399_v32 = vmul.f32 1.442695, %v3185_v23  ;;  %v3056_v31 = vmul.f32 %v9231_v4, %v9231_v4  ;;  %v11353_v2 = vld [vmem:[#allocation73_spill] sm:$0xff]  ;;  %v11354_v18 = vld [vmem:[#allocation44_spill] sm:$0xff] }
 0x3b8   : > { %v3564_v6 = vmul.f32 %v5970_v58, %v2924_v0  ;;  %v2288_v43 = vadd.f32 1.4214138, %v2160_v52  ;;  %v2162_v57 = vmul.f32 %v9329_v16, %v2034_v34  ;;  %v9351_v29 = vmul.f32 0.70710677, %v9342_v27 }
 0x3b9   : > { %v2926_v17 = vmul.f32 %v9197_v25, %v2798_v13  ;;  %v2545_v26 = vadd.f32 -0.28449672, %v2417_v37  ;;  %v9356_v59 = vadd.f32 %v11352_v49, %v6650_v19  ;;  %v4395_v5 = vpack.c.bf16 %v11354_v18, %v11353_v2 }
 0x3ba   : > { %v2671_v0 = vmul.f32 %v9259_v7, %v2543_v51  ;;  %v2290_v4 = vadd.f32 1.4214138, %v2162_v57  ;;  %v3058_v58 = vmul.f32 %v9245_v22, %v9245_v22  ;;  %v9366_v8 = vand.u32 2147483647, %v9351_v29 }
 0x3bb   : > { %v9360_v23 = vpop.eup %5975  ;;  %v11355_v13 = vsub.f32 1.0, %v9271_v15  ;;  %v3693_v37 = vsub.f32 1.0, %v9345_v62  ;;  %vm3821_vm1 = vcmp.lt.f32.partialorder %v9035_v36, 0.0  ;;  %vm3820_vm2 = vcmp.lt.f32.partialorder %v9077_v20, 0.0  ;;  %4771 = vmatmul.mubr.bf16.gmra.mrb[80].mxu0 %v4395_v5  ;;  %v9378_v15 = vpop.f32.mrb[55].mxu0 }
 0x3bc   : > { %5981 = vpow2.f32 %v3399_v32  ;;  %v1907_v1 = vmul.f32 1.0614054, %v9360_v23  ;;  %v3692_v3 = vsub.f32 1.0, %v3564_v6  ;;  %v2416_v22 = vmul.f32 %v9307_v45, %v2288_v43  ;;  %11356 = vst [vmem:[#allocation53_spill] sm:$0xff] %v9378_v15 }
 0x3bd   : > { %v4075_v25 = vsel %vm3819_vm0, %v3947_v39, %v11355_v13  ;;  %v3184_v51 = vsub.f32 0.0, %v3056_v31  ;;  %v1396_v52 = vmul.f32 0.3275911, %v9366_v8  ;;  %v3566_v30 = vmul.f32 %v5974_v9, %v2926_v17 }
 0x3be   : > { %v2673_v39 = vmul.f32 %v9274_v33, %v2545_v26  ;;  %v2035_v34 = vadd.f32 -1.4531521, %v1907_v1  ;;  %v9382_v62 = vmul.f32 0.70710677, %v9356_v59  ;;  %v2799_v57 = vadd.f32 0.2548296, %v2671_v0 }
 0x3bf   : > { %v2418_v32 = vmul.f32 %v9329_v16, %v2290_v4  ;;  %v3186_v49 = vsub.f32 0.0, %v3058_v58  ;;  %v1524_v2 = vadd.f32 1.0, %v1396_v52  ;;  %v4203_v6 = vadd.f32 1.0, %v4075_v25  ;;  %v9392_v0 = vpop.f32.mrb[55].mxu1 }
 0x3c0   : > { %v3949_v18 = vsub.f32 0.0, %v3693_v37  ;;  %v2163_v31 = vmul.f32 %v9360_v23, %v2035_v34  ;;  %v9387_v43 = vand.u32 2147483647, %v9382_v62  ;;  %v9389_v5 = vpop.eup %5977  ;;  %v3948_v9 = vsub.f32 0.0, %v3692_v3 }
 0x3c1   : > { %vm3822_vm3 = vcmp.lt.f32.partialorder %v9104_v54, 0.0  ;;  %v2544_v17 = vadd.f32 -0.28449672, %v2416_v22  ;;  %v3397_v26 = vmul.f32 1.442695, %v3184_v51  ;;  %5983 = vrcp.f32 %v1524_v2  ;;  %v5980_v4 = vpop.eup %5979 }
 0x3c2   : > { %v3694_v58 = vsub.f32 1.0, %v3566_v30  ;;  %v2801_v13 = vadd.f32 0.2548296, %v2673_v39  ;;  %v3059_v25 = vmul.f32 %v9280_v38, %v9280_v38  ;;  %v1909_v1 = vmul.f32 1.0614054, %v9389_v5 }
 0x3c3   : > { %v2927_v52 = vmul.f32 %v9259_v7, %v2799_v57  ;;  %v9399_v34 = vmul.f32 0.5, %v9218_v61  ;;  %v2546_v56 = vadd.f32 -0.28449672, %v2418_v32  ;;  %v3401_v15 = vmul.f32 1.442695, %v3186_v49 }
 0x3c4   : > { %v9402_v22 = vmul.f32 %v4203_v6, %v9133_v11  ;;  %v2291_v51 = vadd.f32 1.4214138, %v2163_v31  ;;  %v2037_v2 = vadd.f32 -1.4531521, %v1909_v1  ;;  %v1398_v30 = vmul.f32 0.3275911, %v9387_v43 }
 0x3c5   : > { %v4077_v39 = vsel %vm3821_vm1, %v3949_v18, %v3693_v37  ;;  %v4076_v38 = vsel %vm3820_vm2, %v3948_v9, %v3692_v3  ;;  %v2672_v7 = vmul.f32 %v9307_v45, %v2544_v17  ;;  %5985 = vpow2.f32 %v3397_v26  ;;  %v11358_v17 = vld [vmem:[#allocation74_spill] sm:$0xff] }
 0x3c6   : > { %11357 = vst [vmem:[#allocation80_spill] sm:$0xff] %v9402_v22  ;;  %v5982_v61 = vpop.eup %5981  ;;  %v3950_v57 = vsub.f32 0.0, %v3694_v58  ;;  %v2929_v32 = vmul.f32 %v9274_v33, %v2801_v13  ;;  %v3187_v49 = vsub.f32 0.0, %v3059_v25  ;;  %v1526_v11 = vadd.f32 1.0, %v1398_v30  ;;  %v11359_v33 = vld [vmem:[#allocation42_spill] sm:$0xff] }
 0x3c7   : > { %v9411_v6 = vmul.f32 %v5980_v4, %v2927_v52  ;;  %v2674_v31 = vmul.f32 %v9329_v16, %v2546_v56  ;;  %5987 = vpow2.f32 %v3401_v15  ;;  %v9415_v36 = vmul.f32 0.5, %v9252_v35 }
 0x3c8   : > { %v4205_v37 = vadd.f32 1.0, %v4077_v39  ;;  %v2419_v20 = vmul.f32 %v9360_v23, %v2291_v51  ;;  %v2165_v3 = vmul.f32 %v9389_v5, %v2037_v2  ;;  %5989 = vrcp.f32 %v1526_v11  ;;  %v9457_v11 = vpop.f32.mrb[56].mxu1 }
 0x3c9   : > { %v4204_v18 = vadd.f32 1.0, %v4076_v38  ;;  %v2800_v9 = vadd.f32 0.2548296, %v2672_v7  ;;  %v4397_v26 = vpack.c.bf16 %v11359_v33, %v11358_v17  ;;  %v9423_v4 = vadd.f32 %v8812_v24, %v6599_v46  ;;  %v11360_v24 = vld [vmem:[#allocation68_spill] sm:$0xff] }
 0x3ca   : > { %v4078_v56 = vsel %vm3822_vm3, %v3950_v57, %v3694_v58  ;;  %v3569_v35 = vmul.f32 %v5982_v61, %v2929_v32  ;;  %v3403_v15 = vmul.f32 1.442695, %v3187_v49  ;;  %v3061_v13 = vmul.f32 %v9313_v42, %v9313_v42  ;;  %v9455_v49 = vpop.f32.mrb[56].mxu0 }
 0x3cb   : > { %v9429_v25 = vpop.eup %5983  ;;  %v3695_v1 = vsub.f32 1.0, %v9411_v6  ;;  %vm3823_vm4 = vcmp.lt.f32.partialorder %v9162_v28, 0.0  ;;  %v2802_v52 = vadd.f32 0.2548296, %v2674_v31  ;;  %4932 = vmatmul.mubr.bf16.gmra.mrb[80].mxu1 %v4397_v26  ;;  %v9434_v51 = vmul.f32 0.70710677, %v9423_v4 }
 0x3cc   : > { %v9438_v54 = vadd.f32 %v11360_v24, %v6601_v47  ;;  %v9441_v58 = vmul.f32 %v4205_v37, %v9147_v48  ;;  %v2547_v2 = vadd.f32 -0.28449672, %v2419_v20  ;;  %v2293_v42 = vadd.f32 1.4214138, %v2165_v3 }
 0x3cd   : > { %v1908_v30 = vmul.f32 1.0614054, %v9429_v25  ;;  %v9445_v39 = vmul.f32 %v4204_v18, %v9214_v55  ;;  %vm3825_vm5 = vcmp.lt.f32.partialorder %v9171_v50, 0.0  ;;  %v2928_v38 = vmul.f32 %v9307_v45, %v2800_v9 }
 0x3ce   : > { %11361 = vst [vmem:[#allocation55_spill] sm:$0xff] %v9441_v58  ;;  %v9450_v7 = vmul.f32 0.5, %v9284_v60  ;;  %v9453_v61 = vand.u32 2147483647, %v9434_v51  ;;  %v4206_v57 = vadd.f32 1.0, %v4078_v56  ;;  %v3697_v48 = vsub.f32 1.0, %v3569_v35 }
 0x3cf   : > { %11362 = vst [vmem:[#allocation21_spill] sm:$0xff] %v9445_v39  ;;  %5991 = vpow2.f32 %v3403_v15  ;;  %v3189_v32 = vsub.f32 0.0, %v3061_v13  ;;  %v5986_v55 = vpop.eup %5985  ;;  %v2930_v6 = vmul.f32 %v9329_v16, %v2802_v52  ;;  %v2036_v31 = vadd.f32 -1.4531521, %v1908_v30  ;;  %v11364_v52 = vld [vmem:[#allocation49_spill] sm:$0xff] }
 0x3d0   : > { %v1399_v45 = vmul.f32 0.3275911, %v9453_v61  ;;  %v9462_v60 = vmul.f32 0.70710677, %v9438_v54  ;;  %v3951_v37 = vsub.f32 0.0, %v3695_v1  ;;  %v2675_v20 = vmul.f32 %v9360_v23, %v2547_v2 }
 0x3d1   : > { %v2421_v3 = vmul.f32 %v9389_v5, %v2293_v42  ;;  %v3060_v18 = vmul.f32 %v9366_v8, %v9366_v8  ;;  %v5988_v9 = vpop.eup %5987  ;;  %v3568_v17 = vmul.f32 %v5986_v55, %v2928_v38  ;;  %v2164_v33 = vmul.f32 %v9429_v25, %v2036_v31 }
 0x3d2   : > { %v1527_v26 = vadd.f32 1.0, %v1399_v45  ;;  %v9470_v16 = vand.u32 2147483647, %v9462_v60  ;;  %v9472_v56 = vpop.eup %5989  ;;  %v9475_v35 = vmul.f32 %v4206_v57, %v9234_v21  ;;  %v3953_v15 = vsub.f32 0.0, %v3697_v48 }
 0x3d3   : > { %v3407_v13 = vmul.f32 1.442695, %v3189_v32  ;;  %v9479_v24 = vadd.f32 %v11364_v52, %v6629_v10  ;;  %v3570_v8 = vmul.f32 %v5988_v9, %v2930_v6  ;;  %v1910_v2 = vmul.f32 1.0614054, %v9472_v56  ;;  %v11365_v9 = vld [vmem:[#allocation47_spill] sm:$0xff] }
 0x3d4   : > { %11363 = vst [vmem:[#allocation15_spill] sm:$0xff] %v9475_v35  ;;  %v3062_v42 = vmul.f32 %v9387_v43, %v9387_v43  ;;  %5993 = vrcp.f32 %v1527_v26  ;;  %v4079_v30 = vsel %vm3823_vm4, %v3951_v37, %v3695_v1  ;;  %vm3824_vm6 = vcmp.lt.f32.partialorder %v9224_v53, 0.0 }
 0x3d5   : > { %v2803_v21 = vadd.f32 0.2548296, %v2675_v20  ;;  %v2549_v38 = vadd.f32 -0.28449672, %v2421_v3  ;;  %v1401_v57 = vmul.f32 0.3275911, %v9470_v16  ;;  %v4081_v45 = vsel %vm3825_vm5, %v3953_v15, %v3697_v48 }
 0x3d6   : > { %v3696_v32 = vsub.f32 1.0, %v3568_v17  ;;  %v9489_v55 = vmul.f32 0.5, %v9342_v27  ;;  %v2292_v6 = vadd.f32 1.4214138, %v2164_v33  ;;  %v3188_v31 = vsub.f32 0.0, %v3060_v18 }
 0x3d7   : > { %vm3826_vm7 = vcmp.lt.f32.partialorder %v9238_v40, 0.0  ;;  %v2038_v43 = vadd.f32 -1.4531521, %v1910_v2  ;;  %v1529_v28 = vadd.f32 1.0, %v1401_v57  ;;  %v9495_v1 = vmul.f32 0.70710677, %v9479_v24 }
 0x3d8   : > { %v4207_v37 = vadd.f32 1.0, %v4079_v30  ;;  %v3698_v20 = vsub.f32 1.0, %v3570_v8  ;;  %v3190_v3 = vsub.f32 0.0, %v3062_v42  ;;  %v9499_v17 = vadd.f32 %v11365_v9, %v6650_v19 }
 0x3d9   : > { %v5992_v27 = vpop.eup %5991  ;;  %v2931_v18 = vmul.f32 %v9360_v23, %v2803_v21  ;;  %v2677_v50 = vmul.f32 %v9389_v5, %v2549_v38  ;;  %5995 = vrcp.f32 %v1529_v28  ;;  %v9504_v48 = vand.u32 2147483647, %v9495_v1 }
 0x3da   : > { %v4209_v33 = vadd.f32 1.0, %v4081_v45  ;;  %v3952_v26 = vsub.f32 0.0, %v3696_v32  ;;  %5997 = vpow2.f32 %v3407_v13  ;;  %v3405_v15 = vmul.f32 1.442695, %v3188_v31 }
 0x3db   : > { %v2420_v52 = vmul.f32 %v9429_v25, %v2292_v6  ;;  %v9508_v8 = vmul.f32 0.5, %v9356_v59  ;;  %v2166_v2 = vmul.f32 %v9472_v56, %v2038_v43  ;;  %v1400_v42 = vmul.f32 0.3275911, %v9504_v48  ;;  %v11367_v6 = vld [vmem:[#allocation62_spill] sm:$0xff] }
 0x3dc   : > { %v9513_v23 = vmul.f32 %v4207_v37, %v9293_v14  ;;  %v3954_v30 = vsub.f32 0.0, %v3698_v20  ;;  %v3409_v21 = vmul.f32 1.442695, %v3190_v3  ;;  %v9516_v38 = vmul.f32 0.70710677, %v9499_v17  ;;  %v9532_v37 = vpop.f32.mrb[57].mxu0 }
 0x3dd   : > { %v3571_v57 = vmul.f32 %v5992_v27, %v2931_v18  ;;  %v2805_v13 = vadd.f32 0.2548296, %v2677_v50  ;;  %v1528_v31 = vadd.f32 1.0, %v1400_v42  ;;  %v9520_v45 = vadd.f32 %v11367_v6, %v6599_v46  ;;  %11369 = vst [vmem:[#allocation23_spill] sm:$0xff] %v9532_v37  ;;  %v9534_v3 = vpop.f32.mrb[57].mxu1 }
 0x3de   : > { %11366 = vst [vmem:[#allocation71_spill] sm:$0xff] %v9513_v23  ;;  %v9522_v59 = vpop.eup %5993  ;;  %v9525_v43 = vmul.f32 %v4209_v33, %v9310_v12  ;;  %v4080_v14 = vsel %vm3824_vm6, %v3952_v26, %v3696_v32  ;;  %5999 = vpow2.f32 %v3405_v15  ;;  %v9530_v28 = vand.u32 2147483647, %v9516_v38  ;;  %11370 = vst [vmem:[#allocation73_spill] sm:$0xff] %v9534_v3 }
 0x3df   : > { %v2548_v9 = vadd.f32 -0.28449672, %v2420_v52  ;;  %v2294_v27 = vadd.f32 1.4214138, %v2166_v2  ;;  %v1911_v18 = vmul.f32 1.0614054, %v9522_v59  ;;  %6001 = vrcp.f32 %v1528_v31 }
 0x3e0   : > { %11368 = vst [vmem:[#allocation54_spill] sm:$0xff] %v9525_v43  ;;  %v4082_v12 = vsel %vm3826_vm7, %v3954_v30, %v3698_v20  ;;  %vm3827_vm8 = vcmp.lt.f32.partialorder %v9269_v44, 0.0  ;;  %6003 = vpow2.f32 %v3409_v21  ;;  %v3063_v53 = vmul.f32 %v9453_v61, %v9453_v61  ;;  %v11371_v20 = vld [vmem:[#allocation32_spill] sm:$0xff] }
 0x3e1   : > { %v1402_v32 = vmul.f32 0.3275911, %v9530_v28  ;;  %v3699_v50 = vsub.f32 1.0, %v3571_v57  ;;  %v2933_v33 = vmul.f32 %v9389_v5, %v2805_v13  ;;  %v2039_v26 = vadd.f32 -1.4531521, %v1911_v18 }
 0x3e2   : > { %v9545_v15 = vmul.f32 0.70710677, %v9520_v45  ;;  %v4208_v52 = vadd.f32 1.0, %v4080_v14  ;;  %v9548_v2 = vmul.f32 0.5, %v9423_v4  ;;  %v9552_v42 = vadd.f32 %v11371_v20, %v6601_v47 }
 0x3e3   : > { %v1530_v40 = vadd.f32 1.0, %v1402_v32  ;;  %v9554_v30 = vpop.eup %5995  ;;  %v2676_v61 = vmul.f32 %v9429_v25, %v2548_v9  ;;  %v2422_v21 = vmul.f32 %v9472_v56, %v2294_v27  ;;  %v2167_v5 = vmul.f32 %v9522_v59, %v2039_v26 }
 0x3e4   : > { %v9560_v57 = vand.u32 2147483647, %v9545_v15  ;;  %v5998_v13 = vpop.eup %5997  ;;  %v4210_v31 = vadd.f32 1.0, %v4082_v12  ;;  %v3191_v4 = vsub.f32 0.0, %v3063_v53  ;;  %v1913_v6 = vmul.f32 1.0614054, %v9554_v30 }
 0x3e5   : > { %6005 = vrcp.f32 %v1530_v40  ;;  %v3955_v14 = vsub.f32 0.0, %v3699_v50  ;;  %v3573_v18 = vmul.f32 %v5998_v13, %v2933_v33  ;;  %v2295_v32 = vadd.f32 1.4214138, %v2167_v5 }
 0x3e6   : > { %v1403_v20 = vmul.f32 0.3275911, %v9560_v57  ;;  %v9565_v9 = vmul.f32 0.5, %v9438_v54  ;;  %v2041_v27 = vadd.f32 -1.4531521, %v1913_v6  ;;  %v3065_v26 = vmul.f32 %v9470_v16, %v9470_v16 }
 0x3e7   : > { %v9570_v43 = vmul.f32 0.70710677, %v9552_v42  ;;  %v9573_v12 = vmul.f32 %v4208_v52, %v9319_v63  ;;  %v2804_v53 = vadd.f32 0.2548296, %v2676_v61  ;;  %v2550_v40 = vadd.f32 -0.28449672, %v2422_v21 }
 0x3e8   : > { %v1531_v58 = vadd.f32 1.0, %v1403_v20  ;;  %v6000_v33 = vpop.eup %5999  ;;  %v9576_v5 = vmul.f32 %v4210_v31, %v9399_v34  ;;  %v2423_v54 = vmul.f32 %v9522_v59, %v2295_v32  ;;  %v2169_v13 = vmul.f32 %v9554_v30, %v2041_v27 }
 0x3e9   : > { %11372 = vst [vmem:[#allocation44_spill] sm:$0xff] %v9573_v12  ;;  %v9581_v6 = vand.u32 2147483647, %v9570_v43  ;;  %v9583_v16 = vpop.eup %6001  ;;  %v4083_v63 = vsel %vm3827_vm8, %v3955_v14, %v3699_v50  ;;  %v3701_v52 = vsub.f32 1.0, %v3573_v18  ;;  %vm3829_vm9 = vcmp.lt.f32.partialorder %v9302_v41, 0.0  ;;  %v11374_v50 = vld [vmem:[#allocation78_spill] sm:$0xff] }
 0x3ea   : > { %11373 = vst [vmem:[#allocation74_spill] sm:$0xff] %v9576_v5  ;;  %v3411_v61 = vmul.f32 1.442695, %v3191_v4  ;;  %6007 = vrcp.f32 %v1531_v58  ;;  %v9588_v21 = vpop.eup %6003  ;;  %v2297_v34 = vadd.f32 1.4214138, %v2169_v13  ;;  %v3193_v31 = vsub.f32 0.0, %v3065_v26 }
 0x3eb   : > { %v1912_v32 = vmul.f32 1.0614054, %v9583_v16  ;;  %v3064_v20 = vmul.f32 %v9504_v48, %v9504_v48  ;;  %v2932_v27 = vmul.f32 %v9429_v25, %v2804_v53  ;;  %v2678_v23 = vmul.f32 %v9472_v56, %v2550_v40  ;;  %v11375_v14 = vld [vmem:[#allocation67_spill] sm:$0xff]  ;;  %v9639_v41 = vpop.f32.mrb[58].mxu1 }
 0x3ec   : > { %v1405_v44 = vmul.f32 0.3275911, %v9581_v6  ;;  %v4400_v18 = vpack.c.bf16 %v11375_v14, %v11374_v50  ;;  %v4211_v4 = vadd.f32 1.0, %v4083_v63  ;;  %v2551_v58 = vadd.f32 -0.28449672, %v2423_v54  ;;  %v11376_v12 = vld [vmem:[#allocation63_spill] sm:$0xff] }
 0x3ed   : > { %v9599_v22 = vmul.f32 0.5, %v9479_v24  ;;  %v2040_v26 = vadd.f32 -1.4531521, %v1912_v32  ;;  %v3957_v13 = vsub.f32 0.0, %v3701_v52  ;;  %6009 = vpow2.f32 %v3411_v61  ;;  %v11377_v50 = vld [vmem:[#allocation27_spill] sm:$0xff]  ;;  %11383 = vst [vmem:[#allocation68_spill] sm:$0xff] %v9639_v41 }
 0x3ee   : > { %v2425_v5 = vmul.f32 %v9554_v30, %v2297_v34  ;;  %v1533_v48 = vadd.f32 1.0, %v1405_v44  ;;  %4778 = vmatprep.mubr.bf16.mxu0 %v4400_v18  ;;  %v3415_v53 = vmul.f32 1.442695, %v3193_v31  ;;  %v3192_v35 = vsub.f32 0.0, %v3064_v20  ;;  %v11378_v31 = vld [vmem:[#allocation59_spill] sm:$0xff] }
 0x3ef   : > { %v9602_v25 = vpop.eup %6005  ;;  %v2168_v40 = vmul.f32 %v9583_v16, %v2040_v26  ;;  %v4402_v63 = vpack.c.bf16 %v11377_v50, %v11376_v12  ;;  %v9607_v54 = vmul.f32 %v6000_v33, %v2932_v27  ;;  %v2806_v24 = vadd.f32 0.2548296, %v2678_v23  ;;  %v11379_v12 = vld [vmem:[#allocation28_spill] sm:$0xff]  ;;  %v11380_v23 = vld [vmem:[#allocation58_spill] sm:$0xff]  ;;  %v9629_v50 = vpop.f32.mrb[58].mxu0 }
 0x3f0   : > { %v1914_v32 = vmul.f32 1.0614054, %v9602_v25  ;;  %6011 = vrcp.f32 %v1533_v48  ;;  %v2679_v61 = vmul.f32 %v9522_v59, %v2551_v58  ;;  %v3066_v44 = vmul.f32 %v9530_v28, %v9530_v28  ;;  %v11381_v27 = vld [vmem:[#allocation36_spill] sm:$0xff]  ;;  %11382 = vst [vmem:[#allocation42_spill] sm:$0xff] %v9629_v50 }
 0x3f1   : > { %v2296_v34 = vadd.f32 1.4214138, %v2168_v40  ;;  %4939 = vmatprep.mubr.bf16.mxu1 %v4402_v63  ;;  %v9615_v14 = vadd.f32 %v11378_v31, %v6629_v10  ;;  %v2553_v20 = vadd.f32 -0.28449672, %v2425_v5  ;;  %v9619_v33 = vadd.f32 %v11379_v12, %v6650_v19 }
 0x3f2   : > { %v2042_v18 = vadd.f32 -1.4531521, %v1914_v32  ;;  %v4399_v26 = vpack.c.bf16 %v11381_v27, %v11380_v23  ;;  %v4085_v58 = vsel %vm3829_vm9, %v3957_v13, %v3701_v52  ;;  %v3413_v28 = vmul.f32 1.442695, %v3192_v35 }
 0x3f3   : > { %v2424_v48 = vmul.f32 %v9583_v16, %v2296_v34  ;;  %v9627_v40 = vmul.f32 0.70710677, %v9615_v14  ;;  %v3700_v63 = vsub.f32 1.0, %v9607_v54  ;;  %v2934_v32 = vmul.f32 %v9472_v56, %v2806_v24 }
 0x3f4   : > { %v9631_v5 = vpop.eup %6007  ;;  %v2170_v31 = vmul.f32 %v9602_v25, %v2042_v18  ;;  %v9637_v12 = vmul.f32 0.70710677, %v9619_v33  ;;  %4779 = vmatmul.mubr.bf16.gmra.mrb[84].mxu0 %v4399_v26  ;;  %v2807_v35 = vadd.f32 0.2548296, %v2679_v61  ;;  %6013 = vpow2.f32 %v3415_v53 }
 0x3f5   : > { %v1915_v52 = vmul.f32 1.0614054, %v9631_v5  ;;  %v9643_v13 = vand.u32 2147483647, %v9627_v40  ;;  %vm3828_vm10 = vcmp.lt.f32.partialorder %v9351_v29, 0.0  ;;  %v2681_v54 = vmul.f32 %v9554_v30, %v2553_v20 }
 0x3f6   : > { %v2298_v56 = vadd.f32 1.4214138, %v2170_v31  ;;  %v3194_v24 = vsub.f32 0.0, %v3066_v44  ;;  %v9648_v34 = vand.u32 2147483647, %v9637_v12  ;;  %v3067_v61 = vmul.f32 %v9560_v57, %v9560_v57 }
 0x3f7   : > { %v2552_v18 = vadd.f32 -0.28449672, %v2424_v48  ;;  %v2043_v23 = vadd.f32 -1.4531521, %v1915_v52  ;;  %v1404_v53 = vmul.f32 0.3275911, %v9643_v13  ;;  %v6010_v27 = vpop.eup %6009  ;;  %v9654_v26 = vmul.f32 %v4211_v4, %v9415_v36 }
 0x3f8   : > { %v4213_v39 = vadd.f32 1.0, %v4085_v58  ;;  %v3574_v41 = vmul.f32 %v9588_v21, %v2934_v32  ;;  %v1406_v20 = vmul.f32 0.3275911, %v9648_v34  ;;  %v2935_v44 = vmul.f32 %v9522_v59, %v2807_v35  ;;  %v9661_v52 = vpop.f32.mrb[59].mxu0  ;;  %v9670_v35 = vpop.f32.mrb[59].mxu1 }
 0x3f9   : > { %11384 = vst [vmem:[#allocation49_spill] sm:$0xff] %v9654_v26  ;;  %6015 = vpow2.f32 %v3413_v28  ;;  %v2426_v48 = vmul.f32 %v9602_v25, %v2298_v56  ;;  %v2171_v31 = vmul.f32 %v9631_v5, %v2043_v23  ;;  %v3956_v50 = vsub.f32 0.0, %v3700_v63 }
 0x3fa   : > { %v9663_v57 = vpop.eup %6011  ;;  %v2809_v3 = vadd.f32 0.2548296, %v2681_v54  ;;  %v1532_v36 = vadd.f32 1.0, %v1404_v53  ;;  %v1534_v4 = vadd.f32 1.0, %v1406_v20  ;;  %v2680_v58 = vmul.f32 %v9583_v16, %v2552_v18 }
 0x3fb   : > { %v3417_v21 = vmul.f32 1.442695, %v3194_v24  ;;  %v2299_v32 = vadd.f32 1.4214138, %v2171_v31  ;;  %v3195_v26 = vsub.f32 0.0, %v3067_v61  ;;  %v3702_v37 = vsub.f32 1.0, %v3574_v41 }
 0x3fc   : > { %vm3830_vm11 = vcmp.lt.f32.partialorder %v9382_v62, 0.0  ;;  %v1917_v59 = vmul.f32 1.0614054, %v9663_v57  ;;  %v3069_v28 = vmul.f32 %v9581_v6, %v9581_v6  ;;  %6017 = vrcp.f32 %v1532_v36 }
 0x3fd   : > { %v3575_v56 = vmul.f32 %v6010_v27, %v2935_v44  ;;  %v2554_v54 = vadd.f32 -0.28449672, %v2426_v48  ;;  %v2427_v23 = vmul.f32 %v9631_v5, %v2299_v32  ;;  %6019 = vrcp.f32 %v1534_v4  ;;  %v11387_v48 = vld [vmem:[#allocation75_spill] sm:$0xff]  ;;  %v11388_v4 = vld [vmem:[#allocation38_spill] sm:$0xff] }
 0x3fe   : > { %v9674_v24 = vmul.f32 %v4213_v39, %v9450_v7  ;;  %v2937_v41 = vmul.f32 %v9554_v30, %v2809_v3  ;;  %v9678_v18 = vmul.f32 0.5, %v9499_v17  ;;  %v2045_v61 = vadd.f32 -1.4531521, %v1917_v59  ;;  %v6014_v53 = vpop.eup %6013  ;;  %v11386_v7 = vld [vmem:[#allocation77_spill] sm:$0xff] }
 0x3ff   : > { %v4084_v6 = vsel %vm3828_vm10, %v3956_v50, %v3700_v63  ;;  %v2808_v20 = vadd.f32 0.2548296, %v2680_v58  ;;  %v2555_v31 = vadd.f32 -0.28449672, %v2427_v23  ;;  %v3419_v27 = vmul.f32 1.442695, %v3195_v26 }
 0x400   : > { %11385 = vst [vmem:[#allocation47_spill] sm:$0xff] %v9674_v24  ;;  %vm3831_vm12 = vcmp.lt.f32.partialorder %v9434_v51, 0.0  ;;  %6021 = vpow2.f32 %v3417_v21  ;;  %v2173_v44 = vmul.f32 %v9663_v57, %v2045_v61  ;;  %v3197_v39 = vsub.f32 0.0, %v3069_v28  ;;  %v11389_v58 = vld [vmem:[#allocation66_spill] sm:$0xff] }
 0x401   : > { %v4401_v3 = vpack.c.bf16 %v11387_v48, %v11386_v7  ;;  %v3958_v30 = vsub.f32 0.0, %v3702_v37  ;;  %v3703_v17 = vsub.f32 1.0, %v3575_v56  ;;  %v2682_v36 = vmul.f32 %v9602_v25, %v2554_v54 }
 0x402   : > { %v9689_v29 = vadd.f32 %v11388_v4, %v6599_v46  ;;  %v3577_v50 = vmul.f32 %v6014_v53, %v2937_v41  ;;  %v2683_v63 = vmul.f32 %v9631_v5, %v2555_v31  ;;  %v2301_v26 = vadd.f32 1.4214138, %v2173_v44  ;;  %v9707_v53 = vpop.f32.mrb[60].mxu0 }
 0x403   : > { %4940 = vmatmul.mubr.bf16.gmra.mrb[84].mxu1 %v4401_v3  ;;  %v9694_v21 = vadd.f32 %v11389_v58, %v6601_v47  ;;  %v6016_v32 = vpop.eup %6015  ;;  %v2936_v59 = vmul.f32 %v9583_v16, %v2808_v20  ;;  %v9698_v28 = vmul.f32 0.5, %v9520_v45  ;;  %6023 = vpow2.f32 %v3419_v27 }
 0x404   : > { %v9701_v56 = vmul.f32 0.5, %v9552_v42  ;;  %v4212_v54 = vadd.f32 1.0, %v4084_v6  ;;  %v2429_v23 = vmul.f32 %v9663_v57, %v2301_v26  ;;  %v3423_v41 = vmul.f32 1.442695, %v3197_v39 }
 0x405   : > { %v9705_v61 = vmul.f32 0.70710677, %v9689_v29  ;;  %v4086_v31 = vsel %vm3830_vm11, %v3958_v30, %v3702_v37  ;;  %v3959_v16 = vsub.f32 0.0, %v3703_v17  ;;  %vm3833_vm13 = vcmp.lt.f32.partialorder %v9462_v60, 0.0 }
 0x406   : > { %v2810_v45 = vadd.f32 0.2548296, %v2682_v36  ;;  %v9713_v20 = vmul.f32 0.70710677, %v9694_v21  ;;  %v9715_v42 = vpop.eup %6017  ;;  %v3705_v6 = vsub.f32 1.0, %v3577_v50  ;;  %v3068_v44 = vmul.f32 %v9643_v13, %v9643_v13 }
 0x407   : > { %v2811_v27 = vadd.f32 0.2548296, %v2683_v63  ;;  %v1279_v39 = vand.u32 2147483647, %v9705_v61  ;;  %v9720_v7 = vpop.eup %6019  ;;  %v3576_v62 = vmul.f32 %v6016_v32, %v2936_v59  ;;  %v2557_v37 = vadd.f32 -0.28449672, %v2429_v23 }
 0x408   : > { %v1916_v48 = vmul.f32 1.0614054, %v9715_v42  ;;  %v9724_v3 = vand.u32 2147483647, %v9713_v20  ;;  %v9727_v30 = vmul.f32 %v4212_v54, %v9489_v55  ;;  %v4214_v36 = vadd.f32 1.0, %v4086_v31  ;;  %v9730_v63 = vpop.f32.mrb[60].mxu1 }
 0x409   : > { %v1918_v4 = vmul.f32 1.0614054, %v9720_v7  ;;  %v1407_v50 = vmul.f32 0.3275911, %v1279_v39  ;;  %11391 = vst [vmem:[#allocation32_spill] sm:$0xff] %v9730_v63  ;;  %v4087_v13 = vsel %vm3831_vm12, %v3959_v16, %v3703_v17  ;;  %v2938_v26 = vmul.f32 %v9602_v25, %v2810_v45 }
 0x40a   : > { %11390 = vst [vmem:[#allocation62_spill] sm:$0xff] %v9727_v30  ;;  %6025 = vpow2.f32 %v3423_v41  ;;  %v2044_v58 = vadd.f32 -1.4531521, %v1916_v48  ;;  %v6022_v32 = vpop.eup %6021  ;;  %v3961_v59 = vsub.f32 0.0, %v3705_v6  ;;  %vm3832_vm14 = vcmp.lt.f32.partialorder %v9495_v1, 0.0 }
 0x40b   : > { %v2939_v55 = vmul.f32 %v9631_v5, %v2811_v27  ;;  %v2046_v54 = vadd.f32 -1.4531521, %v1918_v4  ;;  %v1535_v23 = vadd.f32 1.0, %v1407_v50  ;;  %v3704_v31 = vsub.f32 1.0, %v3576_v62  ;;  %v11392_v27 = vld [vmem:[#allocation37_spill] sm:$0xff] }
 0x40c   : > { %v2172_v24 = vmul.f32 %v9715_v42, %v2044_v58  ;;  %v3196_v30 = vsub.f32 0.0, %v3068_v44  ;;  %v3070_v51 = vmul.f32 %v9648_v34, %v9648_v34  ;;  %v2685_v17 = vmul.f32 %v9663_v57, %v2557_v37 }
 0x40d   : > { %v2174_v25 = vmul.f32 %v9720_v7, %v2046_v54  ;;  %6027 = vrcp.f32 %v1535_v23  ;;  %v1409_v41 = vmul.f32 0.3275911, %v9724_v3  ;;  %v6024_v16 = vpop.eup %6023  ;;  %v4215_v45 = vadd.f32 1.0, %v4087_v13 }
 0x40e   : > { %v3578_v48 = vmul.f32 %v6022_v32, %v2938_v26  ;;  %v2300_v5 = vadd.f32 1.4214138, %v2172_v24  ;;  %v9745_v62 = vadd.f32 %v11392_v27, %v6629_v10  ;;  %v4089_v44 = vsel %vm3833_vm13, %v3961_v59, %v3705_v6 }
 0x40f   : > { %v3579_v4 = vmul.f32 %v6024_v16, %v2939_v55  ;;  %v2302_v34 = vadd.f32 1.4214138, %v2174_v25  ;;  %v1537_v50 = vadd.f32 1.0, %v1409_v41  ;;  %v9750_v37 = vmul.f32 %v4214_v36, %v9508_v8 }
 0x410   : > { %v3960_v58 = vsub.f32 0.0, %v3704_v31  ;;  %v2428_v54 = vmul.f32 %v9715_v42, %v2300_v5  ;;  %v3421_v23 = vmul.f32 1.442695, %v3196_v30  ;;  %vm3834_vm15 = vcmp.lt.f32.partialorder %v9516_v38, 0.0 }
 0x411   : > { %11393 = vst [vmem:[#allocation78_spill] sm:$0xff] %v9750_v37  ;;  %v2813_v24 = vadd.f32 0.2548296, %v2685_v17  ;;  %v9755_v13 = vmul.f32 0.5, %v9615_v14  ;;  %v3198_v26 = vsub.f32 0.0, %v3070_v51  ;;  %6029 = vrcp.f32 %v1537_v50  ;;  %v11395_v14 = vld [vmem:[#allocation40_spill] sm:$0xff] }
 0x412   : > { %v4217_v60 = vadd.f32 1.0, %v4089_v44  ;;  %v3706_v6 = vsub.f32 1.0, %v3578_v48  ;;  %vm3835_vm0 = vcmp.lt.f32.partialorder %v9545_v15, 0.0  ;;  %v9759_v32 = vmul.f32 0.5, %v9619_v33  ;;  %v11397_v44 = vld [vmem:[#allocation29_spill] sm:$0xff]  ;;  %v11404_v37 = vld [vmem:[#allocation56_spill] sm:$0xff] }
 0x413   : > { %v9762_v8 = vmul.f32 0.70710677, %v9745_v62  ;;  %v9765_v30 = vmul.f32 %v4215_v45, %v9548_v2  ;;  %v3707_v36 = vsub.f32 1.0, %v3579_v4  ;;  %v2430_v59 = vmul.f32 %v9720_v7, %v2302_v34 }
 0x414   : > { %v9770_v55 = vadd.f32 %v11395_v14, %v6650_v19  ;;  %v6026_v51 = vpop.eup %6025  ;;  %v4088_v17 = vsel %vm3832_vm14, %v3960_v58, %v3704_v31  ;;  %v2556_v25 = vadd.f32 -0.28449672, %v2428_v54  ;;  %6031 = vpow2.f32 %v3421_v23  ;;  %v9802_v14 = vpop.f32.mrb[61].mxu0 }
 0x415   : > { %11394 = vst [vmem:[#allocation67_spill] sm:$0xff] %v9765_v30  ;;  %v1280_v33 = vand.u32 2147483647, %v9762_v8  ;;  %v2941_v41 = vmul.f32 %v9663_v57, %v2813_v24  ;;  %v3425_v16 = vmul.f32 1.442695, %v3198_v26  ;;  %v3071_v2 = vmul.f32 %v1279_v39, %v1279_v39  ;;  %11398 = vst [vmem:[#allocation27_spill] sm:$0xff] %v9802_v14 }
 0x416   : > { %v9777_v45 = vmul.f32 0.70710677, %v9770_v55  ;;  %v9780_v48 = vmul.f32 %v4217_v60, %v9565_v9  ;;  %v3962_v5 = vsub.f32 0.0, %v3706_v6  ;;  %v9784_v1 = vadd.f32 %v11397_v44, %v6599_v46 }
 0x417   : > { %v1408_v27 = vmul.f32 0.3275911, %v1280_v33  ;;  %v9786_v31 = vpop.eup %6027  ;;  %v3963_v4 = vsub.f32 0.0, %v3707_v36  ;;  %v2558_v34 = vadd.f32 -0.28449672, %v2430_v59  ;;  %v9789_v57 = vmul.f32 0.5, %v9689_v29 }
 0x418   : > { %11396 = vst [vmem:[#allocation63_spill] sm:$0xff] %v9780_v48  ;;  %v9792_v39 = vand.u32 2147483647, %v9777_v45  ;;  %v4216_v50 = vadd.f32 1.0, %v4088_v17  ;;  %v2684_v9 = vmul.f32 %v9715_v42, %v2556_v25  ;;  %v1919_v58 = vmul.f32 1.0614054, %v9786_v31 }
 0x419   : > { %v1536_v54 = vadd.f32 1.0, %v1408_v27  ;;  %v3581_v23 = vmul.f32 %v6026_v51, %v2941_v41  ;;  %6033 = vpow2.f32 %v3425_v16  ;;  %v3199_v24 = vsub.f32 0.0, %v3071_v2  ;;  %v9804_v17 = vpop.f32.mrb[61].mxu1 }
 0x41a   : > { %v1410_v26 = vmul.f32 0.3275911, %v9792_v39  ;;  %v4090_v60 = vsel %vm3834_vm15, %v3962_v5, %v3706_v6  ;;  %v2047_v59 = vadd.f32 -1.4531521, %v1919_v58  ;;  %v9800_v29 = vmul.f32 0.70710677, %v9784_v1 }
 0x41b   : > { %6035 = vrcp.f32 %v1536_v54  ;;  %11399 = vst [vmem:[#allocation59_spill] sm:$0xff] %v9804_v17  ;;  %v9806_v25 = vpop.eup %6029  ;;  %v4091_v51 = vsel %vm3835_vm0, %v3963_v4, %v3707_v36  ;;  %v2686_v41 = vmul.f32 %v9720_v7, %v2558_v34  ;;  %v3073_v38 = vmul.f32 %v9724_v3, %v9724_v3 }
 0x41c   : > { %v1538_v6 = vadd.f32 1.0, %v1410_v26  ;;  %v2812_v16 = vadd.f32 0.2548296, %v2684_v9  ;;  %v2175_v2 = vmul.f32 %v9786_v31, %v2047_v59  ;;  %v1921_v5 = vmul.f32 1.0614054, %v9806_v25 }
 0x41d   : > { %v9816_v27 = vand.u32 2147483647, %v9800_v29  ;;  %v4218_v44 = vadd.f32 1.0, %v4090_v60  ;;  %v3709_v58 = vsub.f32 1.0, %v3581_v23  ;;  %vm3837_vm1 = vcmp.lt.f32.partialorder %v9570_v43, 0.0  ;;  %v11401_v60 = vld [vmem:[#allocation69_spill] sm:$0xff] }
 0x41e   : > { %v3427_v15 = vmul.f32 1.442695, %v3199_v24  ;;  %v9820_v36 = vmul.f32 0.5, %v9694_v21  ;;  %v6032_v4 = vpop.eup %6031  ;;  %v9823_v3 = vmul.f32 %v4216_v50, %v9599_v22  ;;  %v2303_v34 = vadd.f32 1.4214138, %v2175_v2 }
 0x41f   : > { %v2049_v9 = vadd.f32 -1.4531521, %v1921_v5  ;;  %6037 = vrcp.f32 %v1538_v6  ;;  %v4219_v54 = vadd.f32 1.0, %v4091_v51  ;;  %v3201_v26 = vsub.f32 0.0, %v3073_v38  ;;  %v11403_v5 = vld [vmem:[#allocation50_spill] sm:$0xff] }
 0x420   : > { %11400 = vst [vmem:[#allocation28_spill] sm:$0xff] %v9823_v3  ;;  %v1411_v59 = vmul.f32 0.3275911, %v9816_v27  ;;  %v9828_v23 = vadd.f32 %v11401_v60, %v6601_v47  ;;  %v2940_v24 = vmul.f32 %v9715_v42, %v2812_v16  ;;  %v2814_v48 = vadd.f32 0.2548296, %v2686_v41 }
 0x421   : > { %v2431_v21 = vmul.f32 %v9786_v31, %v2303_v34  ;;  %v2177_v30 = vmul.f32 %v9806_v25, %v2049_v9  ;;  %v9834_v22 = vmul.f32 %v4218_v44, %v9678_v18  ;;  %v3965_v50 = vsub.f32 0.0, %v3709_v58 }
 0x422   : > { %6039 = vpow2.f32 %v3427_v15  ;;  %v1539_v51 = vadd.f32 1.0, %v1411_v59  ;;  %v3072_v2 = vmul.f32 %v1280_v33, %v1280_v33  ;;  %v4404_v60 = vpack.c.bf16 %v11404_v37, %v11403_v5  ;;  %v11406_v33 = vld [vmem:[#allocation70_spill] sm:$0xff]  ;;  %v11407_v37 = vld [vmem:[#allocation19_spill] sm:$0xff] }
 0x423   : > { %11402 = vst [vmem:[#allocation58_spill] sm:$0xff] %v9834_v22  ;;  %v2559_v38 = vadd.f32 -0.28449672, %v2431_v21  ;;  %v2305_v6 = vadd.f32 1.4214138, %v2177_v30  ;;  %v6034_v3 = vpop.eup %6033  ;;  %v9839_v42 = vmul.f32 %v4219_v54, %v9698_v28  ;;  %v9846_v44 = vmul.f32 %v6032_v4, %v2940_v24  ;;  %v11408_v59 = vld [vmem:[#allocation34_spill] sm:$0xff] }
 0x424   : > { %v3431_v41 = vmul.f32 1.442695, %v3201_v26  ;;  %6041 = vrcp.f32 %v1539_v51  ;;  %v9842_v16 = vmul.f32 0.70710677, %v9828_v23  ;;  %v2942_v15 = vmul.f32 %v9720_v7, %v2814_v48  ;;  %4786 = vmatprep.mubr.bf16.mxu0 %v4404_v60 }
 0x425   : > { %11405 = vst [vmem:[#allocation36_spill] sm:$0xff] %v9839_v42  ;;  %v9844_v18 = vpop.eup %6035  ;;  %v2687_v30 = vmul.f32 %v9786_v31, %v2559_v38  ;;  %v4406_v34 = vpack.c.bf16 %v11407_v37, %v11406_v33  ;;  %v2433_v28 = vmul.f32 %v9806_v25, %v2305_v6  ;;  %v9854_v9 = vmul.f32 0.5, %v9745_v62  ;;  %v11409_v38 = vld [vmem:[#allocation12_spill] sm:$0xff]  ;;  %v11410_v6 = vld [vmem:[#allocation17_spill] sm:$0xff] }
 0x426   : > { %v1920_v54 = vmul.f32 1.0614054, %v9844_v18  ;;  %v9858_v26 = vand.u32 2147483647, %v9842_v16  ;;  %v4093_v4 = vsel %vm3837_vm1, %v3965_v50, %v3709_v58  ;;  %v3200_v7 = vsub.f32 0.0, %v3072_v2 }
 0x427   : > { %v9863_v48 = vmul.f32 0.5, %v9770_v55  ;;  %4947 = vmatprep.mubr.bf16.mxu1 %v4406_v34  ;;  %v9867_v24 = vadd.f32 %v11408_v59, %v6629_v10  ;;  %v3074_v62 = vmul.f32 %v9792_v39, %v9792_v39  ;;  %v4403_v5 = vpack.c.bf16 %v11410_v6, %v11409_v38  ;;  %v9893_v6 = vpop.f32.mrb[62].mxu0 }
 0x428   : > { %v2048_v21 = vadd.f32 -1.4531521, %v1920_v54  ;;  %v1413_v51 = vmul.f32 0.3275911, %v9858_v26  ;;  %v3708_v58 = vsub.f32 1.0, %v9846_v44  ;;  %v9877_v55 = vmul.f32 %v6034_v3, %v2942_v15  ;;  %11411 = vst [vmem:[#allocation77_spill] sm:$0xff] %v9893_v6 }
 0x429   : > { %v9874_v43 = vpop.eup %6037  ;;  %v2815_v50 = vadd.f32 0.2548296, %v2687_v30  ;;  %v9880_v2 = vmul.f32 0.70710677, %v9867_v24  ;;  %vm3836_vm2 = vcmp.lt.f32.partialorder %v9627_v40, 0.0  ;;  %4787 = vmatmul.mubr.bf16.gmra.mrb[88].mxu0 %v4403_v5  ;;  %v4221_v34 = vadd.f32 1.0, %v4093_v4 }
 0x42a   : > { %v2561_v60 = vadd.f32 -0.28449672, %v2433_v28  ;;  %v2176_v39 = vmul.f32 %v9844_v18, %v2048_v21  ;;  %v1922_v33 = vmul.f32 1.0614054, %v9874_v43  ;;  %v1541_v37 = vadd.f32 1.0, %v1413_v51  ;;  %v9895_v4 = vpop.f32.mrb[62].mxu1 }
 0x42b   : > { %v3429_v54 = vmul.f32 1.442695, %v3200_v7  ;;  %v9886_v59 = vmul.f32 0.5, %v9784_v1  ;;  %v9889_v3 = vand.u32 2147483647, %v9880_v2  ;;  %v3202_v38 = vsub.f32 0.0, %v3074_v62 }
 0x42c   : > { %v6040_v44 = vpop.eup %6039  ;;  %v2304_v15 = vadd.f32 1.4214138, %v2176_v39  ;;  %v2050_v30 = vadd.f32 -1.4531521, %v1922_v33  ;;  %6043 = vrcp.f32 %v1541_v37  ;;  %v3964_v28 = vsub.f32 0.0, %v3708_v58  ;;  %11412 = vst [vmem:[#allocation75_spill] sm:$0xff] %v9895_v4 }
 0x42d   : > { %v3710_v21 = vsub.f32 1.0, %v9877_v55  ;;  %6045 = vpow2.f32 %v3431_v41  ;;  %v1412_v51 = vmul.f32 0.3275911, %v9889_v3  ;;  %v2943_v7 = vmul.f32 %v9786_v31, %v2815_v50  ;;  %v11413_v37 = vld [vmem:[#allocation22_spill] sm:$0xff]  ;;  %v11414_v50 = vld [vmem:[#allocation35_spill] sm:$0xff]  ;;  %v9913_v4 = vpop.f32.mrb[63].mxu0 }
 0x42e   : > { %v9897_v1 = vpop.eup %6041  ;;  %v2689_v5 = vmul.f32 %v9806_v25, %v2561_v60  ;;  %v2432_v39 = vmul.f32 %v9844_v18, %v2304_v15  ;;  %v2178_v62 = vmul.f32 %v9874_v43, %v2050_v30  ;;  %vm3838_vm3 = vcmp.lt.f32.partialorder %v9637_v12, 0.0  ;;  %v11415_v60 = vld [vmem:[#allocation72_spill] sm:$0xff] }
 0x42f   : > { %v1923_v41 = vmul.f32 1.0614054, %v9897_v1  ;;  %v3075_v55 = vmul.f32 %v9816_v27, %v9816_v27  ;;  %v1540_v33 = vadd.f32 1.0, %v1412_v51  ;;  %v9909_v42 = vadd.f32 %v11413_v37, %v6650_v19 }
 0x430   : > { %v2560_v22 = vadd.f32 -0.28449672, %v2432_v39  ;;  %6047 = vpow2.f32 %v3429_v54  ;;  %v2306_v31 = vadd.f32 1.4214138, %v2178_v62  ;;  %v4405_v15 = vpack.c.bf16 %v11415_v60, %v11414_v50 }
 0x431   : > { %v3966_v30 = vsub.f32 0.0, %v3710_v21  ;;  %v3433_v6 = vmul.f32 1.442695, %v3202_v38  ;;  %v2051_v17 = vadd.f32 -1.4531521, %v1923_v41  ;;  %6049 = vrcp.f32 %v1540_v33 }
 0x432   : > { %v3583_v14 = vmul.f32 %v6040_v44, %v2943_v7  ;;  %v2817_v63 = vadd.f32 0.2548296, %v2689_v5  ;;  %v2688_v27 = vmul.f32 %v9844_v18, %v2560_v22  ;;  %v2434_v51 = vmul.f32 %v9874_v43, %v2306_v31  ;;  %4948 = vmatmul.mubr.bf16.gmra.mrb[88].mxu1 %v4405_v15  ;;  %v11416_v7 = vld [vmem:[#allocation18_spill] sm:$0xff] }
 0x433   : > { %v4092_v54 = vsel %vm3836_vm2, %v3964_v28, %v3708_v58  ;;  %v2179_v39 = vmul.f32 %v9897_v1, %v2051_v17  ;;  %v3203_v62 = vsub.f32 0.0, %v3075_v55  ;;  %v9921_v37 = vmul.f32 0.70710677, %v9909_v42  ;;  %v9934_v58 = vpop.f32.mrb[63].mxu1 }
 0x434   : > { %v2816_v50 = vadd.f32 0.2548296, %v2688_v27  ;;  %v2562_v38 = vadd.f32 -0.28449672, %v2434_v51  ;;  %v3077_v44 = vmul.f32 %v9858_v26, %v9858_v26  ;;  %v9927_v22 = vadd.f32 %v11416_v7, %v6599_v46  ;;  %11418 = vst [vmem:[#allocation66_spill] sm:$0xff] %v9934_v58 }
 0x435   : > { %v9930_v5 = vmul.f32 %v4221_v34, %v9701_v56  ;;  %vm3839_vm4 = vcmp.lt.f32.partialorder %v9705_v61, 0.0  ;;  %6051 = vpow2.f32 %v3433_v6  ;;  %v2307_v40 = vadd.f32 1.4214138, %v2179_v39  ;;  %v11419_v61 = vld [vmem:[#allocation33_spill] sm:$0xff] }
 0x436   : > { %v1286_v17 = vand.u32 2147483647, %v9921_v37  ;;  %v9936_v28 = vpop.eup %6043  ;;  %v4220_v41 = vadd.f32 1.0, %v4092_v54  ;;  %v3711_v55 = vsub.f32 1.0, %v3583_v14  ;;  %v2945_v26 = vmul.f32 %v9806_v25, %v2817_v63 }
 0x437   : > { %11417 = vst [vmem:[#allocation38_spill] sm:$0xff] %v9930_v5  ;;  %v9940_v33 = vmul.f32 0.5, %v9828_v23  ;;  %v6046_v31 = vpop.eup %6045  ;;  %v2690_v56 = vmul.f32 %v9874_v43, %v2562_v38  ;;  %v2435_v34 = vmul.f32 %v9897_v1, %v2307_v40  ;;  %v1925_v6 = vmul.f32 1.0614054, %v9936_v28 }
 0x438   : > { %v1414_v60 = vmul.f32 0.3275911, %v1286_v17  ;;  %v4094_v15 = vsel %vm3838_vm3, %v3966_v30, %v3710_v21  ;;  %v3435_v27 = vmul.f32 1.442695, %v3203_v62  ;;  %v3205_v51 = vsub.f32 0.0, %v3077_v44 }
 0x439   : > { %v9948_v14 = vmul.f32 0.70710677, %v9927_v22  ;;  %v2944_v63 = vmul.f32 %v9844_v18, %v2816_v50  ;;  %v2563_v25 = vadd.f32 -0.28449672, %v2435_v34  ;;  %v2053_v23 = vadd.f32 -1.4531521, %v1925_v6 }
 0x43a   : > { %v1542_v54 = vadd.f32 1.0, %v1414_v60  ;;  %v6048_v39 = vpop.eup %6047  ;;  %v3967_v38 = vsub.f32 0.0, %v3711_v55  ;;  %v3585_v7 = vmul.f32 %v6046_v31, %v2945_v26  ;;  %v3076_v40 = vmul.f32 %v9889_v3, %v9889_v3 }
 0x43b   : > { %v1287_v5 = vand.u32 2147483647, %v9948_v14  ;;  %v9954_v12 = vpop.eup %6049  ;;  %v2818_v21 = vadd.f32 0.2548296, %v2690_v56  ;;  %v2691_v30 = vmul.f32 %v9897_v1, %v2563_v25  ;;  %v2181_v62 = vmul.f32 %v9936_v28, %v2053_v23 }
 0x43c   : > { %6053 = vrcp.f32 %v1542_v54  ;;  %v4222_v18 = vadd.f32 1.0, %v4094_v15  ;;  %v1924_v50 = vmul.f32 1.0614054, %v9954_v12  ;;  %v9960_v26 = vmul.f32 %v4220_v41, %v9755_v13 }
 0x43d   : > { %6055 = vpow2.f32 %v3435_v27  ;;  %v1415_v44 = vmul.f32 0.3275911, %v1287_v5  ;;  %vm3841_vm5 = vcmp.lt.f32.partialorder %v9713_v20, 0.0  ;;  %v3584_v3 = vmul.f32 %v6048_v39, %v2944_v63 }
 0x43e   : > { %v2309_v31 = vadd.f32 1.4214138, %v2181_v62  ;;  %v3439_v34 = vmul.f32 1.442695, %v3205_v51  ;;  %v4095_v56 = vsel %vm3839_vm4, %v3967_v38, %v3711_v55  ;;  %v3713_v6 = vsub.f32 1.0, %v3585_v7 }
 0x43f   : > { %v2052_v60 = vadd.f32 -1.4531521, %v1924_v50  ;;  %v1543_v25 = vadd.f32 1.0, %v1415_v44  ;;  %v6052_v23 = vpop.eup %6051  ;;  %v2946_v15 = vmul.f32 %v9874_v43, %v2818_v21  ;;  %v2819_v27 = vadd.f32 0.2548296, %v2691_v30 }
 0x440   : > { %v2437_v54 = vmul.f32 %v9936_v28, %v2309_v31  ;;  %v3204_v58 = vsub.f32 0.0, %v3076_v40  ;;  %v9968_v13 = vmul.f32 %v4222_v18, %v9759_v32  ;;  %vm3840_vm6 = vcmp.lt.f32.partialorder %v9762_v8, 0.0 }
 0x441   : > { %v2180_v41 = vmul.f32 %v9954_v12, %v2052_v60  ;;  %6057 = vrcp.f32 %v1543_v25  ;;  %v9974_v55 = vadd.f32 %v11419_v61, %v6601_v47  ;;  %v4223_v51 = vadd.f32 1.0, %v4095_v56 }
 0x442   : > { %v3712_v63 = vsub.f32 1.0, %v3584_v3  ;;  %v2565_v39 = vadd.f32 -0.28449672, %v2437_v54  ;;  %v3078_v43 = vmul.f32 %v1286_v17, %v1286_v17  ;;  %v3969_v38 = vsub.f32 0.0, %v3713_v6  ;;  %v11420_v17 = vld [vmem:[#allocation53_spill] sm:$0xff] }
 0x443   : > { %6059 = vpow2.f32 %v3439_v34  ;;  %v2308_v7 = vadd.f32 1.4214138, %v2180_v41  ;;  %v9977_v40 = vmul.f32 0.70710677, %v9974_v55  ;;  %v3586_v32 = vmul.f32 %v6052_v23, %v2946_v15 }
 0x444   : > { %v2947_v21 = vmul.f32 %v9897_v1, %v2819_v27  ;;  %v2693_v30 = vmul.f32 %v9936_v28, %v2565_v39  ;;  %v3437_v62 = vmul.f32 1.442695, %v3204_v58  ;;  %v9982_v18 = vmul.f32 0.5, %v9867_v24 }
 0x445   : > { %v2436_v50 = vmul.f32 %v9954_v12, %v2308_v7  ;;  %v9986_v44 = vand.u32 2147483647, %v9977_v40  ;;  %v9990_v3 = vadd.f32 %v11420_v17, %v6629_v10  ;;  %v9995_v34 = vmul.f32 %v4223_v51, %v9789_v57 }
 0x446   : > { %v9992_v31 = vpop.eup %6053  ;;  %v3968_v1 = vsub.f32 0.0, %v3712_v63  ;;  %v9998_v58 = vmul.f32 0.5, %v9909_v42  ;;  %v3206_v24 = vsub.f32 0.0, %v3078_v43  ;;  %v4097_v60 = vsel %vm3841_vm5, %v3969_v38, %v3713_v6 }
 0x447   : > { %v6056_v56 = vpop.eup %6055  ;;  %vm3842_vm7 = vcmp.lt.f32.partialorder %v9777_v45, 0.0  ;;  %v2821_v25 = vadd.f32 0.2548296, %v2693_v30  ;;  %v1926_v23 = vmul.f32 1.0614054, %v9992_v31  ;;  %v3714_v27 = vsub.f32 1.0, %v3586_v32 }
 0x448   : > { %v1417_v15 = vmul.f32 0.3275911, %v9986_v44  ;;  %v3587_v54 = vmul.f32 %v6056_v56, %v2947_v21  ;;  %6061 = vpow2.f32 %v3437_v62  ;;  %v10006_v57 = vmul.f32 0.70710677, %v9990_v3 }
 0x449   : > { %v2564_v42 = vadd.f32 -0.28449672, %v2436_v50  ;;  %v2054_v41 = vadd.f32 -1.4531521, %v1926_v23  ;;  %v3079_v61 = vmul.f32 %v1287_v5, %v1287_v5  ;;  %v4225_v39 = vadd.f32 1.0, %v4097_v60 }
 0x44a   : > { %v1545_v51 = vadd.f32 1.0, %v1417_v15  ;;  %v4096_v20 = vsel %vm3840_vm6, %v3968_v1, %v3712_v63  ;;  %v3441_v6 = vmul.f32 1.442695, %v3206_v24  ;;  %v1288_v43 = vand.u32 2147483647, %v10006_v57 }
 0x44b   : > { %v10011_v38 = vpop.eup %6057  ;;  %vm3843_vm8 = vcmp.lt.f32.partialorder %v9800_v29, 0.0  ;;  %v2949_v7 = vmul.f32 %v9936_v28, %v2821_v25  ;;  %v2182_v32 = vmul.f32 %v9992_v31, %v2054_v41  ;;  %v10018_v5 = vadd.f32 %v9392_v0, %v6650_v19 }
 0x44c   : > { %6063 = vrcp.f32 %v1545_v51  ;;  %v3970_v21 = vsub.f32 0.0, %v3714_v27  ;;  %v3715_v30 = vsub.f32 1.0, %v3587_v54  ;;  %v10021_v8 = vmul.f32 0.5, %v9927_v22 }
 0x44d   : > { %v1927_v63 = vmul.f32 1.0614054, %v10011_v38  ;;  %v6060_v62 = vpop.eup %6059  ;;  %v2692_v50 = vmul.f32 %v9954_v12, %v2564_v42  ;;  %v2310_v17 = vadd.f32 1.4214138, %v2182_v32  ;;  %v3207_v1 = vsub.f32 0.0, %v3079_v61 }
 0x44e   : > { %v1416_v28 = vmul.f32 0.3275911, %v1288_v43  ;;  %v10026_v24 = vmul.f32 %v4225_v39, %v9820_v36  ;;  %v4224_v56 = vadd.f32 1.0, %v4096_v20  ;;  %6065 = vpow2.f32 %v3441_v6 }
 0x44f   : > { %v2055_v0 = vadd.f32 -1.4531521, %v1927_v63  ;;  %v3589_v60 = vmul.f32 %v6060_v62, %v2949_v7  ;;  %v2438_v25 = vmul.f32 %v9992_v31, %v2310_v17  ;;  %v10030_v22 = vmul.f32 0.70710677, %v10018_v5 }
 0x450   : > { %v1544_v23 = vadd.f32 1.0, %v1416_v28  ;;  %v4098_v15 = vsel %vm3842_vm7, %v3970_v21, %v3714_v27  ;;  %v3971_v54 = vsub.f32 0.0, %v3715_v30  ;;  %v10037_v36 = vadd.f32 %v9455_v49, %v6599_v46 }
 0x451   : > { %v2183_v42 = vmul.f32 %v10011_v38, %v2055_v0  ;;  %v2820_v41 = vadd.f32 0.2548296, %v2692_v50  ;;  %v2566_v61 = vadd.f32 -0.28449672, %v2438_v25  ;;  %v3443_v51 = vmul.f32 1.442695, %v3207_v1 }
 0x452   : > { %6067 = vrcp.f32 %v1544_v23  ;;  %v6062_v39 = vpop.eup %6061  ;;  %v10040_v20 = vmul.f32 %v4224_v56, %v9854_v9  ;;  %vm3845_vm9 = vcmp.lt.f32.partialorder %v9842_v16, 0.0  ;;  %v10044_v45 = vmul.f32 0.5, %v9974_v55  ;;  %v11421_v56 = vld [vmem:[#allocation64_spill] sm:$0xff]  ;;  %v11422_v0 = vld [vmem:[#allocation14_spill] sm:$0xff] }
 0x453   : > { %v2311_v6 = vadd.f32 1.4214138, %v2183_v42  ;;  %v1290_v27 = vand.u32 2147483647, %v10030_v22  ;;  %v4226_v7 = vadd.f32 1.0, %v4098_v15  ;;  %v3717_v32 = vsub.f32 1.0, %v3589_v60 }
 0x454   : > { %v2694_v49 = vmul.f32 %v9992_v31, %v2566_v61  ;;  %v3081_v21 = vmul.f32 %v9986_v44, %v9986_v44  ;;  %v4099_v63 = vsel %vm3843_vm8, %v3971_v54, %v3715_v30  ;;  %v10054_v50 = vmul.f32 0.70710677, %v10037_v36 }
 0x455   : > { %v2439_v9 = vmul.f32 %v10011_v38, %v2311_v6  ;;  %v1418_v62 = vmul.f32 0.3275911, %v1290_v27  ;;  %v2948_v17 = vmul.f32 %v9954_v12, %v2820_v41  ;;  %v3080_v28 = vmul.f32 %v1288_v43, %v1288_v43 }
 0x456   : > { %v10056_v55 = vpop.eup %6063  ;;  %v2822_v1 = vadd.f32 0.2548296, %v2694_v49  ;;  %v4408_v60 = vpack.c.bf16 %v11422_v0, %v11421_v56  ;;  %v10064_v30 = vadd.f32 %v9457_v11, %v6601_v47  ;;  %v3973_v23 = vsub.f32 0.0, %v3717_v32 }
 0x457   : > { %v2567_v25 = vadd.f32 -0.28449672, %v2439_v9  ;;  %v1929_v44 = vmul.f32 1.0614054, %v10056_v55  ;;  %v1546_v29 = vadd.f32 1.0, %v1418_v62  ;;  %6069 = vpow2.f32 %v3443_v51 }
 0x458   : > { %v3209_v15 = vsub.f32 0.0, %v3081_v21  ;;  %v1291_v54 = vand.u32 2147483647, %v10054_v50  ;;  %4794 = vmatprep.mubr.bf16.mxu0 %v4408_v60  ;;  %v6066_v12 = vpop.eup %6065  ;;  %v10068_v43 = vmul.f32 %v4226_v7, %v9863_v48  ;;  %v4227_v61 = vadd.f32 1.0, %v4099_v63 }
 0x459   : > { %v2695_v42 = vmul.f32 %v10011_v38, %v2567_v25  ;;  %v2057_v41 = vadd.f32 -1.4531521, %v1929_v44  ;;  %6071 = vrcp.f32 %v1546_v29  ;;  %v3588_v6 = vmul.f32 %v6062_v39, %v2948_v17 }
 0x45a   : > { %v3208_v49 = vsub.f32 0.0, %v3080_v28  ;;  %v1419_v9 = vmul.f32 0.3275911, %v1291_v54  ;;  %v2950_v11 = vmul.f32 %v9992_v31, %v2822_v1  ;;  %v10074_v21 = vmul.f32 0.5, %v9990_v3 }
 0x45b   : > { %v2185_v51 = vmul.f32 %v10056_v55, %v2057_v41  ;;  %v10077_v62 = vmul.f32 0.70710677, %v10064_v30  ;;  %v4101_v7 = vsel %vm3845_vm9, %v3973_v23, %v3717_v32  ;;  %v2823_v56 = vadd.f32 0.2548296, %v2695_v42  ;;  %v11424_v23 = vld [vmem:[#allocation31_spill] sm:$0xff] }
 0x45c   : > { %v10079_v48 = vpop.eup %6067  ;;  %v3447_v63 = vmul.f32 1.442695, %v3209_v15  ;;  %v1547_v39 = vadd.f32 1.0, %v1419_v9  ;;  %v3082_v31 = vmul.f32 %v1290_v27, %v1290_v27  ;;  %v10086_v3 = vmul.f32 %v4227_v61, %v9886_v59  ;;  %v11425_v15 = vld [vmem:[#allocation76_spill] sm:$0xff] }
 0x45d   : > { %v2313_v17 = vadd.f32 1.4214138, %v2185_v51  ;;  %v1928_v28 = vmul.f32 1.0614054, %v10079_v48  ;;  %v1293_v1 = vand.u32 2147483647, %v10077_v62  ;;  %v10089_v25 = vmul.f32 %v6066_v12, %v2950_v11 }
 0x45e   : > { %11423 = vst [vmem:[#allocation37_spill] sm:$0xff] %v10086_v3  ;;  %v3716_v0 = vsub.f32 1.0, %v3588_v6  ;;  %vm3844_vm10 = vcmp.lt.f32.partialorder %v9880_v2, 0.0  ;;  %v3445_v60 = vmul.f32 1.442695, %v3208_v49  ;;  %6073 = vrcp.f32 %v1547_v39  ;;  %v11426_v11 = vld [vmem:[#allocation23_spill] sm:$0xff] }
 0x45f   : > { %v2441_v16 = vmul.f32 %v10056_v55, %v2313_v17  ;;  %v2056_v32 = vadd.f32 -1.4531521, %v1928_v28  ;;  %v1421_v44 = vmul.f32 0.3275911, %v1293_v1  ;;  %v4229_v29 = vadd.f32 1.0, %v4101_v7  ;;  %v11428_v17 = vld [vmem:[#allocation73_spill] sm:$0xff] }
 0x460   : > { %6075 = vpow2.f32 %v3447_v63  ;;  %v10093_v27 = vmul.f32 0.5, %v10018_v5  ;;  %v4410_v59 = vpack.c.bf16 %v11425_v15, %v11424_v23  ;;  %v2951_v42 = vmul.f32 %v10011_v38, %v2823_v56 }
 0x461   : > { %v2569_v41 = vadd.f32 -0.28449672, %v2441_v16  ;;  %v2184_v61 = vmul.f32 %v10079_v48, %v2056_v32  ;;  %v3210_v6 = vsub.f32 0.0, %v3082_v31  ;;  %v6070_v12 = vpop.eup %6069  ;;  %6077 = vpow2.f32 %v3445_v60 }
 0x462   : > { %v3083_v49 = vmul.f32 %v1291_v54, %v1291_v54  ;;  %v1549_v9 = vadd.f32 1.0, %v1421_v44  ;;  %4955 = vmatprep.mubr.bf16.mxu1 %v4410_v59  ;;  %v10101_v51 = vadd.f32 %v11426_v11, %v6629_v10  ;;  %v3972_v7 = vsub.f32 0.0, %v3716_v0 }
 0x463   : > { %v10103_v5 = vpop.eup %6071  ;;  %v3718_v63 = vsub.f32 1.0, %v10089_v25  ;;  %v2697_v38 = vmul.f32 %v10056_v55, %v2569_v41  ;;  %v2312_v56 = vadd.f32 1.4214138, %v2184_v61  ;;  %v10108_v39 = vmul.f32 %v4229_v29, %v9940_v33 }
 0x464   : > { %vm3846_vm11 = vcmp.lt.f32.partialorder %v9921_v37, 0.0  ;;  %v1930_v54 = vmul.f32 1.0614054, %v10103_v5  ;;  %6079 = vrcp.f32 %v1549_v9  ;;  %v10114_v28 = vadd.f32 %v11428_v17, %v6650_v19  ;;  %v11430_v9 = vld [vmem:[#allocation20_spill] sm:$0xff] }
 0x465   : > { %11427 = vst [vmem:[#allocation40_spill] sm:$0xff] %v10108_v39  ;;  %v3591_v31 = vmul.f32 %v6070_v12, %v2951_v42  ;;  %v2440_v60 = vmul.f32 %v10079_v48, %v2312_v56  ;;  %v3449_v16 = vmul.f32 1.442695, %v3210_v6  ;;  %v10118_v25 = vmul.f32 0.70710677, %v10101_v51 }
 0x466   : > { %v2825_v32 = vadd.f32 0.2548296, %v2697_v38  ;;  %v2058_v44 = vadd.f32 -1.4531521, %v1930_v54  ;;  %v10121_v33 = vmul.f32 0.5, %v10037_v36  ;;  %v3211_v29 = vsub.f32 0.0, %v3083_v49 }
 0x467   : > { %v4100_v23 = vsel %vm3844_vm10, %v3972_v7, %v3716_v0  ;;  %v3974_v15 = vsub.f32 0.0, %v3718_v63  ;;  %v2568_v59 = vadd.f32 -0.28449672, %v2440_v60  ;;  %v1292_v41 = vand.u32 2147483647, %v10118_v25  ;;  %v11429_v36 = vld [vmem:[#allocation43_spill] sm:$0xff] }
 0x468   : > { %v10126_v42 = vpop.eup %6073  ;;  %vm3847_vm12 = vcmp.lt.f32.partialorder %v9948_v14, 0.0  ;;  %v2186_v61 = vmul.f32 %v10103_v5, %v2058_v44  ;;  %v3085_v6 = vmul.f32 %v1293_v1, %v1293_v1  ;;  %v10131_v12 = vmul.f32 0.70710677, %v10114_v28 }
 0x469   : > { %v4407_v49 = vpack.c.bf16 %v11430_v9, %v11429_v36  ;;  %v3719_v11 = vsub.f32 1.0, %v3591_v31  ;;  %v2696_v2 = vmul.f32 %v10079_v48, %v2568_v59  ;;  %v1931_v0 = vmul.f32 1.0614054, %v10126_v42 }
 0x46a   : > { %v1420_v7 = vmul.f32 0.3275911, %v1292_v41  ;;  %v6076_v38 = vpop.eup %6075  ;;  %v2953_v56 = vmul.f32 %v10056_v55, %v2825_v32  ;;  %v2314_v54 = vadd.f32 1.4214138, %v2186_v61  ;;  %v3451_v17 = vmul.f32 1.442695, %v3211_v29 }
 0x46b   : > { %v10139_v60 = vand.u32 2147483647, %v10131_v12  ;;  %4795 = vmatmul.mubr.bf16.gmra.mrb[92].mxu0 %v4407_v49  ;;  %v4228_v1 = vadd.f32 1.0, %v4100_v23  ;;  %v2824_v44 = vadd.f32 0.2548296, %v2696_v2  ;;  %v6078_v36 = vpop.eup %6077  ;;  %6081 = vpow2.f32 %v3449_v16 }
 0x46c   : > { %v2059_v39 = vadd.f32 -1.4531521, %v1931_v0  ;;  %v1548_v3 = vadd.f32 1.0, %v1420_v7  ;;  %v2442_v31 = vmul.f32 %v10103_v5, %v2314_v54  ;;  %v3213_v59 = vsub.f32 0.0, %v3085_v6 }
 0x46d   : > { %v1422_v9 = vmul.f32 0.3275911, %v10139_v60  ;;  %v4102_v55 = vsel %vm3846_vm11, %v3974_v15, %v3718_v63  ;;  %v3975_v32 = vsub.f32 0.0, %v3719_v11  ;;  %v3593_v23 = vmul.f32 %v6076_v38, %v2953_v56 }
 0x46e   : > { %v2187_v29 = vmul.f32 %v10126_v42, %v2059_v39  ;;  %6083 = vrcp.f32 %v1548_v3  ;;  %v10146_v61 = vpop.eup %6079  ;;  %v2952_v49 = vmul.f32 %v10079_v48, %v2824_v44  ;;  %v2570_v2 = vadd.f32 -0.28449672, %v2442_v31 }
 0x46f   : > { %v1550_v0 = vadd.f32 1.0, %v1422_v9  ;;  %v10150_v7 = vmul.f32 %v4228_v1, %v9982_v18  ;;  %6085 = vpow2.f32 %v3451_v17  ;;  %v1933_v6 = vmul.f32 1.0614054, %v10146_v61  ;;  %v11431_v17 = vld [vmem:[#allocation45_spill] sm:$0xff] }
 0x470   : > { %v2315_v16 = vadd.f32 1.4214138, %v2187_v29  ;;  %v4230_v37 = vadd.f32 1.0, %v4102_v55  ;;  %v2698_v63 = vmul.f32 %v10103_v5, %v2570_v2  ;;  %v3455_v15 = vmul.f32 1.442695, %v3213_v59  ;;  %v11432_v1 = vld [vmem:[#allocation41_spill] sm:$0xff] }
 0x471   : > { %v3084_v39 = vmul.f32 %v1292_v41, %v1292_v41  ;;  %v4103_v3 = vsel %vm3847_vm12, %v3975_v32, %v3719_v11  ;;  %vm3849_vm13 = vcmp.lt.f32.partialorder %v9977_v40, 0.0  ;;  %v2061_v38 = vadd.f32 -1.4531521, %v1933_v6  ;;  %v11433_v41 = vld [vmem:[#allocation42_spill] sm:$0xff]  ;;  %v11434_v32 = vld [vmem:[#allocation68_spill] sm:$0xff]  ;;  %v10187_v6 = vpop.f32.mrb[64].mxu0 }
 0x472   : > { %v2443_v48 = vmul.f32 %v10126_v42, %v2315_v16  ;;  %6087 = vrcp.f32 %v1550_v0  ;;  %v3721_v18 = vsub.f32 1.0, %v3593_v23  ;;  %v10158_v56 = vmul.f32 %v6078_v36, %v2952_v49  ;;  %11435 = vst [vmem:[#allocation29_spill] sm:$0xff] %v10187_v6 }
 0x473   : > { %v2826_v54 = vadd.f32 0.2548296, %v2698_v63  ;;  %v4409_v44 = vpack.c.bf16 %v11432_v1, %v11431_v17  ;;  %v10163_v59 = vmul.f32 0.5, %v10064_v30  ;;  %v2189_v14 = vmul.f32 %v10146_v61, %v2061_v38  ;;  %v10199_v38 = vpop.f32.mrb[65].mxu0 }
 0x474   : > { %v2571_v31 = vadd.f32 -0.28449672, %v2443_v48  ;;  %v10168_v11 = vadd.f32 %v11433_v41, %v6599_v46  ;;  %v10171_v9 = vmul.f32 %v4230_v37, %v9998_v58  ;;  %v3212_v55 = vsub.f32 0.0, %v3084_v39  ;;  %v10189_v37 = vpop.f32.mrb[64].mxu1  ;;  %11437 = vst [vmem:[#allocation50_spill] sm:$0xff] %v10199_v38 }
 0x475   : > { %v2954_v36 = vmul.f32 %v10103_v5, %v2826_v54  ;;  %4956 = vmatmul.mubr.bf16.gmra.mrb[92].mxu1 %v4409_v44  ;;  %v10176_v29 = vadd.f32 %v11434_v32, %v6601_v47  ;;  %v4231_v23 = vadd.f32 1.0, %v4103_v3  ;;  %v2317_v49 = vadd.f32 1.4214138, %v2189_v14  ;;  %v6082_v0 = vpop.eup %6081  ;;  %11436 = vst [vmem:[#allocation69_spill] sm:$0xff] %v10189_v37 }
 0x476   : > { %v2699_v30 = vmul.f32 %v10126_v42, %v2571_v31  ;;  %v10180_v2 = vmul.f32 0.5, %v10101_v51  ;;  %v3977_v16 = vsub.f32 0.0, %v3721_v18  ;;  %v3720_v58 = vsub.f32 1.0, %v10158_v56 }
 0x477   : > { %vm3848_vm14 = vcmp.lt.f32.partialorder %v10006_v57, 0.0  ;;  %6089 = vpow2.f32 %v3455_v15  ;;  %v10185_v5 = vmul.f32 0.70710677, %v10168_v11  ;;  %v10193_v39 = vmul.f32 %v6082_v0, %v2954_v36  ;;  %v10214_v36 = vpop.f32.mrb[65].mxu1 }
 0x478   : > { %v10191_v63 = vpop.eup %6083  ;;  %v2827_v51 = vadd.f32 0.2548296, %v2699_v30  ;;  %v2445_v3 = vmul.f32 %v10146_v61, %v2317_v49  ;;  %v10197_v48 = vmul.f32 0.70710677, %v10176_v29  ;;  %v3453_v56 = vmul.f32 1.442695, %v3212_v55 }
 0x479   : > { %v1932_v15 = vmul.f32 1.0614054, %v10191_v63  ;;  %v3086_v54 = vmul.f32 %v10139_v60, %v10139_v60  ;;  %v10205_v17 = vand.u32 2147483647, %v10185_v5  ;;  %v6086_v1 = vpop.eup %6085  ;;  %v10209_v14 = vmul.f32 0.5, %v10114_v28  ;;  %11438 = vst [vmem:[#allocation56_spill] sm:$0xff] %v10214_v36 }
 0x47a   : > { %v2955_v44 = vmul.f32 %v10126_v42, %v2827_v51  ;;  %v2573_v31 = vadd.f32 -0.28449672, %v2445_v3  ;;  %v10212_v41 = vand.u32 2147483647, %v10197_v48  ;;  %v10217_v55 = vmul.f32 %v4231_v23, %v10021_v8  ;;  %v10223_v30 = vpop.f32.mrb[66].mxu0  ;;  %v10230_v23 = vpop.f32.mrb[66].mxu1 }
 0x47b   : > { %v4105_v60 = vsel %vm3849_vm13, %v3977_v16, %v3721_v18  ;;  %vm3850_vm15 = vcmp.lt.f32.partialorder %v10030_v22, 0.0  ;;  %v2060_v32 = vadd.f32 -1.4531521, %v1932_v15  ;;  %v1423_v42 = vmul.f32 0.3275911, %v10205_v17  ;;  %11440 = vst [vmem:[#allocation19_spill] sm:$0xff] %v10223_v30 }
 0x47c   : > { %11439 = vst [vmem:[#allocation70_spill] sm:$0xff] %v10217_v55  ;;  %v10225_v28 = vpop.eup %6087  ;;  %v3976_v49 = vsub.f32 0.0, %v3720_v58  ;;  %v3722_v0 = vsub.f32 1.0, %v10193_v39  ;;  %v2701_v51 = vmul.f32 %v10146_v61, %v2573_v31  ;;  %v1425_v8 = vmul.f32 0.3275911, %v10212_v41  ;;  %11441 = vst [vmem:[#allocation34_spill] sm:$0xff] %v10230_v23 }
 0x47d   : > { %v10232_v40 = vpop.f32.mrb[67].mxu0  ;;  %v2188_v18 = vmul.f32 %v10191_v63, %v2060_v32  ;;  %v1934_v16 = vmul.f32 1.0614054, %v10225_v28  ;;  %v3214_v3 = vsub.f32 0.0, %v3086_v54  ;;  %v1551_v15 = vadd.f32 1.0, %v1423_v42  ;;  %v10236_v30 = vpop.f32.mrb[67].mxu1 }
 0x47e   : > { %11442 = vst [vmem:[#allocation12_spill] sm:$0xff] %v10232_v40  ;;  %11443 = vst [vmem:[#allocation17_spill] sm:$0xff] %v10236_v30  ;;  %v10238_v36 = vpop.f32.mrb[68].mxu0  ;;  %v4233_v37 = vadd.f32 1.0, %v4105_v60  ;;  %v10240_v39 = vmul.f32 %v6086_v1, %v2955_v44  ;;  %v2829_v31 = vadd.f32 0.2548296, %v2701_v51  ;;  %6091 = vpow2.f32 %v3453_v56 }
 0x47f   : > { %11444 = vst [vmem:[#allocation22_spill] sm:$0xff] %v10238_v36  ;;  %v10242_v38 = vpop.f32.mrb[68].mxu1  ;;  %v2316_v23 = vadd.f32 1.4214138, %v2188_v18  ;;  %v2062_v6 = vadd.f32 -1.4531521, %v1934_v16  ;;  %6093 = vrcp.f32 %v1551_v15  ;;  %v4104_v54 = vsel %vm3848_vm14, %v3976_v49, %v3720_v58 }
 0x480   : > { %11445 = vst [vmem:[#allocation35_spill] sm:$0xff] %v10242_v38  ;;  %v1553_v40 = vadd.f32 1.0, %v1425_v8  ;;  %v10244_v32 = vpop.f32.mrb[69].mxu0  ;;  %v3978_v42 = vsub.f32 0.0, %v3722_v0  ;;  %v2957_v30 = vmul.f32 %v10146_v61, %v2829_v31  ;;  %v718_v1 = vadd.f32 %v9661_v52, %v6629_v10  ;;  %v10251_v44 = vpop.f32.mrb[69].mxu1 }
 0x481   : > { %11446 = vst [vmem:[#allocation72_spill] sm:$0xff] %v10244_v32  ;;  %11447 = vst [vmem:[#allocation18_spill] sm:$0xff] %v10251_v44  ;;  %v10253_v56 = vpop.f32.mrb[70].mxu0  ;;  %v6090_v60 = vpop.eup %6089  ;;  %vm3851_vm0 = vcmp.lt.f32.partialorder %v10054_v50, 0.0  ;;  %v2444_v51 = vmul.f32 %v10191_v63, %v2316_v23  ;;  %v2190_v8 = vmul.f32 %v10225_v28, %v2062_v6  ;;  %v10260_v57 = vadd.f32 %v9670_v35, %v6650_v19  ;;  %v11465_v50 = vld [vmem:[#allocation32_spill] sm:$0xff]  ;;  %v11476_v32 = vld [vmem:[#allocation79_spill] sm:$0xff] }
 0x482   : > { %11448 = vst [vmem:[#allocation33_spill] sm:$0xff] %v10253_v56  ;;  %6095 = vrcp.f32 %v1553_v40  ;;  %v10262_v61 = vpop.f32.mrb[70].mxu1  ;;  %v10264_v58 = vpop.f32.mrb[71].mxu0  ;;  %v3723_v52 = vsub.f32 1.0, %v10240_v39  ;;  %v3597_v49 = vmul.f32 %v6090_v60, %v2957_v30  ;;  %vm3853_vm1 = vcmp.lt.f32.partialorder %v10077_v62, 0.0 }
 0x483   : > { %11449 = vst [vmem:[#allocation53_spill] sm:$0xff] %v10262_v61  ;;  %11450 = vst [vmem:[#allocation64_spill] sm:$0xff] %v10264_v58  ;;  %v3457_v18 = vmul.f32 1.442695, %v3214_v3  ;;  %v10269_v16 = vmul.f32 0.5, %v10168_v11  ;;  %v10271_v23 = vpop.f32.mrb[71].mxu1  ;;  %v4106_v39 = vsel %vm3850_vm15, %v3978_v42, %v3722_v0  ;;  %v3087_v3 = vmul.f32 %v10205_v17, %v10205_v17 }
 0x484   : > { %11451 = vst [vmem:[#allocation14_spill] sm:$0xff] %v10271_v23  ;;  %v10273_v6 = vpop.f32.mrb[72].mxu0  ;;  %v4232_v40 = vadd.f32 1.0, %v4104_v54  ;;  %v2572_v35 = vadd.f32 -0.28449672, %v2444_v51  ;;  %v10276_v31 = vmul.f32 0.5, %v10176_v29  ;;  %v3089_v51 = vmul.f32 %v10212_v41, %v10212_v41 }
 0x485   : > { %11452 = vst [vmem:[#allocation31_spill] sm:$0xff] %v10273_v6  ;;  %v2318_v15 = vadd.f32 1.4214138, %v2190_v8  ;;  %v3725_v30 = vsub.f32 1.0, %v3597_v49  ;;  %v10282_v60 = vmul.f32 0.70710677, %v718_v1  ;;  %v10298_v17 = vmul.f32 %v4233_v37, %v10044_v45 }
 0x486   : > { %v10284_v11 = vpop.f32.mrb[72].mxu1  ;;  %v2700_v23 = vmul.f32 %v10191_v63, %v2572_v35  ;;  %v10291_v29 = vmul.f32 0.70710677, %v10260_v57  ;;  %v10293_v22 = vpop.f32.mrb[73].mxu0  ;;  %v3979_v42 = vsub.f32 0.0, %v3723_v52  ;;  %v10300_v8 = vmul.f32 0.5, %v718_v1 }
 0x487   : > { %11453 = vst [vmem:[#allocation76_spill] sm:$0xff] %v10284_v11  ;;  %v2446_v54 = vmul.f32 %v10225_v28, %v2318_v15  ;;  %11454 = vst [vmem:[#allocation23_spill] sm:$0xff] %v10293_v22  ;;  %v10295_v0 = vpop.f32.mrb[73].mxu1  ;;  %v1296_v49 = vand.u32 2147483647, %v10282_v60  ;;  %v10303_v35 = vpop.f32.mrb[74].mxu0  ;;  %6097 = vpow2.f32 %v3457_v18 }
 0x488   : > { %11455 = vst [vmem:[#allocation73_spill] sm:$0xff] %v10295_v0  ;;  %11456 = vst [vmem:[#allocation43_spill] sm:$0xff] %v10298_v17  ;;  %v10305_v15 = vpop.f32.mrb[74].mxu1  ;;  %v4234_v41 = vadd.f32 1.0, %v4106_v39  ;;  %v3981_v11 = vsub.f32 0.0, %v3725_v30  ;;  %v6092_v22 = vpop.eup %6091  ;;  %v10309_v0 = vmul.f32 %v4232_v40, %v10074_v21  ;;  %v4107_v21 = vsel %vm3851_vm0, %v3979_v42, %v3723_v52 }
 0x489   : > { %11457 = vst [vmem:[#allocation20_spill] sm:$0xff] %v10303_v35  ;;  %11458 = vst [vmem:[#allocation45_spill] sm:$0xff] %v10305_v15  ;;  %v2828_v6 = vadd.f32 0.2548296, %v2700_v23  ;;  %v1298_v61 = vand.u32 2147483647, %v10291_v29  ;;  %v10315_v56 = vpop.eup %6093  ;;  %v3088_v39 = vmul.f32 %v1296_v49, %v1296_v49  ;;  %v10337_v52 = vadd.f32 %v11465_v50, %v6601_v47 }
 0x48a   : > { %v2574_v45 = vadd.f32 -0.28449672, %v2446_v54  ;;  %v1424_v37 = vmul.f32 0.3275911, %v1296_v49  ;;  %v10311_v1 = vpop.f32.mrb[75].mxu0  ;;  %v10313_v58 = vpop.f32.mrb[75].mxu1  ;;  %v10346_v62 = vmul.f32 %v4234_v41, %v10093_v27 }
 0x48b   : > { %11459 = vst [vmem:[#allocation41_spill] sm:$0xff] %v10311_v1  ;;  %11460 = vst [vmem:[#allocation42_spill] sm:$0xff] %v10313_v58  ;;  %v3215_v35 = vsub.f32 0.0, %v3087_v3  ;;  %v3217_v15 = vsub.f32 0.0, %v3089_v51  ;;  %v1426_v44 = vmul.f32 0.3275911, %v1298_v61  ;;  %v2956_v18 = vmul.f32 %v10191_v63, %v2828_v6 }
 0x48c   : > { %v10317_v23 = vpop.f32.mrb[76].mxu0  ;;  %v10319_v38 = vpop.f32.mrb[76].mxu1  ;;  %v1935_v40 = vmul.f32 1.0614054, %v10315_v56  ;;  %v1552_v54 = vadd.f32 1.0, %v1424_v37  ;;  %v4109_v51 = vsel %vm3853_vm1, %v3981_v11, %v3725_v30  ;;  %v2702_v42 = vmul.f32 %v10225_v28, %v2574_v45 }
 0x48d   : > { %11461 = vst [vmem:[#allocation68_spill] sm:$0xff] %v10317_v23  ;;  %11462 = vst [vmem:[#allocation81_spill] sm:$0xff] %v10319_v38  ;;  %v10325_v1 = vpop.f32.mrb[77].mxu0  ;;  %v10327_v58 = vpop.f32.mrb[77].mxu1  ;;  %v1554_v49 = vadd.f32 1.0, %v1426_v44  ;;  %v722_v38 = vadd.f32 %v9707_v53, %v6599_v46  ;;  %v3216_v30 = vsub.f32 0.0, %v3088_v39  ;;  %v3090_v23 = vmul.f32 %v1298_v61, %v1298_v61 }
 0x48e   : > { %11463 = vst [vmem:[#allocation82_spill] sm:$0xff] %v10325_v1  ;;  %11464 = vst [vmem:[#allocation83_spill] sm:$0xff] %v10327_v58  ;;  %v10329_v3 = vpop.eup %6095  ;;  %v10339_v63 = vpop.f32.mrb[78].mxu0  ;;  %v2063_v37 = vadd.f32 -1.4531521, %v1935_v40  ;;  %6099 = vrcp.f32 %v1552_v54  ;;  %v4235_v50 = vadd.f32 1.0, %v4107_v21 }
 0x48f   : > { %11466 = vst [vmem:[#allocation32_spill] sm:$0xff] %v10339_v63  ;;  %v10341_v6 = vpop.f32.mrb[78].mxu1  ;;  %v1937_v58 = vmul.f32 1.0614054, %v10329_v3  ;;  %v3459_v44 = vmul.f32 1.442695, %v3215_v35  ;;  %6101 = vrcp.f32 %v1554_v49  ;;  %v10352_v63 = vmul.f32 %v6092_v22, %v2956_v18 }
 0x490   : > { %11467 = vst [vmem:[#allocation84_spill] sm:$0xff] %v10341_v6  ;;  %v10348_v53 = vpop.f32.mrb[79].mxu0  ;;  %v10350_v11 = vpop.f32.mrb[79].mxu1  ;;  %v2191_v6 = vmul.f32 %v10315_v56, %v2063_v37  ;;  %v4237_v40 = vadd.f32 1.0, %v4109_v51  ;;  %v3463_v1 = vmul.f32 1.442695, %v3217_v15  ;;  %v10366_v15 = vmul.f32 %v4235_v50, %v10121_v33 }
 0x491   : > { %11468 = vst [vmem:[#allocation85_spill] sm:$0xff] %v10348_v53  ;;  %11469 = vst [vmem:[#allocation86_spill] sm:$0xff] %v10350_v11  ;;  %v2065_v45 = vadd.f32 -1.4531521, %v1937_v58  ;;  %v10355_v54 = vmul.f32 0.70710677, %v722_v38  ;;  %6103 = vpow2.f32 %v3459_v44  ;;  %v6098_v58 = vpop.eup %6097 }
 0x492   : > { %v2830_v27 = vadd.f32 0.2548296, %v2702_v42  ;;  %v2319_v41 = vadd.f32 1.4214138, %v2191_v6  ;;  %v10359_v39 = vmul.f32 0.70710677, %v10337_v52  ;;  %v10371_v6 = vmul.f32 %v4237_v40, %v10163_v59 }
 0x493   : > { %v2193_v35 = vmul.f32 %v10329_v3, %v2065_v45  ;;  %v3461_v49 = vmul.f32 1.442695, %v3216_v30  ;;  %v10362_v22 = vmul.f32 0.5, %v10260_v57  ;;  %v1299_v21 = vand.u32 2147483647, %v10355_v54  ;;  %11470 = vst [vmem:[#allocation87_spill] sm:$0xff] %v10366_v15 }
 0x494   : > { %v2447_v18 = vmul.f32 %v10315_v56, %v2319_v41  ;;  %11471 = vst [vmem:[#allocation88_spill] sm:$0xff] %v10371_v6  ;;  %6105 = vpow2.f32 %v3463_v1  ;;  %v1301_v37 = vand.u32 2147483647, %v10359_v39  ;;  %v2958_v57 = vmul.f32 %v10225_v28, %v2830_v27  ;;  %v10383_v53 = vpop.f32.mrb[80].mxu0  ;;  %v11479_v6 = vld [vmem:[#allocation13_spill] sm:$0xff] }
 0x495   : > { %v2321_v51 = vadd.f32 1.4214138, %v2193_v35  ;;  %v1427_v42 = vmul.f32 0.3275911, %v1299_v21  ;;  %v3218_v45 = vsub.f32 0.0, %v3090_v23  ;;  %6107 = vpow2.f32 %v3461_v49  ;;  %11473 = vst [vmem:[#allocation89_spill] sm:$0xff] %v10383_v53 }
 0x496   : > { %v2575_v44 = vadd.f32 -0.28449672, %v2447_v18  ;;  %v3091_v50 = vmul.f32 %v1299_v21, %v1299_v21  ;;  %v1429_v61 = vmul.f32 0.3275911, %v1301_v37  ;;  %v11472_v41 = vsub.f32 1.0, %v10352_v63  ;;  %v10388_v21 = vpop.f32.mrb[81].mxu0 }
 0x497   : > { %v2449_v30 = vmul.f32 %v10329_v3, %v2321_v51  ;;  %v1555_v33 = vadd.f32 1.0, %v1427_v42  ;;  %v10381_v35 = vmul.f32 0.5, %v722_v38  ;;  %v3093_v49 = vmul.f32 %v1301_v37, %v1301_v37  ;;  %11474 = vst [vmem:[#allocation90_spill] sm:$0xff] %v10388_v21 }
 0x498   : > { %v10376_v11 = vpop.eup %6099  ;;  %v3980_v59 = vsub.f32 0.0, %v11472_v41  ;;  %v2703_v1 = vmul.f32 %v10315_v56, %v2575_v44  ;;  %v1557_v27 = vadd.f32 1.0, %v1429_v61  ;;  %vm3852_vm2 = vcmp.lt.f32.partialorder %v10118_v25, 0.0  ;;  %v10395_v44 = vpop.f32.mrb[82].mxu0 }
 0x499   : > { %v2577_v40 = vadd.f32 -0.28449672, %v2449_v30  ;;  %v10385_v28 = vpop.eup %6101  ;;  %v1936_v23 = vmul.f32 1.0614054, %v10376_v11  ;;  %6109 = vrcp.f32 %v1555_v33  ;;  %v10391_v18 = vmul.f32 %v6098_v58, %v2958_v57  ;;  %11475 = vst [vmem:[#allocation91_spill] sm:$0xff] %v10395_v44  ;;  %v11477_v33 = vld [vmem:[#allocation24_spill] sm:$0xff] }
 0x49a   : > { %v2831_v51 = vadd.f32 0.2548296, %v2703_v1  ;;  %v1938_v38 = vmul.f32 1.0614054, %v10385_v28  ;;  %v3465_v41 = vmul.f32 1.442695, %v3218_v45  ;;  %v4412_v61 = vpack.c.bf16 %v11477_v33, %v11476_v32 }
 0x49b   : > { %v2705_v42 = vmul.f32 %v10329_v3, %v2577_v40  ;;  %v2064_v30 = vadd.f32 -1.4531521, %v1936_v23  ;;  %v3219_v53 = vsub.f32 0.0, %v3091_v50  ;;  %v10399_v37 = vpop.f32.mrb[83].mxu0  ;;  %6111 = vrcp.f32 %v1557_v27  ;;  %v6104_v57 = vpop.eup %6103  ;;  %v11480_v44 = vld [vmem:[#allocation26_spill] sm:$0xff]  ;;  %v11481_v45 = vld [vmem:[#allocation27_spill] sm:$0xff] }
 0x49c   : > { %11478 = vst [vmem:[#allocation79_spill] sm:$0xff] %v10399_v37  ;;  %v2959_v21 = vmul.f32 %v10315_v56, %v2831_v51  ;;  %v2066_v58 = vadd.f32 -1.4531521, %v1938_v38  ;;  %v3221_v40 = vsub.f32 0.0, %v3093_v49  ;;  %4802 = vmatprep.mubr.bf16.mxu0 %v4412_v61  ;;  %v4414_v23 = vpack.c.bf16 %v11480_v44, %v11479_v6  ;;  %v11482_v51 = vld [vmem:[#allocation59_spill] sm:$0xff] }
 0x49d   : > { %v2833_v36 = vadd.f32 0.2548296, %v2705_v42  ;;  %v2192_v1 = vmul.f32 %v10376_v11, %v2064_v30  ;;  %v10407_v50 = vadd.f32 %v11481_v45, %v6629_v10  ;;  %v10413_v27 = vadd.f32 %v11482_v51, %v6650_v19  ;;  %v11484_v45 = vld [vmem:[#allocation61_spill] sm:$0xff] }
 0x49e   : > { %v3599_v32 = vmul.f32 %v6104_v57, %v2959_v21  ;;  %v2194_v56 = vmul.f32 %v10385_v28, %v2066_v58  ;;  %v6106_v42 = vpop.eup %6105  ;;  %v3726_v49 = vsub.f32 1.0, %v10391_v18  ;;  %vm3854_vm3 = vcmp.lt.f32.partialorder %v10131_v12, 0.0  ;;  %4963 = vmatprep.mubr.bf16.mxu1 %v4414_v23  ;;  %v10446_v55 = vpop.f32.mrb[80].mxu1 }
 0x49f   : > { %v2961_v33 = vmul.f32 %v10329_v3, %v2833_v36  ;;  %11483 = vst [vmem:[#allocation24_spill] sm:$0xff] %v10413_v27  ;;  %v2320_v38 = vadd.f32 1.4214138, %v2192_v1  ;;  %v10418_v6 = vmul.f32 0.5, %v10337_v52  ;;  %v10421_v21 = vmul.f32 0.70710677, %v10407_v50  ;;  %v6108_v30 = vpop.eup %6107 }
 0x4a0   : > { %vm3855_vm4 = vcmp.lt.f32.partialorder %v10185_v5, 0.0  ;;  %v2322_v3 = vadd.f32 1.4214138, %v2194_v56  ;;  %6113 = vpow2.f32 %v3465_v41  ;;  %v3467_v44 = vmul.f32 1.442695, %v3219_v53 }
 0x4a1   : > { %v3601_v36 = vmul.f32 %v6106_v42, %v2961_v33  ;;  %v3727_v61 = vsub.f32 1.0, %v3599_v32  ;;  %vm3857_vm5 = vcmp.lt.f32.partialorder %v10197_v48, 0.0  ;;  %v2448_v18 = vmul.f32 %v10376_v11, %v2320_v38  ;;  %v11485_v33 = vld [vmem:[#allocation60_spill] sm:$0xff]  ;;  %v11489_v48 = vld [vmem:[#allocation39_spill] sm:$0xff] }
 0x4a2   : > { %v1300_v58 = vand.u32 2147483647, %v10421_v21  ;;  %v10428_v52 = vmul.f32 0.70710677, %v10413_v27  ;;  %v2450_v1 = vmul.f32 %v10385_v28, %v2322_v3  ;;  %v3471_v23 = vmul.f32 1.442695, %v3221_v40 }
 0x4a3   : > { %v3729_v57 = vsub.f32 1.0, %v3601_v36  ;;  %v4411_v56 = vpack.c.bf16 %v11485_v33, %v11484_v45  ;;  %v10433_v41 = vpop.eup %6109  ;;  %v11486_v53 = vsub.f32 1.0, %v10352_v63  ;;  %v2576_v51 = vadd.f32 -0.28449672, %v2448_v18 }
 0x4a4   : > { %v1428_v42 = vmul.f32 0.3275911, %v1300_v58  ;;  %v1302_v38 = vand.u32 2147483647, %v10428_v52  ;;  %v3982_v27 = vsub.f32 0.0, %v3726_v49  ;;  %6115 = vpow2.f32 %v3467_v44 }
 0x4a5   : > { %v4108_v32 = vsel %vm3852_vm2, %v3980_v59, %v11486_v53  ;;  %v2578_v37 = vadd.f32 -0.28449672, %v2450_v1  ;;  %v1939_v36 = vmul.f32 1.0614054, %v10433_v41  ;;  %4803 = vmatmul.mubr.bf16.gmra.mrb[96].mxu0 %v4411_v56  ;;  %v3983_v40 = vsub.f32 0.0, %v3727_v61  ;;  %v10442_v15 = vpop.eup %6111 }
 0x4a6   : > { %v2704_v3 = vmul.f32 %v10376_v11, %v2576_v51  ;;  %v1556_v45 = vadd.f32 1.0, %v1428_v42  ;;  %v3092_v33 = vmul.f32 %v1300_v58, %v1300_v58  ;;  %v3985_v63 = vsub.f32 0.0, %v3729_v57  ;;  %v10451_v51 = vpop.f32.mrb[81].mxu1 }
 0x4a7   : > { %v2706_v25 = vmul.f32 %v10385_v28, %v2578_v37  ;;  %v2067_v59 = vadd.f32 -1.4531521, %v1939_v36  ;;  %v1430_v18 = vmul.f32 0.3275911, %v1302_v38  ;;  %v4236_v53 = vadd.f32 1.0, %v4108_v32  ;;  %11487 = vst [vmem:[#allocation13_spill] sm:$0xff] %v10451_v51 }
 0x4a8   : > { %v2832_v17 = vadd.f32 0.2548296, %v2704_v3  ;;  %v1941_v1 = vmul.f32 1.0614054, %v10442_v15  ;;  %6117 = vpow2.f32 %v3471_v23  ;;  %v4110_v44 = vsel %vm3854_vm3, %v3982_v27, %v3726_v49  ;;  %v10456_v3 = vpop.f32.mrb[82].mxu1 }
 0x4a9   : > { %v2834_v56 = vadd.f32 0.2548296, %v2706_v25  ;;  %v2195_v58 = vmul.f32 %v10433_v41, %v2067_v59  ;;  %6119 = vrcp.f32 %v1556_v45  ;;  %v4111_v37 = vsel %vm3855_vm4, %v3983_v40, %v3727_v61  ;;  %v10461_v45 = vpop.f32.mrb[83].mxu1  ;;  %v11488_v40 = vld [vmem:[#allocation52_spill] sm:$0xff] }
 0x4aa   : > { %v2960_v32 = vmul.f32 %v10376_v11, %v2832_v17  ;;  %v2069_v42 = vadd.f32 -1.4531521, %v1941_v1  ;;  %v1558_v36 = vadd.f32 1.0, %v1430_v18  ;;  %v6114_v23 = vpop.eup %6113  ;;  %v4113_v12 = vsel %vm3857_vm5, %v3985_v63, %v3729_v57  ;;  %v11490_v18 = vld [vmem:[#allocation77_spill] sm:$0xff] }
 0x4ab   : > { %v2962_v27 = vmul.f32 %v10385_v28, %v2834_v56  ;;  %v2323_v49 = vadd.f32 1.4214138, %v2195_v58  ;;  %v3220_v25 = vsub.f32 0.0, %v3092_v33  ;;  %v4238_v59 = vadd.f32 1.0, %v4110_v44 }
 0x4ac   : > { %v3600_v51 = vmul.f32 %v6108_v30, %v2960_v32  ;;  %v2197_v5 = vmul.f32 %v10442_v15, %v2069_v42  ;;  %6121 = vrcp.f32 %v1558_v36  ;;  %v4239_v17 = vadd.f32 1.0, %v4111_v37  ;;  %v11491_v37 = vld [vmem:[#allocation75_spill] sm:$0xff] }
 0x4ad   : > { %vm3856_vm6 = vcmp.lt.f32.partialorder %v10282_v60, 0.0  ;;  %v3602_v11 = vmul.f32 %v6114_v23, %v2962_v27  ;;  %v2451_v61 = vmul.f32 %v10433_v41, %v2323_v49  ;;  %v4413_v57 = vpack.c.bf16 %v11489_v48, %v11488_v40 }
 0x4ae   : > { %v4241_v63 = vadd.f32 1.0, %v4113_v12  ;;  %v3728_v28 = vsub.f32 1.0, %v3600_v51  ;;  %vm3858_vm7 = vcmp.lt.f32.partialorder %v10291_v29, 0.0  ;;  %v2325_v33 = vadd.f32 1.4214138, %v2197_v5  ;;  %v6116_v1 = vpop.eup %6115 }
 0x4af   : > { %v726_v30 = vadd.f32 %v11490_v18, %v6599_v46  ;;  %v3730_v44 = vsub.f32 1.0, %v3602_v11  ;;  %v2579_v56 = vadd.f32 -0.28449672, %v2451_v61  ;;  %v3469_v58 = vmul.f32 1.442695, %v3220_v25  ;;  %4964 = vmatmul.mubr.bf16.gmra.mrb[96].mxu1 %v4413_v57 }
 0x4b0   : > { %v10473_v32 = vadd.f32 %v11491_v37, %v6601_v47  ;;  %v10476_v42 = vmul.f32 %v4236_v53, %v10180_v2  ;;  %v2453_v51 = vmul.f32 %v10442_v15, %v2325_v33  ;;  %v3094_v36 = vmul.f32 %v1302_v38, %v1302_v38 }
 0x4b1   : > { %v10479_v23 = vmul.f32 0.70710677, %v726_v30  ;;  %v10482_v12 = vmul.f32 %v4238_v59, %v10209_v14  ;;  %v10485_v46 = vmul.f32 %v4239_v17, %v10269_v16  ;;  %v2707_v27 = vmul.f32 %v10433_v41, %v2579_v56 }
 0x4b2   : > { %v10489_v49 = vmul.f32 0.5, %v10407_v50  ;;  %v6118_v47 = vpop.eup %6117  ;;  %v10492_v2 = vmul.f32 %v4241_v63, %v10276_v31  ;;  %v3984_v53 = vsub.f32 0.0, %v3728_v28  ;;  %v2581_v25 = vadd.f32 -0.28449672, %v2453_v51 }
 0x4b3   : > { %11492 = vst [vmem:[#allocation26_spill] sm:$0xff] %v10482_v12  ;;  %11493 = vst [vmem:[#allocation27_spill] sm:$0xff] %v10485_v46  ;;  %v1303_v38 = vand.u32 2147483647, %v10479_v23  ;;  %v10495_v5 = vpop.eup %6119  ;;  %v3986_v14 = vsub.f32 0.0, %v3730_v44  ;;  %6123 = vpow2.f32 %v3469_v58  ;;  %v3222_v11 = vsub.f32 0.0, %v3094_v36 }
 0x4b4   : > { %11494 = vst [vmem:[#allocation59_spill] sm:$0xff] %v10489_v49  ;;  %11495 = vst [vmem:[#allocation61_spill] sm:$0xff] %v10492_v2  ;;  %v2835_v59 = vadd.f32 0.2548296, %v2707_v27  ;;  %v10498_v16 = vmul.f32 0.70710677, %v10473_v32  ;;  %v2709_v17 = vmul.f32 %v10442_v15, %v2581_v25  ;;  %v10506_v57 = vadd.f32 %v9913_v4, %v6629_v10 }
 0x4b5   : > { %v1940_v50 = vmul.f32 1.0614054, %v10495_v5  ;;  %v1431_v61 = vmul.f32 0.3275911, %v1303_v38  ;;  %v3095_v40 = vmul.f32 %v1303_v38, %v1303_v38  ;;  %v4112_v33 = vsel %vm3856_vm6, %v3984_v53, %v3728_v28  ;;  %v11542_v49 = vld [vmem:[#allocation72_spill] sm:$0xff] }
 0x4b6   : > { %v2963_v31 = vmul.f32 %v10433_v41, %v2835_v59  ;;  %v1305_v48 = vand.u32 2147483647, %v10498_v16  ;;  %v10508_v63 = vpop.eup %6121  ;;  %vm3859_vm8 = vcmp.lt.f32.partialorder %v10355_v54, 0.0  ;;  %v2837_v18 = vadd.f32 0.2548296, %v2709_v17 }
 0x4b7   : > { %v2068_v56 = vadd.f32 -1.4531521, %v1940_v50  ;;  %v1559_v58 = vadd.f32 1.0, %v1431_v61  ;;  %v4114_v41 = vsel %vm3858_vm7, %v3986_v14, %v3730_v44  ;;  %v1942_v51 = vmul.f32 1.0614054, %v10508_v63 }
 0x4b8   : > { %v3603_v37 = vmul.f32 %v6116_v1, %v2963_v31  ;;  %v1433_v36 = vmul.f32 0.3275911, %v1305_v48  ;;  %v2965_v10 = vmul.f32 %v10442_v15, %v2837_v18  ;;  %v3223_v27 = vsub.f32 0.0, %v3095_v40 }
 0x4b9   : > { %v2196_v4 = vmul.f32 %v10495_v5, %v2068_v56  ;;  %6125 = vrcp.f32 %v1559_v58  ;;  %v2070_v28 = vadd.f32 -1.4531521, %v1942_v51  ;;  %v3097_v25 = vmul.f32 %v1305_v48, %v1305_v48 }
 0x4ba   : > { %v3731_v60 = vsub.f32 1.0, %v3603_v37  ;;  %v1561_v53 = vadd.f32 1.0, %v1433_v36  ;;  %v4240_v38 = vadd.f32 1.0, %v4112_v33  ;;  %v3605_v59 = vmul.f32 %v6118_v47, %v2965_v10  ;;  %v11496_v33 = vld [vmem:[#allocation66_spill] sm:$0xff] }
 0x4bb   : > { %vm3861_vm9 = vcmp.lt.f32.partialorder %v10359_v39, 0.0  ;;  %v2324_v29 = vadd.f32 1.4214138, %v2196_v4  ;;  %v3473_v44 = vmul.f32 1.442695, %v3222_v11  ;;  %v4242_v1 = vadd.f32 1.0, %v4114_v41 }
 0x4bc   : > { %v3987_v14 = vsub.f32 0.0, %v3731_v60  ;;  %v2198_v17 = vmul.f32 %v10508_v63, %v2070_v28  ;;  %v10520_v50 = vmul.f32 0.5, %v726_v30  ;;  %v3733_v15 = vsub.f32 1.0, %v3605_v59  ;;  %v11500_v59 = vld [vmem:[#allocation30_spill] sm:$0xff] }
 0x4bd   : > { %v2452_v61 = vmul.f32 %v10495_v5, %v2324_v29  ;;  %v3475_v31 = vmul.f32 1.442695, %v3223_v27  ;;  %6127 = vrcp.f32 %v1561_v53  ;;  %v6124_v40 = vpop.eup %6123  ;;  %v3225_v48 = vsub.f32 0.0, %v3097_v25 }
 0x4be   : > { %v2326_v18 = vadd.f32 1.4214138, %v2198_v17  ;;  %v10524_v47 = vmul.f32 0.70710677, %v10506_v57  ;;  %v10528_v11 = vadd.f32 %v11496_v33, %v6650_v19  ;;  %v10531_v56 = vmul.f32 %v4240_v38, %v10300_v8  ;;  %v11499_v38 = vld [vmem:[#allocation25_spill] sm:$0xff] }
 0x4bf   : > { %v2580_v30 = vadd.f32 -0.28449672, %v2452_v61  ;;  %6129 = vpow2.f32 %v3473_v44  ;;  %v10534_v58 = vmul.f32 0.5, %v10473_v32  ;;  %v4115_v41 = vsel %vm3859_vm8, %v3987_v14, %v3731_v60 }
 0x4c0   : > { %11497 = vst [vmem:[#allocation60_spill] sm:$0xff] %v10528_v11  ;;  %v3989_v37 = vsub.f32 0.0, %v3733_v15  ;;  %v2454_v51 = vmul.f32 %v10508_v63, %v2326_v18  ;;  %v1304_v36 = vand.u32 2147483647, %v10524_v47  ;;  %v10541_v10 = vmul.f32 %v4242_v1, %v10362_v22 }
 0x4c1   : > { %v2708_v19 = vmul.f32 %v10495_v5, %v2580_v30  ;;  %6131 = vpow2.f32 %v3475_v31  ;;  %v10545_v8 = vmul.f32 0.70710677, %v10528_v11  ;;  %v3479_v32 = vmul.f32 1.442695, %v3225_v48  ;;  %v11501_v30 = vld [vmem:[#allocation51_spill] sm:$0xff] }
 0x4c2   : > { %11498 = vst [vmem:[#allocation52_spill] sm:$0xff] %v10541_v10  ;;  %v2582_v4 = vadd.f32 -0.28449672, %v2454_v51  ;;  %v1432_v27 = vmul.f32 0.3275911, %v1304_v36  ;;  %v3096_v28 = vmul.f32 %v1304_v36, %v1304_v36  ;;  %v4243_v60 = vadd.f32 1.0, %v4115_v41 }
 0x4c3   : > { %v10547_v54 = vpop.eup %6125  ;;  %v2836_v53 = vadd.f32 0.2548296, %v2708_v19  ;;  %v1306_v25 = vand.u32 2147483647, %v10545_v8  ;;  %v4416_v22 = vpack.c.bf16 %v11500_v59, %v11499_v38  ;;  %v4117_v29 = vsel %vm3861_vm9, %v3989_v37, %v3733_v15  ;;  %v11502_v41 = vld [vmem:[#allocation57_spill] sm:$0xff]  ;;  %v11537_v10 = vld [vmem:[#allocation19_spill] sm:$0xff] }
 0x4c4   : > { %v2710_v44 = vmul.f32 %v10508_v63, %v2582_v4  ;;  %v1943_v1 = vmul.f32 1.0614054, %v10547_v54  ;;  %v1560_v14 = vadd.f32 1.0, %v1432_v27  ;;  %vm3860_vm10 = vcmp.lt.f32.partialorder %v10421_v21, 0.0  ;;  %v11503_v27 = vld [vmem:[#allocation48_spill] sm:$0xff] }
 0x4c5   : > { %v2964_v17 = vmul.f32 %v10495_v5, %v2836_v53  ;;  %v3224_v61 = vsub.f32 0.0, %v3096_v28  ;;  %v1434_v31 = vmul.f32 0.3275911, %v1306_v25  ;;  %v3098_v18 = vmul.f32 %v1306_v25, %v1306_v25  ;;  %4810 = vmatprep.mubr.bf16.mxu0 %v4416_v22  ;;  %v11504_v28 = vld [vmem:[#allocation65_spill] sm:$0xff] }
 0x4c6   : > { %v2838_v48 = vadd.f32 0.2548296, %v2710_v44  ;;  %v2071_v33 = vadd.f32 -1.4531521, %v1943_v1  ;;  %6133 = vrcp.f32 %v1560_v14  ;;  %v4418_v39 = vpack.c.bf16 %v11502_v41, %v11501_v30  ;;  %v11505_v44 = vld [vmem:[#allocation16_spill] sm:$0xff]  ;;  %v11506_v1 = vld [vmem:[#allocation46_spill] sm:$0xff] }
 0x4c7   : > { %v10560_v15 = vpop.eup %6127  ;;  %v3604_v37 = vmul.f32 %v6124_v40, %v2964_v17  ;;  %6135 = vpow2.f32 %v3479_v32  ;;  %v1562_v51 = vadd.f32 1.0, %v1434_v31  ;;  %v3226_v36 = vsub.f32 0.0, %v3098_v18  ;;  %v11510_v41 = vld [vmem:[#allocation74_spill] sm:$0xff] }
 0x4c8   : > { %v2966_v5 = vmul.f32 %v10508_v63, %v2838_v48  ;;  %v2199_v19 = vmul.f32 %v10547_v54, %v2071_v33  ;;  %v1945_v4 = vmul.f32 1.0614054, %v10560_v15  ;;  %4971 = vmatprep.mubr.bf16.mxu1 %v4418_v39  ;;  %v4415_v53 = vpack.c.bf16 %v11504_v28, %v11503_v27  ;;  %v11507_v48 = vld [vmem:[#allocation21_spill] sm:$0xff]  ;;  %v11508_v33 = vld [vmem:[#allocation44_spill] sm:$0xff]  ;;  %v11514_v28 = vld [vmem:[#allocation54_spill] sm:$0xff] }
 0x4c9   : > { %v6130_v25 = vpop.eup %6129  ;;  %v4245_v38 = vadd.f32 1.0, %v4117_v29  ;;  %v3732_v59 = vsub.f32 1.0, %v3604_v37  ;;  %v3477_v22 = vmul.f32 1.442695, %v3224_v61  ;;  %v4417_v40 = vpack.c.bf16 %v11506_v1, %v11505_v44  ;;  %v11509_v29 = vld [vmem:[#allocation15_spill] sm:$0xff]  ;;  %v11511_v27 = vld [vmem:[#allocation80_spill] sm:$0xff] }
 0x4ca   : > { %v3606_v32 = vmul.f32 %v6130_v25, %v2966_v5  ;;  %vm3862_vm11 = vcmp.lt.f32.partialorder %v10428_v52, 0.0  ;;  %v2327_v14 = vadd.f32 1.4214138, %v2199_v19  ;;  %v2073_v63 = vadd.f32 -1.4531521, %v1945_v4  ;;  %4811 = vmatmul.mubr.bf16.gmra.mrb[100].mxu0 %v4415_v53  ;;  %v11512_v19 = vld [vmem:[#allocation71_spill] sm:$0xff] }
 0x4cb   : > { %6137 = vrcp.f32 %v1562_v51  ;;  %v6132_v17 = vpop.eup %6131  ;;  %v3988_v31 = vsub.f32 0.0, %v3732_v59  ;;  %v3481_v18 = vmul.f32 1.442695, %v3226_v36  ;;  %4972 = vmatmul.mubr.bf16.gmra.mrb[100].mxu1 %v4417_v40  ;;  %v4420_v30 = vpack.c.bf16 %v11508_v33, %v11507_v48  ;;  %v11513_v36 = vld [vmem:[#allocation55_spill] sm:$0xff]  ;;  %v11515_v25 = vld [vmem:[#allocation62_spill] sm:$0xff]  ;;  %v11516_v44 = vld [vmem:[#allocation28_spill] sm:$0xff] }
 0x4cc   : > { %v4422_v61 = vpack.c.bf16 %v11510_v41, %v11509_v29  ;;  %v3734_v39 = vsub.f32 1.0, %v3606_v32  ;;  %v2455_v37 = vmul.f32 %v10547_v54, %v2327_v14  ;;  %v2201_v5 = vmul.f32 %v10560_v15, %v2073_v63  ;;  %v11517_v48 = vld [vmem:[#allocation78_spill] sm:$0xff]  ;;  %v11522_v41 = vld [vmem:[#allocation63_spill] sm:$0xff] }
 0x4cd   : > { %v4419_v4 = vpack.c.bf16 %v11512_v19, %v11511_v27  ;;  %v10579_v51 = vmul.f32 %v4243_v60, %v10381_v35  ;;  %6139 = vpow2.f32 %v3477_v22  ;;  %4818 = vmatprep.mubr.bf16.mxu0 %v4420_v30  ;;  %v4421_v53 = vpack.c.bf16 %v11514_v28, %v11513_v36  ;;  %v11518_v33 = vld [vmem:[#allocation58_spill] sm:$0xff]  ;;  %v11519_v35 = vld [vmem:[#allocation49_spill] sm:$0xff]  ;;  %v11520_v60 = vld [vmem:[#allocation67_spill] sm:$0xff] }
 0x4ce   : > { %4979 = vmatprep.mubr.bf16.mxu1 %v4422_v61  ;;  %v4424_v1 = vpack.c.bf16 %v11516_v44, %v11515_v25  ;;  %v4116_v40 = vsel %vm3860_vm10, %v3988_v31, %v3732_v59  ;;  %v3990_v32 = vsub.f32 0.0, %v3734_v39  ;;  %v2583_v14 = vadd.f32 -0.28449672, %v2455_v37  ;;  %v11521_v30 = vld [vmem:[#allocation47_spill] sm:$0xff]  ;;  %v10602_v37 = vpop.f32.mrb[84].mxu0  ;;  %v11524_v44 = vld [vmem:[#allocation36_spill] sm:$0xff] }
 0x4cf   : > { %v2329_v63 = vadd.f32 1.4214138, %v2201_v5  ;;  %v4426_v29 = vpack.c.bf16 %v11518_v33, %v11517_v48  ;;  %v4423_v22 = vpack.c.bf16 %v11520_v60, %v11519_v35  ;;  %v10598_v21 = vmul.f32 %v4245_v38, %v10418_v6  ;;  %v10611_v6 = vpop.f32.mrb[85].mxu0  ;;  %v11528_v60 = vld [vmem:[#allocation70_spill] sm:$0xff]  ;;  %v11535_v27 = vld [vmem:[#allocation69_spill] sm:$0xff]  ;;  %v11536_v48 = vld [vmem:[#allocation56_spill] sm:$0xff] }
 0x4d0   : > { %v10595_v19 = vpop.eup %6133  ;;  %v2711_v59 = vmul.f32 %v10547_v54, %v2583_v14  ;;  %6141 = vpow2.f32 %v3481_v18  ;;  %v10604_v36 = vadd.f32 1.0, %v4116_v40  ;;  %v4430_v25 = vpack.c.bf16 %v10068_v43, %v9968_v13  ;;  %v10617_v33 = vpop.f32.mrb[86].mxu0 }
 0x4d1   : > { %v2457_v31 = vmul.f32 %v10560_v15, %v2329_v63  ;;  %v6136_v5 = vpop.eup %6135  ;;  %v1944_v28 = vmul.f32 1.0614054, %v10595_v19  ;;  %v11525_v63 = vld [vmem:[#allocation38_spill] sm:$0xff]  ;;  %v10621_v35 = vsel %vm3862_vm11, %v3990_v32, %v3734_v39  ;;  %vm3863_vm12 = vcmp.lt.f32.partialorder %v10479_v23, 0.0  ;;  %v11529_v39 = vld [vmem:[#allocation40_spill] sm:$0xff]  ;;  %v11530_v32 = vld [vmem:[#allocation43_spill] sm:$0xff] }
 0x4d2   : > { %11523 = vst [vmem:[#allocation39_spill] sm:$0xff] %v10604_v36  ;;  %v2839_v38 = vadd.f32 0.2548296, %v2711_v59  ;;  %4819 = vmatmul.mubr.bf16.gmra.mrb[104].mxu0 %v4419_v4  ;;  %11526 = vst [vmem:[#allocation77_spill] sm:$0xff] %v10621_v35  ;;  %v11527_v4 = vld [vmem:[#allocation37_spill] sm:$0xff]  ;;  %vm3865_vm13 = vcmp.lt.f32.partialorder %v10498_v16, 0.0  ;;  %v5381_v46 = vadd.f32 %v11536_v48, %v11535_v27 }
 0x4d3   : > { %v2585_v14 = vadd.f32 -0.28449672, %v2457_v31  ;;  %v2072_v13 = vadd.f32 -1.4531521, %v1944_v28  ;;  %4980 = vmatmul.mubr.bf16.gmra.mrb[104].mxu1 %v4421_v53  ;;  %4826 = vmatprep.mubr.bf16.mxu0 %v4424_v1  ;;  %v10628_v31 = vpop.f32.mrb[87].mxu0  ;;  %v11533_v28 = vld [vmem:[#allocation29_spill] sm:$0xff] }
 0x4d4   : > { %v2967_v18 = vmul.f32 %v10547_v54, %v2839_v38  ;;  %4987 = vmatprep.mubr.bf16.mxu1 %v4426_v29  ;;  %v10647_v54 = vld [vmem:[%s10896_s4] ss:$0 sm:$0xff]  ;;  %v11539_v53 = vld [vmem:[#allocation34_spill] sm:$0xff]  ;;  %vm3864_vm14 = vcmp.lt.f32.partialorder %v10524_v47, 0.0  ;;  %vm3866_vm15 = vcmp.lt.f32.partialorder %v10545_v8, 0.0 }
 0x4d5   : > { %v10630_v40 = vpop.eup %6137  ;;  %v2713_v52 = vmul.f32 %v10560_v15, %v2585_v14  ;;  %v2200_v1 = vmul.f32 %v10595_v19, %v2072_v13  ;;  %v11534_v13 = vld [vmem:[#allocation50_spill] sm:$0xff]  ;;  %v11538_v35 = vld [vmem:[#allocation12_spill] sm:$0xff]  ;;  %v11540_v14 = vld [vmem:[#allocation17_spill] sm:$0xff] }
 0x4d6   : > { %v1946_v43 = vmul.f32 1.0614054, %v10630_v40  ;;  %v3607_v29 = vmul.f32 %v6132_v17, %v2967_v18  ;;  %v5269_v61 = vadd.f32 %v11534_v13, %v11533_v28  ;;  %v5272_v36 = vadd.f32 %v11538_v35, %v11537_v10  ;;  %v11582_v8 = vld [vmem:[#allocation52_spill] sm:$0xff] }
 0x4d7   : > { %v2841_v38 = vadd.f32 0.2548296, %v2713_v52  ;;  %v10653_v11 = vpop.eup %6139  ;;  %v2328_v59 = vadd.f32 1.4214138, %v2200_v1  ;;  %v5384_v28 = vadd.f32 %v11540_v14, %v11539_v53  ;;  %v11541_v1 = vld [vmem:[#allocation22_spill] sm:$0xff] }
 0x4d8   : > { %v2074_v12 = vadd.f32 -1.4531521, %v1946_v43  ;;  %v3735_v17 = vsub.f32 1.0, %v3607_v29  ;;  %v4741_v52 = vadd.f32 %v5269_v61, %v10647_v54  ;;  %v4744_v43 = vadd.f32 %v5272_v36, %v10647_v54  ;;  %v11543_v61 = vld [vmem:[#allocation35_spill] sm:$0xff]  ;;  %v11544_v29 = vld [vmem:[#allocation18_spill] sm:$0xff] }
 0x4d9   : > { %v2969_v18 = vmul.f32 %v10560_v15, %v2841_v38  ;;  %v2456_v13 = vmul.f32 %v10595_v19, %v2328_v59  ;;  %v5275_v27 = vadd.f32 %v11542_v49, %v11541_v1  ;;  %v5387_v38 = vadd.f32 %v11544_v29, %v11543_v61 }
 0x4da   : > { %v2202_v2 = vmul.f32 %v10630_v40, %v2074_v12  ;;  %v10669_v48 = vpop.eup %6141  ;;  %v3991_v10 = vsub.f32 0.0, %v3735_v17  ;;  %4827 = vmatmul.mubr.bf16.gmra.mrb[108].mxu0 %v4423_v22  ;;  %v4902_v15 = vadd.f32 %v5381_v46, %v4741_v52  ;;  %v11545_v12 = vpack.c.bf16 %v11522_v41, %v11521_v30  ;;  %v11548_v30 = vld [vmem:[#allocation64_spill] sm:$0xff] }
 0x4db   : > { %v3609_v35 = vmul.f32 %v6136_v5, %v2969_v18  ;;  %v2584_v53 = vadd.f32 -0.28449672, %v2456_v13  ;;  %v11546_v36 = vpack.c.bf16 %v10040_v20, %v9960_v26  ;;  %v4905_v49 = vadd.f32 %v5384_v28, %v4744_v43  ;;  %v11549_v26 = vld [vmem:[#allocation53_spill] sm:$0xff]  ;;  %v11550_v20 = vld [vmem:[#allocation14_spill] sm:$0xff]  ;;  %v11551_v13 = vld [vmem:[#allocation31_spill] sm:$0xff] }
 0x4dc   : > { %v2330_v14 = vadd.f32 1.4214138, %v2202_v2  ;;  %4988 = vmatmul.mubr.bf16.gmra.mrb[108].mxu1 %v11545_v12  ;;  %v4749_v59 = vadd.f32 %v5275_v27, %v10647_v54  ;;  %v4119_v22 = vsel %vm3863_vm12, %v3991_v10, %v3735_v17  ;;  %5028 = vst [vmem:[%s10684_s12] sm:$0xff] %v4902_v15  ;;  %v11547_v2 = vld [vmem:[#allocation33_spill] sm:$0xff]  ;;  %v5390_v5 = vadd.f32 %v11550_v20, %v11549_v26  ;;  %v11552_v43 = vld [vmem:[#allocation23_spill] sm:$0xff]  ;;  %v11553_v27 = vld [vmem:[#allocation76_spill] sm:$0xff]  ;;  %v5409_v15 = vpop.f32.mrb[84].mxu1 }
 0x4dd   : > { %4834 = vmatprep.mubr.bf16.mxu0 %v11546_v36  ;;  %v3737_v46 = vsub.f32 1.0, %v3609_v35  ;;  %4995 = vmatprep.mubr.bf16.mxu1 %v4430_v25  ;;  %v5278_v41 = vadd.f32 %v11548_v30, %v11547_v2  ;;  %v4247_v18 = vadd.f32 1.0, %v4119_v22  ;;  %v2712_v52 = vmul.f32 %v10595_v19, %v2584_v53  ;;  %5029 = vst [vmem:[%s10684_s12 + $0x8] sm:$0xff] %v4905_v49  ;;  %v11554_v10 = vld [vmem:[#allocation73_spill] sm:$0xff]  ;;  %v11555_v53 = vld [vmem:[#allocation20_spill] sm:$0xff]  ;;  %v5410_v36 = vpop.f32.mrb[85].mxu1 }
 0x4de   : > { %v2458_v23 = vmul.f32 %v10630_v40, %v2330_v14  ;;  %v4910_v25 = vadd.f32 %v5387_v38, %v4749_v59  ;;  %v5281_v1 = vadd.f32 %v11552_v43, %v11551_v13  ;;  %v5393_v35 = vadd.f32 %v11554_v10, %v11553_v27  ;;  %v11556_v14 = vld [vmem:[#allocation41_spill] sm:$0xff]  ;;  %v11558_v30 = vld [vmem:[#allocation42_spill] sm:$0xff] }
 0x4df   : > { %v3993_v17 = vsub.f32 0.0, %v3737_v46  ;;  %v4752_v28 = vadd.f32 %v5278_v41, %v10647_v54  ;;  %v10700_v61 = vmul.f32 %v4247_v18, %v10520_v50  ;;  %v2840_v29 = vadd.f32 0.2548296, %v2712_v52  ;;  %v11557_v2 = vld [vmem:[#allocation45_spill] sm:$0xff]  ;;  %v5412_v41 = vpop.f32.mrb[86].mxu1 }
 0x4e0   : > { %v2586_v12 = vadd.f32 -0.28449672, %v2458_v23  ;;  %5030 = vst [vmem:[%s10684_s12 + $0x10] sm:$0xff] %v4910_v25  ;;  %v5284_v38 = vadd.f32 %v11556_v14, %v11555_v53  ;;  %v4757_v22 = vadd.f32 %v5281_v1, %v10647_v54  ;;  %v5396_v50 = vadd.f32 %v11558_v30, %v11557_v2  ;;  %v5413_v16 = vpop.f32.mrb[87].mxu1  ;;  %v11560_v25 = vld [vmem:[#allocation68_spill] sm:$0xff]  ;;  %v11562_v13 = vld [vmem:[#allocation81_spill] sm:$0xff] }
 0x4e1   : > { %v4121_v49 = vsel %vm3865_vm13, %v3993_v17, %v3737_v46  ;;  %v4913_v59 = vadd.f32 %v5390_v5, %v4752_v28  ;;  %v2968_v20 = vmul.f32 %v10595_v19, %v2840_v29  ;;  %v4439_v52 = vpack.c.bf16 %v10700_v61, %v10579_v51  ;;  %v11561_v17 = vld [vmem:[#allocation82_spill] sm:$0xff]  ;;  %v11563_v19 = vld [vmem:[#allocation83_spill] sm:$0xff]  ;;  %v11567_v29 = vld [vmem:[#allocation85_spill] sm:$0xff] }
 0x4e2   : > { %v4249_v26 = vadd.f32 1.0, %v4121_v49  ;;  %v2714_v18 = vmul.f32 %v10630_v40, %v2586_v12  ;;  %v11559_v46 = vpack.c.bf16 %v9995_v34, %v11524_v44  ;;  %v4918_v5 = vadd.f32 %v5393_v35, %v4757_v22  ;;  %v11566_v35 = vld [vmem:[#allocation32_spill] sm:$0xff]  ;;  %v11572_v49 = vld [vmem:[#allocation90_spill] sm:$0xff]  ;;  %v11573_v30 = vld [vmem:[#allocation13_spill] sm:$0xff] }
 0x4e3   : > { %5031 = vst [vmem:[%s10684_s12 + $0x18] sm:$0xff] %v4913_v59  ;;  %v4760_v23 = vadd.f32 %v5284_v38, %v10647_v54  ;;  %v5287_v28 = vadd.f32 %v11561_v17, %v11560_v25  ;;  %v5399_v43 = vadd.f32 %v11563_v19, %v11562_v13  ;;  %v3608_v27 = vmul.f32 %v10653_v11, %v2968_v20  ;;  %v11569_v14 = vld [vmem:[#allocation84_spill] sm:$0xff]  ;;  %v11570_v38 = vld [vmem:[#allocation86_spill] sm:$0xff]  ;;  %v11575_v20 = vld [vmem:[#allocation79_spill] sm:$0xff] }
 0x4e4   : > { %4835 = vmatmul.mubr.bf16.gmra.mrb[112].mxu0 %v11559_v46  ;;  %v10725_v1 = vmul.f32 %v4249_v26, %v10534_v58  ;;  %v2842_v10 = vadd.f32 0.2548296, %v2714_v18  ;;  %v11564_v34 = vpack.c.bf16 %v10026_v24, %v11525_v63  ;;  %v11565_v44 = vpack.c.bf16 %v10309_v0, %v10150_v7  ;;  %5032 = vst [vmem:[%s10684_s12 + $0x20] sm:$0xff] %v4918_v5  ;;  %v11571_v63 = vld [vmem:[#allocation89_spill] sm:$0xff]  ;;  %v11574_v26 = vld [vmem:[#allocation91_spill] sm:$0xff] }
 0x4e5   : > { %v5290_v12 = vadd.f32 %v11567_v29, %v11566_v35  ;;  %v11568_v53 = vpack.c.bf16 %v10346_v62, %v10171_v9  ;;  %v4921_v58 = vadd.f32 %v5396_v50, %v4760_v23  ;;  %v4765_v11 = vadd.f32 %v5287_v28, %v10647_v54 }
 0x4e6   : > { %4996 = vmatmul.mubr.bf16.gmra.mrb[112].mxu1 %v11564_v34  ;;  %4842 = vmatprep.mubr.bf16.mxu0 %v11565_v44  ;;  %v5402_v24 = vadd.f32 %v11570_v38, %v11569_v14  ;;  %v5293_v59 = vadd.f32 %v11572_v49, %v11571_v63  ;;  %v3736_v7 = vsub.f32 1.0, %v3608_v27  ;;  %v2970_v0 = vmul.f32 %v10630_v40, %v2842_v10  ;;  %v11585_v34 = vld [vmem:[#allocation24_spill] sm:$0xff] }
 0x4e7   : > { %5003 = vmatprep.mubr.bf16.mxu1 %v11568_v53  ;;  %v4441_v22 = vpack.c.bf16 %v10725_v1, %v10598_v21  ;;  %v4768_v9 = vadd.f32 %v5290_v12, %v10647_v54  ;;  %5033 = vst [vmem:[%s10684_s12 + $0x28] sm:$0xff] %v4921_v58  ;;  %v4926_v62 = vadd.f32 %v5399_v43, %v4765_v11  ;;  %v11583_v1 = vld [vmem:[#allocation26_spill] sm:$0xff]  ;;  %v11587_v58 = vld [vmem:[#allocation27_spill] sm:$0xff]  ;;  %v11591_v63 = vld [vmem:[#allocation88_spill] sm:$0xff] }
 0x4e8   : > { %v4773_v2 = vadd.f32 %v5293_v59, %v10647_v54  ;;  %v5405_v50 = vadd.f32 %v11573_v30, %v10446_v55  ;;  %v5296_v18 = vadd.f32 %v11575_v20, %v11574_v26  ;;  %v3992_v46 = vsub.f32 0.0, %v3736_v7  ;;  %v11588_v11 = vld [vmem:[#allocation87_spill] sm:$0xff] }
 0x4e9   : > { %v3610_v5 = vmul.f32 %v10669_v48, %v2970_v0  ;;  %v4929_v40 = vadd.f32 %v5402_v24, %v4768_v9  ;;  %v5408_v21 = vadd.f32 %v10461_v45, %v10456_v3  ;;  %5034 = vst [vmem:[%s10684_s12 + $0x30] sm:$0xff] %v4926_v62  ;;  %v5299_v17 = vadd.f32 %v10611_v6, %v10602_v37  ;;  %v11590_v24 = vld [vmem:[#allocation61_spill] sm:$0xff] }
 0x4ea   : > { %v4934_v23 = vadd.f32 %v5405_v50, %v4773_v2  ;;  %v4776_v25 = vadd.f32 %v5296_v18, %v10647_v54  ;;  %v5411_v28 = vadd.f32 %v5410_v36, %v5409_v15  ;;  %v4120_v55 = vsel %vm3864_vm14, %v3992_v46, %v3736_v7  ;;  %v11581_v36 = vld [vmem:[#allocation77_spill] sm:$0xff] }
 0x4eb   : > { %v3738_v13 = vsub.f32 1.0, %v3610_v5  ;;  %5035 = vst [vmem:[%s10684_s12 + $0x38] sm:$0xff] %v4929_v40  ;;  %v5302_v48 = vadd.f32 %v10628_v31, %v10617_v33  ;;  %v5414_v19 = vadd.f32 %v5413_v16, %v5412_v41  ;;  %v1048_v3 = vmul.f32 0.5, %v10506_v57 }
 0x4ec   : > { %v4248_v45 = vadd.f32 1.0, %v4120_v55  ;;  %v11576_v43 = vpack.c.bf16 %v11528_v60, %v11527_v4  ;;  %5036 = vst [vmem:[%s10684_s12 + $0x40] sm:$0xff] %v4934_v23  ;;  %v4937_v37 = vadd.f32 %v5408_v21, %v4776_v25  ;;  %v4781_v6 = vadd.f32 %v5299_v17, %v10647_v54  ;;  %v11579_v4 = vld [vmem:[#allocation59_spill] sm:$0xff] }
 0x4ed   : > { %v3994_v47 = vsub.f32 0.0, %v3738_v13  ;;  %v11577_v15 = vpack.c.bf16 %v11530_v32, %v11529_v39  ;;  %v11578_v57 = vpack.c.bf16 %v10531_v56, %v10476_v42  ;;  %v4784_v33 = vadd.f32 %v5302_v48, %v10647_v54  ;;  %v11580_v60 = vld [vmem:[#allocation39_spill] sm:$0xff]  ;;  %v11586_v56 = vld [vmem:[#allocation60_spill] sm:$0xff] }
 0x4ee   : > { %4843 = vmatmul.mubr.bf16.gmra.mrb[116].mxu0 %v11576_v43  ;;  %v4372_v31 = vmul.f32 %v11580_v60, %v11579_v4  ;;  %v4246_v41 = vadd.f32 1.0, %v11581_v36  ;;  %v4376_v16 = vmul.f32 %v4248_v45, %v1048_v3  ;;  %v11584_v27 = vpack.c.bf16 %v11582_v8, %v11583_v1  ;;  %5037 = vst [vmem:[%s10684_s12 + $0x48] sm:$0xff] %v4937_v37 }
 0x4ef   : > { %5004 = vmatmul.mubr.bf16.gmra.mrb[116].mxu1 %v11577_v15  ;;  %4850 = vmatprep.mubr.bf16.mxu0 %v11578_v57  ;;  %v4942_v39 = vadd.f32 %v5411_v28, %v4781_v6  ;;  %v4122_v32 = vsel %vm3866_vm15, %v3994_v47, %v3738_v13  ;;  %v4945_v10 = vadd.f32 %v5414_v19, %v4784_v33  ;;  %v1046_v42 = vmul.f32 0.5, %v11585_v34 }
 0x4f0   : > { %5011 = vmatprep.mubr.bf16.mxu1 %v11584_v27  ;;  %v1050_v44 = vmul.f32 0.5, %v11586_v56  ;;  %v4250_v35 = vadd.f32 1.0, %v4122_v32  ;;  %v4440_v29 = vpack.c.bf16 %v4376_v16, %v4372_v31  ;;  %v11589_v14 = vpack.c.bf16 %v11587_v58, %v11588_v11 }
 0x4f1   : > { %5038 = vst [vmem:[%s10684_s12 + $0x50] sm:$0xff] %v4942_v39  ;;  %5039 = vst [vmem:[%s10684_s12 + $0x58] sm:$0xff] %v4945_v10  ;;  %v4374_v12 = vmul.f32 %v4246_v41, %v1046_v42  ;;  %v11592_v49 = vpack.c.bf16 %v11590_v24, %v11591_v63 }
 0x4f2   : > { %v4378_v53 = vmul.f32 %v4250_v35, %v1050_v44 }
 0x4f4   : > { %v4442_v38 = vpack.c.bf16 %v4378_v53, %v4374_v12 }
 0x4f6   : > { %4851 = vmatmul.mubr.bf16.gmra.mrb[120].mxu0 %v11589_v14 }
 0x4f7   : > { %5012 = vmatmul.mubr.bf16.gmra.mrb[120].mxu1 %v11592_v49  ;;  %4858 = vmatprep.mubr.bf16.mxu0 %v4440_v29 }
 0x4f8   : > { %5019 = vmatprep.mubr.bf16.mxu1 %v4442_v38 }
 0x4fc   : > { %v5303_v59 = vpop.f32.mrb[88].mxu0 }
 0x4fd   : > { %v5304_v7 = vpop.f32.mrb[89].mxu0 }
 0x4fe   : > { %4859 = vmatmul.mubr.bf16.gmra.mrb[124].mxu0 %v4439_v52  ;;  %v5305_v0 = vadd.f32 %v5304_v7, %v5303_v59  ;;  %v5306_v9 = vpop.f32.mrb[90].mxu0 }
 0x4ff   : > { %5020 = vmatmul.mubr.bf16.gmra.mrb[124].mxu1 %v4441_v22  ;;  %v5307_v62 = vpop.f32.mrb[91].mxu0 }
 0x500   : > { %v5308_v2 = vadd.f32 %v5307_v62, %v5306_v9  ;;  %v4789_v50 = vadd.f32 %v5305_v0, %v10647_v54 }
 0x502   : > { %v4792_v46 = vadd.f32 %v5308_v2, %v10647_v54 }
 0x505   : > { %v5415_v30 = vpop.f32.mrb[88].mxu1 }
 0x506   : > { %v5416_v26 = vpop.f32.mrb[89].mxu1 }
 0x507   : > { %v5417_v20 = vadd.f32 %v5416_v26, %v5415_v30  ;;  %v5418_v18 = vpop.f32.mrb[90].mxu1 }
 0x508   : > { %v5419_v5 = vpop.f32.mrb[91].mxu1 }
 0x509   : > { %v4950_v51 = vadd.f32 %v5417_v20, %v4789_v50  ;;  %v5420_v61 = vadd.f32 %v5419_v5, %v5418_v18 }
 0x50b   : > { %5040 = vst [vmem:[%s10684_s12 + $0x60] sm:$0xff] %v4950_v51  ;;  %v4953_v52 = vadd.f32 %v5420_v61, %v4792_v46 }
 0x50d   : > { %5041 = vst [vmem:[%s10684_s12 + $0x68] sm:$0xff] %v4953_v52 }
 0x53e   : > { %v5309_v22 = vpop.f32.mrb[92].mxu0 }
 0x53f   : > { %v5310_v40 = vpop.f32.mrb[93].mxu0 }
 0x540   : > { %v5311_v21 = vadd.f32 %v5310_v40, %v5309_v22  ;;  %v5312_v23 = vpop.f32.mrb[94].mxu0 }
 0x541   : > { %v5313_v25 = vpop.f32.mrb[95].mxu0 }
 0x542   : > { %v5314_v17 = vadd.f32 %v5313_v25, %v5312_v23  ;;  %v4797_v55 = vadd.f32 %v5311_v21, %v10647_v54 }
 0x544   : > { %v4800_v3 = vadd.f32 %v5314_v17, %v10647_v54 }
 0x548   : > { %v5421_v28 = vpop.f32.mrb[92].mxu1 }
 0x549   : > { %v5422_v13 = vpop.f32.mrb[93].mxu1 }
 0x54a   : > { %v5423_v48 = vadd.f32 %v5422_v13, %v5421_v28  ;;  %v5424_v19 = vpop.f32.mrb[94].mxu1 }
 0x54b   : > { %v5425_v45 = vpop.f32.mrb[95].mxu1 }
 0x54c   : > { %v4958_v43 = vadd.f32 %v5423_v48, %v4797_v55  ;;  %v5426_v37 = vadd.f32 %v5425_v45, %v5424_v19 }
 0x54e   : > { %5042 = vst [vmem:[%s10684_s12 + $0x70] sm:$0xff] %v4958_v43  ;;  %v4961_v6 = vadd.f32 %v5426_v37, %v4800_v3 }
 0x550   : > { %5043 = vst [vmem:[%s10684_s12 + $0x78] sm:$0xff] %v4961_v6 }
 0x578   : > { %v5315_v47 = vpop.f32.mrb[96].mxu0 }
 0x579   : > { %v5316_v15 = vpop.f32.mrb[97].mxu0 }
 0x57a   : > { %v5317_v57 = vadd.f32 %v5316_v15, %v5315_v47  ;;  %v5318_v33 = vpop.f32.mrb[98].mxu0 }
 0x57b   : > { %v5319_v4 = vpop.f32.mrb[99].mxu0 }
 0x57c   : > { %v5320_v60 = vadd.f32 %v5319_v4, %v5318_v33  ;;  %v4805_v36 = vadd.f32 %v5317_v57, %v10647_v54 }
 0x57e   : > { %v4808_v1 = vadd.f32 %v5320_v60, %v10647_v54 }
 0x582   : > { %v5427_v31 = vpop.f32.mrb[96].mxu1 }
 0x583   : > { %v5428_v41 = vpop.f32.mrb[97].mxu1 }
 0x584   : > { %v5429_v16 = vadd.f32 %v5428_v41, %v5427_v31  ;;  %v5430_v8 = vpop.f32.mrb[98].mxu1 }
 0x585   : > { %v5431_v27 = vpop.f32.mrb[99].mxu1 }
 0x586   : > { %v4966_v39 = vadd.f32 %v5429_v16, %v4805_v36  ;;  %v5432_v32 = vadd.f32 %v5431_v27, %v5430_v8 }
 0x588   : > { %5044 = vst [vmem:[%s10684_s12 + $0x80] sm:$0xff] %v4966_v39  ;;  %v4969_v10 = vadd.f32 %v5432_v32, %v4808_v1 }
 0x58a   : > { %5045 = vst [vmem:[%s10684_s12 + $0x88] sm:$0xff] %v4969_v10 }
 0x59d   : > { %v5321_v34 = vpop.f32.mrb[100].mxu0 }
 0x59e   : > { %v5433_v42 = vpop.f32.mrb[100].mxu1  ;;  %v5322_v56 = vpop.f32.mrb[101].mxu0 }
 0x59f   : > { %v5323_v44 = vadd.f32 %v5322_v56, %v5321_v34  ;;  %v5434_v35 = vpop.f32.mrb[101].mxu1  ;;  %v5324_v29 = vpop.f32.mrb[102].mxu0 }
 0x5a0   : > { %v5435_v12 = vadd.f32 %v5434_v35, %v5433_v42  ;;  %v5436_v53 = vpop.f32.mrb[102].mxu1  ;;  %v5325_v58 = vpop.f32.mrb[103].mxu0 }
 0x5a1   : > { %v4813_v11 = vadd.f32 %v5323_v44, %v10647_v54  ;;  %v5326_v14 = vadd.f32 %v5325_v58, %v5324_v29  ;;  %v5437_v38 = vpop.f32.mrb[103].mxu1 }
 0x5a2   : > { %v5438_v24 = vadd.f32 %v5437_v38, %v5436_v53 }
 0x5a3   : > { %v4974_v63 = vadd.f32 %v5435_v12, %v4813_v11  ;;  %v4816_v49 = vadd.f32 %v5326_v14, %v10647_v54 }
 0x5a5   : > { %5046 = vst [vmem:[%s10684_s12 + $0x90] sm:$0xff] %v4974_v63  ;;  %v4977_v59 = vadd.f32 %v5438_v24, %v4816_v49  ;;  %v5327_v7 = vpop.f32.mrb[104].mxu0 }
 0x5a6   : > { %v5439_v0 = vpop.f32.mrb[104].mxu1  ;;  %v5328_v9 = vpop.f32.mrb[105].mxu0 }
 0x5a7   : > { %5047 = vst [vmem:[%s10684_s12 + $0x98] sm:$0xff] %v4977_v59  ;;  %v5329_v62 = vadd.f32 %v5328_v9, %v5327_v7  ;;  %v5440_v2 = vpop.f32.mrb[105].mxu1  ;;  %v5330_v30 = vpop.f32.mrb[106].mxu0 }
 0x5a8   : > { %v5441_v50 = vadd.f32 %v5440_v2, %v5439_v0  ;;  %v5442_v26 = vpop.f32.mrb[106].mxu1  ;;  %v5331_v20 = vpop.f32.mrb[107].mxu0 }
 0x5a9   : > { %v4821_v18 = vadd.f32 %v5329_v62, %v10647_v54  ;;  %v5332_v46 = vadd.f32 %v5331_v20, %v5330_v30  ;;  %v5443_v5 = vpop.f32.mrb[107].mxu1 }
 0x5aa   : > { %v5444_v51 = vadd.f32 %v5443_v5, %v5442_v26 }
 0x5ab   : > { %v4982_v61 = vadd.f32 %v5441_v50, %v4821_v18  ;;  %v4824_v52 = vadd.f32 %v5332_v46, %v10647_v54 }
 0x5ad   : > { %5048 = vst [vmem:[%s10684_s12 + $0xa0] sm:$0xff] %v4982_v61  ;;  %v4985_v22 = vadd.f32 %v5444_v51, %v4824_v52  ;;  %v5333_v40 = vpop.f32.mrb[108].mxu0 }
 0x5ae   : > { %v5334_v23 = vpop.f32.mrb[109].mxu0 }
 0x5af   : > { %v5445_v21 = vpop.f32.mrb[108].mxu1  ;;  %5049 = vst [vmem:[%s10684_s12 + $0xa8] sm:$0xff] %v4985_v22  ;;  %v5335_v25 = vadd.f32 %v5334_v23, %v5333_v40  ;;  %v5336_v28 = vpop.f32.mrb[110].mxu0 }
 0x5b0   : > { %v5446_v17 = vpop.f32.mrb[109].mxu1  ;;  %v5337_v48 = vpop.f32.mrb[111].mxu0 }
 0x5b1   : > { %v5447_v55 = vadd.f32 %v5446_v17, %v5445_v21  ;;  %v5448_v13 = vpop.f32.mrb[110].mxu1  ;;  %v4829_v19 = vadd.f32 %v5335_v25, %v10647_v54  ;;  %v5338_v3 = vadd.f32 %v5337_v48, %v5336_v28 }
 0x5b2   : > { %v5449_v45 = vpop.f32.mrb[111].mxu1 }
 0x5b3   : > { %v5450_v43 = vadd.f32 %v5449_v45, %v5448_v13  ;;  %v4990_v37 = vadd.f32 %v5447_v55, %v4829_v19  ;;  %v4832_v6 = vadd.f32 %v5338_v3, %v10647_v54 }
 0x5b5   : > { %5050 = vst [vmem:[%s10684_s12 + $0xb0] sm:$0xff] %v4990_v37  ;;  %v4993_v47 = vadd.f32 %v5450_v43, %v4832_v6 }
 0x5b7   : > { %v5339_v15 = vpop.f32.mrb[112].mxu0  ;;  %5051 = vst [vmem:[%s10684_s12 + $0xb8] sm:$0xff] %v4993_v47 }
 0x5b8   : > { %v5340_v33 = vpop.f32.mrb[113].mxu0 }
 0x5b9   : > { %v5451_v57 = vpop.f32.mrb[112].mxu1  ;;  %v5341_v4 = vadd.f32 %v5340_v33, %v5339_v15  ;;  %v5342_v31 = vpop.f32.mrb[114].mxu0 }
 0x5ba   : > { %v5452_v60 = vpop.f32.mrb[113].mxu1  ;;  %v5343_v16 = vpop.f32.mrb[115].mxu0 }
 0x5bb   : > { %v5453_v36 = vadd.f32 %v5452_v60, %v5451_v57  ;;  %v5454_v41 = vpop.f32.mrb[114].mxu1  ;;  %v4837_v8 = vadd.f32 %v5341_v4, %v10647_v54  ;;  %v5344_v1 = vadd.f32 %v5343_v16, %v5342_v31 }
 0x5bc   : > { %v5455_v27 = vpop.f32.mrb[115].mxu1 }
 0x5bd   : > { %v5456_v39 = vadd.f32 %v5455_v27, %v5454_v41  ;;  %v4998_v32 = vadd.f32 %v5453_v36, %v4837_v8  ;;  %v4840_v10 = vadd.f32 %v5344_v1, %v10647_v54 }
 0x5bf   : > { %5052 = vst [vmem:[%s10684_s12 + $0xc0] sm:$0xff] %v4998_v32  ;;  %v5001_v34 = vadd.f32 %v5456_v39, %v4840_v10 }
 0x5c1   : > { %v5345_v42 = vpop.f32.mrb[116].mxu0  ;;  %5053 = vst [vmem:[%s10684_s12 + $0xc8] sm:$0xff] %v5001_v34 }
 0x5c2   : > { %v5457_v56 = vpop.f32.mrb[116].mxu1  ;;  %v5346_v44 = vpop.f32.mrb[117].mxu0 }
 0x5c3   : > { %v5347_v35 = vadd.f32 %v5346_v44, %v5345_v42  ;;  %v5458_v29 = vpop.f32.mrb[117].mxu1  ;;  %v5348_v12 = vpop.f32.mrb[118].mxu0 }
 0x5c4   : > { %v5459_v53 = vadd.f32 %v5458_v29, %v5457_v56  ;;  %v5460_v58 = vpop.f32.mrb[118].mxu1  ;;  %v5349_v11 = vpop.f32.mrb[119].mxu0 }
 0x5c5   : > { %v4845_v14 = vadd.f32 %v5347_v35, %v10647_v54  ;;  %v5350_v38 = vadd.f32 %v5349_v11, %v5348_v12  ;;  %v5461_v24 = vpop.f32.mrb[119].mxu1 }
 0x5c6   : > { %v5462_v63 = vadd.f32 %v5461_v24, %v5460_v58 }
 0x5c7   : > { %v5006_v49 = vadd.f32 %v5459_v53, %v4845_v14  ;;  %v4848_v59 = vadd.f32 %v5350_v38, %v10647_v54 }
 0x5c9   : > { %5054 = vst [vmem:[%s10684_s12 + $0xd0] sm:$0xff] %v5006_v49  ;;  %v5009_v7 = vadd.f32 %v5462_v63, %v4848_v59  ;;  %v5351_v0 = vpop.f32.mrb[120].mxu0 }
 0x5ca   : > { %v5463_v9 = vpop.f32.mrb[120].mxu1  ;;  %v5352_v62 = vpop.f32.mrb[121].mxu0 }
 0x5cb   : > { %5055 = vst [vmem:[%s10684_s12 + $0xd8] sm:$0xff] %v5009_v7  ;;  %v5353_v2 = vadd.f32 %v5352_v62, %v5351_v0  ;;  %v5464_v30 = vpop.f32.mrb[121].mxu1  ;;  %v5354_v50 = vpop.f32.mrb[122].mxu0 }
 0x5cc   : > { %v5465_v26 = vadd.f32 %v5464_v30, %v5463_v9  ;;  %v5466_v20 = vpop.f32.mrb[122].mxu1  ;;  %v5355_v18 = vpop.f32.mrb[123].mxu0 }
 0x5cd   : > { %v4853_v46 = vadd.f32 %v5353_v2, %v10647_v54  ;;  %v5356_v5 = vadd.f32 %v5355_v18, %v5354_v50  ;;  %v5467_v51 = vpop.f32.mrb[123].mxu1 }
 0x5ce   : > { %v5468_v61 = vadd.f32 %v5467_v51, %v5466_v20 }
 0x5cf   : > { %v5014_v52 = vadd.f32 %v5465_v26, %v4853_v46  ;;  %v4856_v22 = vadd.f32 %v5356_v5, %v10647_v54 }
 0x5d1   : > { %5056 = vst [vmem:[%s10684_s12 + $0xe0] sm:$0xff] %v5014_v52  ;;  %v5017_v40 = vadd.f32 %v5468_v61, %v4856_v22  ;;  %v5357_v21 = vpop.f32.mrb[124].mxu0 }
 0x5d2   : > { %v5469_v23 = vpop.f32.mrb[124].mxu1  ;;  %v5358_v25 = vpop.f32.mrb[125].mxu0 }
 0x5d3   : > { %5057 = vst [vmem:[%s10684_s12 + $0xe8] sm:$0xff] %v5017_v40  ;;  %v5359_v17 = vadd.f32 %v5358_v25, %v5357_v21  ;;  %v5470_v28 = vpop.f32.mrb[125].mxu1  ;;  %v5360_v55 = vpop.f32.mrb[126].mxu0 }
 0x5d4   : > { %v5471_v13 = vadd.f32 %v5470_v28, %v5469_v23  ;;  %v5472_v48 = vpop.f32.mrb[126].mxu1  ;;  %v5361_v19 = vpop.f32.mrb[127].mxu0 }
 0x5d5   : > { %v4861_v3 = vadd.f32 %v5359_v17, %v10647_v54  ;;  %v5362_v45 = vadd.f32 %v5361_v19, %v5360_v55  ;;  %v5473_v43 = vpop.f32.mrb[127].mxu1 }
 0x5d6   : > { %v5474_v37 = vadd.f32 %v5473_v43, %v5472_v48 }
 0x5d7   : > { %v5022_v6 = vadd.f32 %v5471_v13, %v4861_v3  ;;  %v4864_v47 = vadd.f32 %v5362_v45, %v10647_v54 }
 0x5d9   : > { %5058 = vst [vmem:[%s10684_s12 + $0xf0] sm:$0xff] %v5022_v6  ;;  %v5025_v15 = vadd.f32 %v5474_v37, %v4864_v47 }
 0x5db   : > { %5059 = vst [vmem:[%s10684_s12 + $0xf8] sm:$0xff] %v5025_v15 }
 0x5dc   : > { %6242 = shalt.err (!%p6239_p2)
}
 0x5dd   : > { %s6243_s6 = scalar_lea.hbm %s10844_s11, 4096  ;;  %s6247_s10 = scalar_lea.hbm %s10897_s5, 8192 }
 0x5de   : > { %p6244_p13 = scmp.ne.s32.totalorder %s10844_s11, %s6243_s6  ;;  %p6248_p4 = scmp.lt.u32.totalorder %s10844_s11, %s10897_s5 }
 0x5df   : > { %p6249_p7 = scmp.lt.u32.totalorder %s6247_s10, %s6243_s6  ;;  %p6251_p11 = scmp.lt.u32.totalorder %s6243_s6, %s10844_s11 }
 0x5e0   : > { %p6245_p6 = pnand %p6244_p13, %p11593_p0 }
 0x5e1   : > { %p6250_p8 = por %p6249_p7, %p6248_p4 }
 0x5e2   : > { %p6246_p10 = pneg %p6245_p6 }
 0x5e3   : > { %p6252_p1 = por %p6251_p11, %p6250_p8 }
 0x5e5   : > { %p6253_p3 = pnand %p6252_p1, %p6246_p10 }
 0x5e7   : > { %6256 = shalt.err (!%p6253_p3)
}
 0x5e8   : > { %s6312_s13 = smov 128   ;;  %s6313_s8 = smov 8  }
 0x5e9   : > { %5485 = dma.vmem_to_hbm [thread:$0]  (%p11593_p0), %s10846_s29, 4096, %s10844_s11, %s5061_s14, %s6312_s13, %s6312_s13, %s6313_s8  }
 0x5ea PF: > { %s5089_s9 = sand.u32 1, %s6287_s18   ;;  %p11594_p5 = scmp.ne.s32.totalorder %s10988_s25, 0 }
 0x5eb   : > { %p11595_p9 = scmp.ge.s32.totalorder %s6299_s21, 2  ;;  %s5090_s22 = scalar_lea.sflag [#allocation4], %s5089_s9 }
 0x5ed   : > { %p5499_p12 = pnand %p11595_p9, %p11594_p5 }
 0x5ef   : > { %6282 = dma.done.wait (!%p5499_p12), %s5090_s22, 4096  }
 0x5f0   : > { %6284 = vsyncadd (!%p5499_p12), %s5090_s22, 4294963200  ;;  %p19_p2 = scmp.ge.s32.totalorder %s6454_s16, 4   ;;  %s11596_s18 = smov %s6291_s19 }
 0x5f1   : > { %s11597_s19 = smov %s6295_s20  ;;  %s11598_s20 = smov %s6463_s27 }
 0x5f2   : > { %s11599_s21 = smov %s6454_s16  ;;  %21 = sbr.rel (!%p19_p2) target bundleno = 6 (0x6), region = 93 }
 0x5f9   :  { %5095 = vsyncpa [#allocation3], 1 }
 0x5fa   :  { %5097 = vsyncpa [#allocation3 + $0x1], 1 }
 0x5fb   :  { %5098 = vsyncpa [#allocation6], 1 }
 0x5fc   :  { %5099 = vsyncpa [#allocation4], 1 }
 0x5fd   :  { %5101 = vsyncpa [#allocation4 + $0x1], 1 }

</bundles_post_ra>
